<compile_context>
chip_gen: v7x
topology: tpu7x:2x2x1
jax: 0.10.0
libtpu: 0.0.40
codegen_flags: <defaults>
</compile_context>

<pallas_src>
import functools

import jax
import jax.numpy as jnp
from jax.experimental import pallas as pl
from jax.experimental.pallas import tpu as pltpu


_DYDX = ((0, 0), (0, 1), (1, 0), (1, 1))


def _upblock_kernel(x_ref, wl_ref, wg_ref, bl_ref, bg_ref, o_ref, *, wp, s_out):
    """Fused upsample2x + conv3x3 + BN + GLU for one batch element.

    x_ref : (S_in, Cin)    flattened, zero-padded ORIGINAL-resolution image
    wl_ref: (16, Cin, Ch)  phase-folded, BN-fused weights, GLU "linear" half
                           index = 4*(dy*2+dx) + (a*2+b)
    wg_ref: (16, Cin, Ch)  phase-folded, BN-fused weights, GLU "gate" half
    bl_ref: (1, Ch)        BN-fused bias, linear half
    bg_ref: (1, Ch)        BN-fused bias, gate half
    o_ref : (4, S_out, Ch) per-phase output rows at padded width
                           (wrapper crops the 2 wrapped columns per row)
    """
    half = wl_ref.shape[-1]
    for p, (dy, dx) in enumerate(_DYDX):                 # 4 output phases
        acc_l = jnp.zeros((s_out, half), jnp.float32)
        acc_g = jnp.zeros((s_out, half), jnp.float32)
        for t, (a, b) in enumerate(_DYDX):               # 2x2 taps per phase
            off = (dy + a) * wp + (dx + b)               # static flat offset
            xt = x_ref[pl.ds(off, s_out), :]
            w_idx = 4 * p + t
            acc_l = acc_l + jnp.dot(xt, wl_ref[w_idx],
                                    preferred_element_type=jnp.float32)
            acc_g = acc_g + jnp.dot(xt, wg_ref[w_idx],
                                    preferred_element_type=jnp.float32)
        lin = acc_l + bl_ref[...]
        gate = acc_g + bg_ref[...]
        # GLU: linear_half * sigmoid(gate_half)
        o_ref[p] = (lin * jax.nn.sigmoid(gate)).astype(o_ref.dtype)


def direct_upsample(x_nchw, conv_w_oihw, bn_gamma, bn_beta, bn_mean, bn_var,
                    *, bn_eps=1e-5, compute_dtype=None):
    """Forward pass of DirectUpsampleModule.

    x_nchw     : (B, C, H, W)
    conv_w_oihw: (Cout, C, 3, 3) with Cout = 2*(C//2)   (conv3x3, bias=False)
    bn_*       : (Cout,) BatchNorm2d parameters / running stats
    Returns (B, C//2, 2H, 2W).
    """
    B, C, H, W = x_nchw.shape
    cout = conv_w_oihw.shape[0]
    assert cout % 2 == 0, "GLU channels must divide 2"
    half = cout // 2

    # --- wrapper-side layout prep (cheap, XLA-fused) -------------------------
    # NHWC; zero pad 1 row top / 2 rows bottom (extra row keeps shifted flat
    # slices in-bounds) and 1 col left/right; flatten spatial dims.
    x = jnp.transpose(x_nchw, (0, 2, 3, 1))                     # NHWC
    x = jnp.pad(x, ((0, 0), (1, 2), (1, 1), (0, 0)))
    Hp, Wp = H + 3, W + 2
    s_in, s_out = Hp * Wp, H * Wp
    x_flat = x.reshape(B, s_in, C)

    # Fold BatchNorm (inference mode) into conv weights / bias.
    scale = bn_gamma / jnp.sqrt(bn_var + bn_eps)                # (Cout,)
    shift = bn_beta - bn_mean * scale                           # (Cout,)
    w_hwio = jnp.transpose(conv_w_oihw, (2, 3, 1, 0)) * scale   # (3,3,Cin,Cout)

    # Fold the nearest-2x upsample into the conv: output phase (dy,dx) is a
    # 2x2 conv on the original image; fold[d, a, k] = 1 iff 3x3 tap k hits
    # original-pixel offset a for phase d (rows and cols are symmetric).
    fold = jnp.asarray([[[1., 0., 0.], [0., 1., 1.]],
                        [[1., 1., 0.], [0., 0., 1.]]], dtype=w_hwio.dtype)
    w_phase = jnp.einsum('pak,qbl,klio->pqabio', fold, fold, w_hwio)
    w_phase = w_phase.reshape(16, C, cout)    # [4*(dy*2+dx) + (a*2+b), C, Cout]

    # Pre-split for GLU so the kernel never lane-slices matmul outputs.
    w_lin, w_gate = w_phase[..., :half], w_phase[..., half:]
    b_lin = shift[:half].reshape(1, half).astype(jnp.float32)
    b_gate = shift[half:].reshape(1, half).astype(jnp.float32)

    if compute_dtype is not None:                                # bf16 on v6e/v7x
        x_flat = x_flat.astype(compute_dtype)
        w_lin = w_lin.astype(compute_dtype)
        w_gate = w_gate.astype(compute_dtype)

    kernel = functools.partial(_upblock_kernel, wp=Wp, s_out=s_out)

    out = pl.pallas_call(
        kernel,
        out_shape=jax.ShapeDtypeStruct((B, 4, s_out, half), x_nchw.dtype),
        grid=(B,),
        in_specs=[
            pl.BlockSpec((None, s_in, C), lambda b: (b, 0, 0)),     # pipelined
            pl.BlockSpec((16, C, half), lambda b: (0, 0, 0)),       # resident
            pl.BlockSpec((16, C, half), lambda b: (0, 0, 0)),       # resident
            pl.BlockSpec((1, half), lambda b: (0, 0)),              # resident
            pl.BlockSpec((1, half), lambda b: (0, 0)),              # resident
        ],
        out_specs=pl.BlockSpec((None, 4, s_out, half), lambda b: (b, 0, 0, 0)),
        compiler_params=pltpu.CompilerParams(
            dimension_semantics=("parallel",),                      # megacore/v7x
        ),
    )(x_flat, w_lin, w_gate, b_lin, b_gate)

    # (B, dy, dx, H, Wp, half): crop the 2 wrapped columns, interleave the
    # 2x2 phases back into (2H, 2W), and return NCHW.
    y = out.reshape(B, 2, 2, H, Wp, half)[:, :, :, :, :W, :]
    y = jnp.transpose(y, (0, 5, 3, 1, 4, 2)).reshape(B, half, 2 * H, 2 * W)
    return y


def _reference(x_nchw, conv_w_oihw, gamma, beta, mean, var, eps=1e-5):
    """Pure-JAX reference: Upsample(2, nearest) -> conv3x3 -> BN(eval) -> GLU."""
    x = jnp.repeat(jnp.repeat(x_nchw, 2, axis=2), 2, axis=3)
    y = jax.lax.conv_general_dilated(
        x, conv_w_oihw, window_strides=(1, 1), padding=((1, 1), (1, 1)),
        dimension_numbers=("NCHW", "OIHW", "NCHW"))
    scale = gamma / jnp.sqrt(var + eps)
    y = y * scale[None, :, None, None] + (beta - mean * scale)[None, :, None, None]
    c = y.shape[1] // 2
    return y[:, :c] * jax.nn.sigmoid(y[:, c:])


if __name__ == "__main__":
    B, C, H, W = 2, 8, 16, 16          # in_channels=8 -> out_planes=4 -> out chans 4
    cout = 2 * (C // 2)

    key = jax.random.PRNGKey(0)
    k_x, k_w, k_g, k_b, k_m, k_v = jax.random.split(key, 6)

    x = jax.random.normal(k_x, (B, C, H, W), dtype=jnp.float32)
    conv_w = jax.random.normal(k_w, (cout, C, 3, 3), dtype=jnp.float32) * 0.1
    gamma = 1.0 + 0.1 * jax.random.normal(k_g, (cout,), dtype=jnp.float32)
    beta = 0.1 * jax.random.normal(k_b, (cout,), dtype=jnp.float32)
    mean = 0.1 * jax.random.normal(k_m, (cout,), dtype=jnp.float32)
    var = 1.0 + 0.1 * jnp.abs(jax.random.normal(k_v, (cout,), dtype=jnp.float32))

    y = direct_upsample(x, conv_w, gamma, beta, mean, var)
    jax.block_until_ready(y)

    y_ref = _reference(x, conv_w, gamma, beta, mean, var)
    assert y.shape == (B, C // 2, 2 * H, 2 * W), y.shape
    assert jnp.allclose(y, y_ref, atol=1e-4, rtol=1e-4), float(
        jnp.max(jnp.abs(y - y_ref)))

    print("KERNEL_OK")
</pallas_src>

<mosaic_0001>
module attributes {stable_mosaic.version = 11 : i64} {
  func.func @_upblock_kernel(%arg0: i32, %arg1: memref<1x342x8xf32, #tpu.memory_space<vmem>>, %arg2: memref<16x8x4xf32, #tpu.memory_space<vmem>>, %arg3: memref<16x8x4xf32, #tpu.memory_space<vmem>>, %arg4: memref<1x4xf32, #tpu.memory_space<vmem>>, %arg5: memref<1x4xf32, #tpu.memory_space<vmem>>, %arg6: memref<1x4x288x4xf32, #tpu.memory_space<vmem>>) attributes {dimension_semantics = [#tpu.dimension_semantics<parallel>], iteration_bounds = array<i64: 2>, scalar_prefetch = 0 : i64, scratch_operands = 0 : i64, tpu.core_type = #tpu.core_type<tc>, window_params = [{transform_indices = @transform_0, window_bounds = array<i64: 1, 342, 8>}, {pipeline_mode = #tpu.pipeline_mode<synchronous>, transform_indices = @transform_1, window_bounds = array<i64: 16, 8, 4>}, {pipeline_mode = #tpu.pipeline_mode<synchronous>, transform_indices = @transform_2, window_bounds = array<i64: 16, 8, 4>}, {pipeline_mode = #tpu.pipeline_mode<synchronous>, transform_indices = @transform_3, window_bounds = array<i64: 1, 4>}, {pipeline_mode = #tpu.pipeline_mode<synchronous>, transform_indices = @transform_4, window_bounds = array<i64: 1, 4>}, {transform_indices = @transform_5, window_bounds = array<i64: 1, 4, 288, 4>}]} {
    %cst = arith.constant 0.000000e+00 : f32
    %0 = vector.broadcast %cst : f32 to vector<288x4xf32>
    %cst_0 = arith.constant 0.000000e+00 : f32
    %1 = vector.broadcast %cst_0 : f32 to vector<288x4xf32>
    %c0 = arith.constant 0 : index
    %c0_1 = arith.constant 0 : index
    %c0_2 = arith.constant 0 : index
    %2 = vector.load %arg1[%c0, %c0_1, %c0_2] : memref<1x342x8xf32, #tpu.memory_space<vmem>>, vector<1x288x8xf32>
    %3 = vector.shape_cast %2 : vector<1x288x8xf32> to vector<288x8xf32>
    %c0_3 = arith.constant 0 : index
    %c0_4 = arith.constant 0 : index
    %c0_5 = arith.constant 0 : index
    %4 = vector.load %arg2[%c0_3, %c0_4, %c0_5] : memref<16x8x4xf32, #tpu.memory_space<vmem>>, vector<1x8x4xf32>
    %5 = vector.shape_cast %4 : vector<1x8x4xf32> to vector<8x4xf32>
    %cst_6 = arith.constant dense<0.000000e+00> : vector<288x4xf32>
    %6 = tpu.matmul %3, %5, %cst_6 {dimension_numbers = #tpu.dot_dimension_numbers<[1], [0], [0], [1], [0, 0, 1, 1], [], []>} : vector<288x8xf32>, vector<8x4xf32>, vector<288x4xf32> -> vector<288x4xf32>
    %7 = arith.addf %0, %6 : vector<288x4xf32>
    %c0_7 = arith.constant 0 : index
    %c0_8 = arith.constant 0 : index
    %c0_9 = arith.constant 0 : index
    %8 = vector.load %arg3[%c0_7, %c0_8, %c0_9] : memref<16x8x4xf32, #tpu.memory_space<vmem>>, vector<1x8x4xf32>
    %9 = vector.shape_cast %8 : vector<1x8x4xf32> to vector<8x4xf32>
    %cst_10 = arith.constant dense<0.000000e+00> : vector<288x4xf32>
    %10 = tpu.matmul %3, %9, %cst_10 {dimension_numbers = #tpu.dot_dimension_numbers<[1], [0], [0], [1], [0, 0, 1, 1], [], []>} : vector<288x8xf32>, vector<8x4xf32>, vector<288x4xf32> -> vector<288x4xf32>
    %11 = arith.addf %1, %10 : vector<288x4xf32>
    %c0_11 = arith.constant 0 : index
    %c1 = arith.constant 1 : index
    %c0_12 = arith.constant 0 : index
    %12 = vector.load %arg1[%c0_11, %c1, %c0_12] : memref<1x342x8xf32, #tpu.memory_space<vmem>>, vector<1x288x8xf32>
    %13 = vector.shape_cast %12 : vector<1x288x8xf32> to vector<288x8xf32>
    %c1_13 = arith.constant 1 : index
    %c0_14 = arith.constant 0 : index
    %c0_15 = arith.constant 0 : index
    %14 = vector.load %arg2[%c1_13, %c0_14, %c0_15] : memref<16x8x4xf32, #tpu.memory_space<vmem>>, vector<1x8x4xf32>
    %15 = vector.shape_cast %14 : vector<1x8x4xf32> to vector<8x4xf32>
    %cst_16 = arith.constant dense<0.000000e+00> : vector<288x4xf32>
    %16 = tpu.matmul %13, %15, %cst_16 {dimension_numbers = #tpu.dot_dimension_numbers<[1], [0], [0], [1], [0, 0, 1, 1], [], []>} : vector<288x8xf32>, vector<8x4xf32>, vector<288x4xf32> -> vector<288x4xf32>
    %17 = arith.addf %7, %16 : vector<288x4xf32>
    %c1_17 = arith.constant 1 : index
    %c0_18 = arith.constant 0 : index
    %c0_19 = arith.constant 0 : index
    %18 = vector.load %arg3[%c1_17, %c0_18, %c0_19] : memref<16x8x4xf32, #tpu.memory_space<vmem>>, vector<1x8x4xf32>
    %19 = vector.shape_cast %18 : vector<1x8x4xf32> to vector<8x4xf32>
    %cst_20 = arith.constant dense<0.000000e+00> : vector<288x4xf32>
    %20 = tpu.matmul %13, %19, %cst_20 {dimension_numbers = #tpu.dot_dimension_numbers<[1], [0], [0], [1], [0, 0, 1, 1], [], []>} : vector<288x8xf32>, vector<8x4xf32>, vector<288x4xf32> -> vector<288x4xf32>
    %21 = arith.addf %11, %20 : vector<288x4xf32>
    %c0_21 = arith.constant 0 : index
    %c18 = arith.constant 18 : index
    %c0_22 = arith.constant 0 : index
    %22 = vector.load %arg1[%c0_21, %c18, %c0_22] : memref<1x342x8xf32, #tpu.memory_space<vmem>>, vector<1x288x8xf32>
    %23 = vector.shape_cast %22 : vector<1x288x8xf32> to vector<288x8xf32>
    %c2 = arith.constant 2 : index
    %c0_23 = arith.constant 0 : index
    %c0_24 = arith.constant 0 : index
    %24 = vector.load %arg2[%c2, %c0_23, %c0_24] : memref<16x8x4xf32, #tpu.memory_space<vmem>>, vector<1x8x4xf32>
    %25 = vector.shape_cast %24 : vector<1x8x4xf32> to vector<8x4xf32>
    %cst_25 = arith.constant dense<0.000000e+00> : vector<288x4xf32>
    %26 = tpu.matmul %23, %25, %cst_25 {dimension_numbers = #tpu.dot_dimension_numbers<[1], [0], [0], [1], [0, 0, 1, 1], [], []>} : vector<288x8xf32>, vector<8x4xf32>, vector<288x4xf32> -> vector<288x4xf32>
    %27 = arith.addf %17, %26 : vector<288x4xf32>
    %c2_26 = arith.constant 2 : index
    %c0_27 = arith.constant 0 : index
    %c0_28 = arith.constant 0 : index
    %28 = vector.load %arg3[%c2_26, %c0_27, %c0_28] : memref<16x8x4xf32, #tpu.memory_space<vmem>>, vector<1x8x4xf32>
    %29 = vector.shape_cast %28 : vector<1x8x4xf32> to vector<8x4xf32>
    %cst_29 = arith.constant dense<0.000000e+00> : vector<288x4xf32>
    %30 = tpu.matmul %23, %29, %cst_29 {dimension_numbers = #tpu.dot_dimension_numbers<[1], [0], [0], [1], [0, 0, 1, 1], [], []>} : vector<288x8xf32>, vector<8x4xf32>, vector<288x4xf32> -> vector<288x4xf32>
    %31 = arith.addf %21, %30 : vector<288x4xf32>
    %c0_30 = arith.constant 0 : index
    %c19 = arith.constant 19 : index
    %c0_31 = arith.constant 0 : index
    %32 = vector.load %arg1[%c0_30, %c19, %c0_31] : memref<1x342x8xf32, #tpu.memory_space<vmem>>, vector<1x288x8xf32>
    %33 = vector.shape_cast %32 : vector<1x288x8xf32> to vector<288x8xf32>
    %c3 = arith.constant 3 : index
    %c0_32 = arith.constant 0 : index
    %c0_33 = arith.constant 0 : index
    %34 = vector.load %arg2[%c3, %c0_32, %c0_33] : memref<16x8x4xf32, #tpu.memory_space<vmem>>, vector<1x8x4xf32>
    %35 = vector.shape_cast %34 : vector<1x8x4xf32> to vector<8x4xf32>
    %cst_34 = arith.constant dense<0.000000e+00> : vector<288x4xf32>
    %36 = tpu.matmul %33, %35, %cst_34 {dimension_numbers = #tpu.dot_dimension_numbers<[1], [0], [0], [1], [0, 0, 1, 1], [], []>} : vector<288x8xf32>, vector<8x4xf32>, vector<288x4xf32> -> vector<288x4xf32>
    %37 = arith.addf %27, %36 : vector<288x4xf32>
    %c3_35 = arith.constant 3 : index
    %c0_36 = arith.constant 0 : index
    %c0_37 = arith.constant 0 : index
    %38 = vector.load %arg3[%c3_35, %c0_36, %c0_37] : memref<16x8x4xf32, #tpu.memory_space<vmem>>, vector<1x8x4xf32>
    %39 = vector.shape_cast %38 : vector<1x8x4xf32> to vector<8x4xf32>
    %cst_38 = arith.constant dense<0.000000e+00> : vector<288x4xf32>
    %40 = tpu.matmul %33, %39, %cst_38 {dimension_numbers = #tpu.dot_dimension_numbers<[1], [0], [0], [1], [0, 0, 1, 1], [], []>} : vector<288x8xf32>, vector<8x4xf32>, vector<288x4xf32> -> vector<288x4xf32>
    %41 = arith.addf %31, %40 : vector<288x4xf32>
    %c0_39 = arith.constant 0 : index
    %c0_40 = arith.constant 0 : index
    %42 = vector.load %arg4[%c0_39, %c0_40] : memref<1x4xf32, #tpu.memory_space<vmem>>, vector<1x4xf32>
    %43 = vector.broadcast %42 : vector<1x4xf32> to vector<288x4xf32>
    %44 = arith.addf %37, %43 : vector<288x4xf32>
    %c0_41 = arith.constant 0 : index
    %c0_42 = arith.constant 0 : index
    %45 = vector.load %arg5[%c0_41, %c0_42] : memref<1x4xf32, #tpu.memory_space<vmem>>, vector<1x4xf32>
    %46 = vector.broadcast %45 : vector<1x4xf32> to vector<288x4xf32>
    %47 = arith.addf %41, %46 : vector<288x4xf32>
    %48 = arith.negf %47 : vector<288x4xf32>
    %49 = math.exp %48 : vector<288x4xf32>
    %cst_43 = arith.constant 1.000000e+00 : f32
    %50 = vector.broadcast %cst_43 : f32 to vector<288x4xf32>
    %51 = arith.addf %50, %49 : vector<288x4xf32>
    %52 = arith.divf %50, %51 : vector<288x4xf32>
    %53 = arith.mulf %44, %52 : vector<288x4xf32>
    %c0_44 = arith.constant 0 : index
    %c0_45 = arith.constant 0 : index
    %c0_46 = arith.constant 0 : index
    %c0_47 = arith.constant 0 : index
    %54 = vector.load %arg6[%c0_44, %c0_45, %c0_46, %c0_47] : memref<1x4x288x4xf32, #tpu.memory_space<vmem>>, vector<1x1x288x4xf32>
    %55 = vector.shape_cast %54 : vector<1x1x288x4xf32> to vector<288x4xf32>
    %56 = vector.shape_cast %53 : vector<288x4xf32> to vector<1x1x288x4xf32>
    tpu.vector_store %arg6[%c0_44, %c0_45, %c0_46, %c0_47], %56 {strides = array<i32>} : memref<1x4x288x4xf32, #tpu.memory_space<vmem>>, vector<1x1x288x4xf32>,
    %cst_48 = arith.constant 0.000000e+00 : f32
    %57 = vector.broadcast %cst_48 : f32 to vector<288x4xf32>
    %cst_49 = arith.constant 0.000000e+00 : f32
    %58 = vector.broadcast %cst_49 : f32 to vector<288x4xf32>
    %c0_50 = arith.constant 0 : index
    %c1_51 = arith.constant 1 : index
    %c0_52 = arith.constant 0 : index
    %59 = vector.load %arg1[%c0_50, %c1_51, %c0_52] : memref<1x342x8xf32, #tpu.memory_space<vmem>>, vector<1x288x8xf32>
    %60 = vector.shape_cast %59 : vector<1x288x8xf32> to vector<288x8xf32>
    %c4 = arith.constant 4 : index
    %c0_53 = arith.constant 0 : index
    %c0_54 = arith.constant 0 : index
    %61 = vector.load %arg2[%c4, %c0_53, %c0_54] : memref<16x8x4xf32, #tpu.memory_space<vmem>>, vector<1x8x4xf32>
    %62 = vector.shape_cast %61 : vector<1x8x4xf32> to vector<8x4xf32>
    %cst_55 = arith.constant dense<0.000000e+00> : vector<288x4xf32>
    %63 = tpu.matmul %60, %62, %cst_55 {dimension_numbers = #tpu.dot_dimension_numbers<[1], [0], [0], [1], [0, 0, 1, 1], [], []>} : vector<288x8xf32>, vector<8x4xf32>, vector<288x4xf32> -> vector<288x4xf32>
    %64 = arith.addf %57, %63 : vector<288x4xf32>
    %c4_56 = arith.constant 4 : index
    %c0_57 = arith.constant 0 : index
    %c0_58 = arith.constant 0 : index
    %65 = vector.load %arg3[%c4_56, %c0_57, %c0_58] : memref<16x8x4xf32, #tpu.memory_space<vmem>>, vector<1x8x4xf32>
    %66 = vector.shape_cast %65 : vector<1x8x4xf32> to vector<8x4xf32>
    %cst_59 = arith.constant dense<0.000000e+00> : vector<288x4xf32>
    %67 = tpu.matmul %60, %66, %cst_59 {dimension_numbers = #tpu.dot_dimension_numbers<[1], [0], [0], [1], [0, 0, 1, 1], [], []>} : vector<288x8xf32>, vector<8x4xf32>, vector<288x4xf32> -> vector<288x4xf32>
    %68 = arith.addf %58, %67 : vector<288x4xf32>
    %c0_60 = arith.constant 0 : index
    %c2_61 = arith.constant 2 : index
    %c0_62 = arith.constant 0 : index
    %69 = vector.load %arg1[%c0_60, %c2_61, %c0_62] : memref<1x342x8xf32, #tpu.memory_space<vmem>>, vector<1x288x8xf32>
    %70 = vector.shape_cast %69 : vector<1x288x8xf32> to vector<288x8xf32>
    %c5 = arith.constant 5 : index
    %c0_63 = arith.constant 0 : index
    %c0_64 = arith.constant 0 : index
    %71 = vector.load %arg2[%c5, %c0_63, %c0_64] : memref<16x8x4xf32, #tpu.memory_space<vmem>>, vector<1x8x4xf32>
    %72 = vector.shape_cast %71 : vector<1x8x4xf32> to vector<8x4xf32>
    %cst_65 = arith.constant dense<0.000000e+00> : vector<288x4xf32>
    %73 = tpu.matmul %70, %72, %cst_65 {dimension_numbers = #tpu.dot_dimension_numbers<[1], [0], [0], [1], [0, 0, 1, 1], [], []>} : vector<288x8xf32>, vector<8x4xf32>, vector<288x4xf32> -> vector<288x4xf32>
    %74 = arith.addf %64, %73 : vector<288x4xf32>
    %c5_66 = arith.constant 5 : index
    %c0_67 = arith.constant 0 : index
    %c0_68 = arith.constant 0 : index
    %75 = vector.load %arg3[%c5_66, %c0_67, %c0_68] : memref<16x8x4xf32, #tpu.memory_space<vmem>>, vector<1x8x4xf32>
    %76 = vector.shape_cast %75 : vector<1x8x4xf32> to vector<8x4xf32>
    %cst_69 = arith.constant dense<0.000000e+00> : vector<288x4xf32>
    %77 = tpu.matmul %70, %76, %cst_69 {dimension_numbers = #tpu.dot_dimension_numbers<[1], [0], [0], [1], [0, 0, 1, 1], [], []>} : vector<288x8xf32>, vector<8x4xf32>, vector<288x4xf32> -> vector<288x4xf32>
    %78 = arith.addf %68, %77 : vector<288x4xf32>
    %c0_70 = arith.constant 0 : index
    %c19_71 = arith.constant 19 : index
    %c0_72 = arith.constant 0 : index
    %79 = vector.load %arg1[%c0_70, %c19_71, %c0_72] : memref<1x342x8xf32, #tpu.memory_space<vmem>>, vector<1x288x8xf32>
    %80 = vector.shape_cast %79 : vector<1x288x8xf32> to vector<288x8xf32>
    %c6 = arith.constant 6 : index
    %c0_73 = arith.constant 0 : index
    %c0_74 = arith.constant 0 : index
    %81 = vector.load %arg2[%c6, %c0_73, %c0_74] : memref<16x8x4xf32, #tpu.memory_space<vmem>>, vector<1x8x4xf32>
    %82 = vector.shape_cast %81 : vector<1x8x4xf32> to vector<8x4xf32>
    %cst_75 = arith.constant dense<0.000000e+00> : vector<288x4xf32>
    %83 = tpu.matmul %80, %82, %cst_75 {dimension_numbers = #tpu.dot_dimension_numbers<[1], [0], [0], [1], [0, 0, 1, 1], [], []>} : vector<288x8xf32>, vector<8x4xf32>, vector<288x4xf32> -> vector<288x4xf32>
    %84 = arith.addf %74, %83 : vector<288x4xf32>
    %c6_76 = arith.constant 6 : index
    %c0_77 = arith.constant 0 : index
    %c0_78 = arith.constant 0 : index
    %85 = vector.load %arg3[%c6_76, %c0_77, %c0_78] : memref<16x8x4xf32, #tpu.memory_space<vmem>>, vector<1x8x4xf32>
    %86 = vector.shape_cast %85 : vector<1x8x4xf32> to vector<8x4xf32>
    %cst_79 = arith.constant dense<0.000000e+00> : vector<288x4xf32>
    %87 = tpu.matmul %80, %86, %cst_79 {dimension_numbers = #tpu.dot_dimension_numbers<[1], [0], [0], [1], [0, 0, 1, 1], [], []>} : vector<288x8xf32>, vector<8x4xf32>, vector<288x4xf32> -> vector<288x4xf32>
    %88 = arith.addf %78, %87 : vector<288x4xf32>
    %c0_80 = arith.constant 0 : index
    %c20 = arith.constant 20 : index
    %c0_81 = arith.constant 0 : index
    %89 = vector.load %arg1[%c0_80, %c20, %c0_81] : memref<1x342x8xf32, #tpu.memory_space<vmem>>, vector<1x288x8xf32>
    %90 = vector.shape_cast %89 : vector<1x288x8xf32> to vector<288x8xf32>
    %c7 = arith.constant 7 : index
    %c0_82 = arith.constant 0 : index
    %c0_83 = arith.constant 0 : index
    %91 = vector.load %arg2[%c7, %c0_82, %c0_83] : memref<16x8x4xf32, #tpu.memory_space<vmem>>, vector<1x8x4xf32>
    %92 = vector.shape_cast %91 : vector<1x8x4xf32> to vector<8x4xf32>
    %cst_84 = arith.constant dense<0.000000e+00> : vector<288x4xf32>
    %93 = tpu.matmul %90, %92, %cst_84 {dimension_numbers = #tpu.dot_dimension_numbers<[1], [0], [0], [1], [0, 0, 1, 1], [], []>} : vector<288x8xf32>, vector<8x4xf32>, vector<288x4xf32> -> vector<288x4xf32>
    %94 = arith.addf %84, %93 : vector<288x4xf32>
    %c7_85 = arith.constant 7 : index
    %c0_86 = arith.constant 0 : index
    %c0_87 = arith.constant 0 : index
    %95 = vector.load %arg3[%c7_85, %c0_86, %c0_87] : memref<16x8x4xf32, #tpu.memory_space<vmem>>, vector<1x8x4xf32>
    %96 = vector.shape_cast %95 : vector<1x8x4xf32> to vector<8x4xf32>
    %cst_88 = arith.constant dense<0.000000e+00> : vector<288x4xf32>
    %97 = tpu.matmul %90, %96, %cst_88 {dimension_numbers = #tpu.dot_dimension_numbers<[1], [0], [0], [1], [0, 0, 1, 1], [], []>} : vector<288x8xf32>, vector<8x4xf32>, vector<288x4xf32> -> vector<288x4xf32>
    %98 = arith.addf %88, %97 : vector<288x4xf32>
    %c0_89 = arith.constant 0 : index
    %c0_90 = arith.constant 0 : index
    %99 = vector.load %arg4[%c0_89, %c0_90] : memref<1x4xf32, #tpu.memory_space<vmem>>, vector<1x4xf32>
    %100 = vector.broadcast %99 : vector<1x4xf32> to vector<288x4xf32>
    %101 = arith.addf %94, %100 : vector<288x4xf32>
    %c0_91 = arith.constant 0 : index
    %c0_92 = arith.constant 0 : index
    %102 = vector.load %arg5[%c0_91, %c0_92] : memref<1x4xf32, #tpu.memory_space<vmem>>, vector<1x4xf32>
    %103 = vector.broadcast %102 : vector<1x4xf32> to vector<288x4xf32>
    %104 = arith.addf %98, %103 : vector<288x4xf32>
    %105 = arith.negf %104 : vector<288x4xf32>
    %106 = math.exp %105 : vector<288x4xf32>
    %cst_93 = arith.constant 1.000000e+00 : f32
    %107 = vector.broadcast %cst_93 : f32 to vector<288x4xf32>
    %108 = arith.addf %107, %106 : vector<288x4xf32>
    %109 = arith.divf %107, %108 : vector<288x4xf32>
    %110 = arith.mulf %101, %109 : vector<288x4xf32>
    %c0_94 = arith.constant 0 : index
    %c1_95 = arith.constant 1 : index
    %c0_96 = arith.constant 0 : index
    %c0_97 = arith.constant 0 : index
    %111 = vector.load %arg6[%c0_94, %c1_95, %c0_96, %c0_97] : memref<1x4x288x4xf32, #tpu.memory_space<vmem>>, vector<1x1x288x4xf32>
    %112 = vector.shape_cast %111 : vector<1x1x288x4xf32> to vector<288x4xf32>
    %113 = vector.shape_cast %110 : vector<288x4xf32> to vector<1x1x288x4xf32>
    tpu.vector_store %arg6[%c0_94, %c1_95, %c0_96, %c0_97], %113 {strides = array<i32>} : memref<1x4x288x4xf32, #tpu.memory_space<vmem>>, vector<1x1x288x4xf32>,
    %cst_98 = arith.constant 0.000000e+00 : f32
    %114 = vector.broadcast %cst_98 : f32 to vector<288x4xf32>
    %cst_99 = arith.constant 0.000000e+00 : f32
    %115 = vector.broadcast %cst_99 : f32 to vector<288x4xf32>
    %c0_100 = arith.constant 0 : index
    %c18_101 = arith.constant 18 : index
    %c0_102 = arith.constant 0 : index
    %116 = vector.load %arg1[%c0_100, %c18_101, %c0_102] : memref<1x342x8xf32, #tpu.memory_space<vmem>>, vector<1x288x8xf32>
    %117 = vector.shape_cast %116 : vector<1x288x8xf32> to vector<288x8xf32>
    %c8 = arith.constant 8 : index
    %c0_103 = arith.constant 0 : index
    %c0_104 = arith.constant 0 : index
    %118 = vector.load %arg2[%c8, %c0_103, %c0_104] : memref<16x8x4xf32, #tpu.memory_space<vmem>>, vector<1x8x4xf32>
    %119 = vector.shape_cast %118 : vector<1x8x4xf32> to vector<8x4xf32>
    %cst_105 = arith.constant dense<0.000000e+00> : vector<288x4xf32>
    %120 = tpu.matmul %117, %119, %cst_105 {dimension_numbers = #tpu.dot_dimension_numbers<[1], [0], [0], [1], [0, 0, 1, 1], [], []>} : vector<288x8xf32>, vector<8x4xf32>, vector<288x4xf32> -> vector<288x4xf32>
    %121 = arith.addf %114, %120 : vector<288x4xf32>
    %c8_106 = arith.constant 8 : index
    %c0_107 = arith.constant 0 : index
    %c0_108 = arith.constant 0 : index
    %122 = vector.load %arg3[%c8_106, %c0_107, %c0_108] : memref<16x8x4xf32, #tpu.memory_space<vmem>>, vector<1x8x4xf32>
    %123 = vector.shape_cast %122 : vector<1x8x4xf32> to vector<8x4xf32>
    %cst_109 = arith.constant dense<0.000000e+00> : vector<288x4xf32>
    %124 = tpu.matmul %117, %123, %cst_109 {dimension_numbers = #tpu.dot_dimension_numbers<[1], [0], [0], [1], [0, 0, 1, 1], [], []>} : vector<288x8xf32>, vector<8x4xf32>, vector<288x4xf32> -> vector<288x4xf32>
    %125 = arith.addf %115, %124 : vector<288x4xf32>
    %c0_110 = arith.constant 0 : index
    %c19_111 = arith.constant 19 : index
    %c0_112 = arith.constant 0 : index
    %126 = vector.load %arg1[%c0_110, %c19_111, %c0_112] : memref<1x342x8xf32, #tpu.memory_space<vmem>>, vector<1x288x8xf32>
    %127 = vector.shape_cast %126 : vector<1x288x8xf32> to vector<288x8xf32>
    %c9 = arith.constant 9 : index
    %c0_113 = arith.constant 0 : index
    %c0_114 = arith.constant 0 : index
    %128 = vector.load %arg2[%c9, %c0_113, %c0_114] : memref<16x8x4xf32, #tpu.memory_space<vmem>>, vector<1x8x4xf32>
    %129 = vector.shape_cast %128 : vector<1x8x4xf32> to vector<8x4xf32>
    %cst_115 = arith.constant dense<0.000000e+00> : vector<288x4xf32>
    %130 = tpu.matmul %127, %129, %cst_115 {dimension_numbers = #tpu.dot_dimension_numbers<[1], [0], [0], [1], [0, 0, 1, 1], [], []>} : vector<288x8xf32>, vector<8x4xf32>, vector<288x4xf32> -> vector<288x4xf32>
    %131 = arith.addf %121, %130 : vector<288x4xf32>
    %c9_116 = arith.constant 9 : index
    %c0_117 = arith.constant 0 : index
    %c0_118 = arith.constant 0 : index
    %132 = vector.load %arg3[%c9_116, %c0_117, %c0_118] : memref<16x8x4xf32, #tpu.memory_space<vmem>>, vector<1x8x4xf32>
    %133 = vector.shape_cast %132 : vector<1x8x4xf32> to vector<8x4xf32>
    %cst_119 = arith.constant dense<0.000000e+00> : vector<288x4xf32>
    %134 = tpu.matmul %127, %133, %cst_119 {dimension_numbers = #tpu.dot_dimension_numbers<[1], [0], [0], [1], [0, 0, 1, 1], [], []>} : vector<288x8xf32>, vector<8x4xf32>, vector<288x4xf32> -> vector<288x4xf32>
    %135 = arith.addf %125, %134 : vector<288x4xf32>
    %c0_120 = arith.constant 0 : index
    %c36 = arith.constant 36 : index
    %c0_121 = arith.constant 0 : index
    %136 = vector.load %arg1[%c0_120, %c36, %c0_121] : memref<1x342x8xf32, #tpu.memory_space<vmem>>, vector<1x288x8xf32>
    %137 = vector.shape_cast %136 : vector<1x288x8xf32> to vector<288x8xf32>
    %c10 = arith.constant 10 : index
    %c0_122 = arith.constant 0 : index
    %c0_123 = arith.constant 0 : index
    %138 = vector.load %arg2[%c10, %c0_122, %c0_123] : memref<16x8x4xf32, #tpu.memory_space<vmem>>, vector<1x8x4xf32>
    %139 = vector.shape_cast %138 : vector<1x8x4xf32> to vector<8x4xf32>
    %cst_124 = arith.constant dense<0.000000e+00> : vector<288x4xf32>
    %140 = tpu.matmul %137, %139, %cst_124 {dimension_numbers = #tpu.dot_dimension_numbers<[1], [0], [0], [1], [0, 0, 1, 1], [], []>} : vector<288x8xf32>, vector<8x4xf32>, vector<288x4xf32> -> vector<288x4xf32>
    %141 = arith.addf %131, %140 : vector<288x4xf32>
    %c10_125 = arith.constant 10 : index
    %c0_126 = arith.constant 0 : index
    %c0_127 = arith.constant 0 : index
    %142 = vector.load %arg3[%c10_125, %c0_126, %c0_127] : memref<16x8x4xf32, #tpu.memory_space<vmem>>, vector<1x8x4xf32>
    %143 = vector.shape_cast %142 : vector<1x8x4xf32> to vector<8x4xf32>
    %cst_128 = arith.constant dense<0.000000e+00> : vector<288x4xf32>
    %144 = tpu.matmul %137, %143, %cst_128 {dimension_numbers = #tpu.dot_dimension_numbers<[1], [0], [0], [1], [0, 0, 1, 1], [], []>} : vector<288x8xf32>, vector<8x4xf32>, vector<288x4xf32> -> vector<288x4xf32>
    %145 = arith.addf %135, %144 : vector<288x4xf32>
    %c0_129 = arith.constant 0 : index
    %c37 = arith.constant 37 : index
    %c0_130 = arith.constant 0 : index
    %146 = vector.load %arg1[%c0_129, %c37, %c0_130] : memref<1x342x8xf32, #tpu.memory_space<vmem>>, vector<1x288x8xf32>
    %147 = vector.shape_cast %146 : vector<1x288x8xf32> to vector<288x8xf32>
    %c11 = arith.constant 11 : index
    %c0_131 = arith.constant 0 : index
    %c0_132 = arith.constant 0 : index
    %148 = vector.load %arg2[%c11, %c0_131, %c0_132] : memref<16x8x4xf32, #tpu.memory_space<vmem>>, vector<1x8x4xf32>
    %149 = vector.shape_cast %148 : vector<1x8x4xf32> to vector<8x4xf32>
    %cst_133 = arith.constant dense<0.000000e+00> : vector<288x4xf32>
    %150 = tpu.matmul %147, %149, %cst_133 {dimension_numbers = #tpu.dot_dimension_numbers<[1], [0], [0], [1], [0, 0, 1, 1], [], []>} : vector<288x8xf32>, vector<8x4xf32>, vector<288x4xf32> -> vector<288x4xf32>
    %151 = arith.addf %141, %150 : vector<288x4xf32>
    %c11_134 = arith.constant 11 : index
    %c0_135 = arith.constant 0 : index
    %c0_136 = arith.constant 0 : index
    %152 = vector.load %arg3[%c11_134, %c0_135, %c0_136] : memref<16x8x4xf32, #tpu.memory_space<vmem>>, vector<1x8x4xf32>
    %153 = vector.shape_cast %152 : vector<1x8x4xf32> to vector<8x4xf32>
    %cst_137 = arith.constant dense<0.000000e+00> : vector<288x4xf32>
    %154 = tpu.matmul %147, %153, %cst_137 {dimension_numbers = #tpu.dot_dimension_numbers<[1], [0], [0], [1], [0, 0, 1, 1], [], []>} : vector<288x8xf32>, vector<8x4xf32>, vector<288x4xf32> -> vector<288x4xf32>
    %155 = arith.addf %145, %154 : vector<288x4xf32>
    %c0_138 = arith.constant 0 : index
    %c0_139 = arith.constant 0 : index
    %156 = vector.load %arg4[%c0_138, %c0_139] : memref<1x4xf32, #tpu.memory_space<vmem>>, vector<1x4xf32>
    %157 = vector.broadcast %156 : vector<1x4xf32> to vector<288x4xf32>
    %158 = arith.addf %151, %157 : vector<288x4xf32>
    %c0_140 = arith.constant 0 : index
    %c0_141 = arith.constant 0 : index
    %159 = vector.load %arg5[%c0_140, %c0_141] : memref<1x4xf32, #tpu.memory_space<vmem>>, vector<1x4xf32>
    %160 = vector.broadcast %159 : vector<1x4xf32> to vector<288x4xf32>
    %161 = arith.addf %155, %160 : vector<288x4xf32>
    %162 = arith.negf %161 : vector<288x4xf32>
    %163 = math.exp %162 : vector<288x4xf32>
    %cst_142 = arith.constant 1.000000e+00 : f32
    %164 = vector.broadcast %cst_142 : f32 to vector<288x4xf32>
    %165 = arith.addf %164, %163 : vector<288x4xf32>
    %166 = arith.divf %164, %165 : vector<288x4xf32>
    %167 = arith.mulf %158, %166 : vector<288x4xf32>
    %c0_143 = arith.constant 0 : index
    %c2_144 = arith.constant 2 : index
    %c0_145 = arith.constant 0 : index
    %c0_146 = arith.constant 0 : index
    %168 = vector.load %arg6[%c0_143, %c2_144, %c0_145, %c0_146] : memref<1x4x288x4xf32, #tpu.memory_space<vmem>>, vector<1x1x288x4xf32>
    %169 = vector.shape_cast %168 : vector<1x1x288x4xf32> to vector<288x4xf32>
    %170 = vector.shape_cast %167 : vector<288x4xf32> to vector<1x1x288x4xf32>
    tpu.vector_store %arg6[%c0_143, %c2_144, %c0_145, %c0_146], %170 {strides = array<i32>} : memref<1x4x288x4xf32, #tpu.memory_space<vmem>>, vector<1x1x288x4xf32>,
    %cst_147 = arith.constant 0.000000e+00 : f32
    %171 = vector.broadcast %cst_147 : f32 to vector<288x4xf32>
    %cst_148 = arith.constant 0.000000e+00 : f32
    %172 = vector.broadcast %cst_148 : f32 to vector<288x4xf32>
    %c0_149 = arith.constant 0 : index
    %c19_150 = arith.constant 19 : index
    %c0_151 = arith.constant 0 : index
    %173 = vector.load %arg1[%c0_149, %c19_150, %c0_151] : memref<1x342x8xf32, #tpu.memory_space<vmem>>, vector<1x288x8xf32>
    %174 = vector.shape_cast %173 : vector<1x288x8xf32> to vector<288x8xf32>
    %c12 = arith.constant 12 : index
    %c0_152 = arith.constant 0 : index
    %c0_153 = arith.constant 0 : index
    %175 = vector.load %arg2[%c12, %c0_152, %c0_153] : memref<16x8x4xf32, #tpu.memory_space<vmem>>, vector<1x8x4xf32>
    %176 = vector.shape_cast %175 : vector<1x8x4xf32> to vector<8x4xf32>
    %cst_154 = arith.constant dense<0.000000e+00> : vector<288x4xf32>
    %177 = tpu.matmul %174, %176, %cst_154 {dimension_numbers = #tpu.dot_dimension_numbers<[1], [0], [0], [1], [0, 0, 1, 1], [], []>} : vector<288x8xf32>, vector<8x4xf32>, vector<288x4xf32> -> vector<288x4xf32>
    %178 = arith.addf %171, %177 : vector<288x4xf32>
    %c12_155 = arith.constant 12 : index
    %c0_156 = arith.constant 0 : index
    %c0_157 = arith.constant 0 : index
    %179 = vector.load %arg3[%c12_155, %c0_156, %c0_157] : memref<16x8x4xf32, #tpu.memory_space<vmem>>, vector<1x8x4xf32>
    %180 = vector.shape_cast %179 : vector<1x8x4xf32> to vector<8x4xf32>
    %cst_158 = arith.constant dense<0.000000e+00> : vector<288x4xf32>
    %181 = tpu.matmul %174, %180, %cst_158 {dimension_numbers = #tpu.dot_dimension_numbers<[1], [0], [0], [1], [0, 0, 1, 1], [], []>} : vector<288x8xf32>, vector<8x4xf32>, vector<288x4xf32> -> vector<288x4xf32>
    %182 = arith.addf %172, %181 : vector<288x4xf32>
    %c0_159 = arith.constant 0 : index
    %c20_160 = arith.constant 20 : index
    %c0_161 = arith.constant 0 : index
    %183 = vector.load %arg1[%c0_159, %c20_160, %c0_161] : memref<1x342x8xf32, #tpu.memory_space<vmem>>, vector<1x288x8xf32>
    %184 = vector.shape_cast %183 : vector<1x288x8xf32> to vector<288x8xf32>
    %c13 = arith.constant 13 : index
    %c0_162 = arith.constant 0 : index
    %c0_163 = arith.constant 0 : index
    %185 = vector.load %arg2[%c13, %c0_162, %c0_163] : memref<16x8x4xf32, #tpu.memory_space<vmem>>, vector<1x8x4xf32>
    %186 = vector.shape_cast %185 : vector<1x8x4xf32> to vector<8x4xf32>
    %cst_164 = arith.constant dense<0.000000e+00> : vector<288x4xf32>
    %187 = tpu.matmul %184, %186, %cst_164 {dimension_numbers = #tpu.dot_dimension_numbers<[1], [0], [0], [1], [0, 0, 1, 1], [], []>} : vector<288x8xf32>, vector<8x4xf32>, vector<288x4xf32> -> vector<288x4xf32>
    %188 = arith.addf %178, %187 : vector<288x4xf32>
    %c13_165 = arith.constant 13 : index
    %c0_166 = arith.constant 0 : index
    %c0_167 = arith.constant 0 : index
    %189 = vector.load %arg3[%c13_165, %c0_166, %c0_167] : memref<16x8x4xf32, #tpu.memory_space<vmem>>, vector<1x8x4xf32>
    %190 = vector.shape_cast %189 : vector<1x8x4xf32> to vector<8x4xf32>
    %cst_168 = arith.constant dense<0.000000e+00> : vector<288x4xf32>
    %191 = tpu.matmul %184, %190, %cst_168 {dimension_numbers = #tpu.dot_dimension_numbers<[1], [0], [0], [1], [0, 0, 1, 1], [], []>} : vector<288x8xf32>, vector<8x4xf32>, vector<288x4xf32> -> vector<288x4xf32>
    %192 = arith.addf %182, %191 : vector<288x4xf32>
    %c0_169 = arith.constant 0 : index
    %c37_170 = arith.constant 37 : index
    %c0_171 = arith.constant 0 : index
    %193 = vector.load %arg1[%c0_169, %c37_170, %c0_171] : memref<1x342x8xf32, #tpu.memory_space<vmem>>, vector<1x288x8xf32>
    %194 = vector.shape_cast %193 : vector<1x288x8xf32> to vector<288x8xf32>
    %c14 = arith.constant 14 : index
    %c0_172 = arith.constant 0 : index
    %c0_173 = arith.constant 0 : index
    %195 = vector.load %arg2[%c14, %c0_172, %c0_173] : memref<16x8x4xf32, #tpu.memory_space<vmem>>, vector<1x8x4xf32>
    %196 = vector.shape_cast %195 : vector<1x8x4xf32> to vector<8x4xf32>
    %cst_174 = arith.constant dense<0.000000e+00> : vector<288x4xf32>
    %197 = tpu.matmul %194, %196, %cst_174 {dimension_numbers = #tpu.dot_dimension_numbers<[1], [0], [0], [1], [0, 0, 1, 1], [], []>} : vector<288x8xf32>, vector<8x4xf32>, vector<288x4xf32> -> vector<288x4xf32>
    %198 = arith.addf %188, %197 : vector<288x4xf32>
    %c14_175 = arith.constant 14 : index
    %c0_176 = arith.constant 0 : index
    %c0_177 = arith.constant 0 : index
    %199 = vector.load %arg3[%c14_175, %c0_176, %c0_177] : memref<16x8x4xf32, #tpu.memory_space<vmem>>, vector<1x8x4xf32>
    %200 = vector.shape_cast %199 : vector<1x8x4xf32> to vector<8x4xf32>
    %cst_178 = arith.constant dense<0.000000e+00> : vector<288x4xf32>
    %201 = tpu.matmul %194, %200, %cst_178 {dimension_numbers = #tpu.dot_dimension_numbers<[1], [0], [0], [1], [0, 0, 1, 1], [], []>} : vector<288x8xf32>, vector<8x4xf32>, vector<288x4xf32> -> vector<288x4xf32>
    %202 = arith.addf %192, %201 : vector<288x4xf32>
    %c0_179 = arith.constant 0 : index
    %c38 = arith.constant 38 : index
    %c0_180 = arith.constant 0 : index
    %203 = vector.load %arg1[%c0_179, %c38, %c0_180] : memref<1x342x8xf32, #tpu.memory_space<vmem>>, vector<1x288x8xf32>
    %204 = vector.shape_cast %203 : vector<1x288x8xf32> to vector<288x8xf32>
    %c15 = arith.constant 15 : index
    %c0_181 = arith.constant 0 : index
    %c0_182 = arith.constant 0 : index
    %205 = vector.load %arg2[%c15, %c0_181, %c0_182] : memref<16x8x4xf32, #tpu.memory_space<vmem>>, vector<1x8x4xf32>
    %206 = vector.shape_cast %205 : vector<1x8x4xf32> to vector<8x4xf32>
    %cst_183 = arith.constant dense<0.000000e+00> : vector<288x4xf32>
    %207 = tpu.matmul %204, %206, %cst_183 {dimension_numbers = #tpu.dot_dimension_numbers<[1], [0], [0], [1], [0, 0, 1, 1], [], []>} : vector<288x8xf32>, vector<8x4xf32>, vector<288x4xf32> -> vector<288x4xf32>
    %208 = arith.addf %198, %207 : vector<288x4xf32>
    %c15_184 = arith.constant 15 : index
    %c0_185 = arith.constant 0 : index
    %c0_186 = arith.constant 0 : index
    %209 = vector.load %arg3[%c15_184, %c0_185, %c0_186] : memref<16x8x4xf32, #tpu.memory_space<vmem>>, vector<1x8x4xf32>
    %210 = vector.shape_cast %209 : vector<1x8x4xf32> to vector<8x4xf32>
    %cst_187 = arith.constant dense<0.000000e+00> : vector<288x4xf32>
    %211 = tpu.matmul %204, %210, %cst_187 {dimension_numbers = #tpu.dot_dimension_numbers<[1], [0], [0], [1], [0, 0, 1, 1], [], []>} : vector<288x8xf32>, vector<8x4xf32>, vector<288x4xf32> -> vector<288x4xf32>
    %212 = arith.addf %202, %211 : vector<288x4xf32>
    %c0_188 = arith.constant 0 : index
    %c0_189 = arith.constant 0 : index
    %213 = vector.load %arg4[%c0_188, %c0_189] : memref<1x4xf32, #tpu.memory_space<vmem>>, vector<1x4xf32>
    %214 = vector.broadcast %213 : vector<1x4xf32> to vector<288x4xf32>
    %215 = arith.addf %208, %214 : vector<288x4xf32>
    %c0_190 = arith.constant 0 : index
    %c0_191 = arith.constant 0 : index
    %216 = vector.load %arg5[%c0_190, %c0_191] : memref<1x4xf32, #tpu.memory_space<vmem>>, vector<1x4xf32>
    %217 = vector.broadcast %216 : vector<1x4xf32> to vector<288x4xf32>
    %218 = arith.addf %212, %217 : vector<288x4xf32>
    %219 = arith.negf %218 : vector<288x4xf32>
    %220 = math.exp %219 : vector<288x4xf32>
    %cst_192 = arith.constant 1.000000e+00 : f32
    %221 = vector.broadcast %cst_192 : f32 to vector<288x4xf32>
    %222 = arith.addf %221, %220 : vector<288x4xf32>
    %223 = arith.divf %221, %222 : vector<288x4xf32>
    %224 = arith.mulf %215, %223 : vector<288x4xf32>
    %c0_193 = arith.constant 0 : index
    %c3_194 = arith.constant 3 : index
    %c0_195 = arith.constant 0 : index
    %c0_196 = arith.constant 0 : index
    %225 = vector.load %arg6[%c0_193, %c3_194, %c0_195, %c0_196] : memref<1x4x288x4xf32, #tpu.memory_space<vmem>>, vector<1x1x288x4xf32>
    %226 = vector.shape_cast %225 : vector<1x1x288x4xf32> to vector<288x4xf32>
    %227 = vector.shape_cast %224 : vector<288x4xf32> to vector<1x1x288x4xf32>
    tpu.vector_store %arg6[%c0_193, %c3_194, %c0_195, %c0_196], %227 {strides = array<i32>} : memref<1x4x288x4xf32, #tpu.memory_space<vmem>>, vector<1x1x288x4xf32>,
    return
  }
  func.func @transform_0(%arg0: i32) -> (i32, i32, i32) {
    %c0_i32 = arith.constant 0 : i32
    %c0_i32_0 = arith.constant 0 : i32
    %c0_i32_1 = arith.constant 0 : i32
    return %arg0, %c0_i32, %c0_i32_0 : i32, i32, i32
  }
  func.func @transform_1(%arg0: i32) -> (i32, i32, i32) {
    %c0_i32 = arith.constant 0 : i32
    %c0_i32_0 = arith.constant 0 : i32
    %c0_i32_1 = arith.constant 0 : i32
    %c0_i32_2 = arith.constant 0 : i32
    return %c0_i32, %c0_i32_0, %c0_i32_1 : i32, i32, i32
  }
  func.func @transform_2(%arg0: i32) -> (i32, i32, i32) {
    %c0_i32 = arith.constant 0 : i32
    %c0_i32_0 = arith.constant 0 : i32
    %c0_i32_1 = arith.constant 0 : i32
    %c0_i32_2 = arith.constant 0 : i32
    return %c0_i32, %c0_i32_0, %c0_i32_1 : i32, i32, i32
  }
  func.func @transform_3(%arg0: i32) -> (i32, i32) {
    %c0_i32 = arith.constant 0 : i32
    %c0_i32_0 = arith.constant 0 : i32
    %c0_i32_1 = arith.constant 0 : i32
    return %c0_i32, %c0_i32_0 : i32, i32
  }
  func.func @transform_4(%arg0: i32) -> (i32, i32) {
    %c0_i32 = arith.constant 0 : i32
    %c0_i32_0 = arith.constant 0 : i32
    %c0_i32_1 = arith.constant 0 : i32
    return %c0_i32, %c0_i32_0 : i32, i32
  }
  func.func @transform_5(%arg0: i32) -> (i32, i32, i32, i32) {
    %c0_i32 = arith.constant 0 : i32
    %c0_i32_0 = arith.constant 0 : i32
    %c0_i32_1 = arith.constant 0 : i32
    %c0_i32_2 = arith.constant 0 : i32
    return %arg0, %c0_i32, %c0_i32_0, %c0_i32_1 : i32, i32, i32, i32
  }
}

</mosaic_0001>

<bundles_post_ra>
// kernel: tpu_custom_call.1
= control target key start
LH: loop header
LB: loop body
LE: loop exit
PB: predicated region body
PF: predicated region fallthrough
CT: control target
= control target key end

     0   :  { %10 = vsyncpa [#allocation3], 0  ;;  %s22229_s0 = inlined_call_operand.vmem [shape: f32[2,342,8], index: 0, kind: input, shape index: {}]   ;;  %s22230_s1 = inlined_call_operand.vmem [shape: f32[16,8,4], index: 1, kind: input, shape index: {}]   ;;  %s22231_s2 = inlined_call_operand.vmem [shape: f32[16,8,4], index: 2, kind: input, shape index: {}]   ;;  %s22232_s3 = inlined_call_operand.hbm [shape: f32[1,4], index: 3, kind: input, shape index: {}]   ;;  %s22233_s4 = inlined_call_operand.hbm [shape: f32[1,4], index: 4, kind: input, shape index: {}]   ;;  %s22234_s5 = inlined_call_operand.vmem [shape: f32[2,4,288,4], index: 5, kind: output, shape index: {}]  }
   0x1   :  { %11 = vsyncpa [#allocation5], 0  ;;  %s18627_s18 = smov 0  }
   0x2 LB: > { %s18633_s19 = sadd.s32 4294967295, %s18593_s18   ;;  %p12613_p0 = scmp.ge.s32.totalorder %s18593_s18, 1  ;;  %s18593_s18 = sphi %s18627_s18, %s17_s18  }
   0x3   : > { %p158_p1 = scmp.lt.s32.totalorder %s18593_s18, 3  ;;  %p22235_p2 = scmp.eq.s32.totalorder %s18633_s19, 0 }
   0x4   : > { %s18595_s21 = smov [#allocation2]   ;;  %s18596_s23 = smov [#allocation4]  }
   0x5   : > { %p18638_p3 = pnand %p12613_p0, %p158_p1  ;;  %s177_s22 = sshll.u32 %s18595_s21, 4  ;;  %s178_s22 = int_to_ptr.vmem [resolvable:$true] %s177_s22 }
   0x6   : > { %s188_s24 = sshll.u32 %s18596_s23, 4  ;;  %s18523_s28 = scalar_lea.hbm %s22232_s3, 16  ;;  %s18650_s24 = int_to_ptr.vmem [resolvable:$true] %s188_s24 }
   0x7   : > { %s22237_s20 = scalar_select %p18638_p3, 1, 0 }
   0x8   : > { %p17916_p4 = pneg %p18638_p3  ;;  %p18524_p6 = scmp.ne.s32.totalorder %s22232_s3, %s18523_s28 }
   0x9   : > { %p18530_p10 = scmp.lt.u32.totalorder %s18523_s28, %s22232_s3 }
   0xa   : > { %p18646_p5 = pnand %p22235_p2, %p17916_p4 }
   0xc   : > { %p18525_p7 = pneg %p18646_p5 }
   0xe   : > { %p18526_p8 = pnand %p18525_p7, %p18524_p6 }
  0x10   : > { %p18527_p9 = pneg %p18526_p8 }
  0x12   : > { %p18532_p11 = pnand %p18530_p10, %p18527_p9 }
  0x14   : > { %18535 = shalt.err (!%p18532_p11)
}
  0x15   : > { %s18536_s8 = scalar_lea.vmem %s178_s22, 16  ;;  %s18543_s9 = scalar_lea.vmem %s178_s22, 32 }
  0x16   : > { %p18537_p12 = scmp.ne.s32.totalorder %s178_s22, %s18536_s8  ;;  %p18544_p1 = scmp.lt.s32.totalorder %s178_s22, %s178_s22 }
  0x17   : > { %p18545_p4 = scmp.lt.s32.totalorder %s18543_s9, %s18536_s8 }
  0x18   : > { %p18539_p13 = pnand %p18537_p12, %p18525_p7 }
  0x19   : > { %p18546_p2 = por %p18545_p4, %p18544_p1 }
  0x1a   : > { %p18540_p0 = pneg %p18539_p13 }
  0x1c   : > { %p18547_p3 = pnand %p18546_p2, %p18540_p0 }
  0x1e   : > { %18550 = shalt.err (!%p18547_p3)
}
  0x1f   : > { %17919 = dma.hbm_to_vmem [thread:$0]  (!%p18646_p5), %s22232_s3, 16, %s178_s22, [#allocation3]  }
  0x20   : > { %s18551_s14 = scalar_lea.hbm %s22233_s4, 16 }
  0x21   : > { %p18552_p6 = scmp.ne.s32.totalorder %s22233_s4, %s18551_s14  ;;  %p18558_p3 = scmp.lt.u32.totalorder %s18551_s14, %s22233_s4 }
  0x23   : > { %p18554_p8 = pnand %p18552_p6, %p18525_p7 }
  0x25   : > { %p18555_p2 = pneg %p18554_p8 }
  0x27   : > { %p18560_p9 = pnand %p18558_p3, %p18555_p2 }
  0x29   : > { %18563 = shalt.err (!%p18560_p9)
}
  0x2a   : > { %s18564_s22 = scalar_lea.vmem %s18650_s24, 16  ;;  %s18571_s23 = scalar_lea.vmem %s18650_s24, 32 }
  0x2b   : > { %p18565_p10 = scmp.ne.s32.totalorder %s18650_s24, %s18564_s22  ;;  %p18572_p13 = scmp.lt.s32.totalorder %s18650_s24, %s18650_s24 }
  0x2c   : > { %p18573_p0 = scmp.lt.s32.totalorder %s18571_s23, %s18564_s22 }
  0x2d   : > { %p18567_p11 = pnand %p18565_p10, %p18525_p7 }
  0x2e   : > { %p18574_p1 = por %p18573_p0, %p18572_p13 }
  0x2f   : > { %p18568_p12 = pneg %p18567_p11 }
  0x31   : > { %p18575_p4 = pnand %p18574_p1, %p18568_p12 }
  0x33   : > { %18578 = shalt.err (!%p18575_p4)
}
  0x34   : > { %17922 = dma.hbm_to_vmem [thread:$0]  (!%p18646_p5), %s22233_s4, 16, %s18650_s24, [#allocation5]  }
  0x35   : > { %p22239_p6 = scmp.ne.s32.totalorder %s22237_s20, 0 }
  0x36   : > { %p22240_p7 = scmp.eq.s32.totalorder (!%p22239_p6), %s18633_s19, 0 }
  0x37   : > { %209 = sbr.rel (%p22239_p6) target bundleno = 1469 (0x5bd), region = 40 }
  0x3e   : > { %18584 = dma.done.wait (%p22240_p7), [#allocation3], 16   ;;  %p22241_p8 = pmov %p22240_p7 }
  0x3f   : > { %p22242_p2 = pmov %p22240_p7 }
  0x40   : > { %18586 = vsyncadd (%p22241_p8), [#allocation3], 4294967280 }
  0x41   : > { %18588 = dma.done.wait (%p22242_p2), [#allocation5], 16   ;;  %p22243_p3 = pmov %p22242_p2 }
  0x42   : > { %p241_p9 = scmp.lt.s32.totalorder %s18633_s19, 1  ;;  %vm327_vm0 = vcmask 64512   ;;  %v12622_v0 = vld [vmem:[%s22230_s1 + $0x8] sm:$0xff]  ;;  %v288_v4 = vld [vmem:[%s22231_s2] sm:$0xff]  ;;  %v18758_v13 = vld [vmem:[%s22231_s2 + $0x10] sm:$0xff]  ;;  %vm3284_vm1 = vcmask 31744  }
  0x43   : > { %18590 = vsyncadd (%p22243_p3), [#allocation5], 4294967280  ;;  %v12695_v1 = vld [vmem:[%s22231_s2 + $0x8] sm:$0xff]  ;;  %15250 = vmatprep.subr.mxu0 %v12622_v0  ;;  %v287_v7 = vld [vmem:[%s22230_s1] sm:$0xff] }
  0x44   : > { %s22245_s19 = smov (!%p241_p9, %s18633_s19), 1  ;;  %15362 = vmatprep.subr.mxu1 %v12695_v1  ;;  %15251 = vmatpush3.msra.mxu0 %v12622_v0  ;;  %v18770_v16 = vld [vmem:[%s22230_s1 + $0x10] sm:$0xff]  ;;  %v18862_v45 = vld [vmem:[%s22231_s2 + $0x18] sm:$0xff] }
  0x45   : > { %s17906_s20 = smul.u32 344, %s22245_s19  ;;  %15363 = vmatpush3.msra.mxu1 %v12695_v1  ;;  %15306 = vmatprep.subr.mxu0 %v287_v7  ;;  %v18867_v46 = vld [vmem:[%s22230_s1 + $0x18] sm:$0xff] }
  0x46   : > { %15418 = vmatprep.subr.mxu1 %v288_v4  ;;  %s17907_s21 = smul.u32 1152, %s22245_s19 }
  0x47   : > { %s18718_s28 = scalar_lea.vmem %s22229_s0, %s17906_s20 }
  0x48   : > { %v289_v2 = vld [vmem:[%s18718_s28 + $0x1] sm:$0xff]  ;;  %v290_v3 = vld [vmem:[%s18718_s28 + $0x9] sm:$0xff]  ;;  %v291_v5 = vld [vmem:[%s18718_s28 + $0x11] sm:$0xff]  ;;  %s19807_s23 = scalar_lea.vmem %s22234_s5, %s17907_s21 }
  0x49   : > { %15252 = vmatprep.mubr.msk.f32.mxu0 %vm327_vm0, %v289_v2  ;;  %15364 = vmatprep.mubr.msk.f32.mxu1 %vm327_vm0, %v289_v2  ;;  %v292_v6 = vld [vmem:[%s18718_s28 + $0x19] sm:$0xff]  ;;  %v293_v8 = vld [vmem:[%s18718_s28 + $0x21] sm:$0xff]  ;;  %v294_v9 = vld [vmem:[%s18718_s28 + $0x29] sm:$0xff] }
  0x4a   : > { %15253 = vmatmul.mubr.msk.f32.vlgmr.msra.gmra.mrb[0].mxu0 %vm327_vm0, %v290_v3  ;;  %15365 = vmatmul.mubr.msk.f32.vlgmr.msra.gmra.mrb[0].mxu1 %vm327_vm0, %v290_v3  ;;  %v295_v10 = vld [vmem:[%s18718_s28 + $0x31] sm:$0xff]  ;;  %v296_v11 = vld [vmem:[%s18718_s28 + $0x39] sm:$0xff]  ;;  %v297_v12 = vld [vmem:[%s18718_s28 + $0x41] sm:$0xff] }
  0x4b   : > { %15255 = vmatprep.mubr.msk.f32.mxu0 %vm327_vm0, %v291_v5  ;;  %15419 = vmatpush3.msra.mxu1 %v288_v4  ;;  %v298_v14 = vld [vmem:[%s18718_s28 + $0x49] sm:$0xff]  ;;  %v299_v15 = vld [vmem:[%s18718_s28 + $0x51] sm:$0xff]  ;;  %v300_v17 = vld [vmem:[%s18718_s28 + $0x59] sm:$0xff] }
  0x4c   : > { %15367 = vmatprep.mubr.msk.f32.mxu1 %vm327_vm0, %v291_v5  ;;  %15307 = vmatpush3.msra.mxu0 %v287_v7  ;;  %v301_v18 = vld [vmem:[%s18718_s28 + $0x61] sm:$0xff]  ;;  %v302_v19 = vld [vmem:[%s18718_s28 + $0x69] sm:$0xff]  ;;  %v303_v20 = vld [vmem:[%s18718_s28 + $0x71] sm:$0xff] }
  0x4d   : > { %15530 = vmatprep.subr.mxu1 %v18758_v13  ;;  %15474 = vmatprep.subr.mxu0 %v18770_v16  ;;  %v304_v21 = vld [vmem:[%s18718_s28 + $0x79] sm:$0xff]  ;;  %v305_v22 = vld [vmem:[%s18718_s28 + $0x81] sm:$0xff]  ;;  %v306_v23 = vld [vmem:[%s18718_s28 + $0x89] sm:$0xff] }
  0x4e   : > { %15256 = vmatmul.mubr.msk.f32.gmra.mrb[2].mxu0 %vm327_vm0, %v292_v6  ;;  %15368 = vmatmul.mubr.msk.f32.gmra.mrb[2].mxu1 %vm327_vm0, %v292_v6  ;;  %v307_v24 = vld [vmem:[%s18718_s28 + $0x91] sm:$0xff]  ;;  %v308_v25 = vld [vmem:[%s18718_s28 + $0x99] sm:$0xff]  ;;  %v309_v26 = vld [vmem:[%s18718_s28 + $0xa1] sm:$0xff] }
  0x4f   : > { %15258 = vmatprep.mubr.msk.f32.mxu0 %vm327_vm0, %v293_v8  ;;  %15370 = vmatprep.mubr.msk.f32.mxu1 %vm327_vm0, %v293_v8  ;;  %v310_v27 = vld [vmem:[%s18718_s28 + $0xa9] sm:$0xff]  ;;  %v311_v28 = vld [vmem:[%s18718_s28 + $0xb1] sm:$0xff]  ;;  %v312_v29 = vld [vmem:[%s18718_s28 + $0xb9] sm:$0xff] }
  0x50   : > { %v313_v30 = vld [vmem:[%s18718_s28 + $0xc1] sm:$0xff]  ;;  %v314_v31 = vld [vmem:[%s18718_s28 + $0xc9] sm:$0xff]  ;;  %v315_v32 = vld [vmem:[%s18718_s28 + $0xd1] sm:$0xff] }
  0x51   : > { %v316_v33 = vld [vmem:[%s18718_s28 + $0xd9] sm:$0xff]  ;;  %v317_v34 = vld [vmem:[%s18718_s28 + $0xe1] sm:$0xff]  ;;  %v318_v35 = vld [vmem:[%s18718_s28 + $0xe9] sm:$0xff] }
  0x52   : > { %15259 = vmatmul.mubr.msk.f32.gmra.mrb[4].mxu0 %vm327_vm0, %v294_v9  ;;  %15371 = vmatmul.mubr.msk.f32.gmra.mrb[4].mxu1 %vm327_vm0, %v294_v9  ;;  %v319_v36 = vld [vmem:[%s18718_s28 + $0xf1] sm:$0xff]  ;;  %v320_v37 = vld [vmem:[%s18718_s28 + $0xf9] sm:$0xff]  ;;  %v321_v38 = vld [vmem:[%s18718_s28 + $0x101] sm:$0xff] }
  0x53   : > { %15261 = vmatprep.mubr.msk.f32.mxu0 %vm327_vm0, %v295_v10  ;;  %15373 = vmatprep.mubr.msk.f32.mxu1 %vm327_vm0, %v295_v10  ;;  %v322_v39 = vld [vmem:[%s18718_s28 + $0x109] sm:$0xff]  ;;  %v323_v40 = vld [vmem:[%s18718_s28 + $0x111] sm:$0xff]  ;;  %v324_v41 = vld [vmem:[%s18718_s28 + $0x119] sm:$0xff] }
  0x54   : > { %v251_v42 = vld [vmem:[%s18718_s28] sm:$0xff]  ;;  %v252_v43 = vld [vmem:[%s18718_s28 + $0x8] sm:$0xff]  ;;  %v253_v44 = vld [vmem:[%s18718_s28 + $0x10] sm:$0xff] }
  0x55   : > { %v254_v47 = vld [vmem:[%s18718_s28 + $0x18] sm:$0xff]  ;;  %v255_v48 = vld [vmem:[%s18718_s28 + $0x20] sm:$0xff]  ;;  %v256_v49 = vld [vmem:[%s18718_s28 + $0x28] sm:$0xff] }
  0x56   : > { %15262 = vmatmul.mubr.msk.f32.gmra.mrb[6].mxu0 %vm327_vm0, %v296_v11  ;;  %15374 = vmatmul.mubr.msk.f32.gmra.mrb[6].mxu1 %vm327_vm0, %v296_v11  ;;  %v257_v50 = vld [vmem:[%s18718_s28 + $0x30] sm:$0xff]  ;;  %v258_v51 = vld [vmem:[%s18718_s28 + $0x38] sm:$0xff]  ;;  %v259_v52 = vld [vmem:[%s18718_s28 + $0x40] sm:$0xff] }
  0x57   : > { %15264 = vmatprep.mubr.msk.f32.mxu0 %vm327_vm0, %v297_v12  ;;  %15376 = vmatprep.mubr.msk.f32.mxu1 %vm327_vm0, %v297_v12  ;;  %v260_v53 = vld [vmem:[%s18718_s28 + $0x48] sm:$0xff]  ;;  %v261_v54 = vld [vmem:[%s18718_s28 + $0x50] sm:$0xff]  ;;  %v262_v55 = vld [vmem:[%s18718_s28 + $0x58] sm:$0xff] }
  0x58   : > { %v263_v56 = vld [vmem:[%s18718_s28 + $0x60] sm:$0xff]  ;;  %v264_v57 = vld [vmem:[%s18718_s28 + $0x68] sm:$0xff]  ;;  %v265_v58 = vld [vmem:[%s18718_s28 + $0x70] sm:$0xff] }
  0x59   : > { %v266_v59 = vld [vmem:[%s18718_s28 + $0x78] sm:$0xff]  ;;  %v267_v60 = vld [vmem:[%s18718_s28 + $0x80] sm:$0xff]  ;;  %v268_v61 = vld [vmem:[%s18718_s28 + $0x88] sm:$0xff] }
  0x5a   : > { %15265 = vmatmul.mubr.msk.f32.gmra.mrb[8].mxu0 %vm327_vm0, %v298_v14  ;;  %15377 = vmatmul.mubr.msk.f32.gmra.mrb[8].mxu1 %vm327_vm0, %v298_v14  ;;  %v269_v62 = vld [vmem:[%s18718_s28 + $0x90] sm:$0xff]  ;;  %v270_v63 = vld [vmem:[%s18718_s28 + $0x98] sm:$0xff]  ;;  %v271_v0 = vld [vmem:[%s18718_s28 + $0xa0] sm:$0xff] }
  0x5b   : > { %15267 = vmatprep.mubr.msk.f32.mxu0 %vm327_vm0, %v299_v15  ;;  %15379 = vmatprep.mubr.msk.f32.mxu1 %vm327_vm0, %v299_v15  ;;  %v272_v1 = vld [vmem:[%s18718_s28 + $0xa8] sm:$0xff]  ;;  %v273_v2 = vld [vmem:[%s18718_s28 + $0xb0] sm:$0xff]  ;;  %v274_v3 = vld [vmem:[%s18718_s28 + $0xb8] sm:$0xff] }
  0x5c   : > { %v275_v4 = vld [vmem:[%s18718_s28 + $0xc0] sm:$0xff]  ;;  %v276_v5 = vld [vmem:[%s18718_s28 + $0xc8] sm:$0xff]  ;;  %v277_v6 = vld [vmem:[%s18718_s28 + $0xd0] sm:$0xff] }
  0x5d   : > { %v278_v7 = vld [vmem:[%s18718_s28 + $0xd8] sm:$0xff]  ;;  %v279_v8 = vld [vmem:[%s18718_s28 + $0xe0] sm:$0xff]  ;;  %v280_v9 = vld [vmem:[%s18718_s28 + $0xe8] sm:$0xff] }
  0x5e   : > { %15268 = vmatmul.mubr.msk.f32.gmra.mrb[10].mxu0 %vm327_vm0, %v300_v17  ;;  %15380 = vmatmul.mubr.msk.f32.gmra.mrb[10].mxu1 %vm327_vm0, %v300_v17  ;;  %v281_v10 = vld [vmem:[%s18718_s28 + $0xf0] sm:$0xff]  ;;  %v282_v11 = vld [vmem:[%s18718_s28 + $0xf8] sm:$0xff]  ;;  %v283_v12 = vld [vmem:[%s18718_s28 + $0x100] sm:$0xff] }
  0x5f   : > { %15270 = vmatprep.mubr.msk.f32.mxu0 %vm327_vm0, %v301_v18  ;;  %15382 = vmatprep.mubr.msk.f32.mxu1 %vm327_vm0, %v301_v18  ;;  %v285_v14 = vld [vmem:[%s18718_s28 + $0x110] sm:$0xff]  ;;  %v286_v15 = vld [vmem:[%s18718_s28 + $0x118] sm:$0xff]  ;;  %v18985_v18 = vld [vmem:[%s18718_s28 + $0x22] sm:$0xff] }
  0x60   : > { %v18982_v17 = vld [vmem:[%s18718_s28 + $0x1a] sm:$0xff] }
  0x62   : > { %15271 = vmatmul.mubr.msk.f32.gmra.mrb[12].mxu0 %vm327_vm0, %v302_v19  ;;  %15383 = vmatmul.mubr.msk.f32.gmra.mrb[12].mxu1 %vm327_vm0, %v302_v19  ;;  %v18994_v19 = vld [vmem:[%s22231_s2 + $0x28] sm:$0xff] }
  0x63   : > { %15273 = vmatprep.mubr.msk.f32.mxu0 %vm327_vm0, %v303_v20  ;;  %15385 = vmatprep.mubr.msk.f32.mxu1 %vm327_vm0, %v303_v20  ;;  %v18999_v20 = vld [vmem:[%s22230_s1 + $0x28] sm:$0xff] }
  0x66   : > { %15274 = vmatmul.mubr.msk.f32.gmra.mrb[14].mxu0 %vm327_vm0, %v304_v21  ;;  %15386 = vmatmul.mubr.msk.f32.gmra.mrb[14].mxu1 %vm327_vm0, %v304_v21  ;;  %v19005_v21 = vld [vmem:[%s18718_s28 + $0x2a] sm:$0xff] }
  0x67   : > { %15276 = vmatprep.mubr.msk.f32.mxu0 %vm327_vm0, %v305_v22  ;;  %15388 = vmatprep.mubr.msk.f32.mxu1 %vm327_vm0, %v305_v22  ;;  %v19010_v22 = vld [vmem:[%s18718_s28 + $0x32] sm:$0xff] }
  0x6a   : > { %15277 = vmatmul.mubr.msk.f32.gmra.mrb[16].mxu0 %vm327_vm0, %v306_v23  ;;  %15389 = vmatmul.mubr.msk.f32.gmra.mrb[16].mxu1 %vm327_vm0, %v306_v23  ;;  %v19024_v23 = vld [vmem:[%s18718_s28 + $0x3a] sm:$0xff] }
  0x6b   : > { %15279 = vmatprep.mubr.msk.f32.mxu0 %vm327_vm0, %v307_v24  ;;  %15391 = vmatprep.mubr.msk.f32.mxu1 %vm327_vm0, %v307_v24  ;;  %v19027_v24 = vld [vmem:[%s18718_s28 + $0x42] sm:$0xff] }
  0x6e   : > { %15280 = vmatmul.mubr.msk.f32.gmra.mrb[18].mxu0 %vm327_vm0, %v308_v25  ;;  %15392 = vmatmul.mubr.msk.f32.gmra.mrb[18].mxu1 %vm327_vm0, %v308_v25  ;;  %v19038_v25 = vld [vmem:[%s18718_s28 + $0x4a] sm:$0xff] }
  0x6f   : > { %15282 = vmatprep.mubr.msk.f32.mxu0 %vm327_vm0, %v309_v26  ;;  %15394 = vmatprep.mubr.msk.f32.mxu1 %vm327_vm0, %v309_v26  ;;  %v19041_v26 = vld [vmem:[%s18718_s28 + $0x52] sm:$0xff] }
  0x72   : > { %15283 = vmatmul.mubr.msk.f32.gmra.mrb[20].mxu0 %vm327_vm0, %v310_v27  ;;  %15395 = vmatmul.mubr.msk.f32.gmra.mrb[20].mxu1 %vm327_vm0, %v310_v27  ;;  %v19052_v27 = vld [vmem:[%s18718_s28 + $0x5a] sm:$0xff] }
  0x73   : > { %15285 = vmatprep.mubr.msk.f32.mxu0 %vm327_vm0, %v311_v28  ;;  %15397 = vmatprep.mubr.msk.f32.mxu1 %vm327_vm0, %v311_v28  ;;  %v19055_v28 = vld [vmem:[%s18718_s28 + $0x62] sm:$0xff] }
  0x76   : > { %15286 = vmatmul.mubr.msk.f32.gmra.mrb[22].mxu0 %vm327_vm0, %v312_v29  ;;  %15398 = vmatmul.mubr.msk.f32.gmra.mrb[22].mxu1 %vm327_vm0, %v312_v29  ;;  %v19066_v29 = vld [vmem:[%s18718_s28 + $0x6a] sm:$0xff] }
  0x77   : > { %15288 = vmatprep.mubr.msk.f32.mxu0 %vm327_vm0, %v313_v30  ;;  %15400 = vmatprep.mubr.msk.f32.mxu1 %vm327_vm0, %v313_v30  ;;  %v19069_v30 = vld [vmem:[%s18718_s28 + $0x72] sm:$0xff] }
  0x7a   : > { %15289 = vmatmul.mubr.msk.f32.gmra.mrb[24].mxu0 %vm327_vm0, %v314_v31  ;;  %15401 = vmatmul.mubr.msk.f32.gmra.mrb[24].mxu1 %vm327_vm0, %v314_v31  ;;  %v19080_v31 = vld [vmem:[%s18718_s28 + $0x7a] sm:$0xff] }
  0x7b   : > { %15291 = vmatprep.mubr.msk.f32.mxu0 %vm327_vm0, %v315_v32  ;;  %15403 = vmatprep.mubr.msk.f32.mxu1 %vm327_vm0, %v315_v32  ;;  %v19083_v32 = vld [vmem:[%s18718_s28 + $0x82] sm:$0xff] }
  0x7e   : > { %15292 = vmatmul.mubr.msk.f32.gmra.mrb[26].mxu0 %vm327_vm0, %v316_v33  ;;  %15404 = vmatmul.mubr.msk.f32.gmra.mrb[26].mxu1 %vm327_vm0, %v316_v33  ;;  %v19094_v33 = vld [vmem:[%s18718_s28 + $0x8a] sm:$0xff] }
  0x7f   : > { %15294 = vmatprep.mubr.msk.f32.mxu0 %vm327_vm0, %v317_v34  ;;  %15406 = vmatprep.mubr.msk.f32.mxu1 %vm327_vm0, %v317_v34  ;;  %v19097_v34 = vld [vmem:[%s18718_s28 + $0x92] sm:$0xff] }
  0x82   : > { %15295 = vmatmul.mubr.msk.f32.gmra.mrb[28].mxu0 %vm327_vm0, %v318_v35  ;;  %15407 = vmatmul.mubr.msk.f32.gmra.mrb[28].mxu1 %vm327_vm0, %v318_v35  ;;  %v19108_v35 = vld [vmem:[%s18718_s28 + $0x9a] sm:$0xff] }
  0x83   : > { %15297 = vmatprep.mubr.msk.f32.mxu0 %vm327_vm0, %v319_v36  ;;  %15409 = vmatprep.mubr.msk.f32.mxu1 %vm327_vm0, %v319_v36  ;;  %v19111_v36 = vld [vmem:[%s18718_s28 + $0xa2] sm:$0xff] }
  0x86   : > { %15298 = vmatmul.mubr.msk.f32.gmra.mrb[30].mxu0 %vm327_vm0, %v320_v37  ;;  %15410 = vmatmul.mubr.msk.f32.gmra.mrb[30].mxu1 %vm327_vm0, %v320_v37  ;;  %v19122_v37 = vld [vmem:[%s18718_s28 + $0xaa] sm:$0xff] }
  0x87   : > { %15300 = vmatprep.mubr.msk.f32.mxu0 %vm327_vm0, %v321_v38  ;;  %15412 = vmatprep.mubr.msk.f32.mxu1 %vm327_vm0, %v321_v38  ;;  %v19125_v38 = vld [vmem:[%s18718_s28 + $0xb2] sm:$0xff] }
  0x8a   : > { %15301 = vmatmul.mubr.msk.f32.gmra.mrb[32].mxu0 %vm327_vm0, %v322_v39  ;;  %15413 = vmatmul.mubr.msk.f32.gmra.mrb[32].mxu1 %vm327_vm0, %v322_v39  ;;  %v19136_v39 = vld [vmem:[%s18718_s28 + $0xba] sm:$0xff] }
  0x8b   : > { %15303 = vmatprep.mubr.msk.f32.mxu0 %vm327_vm0, %v323_v40  ;;  %15415 = vmatprep.mubr.msk.f32.mxu1 %vm327_vm0, %v323_v40  ;;  %v19139_v40 = vld [vmem:[%s18718_s28 + $0xc2] sm:$0xff] }
  0x8e   : > { %15304 = vmatmul.mubr.msk.f32.gmra.mrb[34].mxu0 %vm327_vm0, %v324_v41  ;;  %15416 = vmatmul.mubr.msk.f32.gmra.mrb[34].mxu1 %vm327_vm0, %v324_v41  ;;  %v19150_v41 = vld [vmem:[%s18718_s28 + $0xca] sm:$0xff] }
  0x8f   : > { %15308 = vmatprep.mubr.msk.f32.mxu0 %vm327_vm0, %v251_v42  ;;  %15420 = vmatprep.mubr.msk.f32.mxu1 %vm327_vm0, %v251_v42  ;;  %v19153_v42 = vld [vmem:[%s18718_s28 + $0xd2] sm:$0xff] }
  0x92   : > { %15309 = vmatmul.mubr.msk.f32.vlgmr.msra.gmra.mrb[0].mxu0 %vm327_vm0, %v252_v43  ;;  %15421 = vmatmul.mubr.msk.f32.vlgmr.msra.gmra.mrb[0].mxu1 %vm327_vm0, %v252_v43  ;;  %v19164_v43 = vld [vmem:[%s18718_s28 + $0xda] sm:$0xff] }
  0x93   : > { %15531 = vmatpush3.msra.mxu1 %v18758_v13  ;;  %15311 = vmatprep.mubr.msk.f32.mxu0 %vm327_vm0, %v253_v44  ;;  %v284_v13 = vld [vmem:[%s18718_s28 + $0x108] sm:$0xff] }
  0x94   : > { %15423 = vmatprep.mubr.msk.f32.mxu1 %vm327_vm0, %v253_v44  ;;  %15475 = vmatpush3.msra.mxu0 %v18770_v16  ;;  %v18973_v16 = vld [vmem:[%s18718_s28 + $0x12] sm:$0xff]  ;;  %v19167_v44 = vld [vmem:[%s18718_s28 + $0xe2] sm:$0xff] }
  0x95   : > { %15642 = vmatprep.subr.mxu1 %v18862_v45  ;;  %15586 = vmatprep.subr.mxu0 %v18867_v46 }
  0x96   : > { %15312 = vmatmul.mubr.msk.f32.gmra.mrb[2].mxu0 %vm327_vm0, %v254_v47  ;;  %15424 = vmatmul.mubr.msk.f32.gmra.mrb[2].mxu1 %vm327_vm0, %v254_v47  ;;  %v19192_v47 = vld [vmem:[%s18718_s28 + $0xfa] sm:$0xff] }
  0x97   : > { %15314 = vmatprep.mubr.msk.f32.mxu0 %vm327_vm0, %v255_v48  ;;  %15426 = vmatprep.mubr.msk.f32.mxu1 %vm327_vm0, %v255_v48  ;;  %v19195_v48 = vld [vmem:[%s18718_s28 + $0x102] sm:$0xff] }
  0x9a   : > { %15315 = vmatmul.mubr.msk.f32.gmra.mrb[4].mxu0 %vm327_vm0, %v256_v49  ;;  %15427 = vmatmul.mubr.msk.f32.gmra.mrb[4].mxu1 %vm327_vm0, %v256_v49  ;;  %v19206_v49 = vld [vmem:[%s18718_s28 + $0x10a] sm:$0xff] }
  0x9b   : > { %15317 = vmatprep.mubr.msk.f32.mxu0 %vm327_vm0, %v257_v50  ;;  %15429 = vmatprep.mubr.msk.f32.mxu1 %vm327_vm0, %v257_v50  ;;  %v19209_v50 = vld [vmem:[%s18718_s28 + $0x112] sm:$0xff] }
  0x9e   : > { %15318 = vmatmul.mubr.msk.f32.gmra.mrb[6].mxu0 %vm327_vm0, %v258_v51  ;;  %15430 = vmatmul.mubr.msk.f32.gmra.mrb[6].mxu1 %vm327_vm0, %v258_v51  ;;  %v19220_v51 = vld [vmem:[%s18718_s28 + $0x11a] sm:$0xff] }
  0x9f   : > { %15320 = vmatprep.mubr.msk.f32.mxu0 %vm327_vm0, %v259_v52  ;;  %15432 = vmatprep.mubr.msk.f32.mxu1 %vm327_vm0, %v259_v52  ;;  %v1560_v52 = vld [vmem:[%s18718_s28 + $0x122] sm:$0xff] }
  0xa2   : > { %15321 = vmatmul.mubr.msk.f32.gmra.mrb[8].mxu0 %vm327_vm0, %v260_v53  ;;  %15433 = vmatmul.mubr.msk.f32.gmra.mrb[8].mxu1 %vm327_vm0, %v260_v53  ;;  %v1561_v53 = vld [vmem:[%s18718_s28 + $0x12a] sm:$0xff] }
  0xa3   : > { %15323 = vmatprep.mubr.msk.f32.mxu0 %vm327_vm0, %v261_v54  ;;  %15435 = vmatprep.mubr.msk.f32.mxu1 %vm327_vm0, %v261_v54  ;;  %v19231_v54 = vld [vmem:[%s18718_s28 + $0x13] sm:$0xff] }
  0xa6   : > { %15324 = vmatmul.mubr.msk.f32.gmra.mrb[10].mxu0 %vm327_vm0, %v262_v55  ;;  %15436 = vmatmul.mubr.msk.f32.gmra.mrb[10].mxu1 %vm327_vm0, %v262_v55  ;;  %v19240_v55 = vld [vmem:[%s18718_s28 + $0x1b] sm:$0xff] }
  0xa7   : > { %15326 = vmatprep.mubr.msk.f32.mxu0 %vm327_vm0, %v263_v56  ;;  %15438 = vmatprep.mubr.msk.f32.mxu1 %vm327_vm0, %v263_v56  ;;  %v19243_v56 = vld [vmem:[%s18718_s28 + $0x23] sm:$0xff] }
  0xaa   : > { %15327 = vmatmul.mubr.msk.f32.gmra.mrb[12].mxu0 %vm327_vm0, %v264_v57  ;;  %15439 = vmatmul.mubr.msk.f32.gmra.mrb[12].mxu1 %vm327_vm0, %v264_v57  ;;  %v19252_v57 = vld [vmem:[%s22231_s2 + $0x20] sm:$0xff] }
  0xab   : > { %15329 = vmatprep.mubr.msk.f32.mxu0 %vm327_vm0, %v265_v58  ;;  %15441 = vmatprep.mubr.msk.f32.mxu1 %vm327_vm0, %v265_v58  ;;  %v19257_v58 = vld [vmem:[%s22230_s1 + $0x20] sm:$0xff] }
  0xae   : > { %15330 = vmatmul.mubr.msk.f32.gmra.mrb[14].mxu0 %vm327_vm0, %v266_v59  ;;  %15442 = vmatmul.mubr.msk.f32.gmra.mrb[14].mxu1 %vm327_vm0, %v266_v59  ;;  %v19263_v59 = vld [vmem:[%s18718_s28 + $0x2b] sm:$0xff] }
  0xaf   : > { %15332 = vmatprep.mubr.msk.f32.mxu0 %vm327_vm0, %v267_v60  ;;  %15444 = vmatprep.mubr.msk.f32.mxu1 %vm327_vm0, %v267_v60  ;;  %v19268_v60 = vld [vmem:[%s18718_s28 + $0x33] sm:$0xff] }
  0xb2   : > { %15333 = vmatmul.mubr.msk.f32.gmra.mrb[16].mxu0 %vm327_vm0, %v268_v61  ;;  %15445 = vmatmul.mubr.msk.f32.gmra.mrb[16].mxu1 %vm327_vm0, %v268_v61  ;;  %v19282_v61 = vld [vmem:[%s18718_s28 + $0x3b] sm:$0xff] }
  0xb3   : > { %15335 = vmatprep.mubr.msk.f32.mxu0 %vm327_vm0, %v269_v62  ;;  %15447 = vmatprep.mubr.msk.f32.mxu1 %vm327_vm0, %v269_v62  ;;  %v19285_v62 = vld [vmem:[%s18718_s28 + $0x43] sm:$0xff] }
  0xb6   : > { %15336 = vmatmul.mubr.msk.f32.gmra.mrb[18].mxu0 %vm327_vm0, %v270_v63  ;;  %15448 = vmatmul.mubr.msk.f32.gmra.mrb[18].mxu1 %vm327_vm0, %v270_v63  ;;  %v19296_v63 = vld [vmem:[%s18718_s28 + $0x4b] sm:$0xff] }
  0xb7   : > { %15338 = vmatprep.mubr.msk.f32.mxu0 %vm327_vm0, %v271_v0  ;;  %15450 = vmatprep.mubr.msk.f32.mxu1 %vm327_vm0, %v271_v0  ;;  %v19299_v0 = vld [vmem:[%s18718_s28 + $0x53] sm:$0xff] }
  0xba   : > { %15339 = vmatmul.mubr.msk.f32.gmra.mrb[20].mxu0 %vm327_vm0, %v272_v1  ;;  %15451 = vmatmul.mubr.msk.f32.gmra.mrb[20].mxu1 %vm327_vm0, %v272_v1  ;;  %v19310_v1 = vld [vmem:[%s18718_s28 + $0x5b] sm:$0xff] }
  0xbb   : > { %15341 = vmatprep.mubr.msk.f32.mxu0 %vm327_vm0, %v273_v2  ;;  %15453 = vmatprep.mubr.msk.f32.mxu1 %vm327_vm0, %v273_v2  ;;  %v19313_v2 = vld [vmem:[%s18718_s28 + $0x63] sm:$0xff] }
  0xbe   : > { %15342 = vmatmul.mubr.msk.f32.gmra.mrb[22].mxu0 %vm327_vm0, %v274_v3  ;;  %15454 = vmatmul.mubr.msk.f32.gmra.mrb[22].mxu1 %vm327_vm0, %v274_v3  ;;  %v19324_v3 = vld [vmem:[%s18718_s28 + $0x6b] sm:$0xff] }
  0xbf   : > { %15344 = vmatprep.mubr.msk.f32.mxu0 %vm327_vm0, %v275_v4  ;;  %15456 = vmatprep.mubr.msk.f32.mxu1 %vm327_vm0, %v275_v4  ;;  %v19327_v4 = vld [vmem:[%s18718_s28 + $0x73] sm:$0xff] }
  0xc2   : > { %15345 = vmatmul.mubr.msk.f32.gmra.mrb[24].mxu0 %vm327_vm0, %v276_v5  ;;  %15457 = vmatmul.mubr.msk.f32.gmra.mrb[24].mxu1 %vm327_vm0, %v276_v5  ;;  %v19338_v5 = vld [vmem:[%s18718_s28 + $0x7b] sm:$0xff] }
  0xc3   : > { %15347 = vmatprep.mubr.msk.f32.mxu0 %vm327_vm0, %v277_v6  ;;  %15459 = vmatprep.mubr.msk.f32.mxu1 %vm327_vm0, %v277_v6  ;;  %v2250_v6 = vld [vmem:[%s18718_s28 + $0x83] sm:$0xff] }
  0xc6   : > { %15348 = vmatmul.mubr.msk.f32.gmra.mrb[26].mxu0 %vm327_vm0, %v278_v7  ;;  %15460 = vmatmul.mubr.msk.f32.gmra.mrb[26].mxu1 %vm327_vm0, %v278_v7  ;;  %v2251_v7 = vld [vmem:[%s18718_s28 + $0x8b] sm:$0xff] }
  0xc7   : > { %15350 = vmatprep.mubr.msk.f32.mxu0 %vm327_vm0, %v279_v8  ;;  %15462 = vmatprep.mubr.msk.f32.mxu1 %vm327_vm0, %v279_v8  ;;  %v2252_v8 = vld [vmem:[%s18718_s28 + $0x93] sm:$0xff] }
  0xca   : > { %15351 = vmatmul.mubr.msk.f32.gmra.mrb[28].mxu0 %vm327_vm0, %v280_v9  ;;  %15463 = vmatmul.mubr.msk.f32.gmra.mrb[28].mxu1 %vm327_vm0, %v280_v9  ;;  %v2253_v9 = vld [vmem:[%s18718_s28 + $0x9b] sm:$0xff] }
  0xcb   : > { %15353 = vmatprep.mubr.msk.f32.mxu0 %vm327_vm0, %v281_v10  ;;  %15465 = vmatprep.mubr.msk.f32.mxu1 %vm327_vm0, %v281_v10  ;;  %v2254_v10 = vld [vmem:[%s18718_s28 + $0xa3] sm:$0xff] }
  0xce   : > { %15354 = vmatmul.mubr.msk.f32.gmra.mrb[30].mxu0 %vm327_vm0, %v282_v11  ;;  %15466 = vmatmul.mubr.msk.f32.gmra.mrb[30].mxu1 %vm327_vm0, %v282_v11  ;;  %v2255_v11 = vld [vmem:[%s18718_s28 + $0xab] sm:$0xff] }
  0xcf   : > { %15356 = vmatprep.mubr.msk.f32.mxu0 %vm327_vm0, %v283_v12  ;;  %15468 = vmatprep.mubr.msk.f32.mxu1 %vm327_vm0, %v283_v12  ;;  %v2256_v12 = vld [vmem:[%s18718_s28 + $0xb3] sm:$0xff] }
  0xd2   : > { %15357 = vmatmul.mubr.msk.f32.gmra.mrb[32].mxu0 %vm327_vm0, %v284_v13  ;;  %15469 = vmatmul.mubr.msk.f32.gmra.mrb[32].mxu1 %vm327_vm0, %v284_v13  ;;  %v2257_v13 = vld [vmem:[%s18718_s28 + $0xbb] sm:$0xff] }
  0xd3   : > { %15359 = vmatprep.mubr.msk.f32.mxu0 %vm327_vm0, %v285_v14  ;;  %15471 = vmatprep.mubr.msk.f32.mxu1 %vm327_vm0, %v285_v14  ;;  %v2258_v14 = vld [vmem:[%s18718_s28 + $0xc3] sm:$0xff] }
  0xd6   : > { %15360 = vmatmul.mubr.msk.f32.gmra.mrb[34].mxu0 %vm327_vm0, %v286_v15  ;;  %15472 = vmatmul.mubr.msk.f32.gmra.mrb[34].mxu1 %vm327_vm0, %v286_v15  ;;  %v2259_v15 = vld [vmem:[%s18718_s28 + $0xcb] sm:$0xff] }
  0xd7   : > { %15476 = vmatprep.mubr.msk.f32.mxu0 %vm327_vm0, %v18973_v16  ;;  %15532 = vmatprep.mubr.msk.f32.mxu1 %vm327_vm0, %v18973_v16 }
  0xda   : > { %15477 = vmatmul.mubr.msk.f32.vlgmr.msra.gmra.mrb[0].mxu0 %vm327_vm0, %v18982_v17  ;;  %15533 = vmatmul.mubr.msk.f32.vlgmr.msra.gmra.mrb[0].mxu1 %vm327_vm0, %v18982_v17 }
  0xdb   : > { %15643 = vmatpush3.msra.mxu1 %v18862_v45  ;;  %15479 = vmatprep.mubr.msk.f32.mxu0 %vm327_vm0, %v18985_v18  ;;  %v19178_v45 = vld [vmem:[%s18718_s28 + $0xea] sm:$0xff] }
  0xdc   : > { %15535 = vmatprep.mubr.msk.f32.mxu1 %vm327_vm0, %v18985_v18  ;;  %15587 = vmatpush3.msra.mxu0 %v18867_v46  ;;  %v19181_v46 = vld [vmem:[%s18718_s28 + $0xf2] sm:$0xff] }
  0xdd   : > { %15810 = vmatprep.subr.mxu1 %v18994_v19  ;;  %15698 = vmatprep.subr.mxu0 %v18999_v20 }
  0xde   : > { %15480 = vmatmul.mubr.msk.f32.gmra.mrb[2].mxu0 %vm327_vm0, %v19005_v21  ;;  %15536 = vmatmul.mubr.msk.f32.gmra.mrb[2].mxu1 %vm327_vm0, %v19005_v21 }
  0xdf   : > { %15482 = vmatprep.mubr.msk.f32.mxu0 %vm327_vm0, %v19010_v22  ;;  %15538 = vmatprep.mubr.msk.f32.mxu1 %vm327_vm0, %v19010_v22 }
  0xe2   : > { %15483 = vmatmul.mubr.msk.f32.gmra.mrb[4].mxu0 %vm327_vm0, %v19024_v23  ;;  %15539 = vmatmul.mubr.msk.f32.gmra.mrb[4].mxu1 %vm327_vm0, %v19024_v23 }
  0xe3   : > { %15485 = vmatprep.mubr.msk.f32.mxu0 %vm327_vm0, %v19027_v24  ;;  %15541 = vmatprep.mubr.msk.f32.mxu1 %vm327_vm0, %v19027_v24 }
  0xe6   : > { %15486 = vmatmul.mubr.msk.f32.gmra.mrb[6].mxu0 %vm327_vm0, %v19038_v25  ;;  %15542 = vmatmul.mubr.msk.f32.gmra.mrb[6].mxu1 %vm327_vm0, %v19038_v25 }
  0xe7   : > { %15488 = vmatprep.mubr.msk.f32.mxu0 %vm327_vm0, %v19041_v26  ;;  %15544 = vmatprep.mubr.msk.f32.mxu1 %vm327_vm0, %v19041_v26 }
  0xea   : > { %15489 = vmatmul.mubr.msk.f32.gmra.mrb[8].mxu0 %vm327_vm0, %v19052_v27  ;;  %15545 = vmatmul.mubr.msk.f32.gmra.mrb[8].mxu1 %vm327_vm0, %v19052_v27 }
  0xeb   : > { %15491 = vmatprep.mubr.msk.f32.mxu0 %vm327_vm0, %v19055_v28  ;;  %15547 = vmatprep.mubr.msk.f32.mxu1 %vm327_vm0, %v19055_v28 }
  0xee   : > { %15492 = vmatmul.mubr.msk.f32.gmra.mrb[10].mxu0 %vm327_vm0, %v19066_v29  ;;  %15548 = vmatmul.mubr.msk.f32.gmra.mrb[10].mxu1 %vm327_vm0, %v19066_v29 }
  0xef   : > { %15494 = vmatprep.mubr.msk.f32.mxu0 %vm327_vm0, %v19069_v30  ;;  %15550 = vmatprep.mubr.msk.f32.mxu1 %vm327_vm0, %v19069_v30 }
  0xf2   : > { %15495 = vmatmul.mubr.msk.f32.gmra.mrb[12].mxu0 %vm327_vm0, %v19080_v31  ;;  %15551 = vmatmul.mubr.msk.f32.gmra.mrb[12].mxu1 %vm327_vm0, %v19080_v31 }
  0xf3   : > { %15497 = vmatprep.mubr.msk.f32.mxu0 %vm327_vm0, %v19083_v32  ;;  %15553 = vmatprep.mubr.msk.f32.mxu1 %vm327_vm0, %v19083_v32 }
  0xf6   : > { %15498 = vmatmul.mubr.msk.f32.gmra.mrb[14].mxu0 %vm327_vm0, %v19094_v33  ;;  %15554 = vmatmul.mubr.msk.f32.gmra.mrb[14].mxu1 %vm327_vm0, %v19094_v33 }
  0xf7   : > { %15500 = vmatprep.mubr.msk.f32.mxu0 %vm327_vm0, %v19097_v34  ;;  %15556 = vmatprep.mubr.msk.f32.mxu1 %vm327_vm0, %v19097_v34 }
  0xfa   : > { %15501 = vmatmul.mubr.msk.f32.gmra.mrb[16].mxu0 %vm327_vm0, %v19108_v35  ;;  %15557 = vmatmul.mubr.msk.f32.gmra.mrb[16].mxu1 %vm327_vm0, %v19108_v35 }
  0xfb   : > { %15503 = vmatprep.mubr.msk.f32.mxu0 %vm327_vm0, %v19111_v36  ;;  %15559 = vmatprep.mubr.msk.f32.mxu1 %vm327_vm0, %v19111_v36 }
  0xfe   : > { %15504 = vmatmul.mubr.msk.f32.gmra.mrb[18].mxu0 %vm327_vm0, %v19122_v37  ;;  %15560 = vmatmul.mubr.msk.f32.gmra.mrb[18].mxu1 %vm327_vm0, %v19122_v37 }
  0xff   : > { %15506 = vmatprep.mubr.msk.f32.mxu0 %vm327_vm0, %v19125_v38  ;;  %15562 = vmatprep.mubr.msk.f32.mxu1 %vm327_vm0, %v19125_v38 }
 0x102   : > { %15507 = vmatmul.mubr.msk.f32.gmra.mrb[20].mxu0 %vm327_vm0, %v19136_v39  ;;  %15563 = vmatmul.mubr.msk.f32.gmra.mrb[20].mxu1 %vm327_vm0, %v19136_v39 }
 0x103   : > { %15509 = vmatprep.mubr.msk.f32.mxu0 %vm327_vm0, %v19139_v40  ;;  %15565 = vmatprep.mubr.msk.f32.mxu1 %vm327_vm0, %v19139_v40 }
 0x106   : > { %15510 = vmatmul.mubr.msk.f32.gmra.mrb[22].mxu0 %vm327_vm0, %v19150_v41  ;;  %15566 = vmatmul.mubr.msk.f32.gmra.mrb[22].mxu1 %vm327_vm0, %v19150_v41 }
 0x107   : > { %15512 = vmatprep.mubr.msk.f32.mxu0 %vm327_vm0, %v19153_v42  ;;  %15568 = vmatprep.mubr.msk.f32.mxu1 %vm327_vm0, %v19153_v42 }
 0x10a   : > { %15513 = vmatmul.mubr.msk.f32.gmra.mrb[24].mxu0 %vm327_vm0, %v19164_v43  ;;  %15569 = vmatmul.mubr.msk.f32.gmra.mrb[24].mxu1 %vm327_vm0, %v19164_v43 }
 0x10b   : > { %15515 = vmatprep.mubr.msk.f32.mxu0 %vm327_vm0, %v19167_v44  ;;  %15571 = vmatprep.mubr.msk.f32.mxu1 %vm327_vm0, %v19167_v44 }
 0x10e   : > { %15516 = vmatmul.mubr.msk.f32.gmra.mrb[26].mxu0 %vm327_vm0, %v19178_v45  ;;  %15572 = vmatmul.mubr.msk.f32.gmra.mrb[26].mxu1 %vm327_vm0, %v19178_v45 }
 0x10f   : > { %15518 = vmatprep.mubr.msk.f32.mxu0 %vm327_vm0, %v19181_v46  ;;  %15574 = vmatprep.mubr.msk.f32.mxu1 %vm327_vm0, %v19181_v46 }
 0x112   : > { %15519 = vmatmul.mubr.msk.f32.gmra.mrb[28].mxu0 %vm327_vm0, %v19192_v47  ;;  %15575 = vmatmul.mubr.msk.f32.gmra.mrb[28].mxu1 %vm327_vm0, %v19192_v47 }
 0x113   : > { %15521 = vmatprep.mubr.msk.f32.mxu0 %vm327_vm0, %v19195_v48  ;;  %15577 = vmatprep.mubr.msk.f32.mxu1 %vm327_vm0, %v19195_v48 }
 0x116   : > { %15522 = vmatmul.mubr.msk.f32.gmra.mrb[30].mxu0 %vm327_vm0, %v19206_v49  ;;  %15578 = vmatmul.mubr.msk.f32.gmra.mrb[30].mxu1 %vm327_vm0, %v19206_v49 }
 0x117   : > { %15524 = vmatprep.mubr.msk.f32.mxu0 %vm327_vm0, %v19209_v50  ;;  %15580 = vmatprep.mubr.msk.f32.mxu1 %vm327_vm0, %v19209_v50 }
 0x11a   : > { %15525 = vmatmul.mubr.msk.f32.gmra.mrb[32].mxu0 %vm327_vm0, %v19220_v51  ;;  %15581 = vmatmul.mubr.msk.f32.gmra.mrb[32].mxu1 %vm327_vm0, %v19220_v51 }
 0x11b   : > { %15527 = vmatprep.mubr.msk.f32.mxu0 %vm327_vm0, %v1560_v52  ;;  %15583 = vmatprep.mubr.msk.f32.mxu1 %vm327_vm0, %v1560_v52  ;;  %v2262_v52 = vld [vmem:[%s18718_s28 + $0xe3] sm:$0xff] }
 0x11e   : > { %15528 = vmatmul.mubr.msk.f32.gmra.mrb[34].mxu0 %vm327_vm0, %v1561_v53  ;;  %15584 = vmatmul.mubr.msk.f32.gmra.mrb[34].mxu1 %vm327_vm0, %v1561_v53  ;;  %v2263_v53 = vld [vmem:[%s18718_s28 + $0xeb] sm:$0xff] }
 0x11f   : > { %15588 = vmatprep.mubr.msk.f32.mxu0 %vm327_vm0, %v19231_v54  ;;  %15644 = vmatprep.mubr.msk.f32.mxu1 %vm327_vm0, %v19231_v54 }
 0x122   : > { %15589 = vmatmul.mubr.msk.f32.vlgmr.msra.gmra.mrb[0].mxu0 %vm327_vm0, %v19240_v55  ;;  %15645 = vmatmul.mubr.msk.f32.vlgmr.msra.gmra.mrb[0].mxu1 %vm327_vm0, %v19240_v55 }
 0x123   : > { %15811 = vmatpush3.msra.mxu1 %v18994_v19  ;;  %15591 = vmatprep.mubr.msk.f32.mxu0 %vm327_vm0, %v19243_v56  ;;  %v2260_v19 = vld [vmem:[%s18718_s28 + $0xd3] sm:$0xff] }
 0x124   : > { %15647 = vmatprep.mubr.msk.f32.mxu1 %vm327_vm0, %v19243_v56  ;;  %15699 = vmatpush3.msra.mxu0 %v18999_v20  ;;  %v2261_v20 = vld [vmem:[%s18718_s28 + $0xdb] sm:$0xff] }
 0x125   : > { %15866 = vmatprep.subr.mxu1 %v19252_v57  ;;  %15754 = vmatprep.subr.mxu0 %v19257_v58 }
 0x126   : > { %15592 = vmatmul.mubr.msk.f32.gmra.mrb[2].mxu0 %vm327_vm0, %v19263_v59  ;;  %15648 = vmatmul.mubr.msk.f32.gmra.mrb[2].mxu1 %vm327_vm0, %v19263_v59 }
 0x127   : > { %15594 = vmatprep.mubr.msk.f32.mxu0 %vm327_vm0, %v19268_v60  ;;  %15650 = vmatprep.mubr.msk.f32.mxu1 %vm327_vm0, %v19268_v60 }
 0x12a   : > { %15595 = vmatmul.mubr.msk.f32.gmra.mrb[4].mxu0 %vm327_vm0, %v19282_v61  ;;  %15651 = vmatmul.mubr.msk.f32.gmra.mrb[4].mxu1 %vm327_vm0, %v19282_v61 }
 0x12b   : > { %15597 = vmatprep.mubr.msk.f32.mxu0 %vm327_vm0, %v19285_v62  ;;  %15653 = vmatprep.mubr.msk.f32.mxu1 %vm327_vm0, %v19285_v62 }
 0x12e   : > { %15598 = vmatmul.mubr.msk.f32.gmra.mrb[6].mxu0 %vm327_vm0, %v19296_v63  ;;  %15654 = vmatmul.mubr.msk.f32.gmra.mrb[6].mxu1 %vm327_vm0, %v19296_v63 }
 0x12f   : > { %15600 = vmatprep.mubr.msk.f32.mxu0 %vm327_vm0, %v19299_v0  ;;  %15656 = vmatprep.mubr.msk.f32.mxu1 %vm327_vm0, %v19299_v0 }
 0x132   : > { %15601 = vmatmul.mubr.msk.f32.gmra.mrb[8].mxu0 %vm327_vm0, %v19310_v1  ;;  %15657 = vmatmul.mubr.msk.f32.gmra.mrb[8].mxu1 %vm327_vm0, %v19310_v1 }
 0x133   : > { %15603 = vmatprep.mubr.msk.f32.mxu0 %vm327_vm0, %v19313_v2  ;;  %15659 = vmatprep.mubr.msk.f32.mxu1 %vm327_vm0, %v19313_v2 }
 0x136   : > { %15604 = vmatmul.mubr.msk.f32.gmra.mrb[10].mxu0 %vm327_vm0, %v19324_v3  ;;  %15660 = vmatmul.mubr.msk.f32.gmra.mrb[10].mxu1 %vm327_vm0, %v19324_v3 }
 0x137   : > { %15606 = vmatprep.mubr.msk.f32.mxu0 %vm327_vm0, %v19327_v4  ;;  %15662 = vmatprep.mubr.msk.f32.mxu1 %vm327_vm0, %v19327_v4 }
 0x13a   : > { %15607 = vmatmul.mubr.msk.f32.gmra.mrb[12].mxu0 %vm327_vm0, %v19338_v5  ;;  %15663 = vmatmul.mubr.msk.f32.gmra.mrb[12].mxu1 %vm327_vm0, %v19338_v5 }
 0x13b   : > { %15609 = vmatprep.mubr.msk.f32.mxu0 %vm327_vm0, %v2250_v6  ;;  %15665 = vmatprep.mubr.msk.f32.mxu1 %vm327_vm0, %v2250_v6  ;;  %v2264_v6 = vld [vmem:[%s18718_s28 + $0xf3] sm:$0xff] }
 0x13e   : > { %15610 = vmatmul.mubr.msk.f32.gmra.mrb[14].mxu0 %vm327_vm0, %v2251_v7  ;;  %15666 = vmatmul.mubr.msk.f32.gmra.mrb[14].mxu1 %vm327_vm0, %v2251_v7  ;;  %v2265_v7 = vld [vmem:[%s18718_s28 + $0xfb] sm:$0xff] }
 0x13f   : > { %15612 = vmatprep.mubr.msk.f32.mxu0 %vm327_vm0, %v2252_v8  ;;  %15668 = vmatprep.mubr.msk.f32.mxu1 %vm327_vm0, %v2252_v8  ;;  %v2266_v8 = vld [vmem:[%s18718_s28 + $0x103] sm:$0xff] }
 0x142   : > { %15613 = vmatmul.mubr.msk.f32.gmra.mrb[16].mxu0 %vm327_vm0, %v2253_v9  ;;  %15669 = vmatmul.mubr.msk.f32.gmra.mrb[16].mxu1 %vm327_vm0, %v2253_v9  ;;  %v2267_v9 = vld [vmem:[%s18718_s28 + $0x10b] sm:$0xff] }
 0x143   : > { %15615 = vmatprep.mubr.msk.f32.mxu0 %vm327_vm0, %v2254_v10  ;;  %15671 = vmatprep.mubr.msk.f32.mxu1 %vm327_vm0, %v2254_v10  ;;  %v2268_v10 = vld [vmem:[%s18718_s28 + $0x113] sm:$0xff] }
 0x146   : > { %15616 = vmatmul.mubr.msk.f32.gmra.mrb[18].mxu0 %vm327_vm0, %v2255_v11  ;;  %15672 = vmatmul.mubr.msk.f32.gmra.mrb[18].mxu1 %vm327_vm0, %v2255_v11  ;;  %v2269_v11 = vld [vmem:[%s18718_s28 + $0x11b] sm:$0xff] }
 0x147   : > { %15618 = vmatprep.mubr.msk.f32.mxu0 %vm327_vm0, %v2256_v12  ;;  %15674 = vmatprep.mubr.msk.f32.mxu1 %vm327_vm0, %v2256_v12  ;;  %v2270_v12 = vld [vmem:[%s18718_s28 + $0x123] sm:$0xff] }
 0x14a   : > { %15619 = vmatmul.mubr.msk.f32.gmra.mrb[20].mxu0 %vm327_vm0, %v2257_v13  ;;  %15675 = vmatmul.mubr.msk.f32.gmra.mrb[20].mxu1 %vm327_vm0, %v2257_v13  ;;  %v2271_v13 = vld [vmem:[%s18718_s28 + $0x12b] sm:$0xff] }
 0x14b   : > { %15621 = vmatprep.mubr.msk.f32.mxu0 %vm327_vm0, %v2258_v14  ;;  %15677 = vmatprep.mubr.msk.f32.mxu1 %vm327_vm0, %v2258_v14  ;;  %v3361_v14 = vld [vmem:[%s18718_s28 + $0x2] sm:$0xff] }
 0x14e   : > { %15622 = vmatmul.mubr.msk.f32.gmra.mrb[22].mxu0 %vm327_vm0, %v2259_v15  ;;  %15678 = vmatmul.mubr.msk.f32.gmra.mrb[22].mxu1 %vm327_vm0, %v2259_v15  ;;  %v3362_v15 = vld [vmem:[%s18718_s28 + $0xa] sm:$0xff] }
 0x14f   : > { %15624 = vmatprep.mubr.msk.f32.mxu0 %vm327_vm0, %v2260_v19  ;;  %15680 = vmatprep.mubr.msk.f32.mxu1 %vm327_vm0, %v2260_v19  ;;  %v19419_v19 = vld [vmem:[%s22231_s2 + $0x30] sm:$0xff] }
 0x152   : > { %15625 = vmatmul.mubr.msk.f32.gmra.mrb[24].mxu0 %vm327_vm0, %v2261_v20  ;;  %15681 = vmatmul.mubr.msk.f32.gmra.mrb[24].mxu1 %vm327_vm0, %v2261_v20  ;;  %v19424_v20 = vld [vmem:[%s22230_s1 + $0x30] sm:$0xff] }
 0x153   : > { %15627 = vmatprep.mubr.msk.f32.mxu0 %vm327_vm0, %v2262_v52  ;;  %15683 = vmatprep.mubr.msk.f32.mxu1 %vm327_vm0, %v2262_v52  ;;  %v3355_v52 = vld [vmem:[%s18718_s28 + $0x111] sm:$0xff] }
 0x156   : > { %15628 = vmatmul.mubr.msk.f32.gmra.mrb[26].mxu0 %vm327_vm0, %v2263_v53  ;;  %15684 = vmatmul.mubr.msk.f32.gmra.mrb[26].mxu1 %vm327_vm0, %v2263_v53  ;;  %v19683_v53 = vld [vmem:[#allocation4] ss:$0 sm:$0xff] }
 0x157   : > { %15630 = vmatprep.mubr.msk.f32.mxu0 %vm327_vm0, %v2264_v6  ;;  %15686 = vmatprep.mubr.msk.f32.mxu1 %vm327_vm0, %v2264_v6  ;;  %v3356_v6 = vld [vmem:[%s18718_s28 + $0x119] sm:$0xff] }
 0x15a   : > { %15631 = vmatmul.mubr.msk.f32.gmra.mrb[28].mxu0 %vm327_vm0, %v2265_v7  ;;  %15687 = vmatmul.mubr.msk.f32.gmra.mrb[28].mxu1 %vm327_vm0, %v2265_v7 }
 0x15b   : > { %15633 = vmatprep.mubr.msk.f32.mxu0 %vm327_vm0, %v2266_v8  ;;  %15689 = vmatprep.mubr.msk.f32.mxu1 %vm327_vm0, %v2266_v8 }
 0x15e   : > { %15634 = vmatmul.mubr.msk.f32.gmra.mrb[30].mxu0 %vm327_vm0, %v2267_v9  ;;  %15690 = vmatmul.mubr.msk.f32.gmra.mrb[30].mxu1 %vm327_vm0, %v2267_v9 }
 0x15f   : > { %15636 = vmatprep.mubr.msk.f32.mxu0 %vm327_vm0, %v2268_v10  ;;  %15692 = vmatprep.mubr.msk.f32.mxu1 %vm327_vm0, %v2268_v10 }
 0x162   : > { %15637 = vmatmul.mubr.msk.f32.gmra.mrb[32].mxu0 %vm327_vm0, %v2269_v11  ;;  %15693 = vmatmul.mubr.msk.f32.gmra.mrb[32].mxu1 %vm327_vm0, %v2269_v11 }
 0x163   : > { %15639 = vmatprep.mubr.msk.f32.mxu0 %vm327_vm0, %v2270_v12  ;;  %15695 = vmatprep.mubr.msk.f32.mxu1 %vm327_vm0, %v2270_v12 }
 0x166   : > { %15640 = vmatmul.mubr.msk.f32.gmra.mrb[34].mxu0 %vm327_vm0, %v2271_v13  ;;  %15696 = vmatmul.mubr.msk.f32.gmra.mrb[34].mxu1 %vm327_vm0, %v2271_v13 }
 0x167   : > { %15700 = vmatprep.mubr.msk.f32.mxu0 %vm327_vm0, %v3361_v14  ;;  %15812 = vmatprep.mubr.msk.f32.mxu1 %vm327_vm0, %v3361_v14 }
 0x16a   : > { %15701 = vmatmul.mubr.msk.f32.vlgmr.msra.gmra.mrb[36].mxu0 %vm327_vm0, %v3362_v15  ;;  %15813 = vmatmul.mubr.msk.f32.vlgmr.msra.gmra.mrb[36].mxu1 %vm327_vm0, %v3362_v15 }
 0x16b   : > { %15867 = vmatpush3.msra.mxu1 %v19252_v57  ;;  %15703 = vmatprep.mubr.msk.f32.mxu0 %vm327_vm0, %v18973_v16  ;;  %v3353_v57 = vld [vmem:[%s18718_s28 + $0x101] sm:$0xff] }
 0x16c   : > { %15815 = vmatprep.mubr.msk.f32.mxu1 %vm327_vm0, %v18973_v16  ;;  %15755 = vmatpush3.msra.mxu0 %v19257_v58  ;;  %v3321_v16 = vld [vmem:[%s18718_s28 + $0x1] sm:$0xff]  ;;  %v3354_v58 = vld [vmem:[%s18718_s28 + $0x109] sm:$0xff] }
 0x16d   : > { %15978 = vmatprep.subr.mxu1 %v19419_v19  ;;  %15922 = vmatprep.subr.mxu0 %v19424_v20 }
 0x16e   : > { %15704 = vmatmul.mubr.msk.f32.gmra.mrb[38].mxu0 %vm327_vm0, %v18982_v17  ;;  %15816 = vmatmul.mubr.msk.f32.gmra.mrb[38].mxu1 %vm327_vm0, %v18982_v17  ;;  %v3322_v17 = vld [vmem:[%s18718_s28 + $0x9] sm:$0xff] }
 0x16f   : > { %15706 = vmatprep.mubr.msk.f32.mxu0 %vm327_vm0, %v18985_v18  ;;  %15818 = vmatprep.mubr.msk.f32.mxu1 %vm327_vm0, %v18985_v18  ;;  %v3323_v18 = vld [vmem:[%s18718_s28 + $0x11] sm:$0xff] }
 0x172   : > { %15707 = vmatmul.mubr.msk.f32.gmra.mrb[40].mxu0 %vm327_vm0, %v19005_v21  ;;  %15819 = vmatmul.mubr.msk.f32.gmra.mrb[40].mxu1 %vm327_vm0, %v19005_v21  ;;  %v19576_v21 = vld [vmem:[%s22231_s2 + $0x38] sm:$0xff] }
 0x173   : > { %15709 = vmatprep.mubr.msk.f32.mxu0 %vm327_vm0, %v19010_v22  ;;  %15821 = vmatprep.mubr.msk.f32.mxu1 %vm327_vm0, %v19010_v22  ;;  %v3324_v22 = vld [vmem:[%s18718_s28 + $0x19] sm:$0xff] }
 0x176   : > { %15710 = vmatmul.mubr.msk.f32.gmra.mrb[42].mxu0 %vm327_vm0, %v19024_v23  ;;  %15822 = vmatmul.mubr.msk.f32.gmra.mrb[42].mxu1 %vm327_vm0, %v19024_v23  ;;  %v19584_v23 = vld [vmem:[%s22230_s1 + $0x38] sm:$0xff] }
 0x177   : > { %15712 = vmatprep.mubr.msk.f32.mxu0 %vm327_vm0, %v19027_v24  ;;  %15824 = vmatprep.mubr.msk.f32.mxu1 %vm327_vm0, %v19027_v24  ;;  %v3325_v24 = vld [vmem:[%s18718_s28 + $0x21] sm:$0xff] }
 0x17a   : > { %15713 = vmatmul.mubr.msk.f32.gmra.mrb[44].mxu0 %vm327_vm0, %v19038_v25  ;;  %15825 = vmatmul.mubr.msk.f32.gmra.mrb[44].mxu1 %vm327_vm0, %v19038_v25  ;;  %v3326_v25 = vld [vmem:[%s18718_s28 + $0x29] sm:$0xff] }
 0x17b   : > { %15715 = vmatprep.mubr.msk.f32.mxu0 %vm327_vm0, %v19041_v26  ;;  %15827 = vmatprep.mubr.msk.f32.mxu1 %vm327_vm0, %v19041_v26  ;;  %v3327_v26 = vld [vmem:[%s18718_s28 + $0x31] sm:$0xff] }
 0x17e   : > { %15716 = vmatmul.mubr.msk.f32.gmra.mrb[46].mxu0 %vm327_vm0, %v19052_v27  ;;  %15828 = vmatmul.mubr.msk.f32.gmra.mrb[46].mxu1 %vm327_vm0, %v19052_v27  ;;  %v3328_v27 = vld [vmem:[%s18718_s28 + $0x39] sm:$0xff] }
 0x17f   : > { %15718 = vmatprep.mubr.msk.f32.mxu0 %vm327_vm0, %v19055_v28  ;;  %15830 = vmatprep.mubr.msk.f32.mxu1 %vm327_vm0, %v19055_v28  ;;  %v3329_v28 = vld [vmem:[%s18718_s28 + $0x41] sm:$0xff] }
 0x182   : > { %15719 = vmatmul.mubr.msk.f32.gmra.mrb[48].mxu0 %vm327_vm0, %v19066_v29  ;;  %15831 = vmatmul.mubr.msk.f32.gmra.mrb[48].mxu1 %vm327_vm0, %v19066_v29  ;;  %v3330_v29 = vld [vmem:[%s18718_s28 + $0x49] sm:$0xff] }
 0x183   : > { %15721 = vmatprep.mubr.msk.f32.mxu0 %vm327_vm0, %v19069_v30  ;;  %15833 = vmatprep.mubr.msk.f32.mxu1 %vm327_vm0, %v19069_v30  ;;  %v3331_v30 = vld [vmem:[%s18718_s28 + $0x51] sm:$0xff] }
 0x186   : > { %15722 = vmatmul.mubr.msk.f32.gmra.mrb[50].mxu0 %vm327_vm0, %v19080_v31  ;;  %15834 = vmatmul.mubr.msk.f32.gmra.mrb[50].mxu1 %vm327_vm0, %v19080_v31  ;;  %v3332_v31 = vld [vmem:[%s18718_s28 + $0x59] sm:$0xff] }
 0x187   : > { %15724 = vmatprep.mubr.msk.f32.mxu0 %vm327_vm0, %v19083_v32  ;;  %15836 = vmatprep.mubr.msk.f32.mxu1 %vm327_vm0, %v19083_v32  ;;  %v3333_v32 = vld [vmem:[%s18718_s28 + $0x61] sm:$0xff] }
 0x18a   : > { %15725 = vmatmul.mubr.msk.f32.gmra.mrb[52].mxu0 %vm327_vm0, %v19094_v33  ;;  %15837 = vmatmul.mubr.msk.f32.gmra.mrb[52].mxu1 %vm327_vm0, %v19094_v33  ;;  %v3334_v33 = vld [vmem:[%s18718_s28 + $0x69] sm:$0xff] }
 0x18b   : > { %15727 = vmatprep.mubr.msk.f32.mxu0 %vm327_vm0, %v19097_v34  ;;  %15839 = vmatprep.mubr.msk.f32.mxu1 %vm327_vm0, %v19097_v34  ;;  %v3335_v34 = vld [vmem:[%s18718_s28 + $0x71] sm:$0xff] }
 0x18e   : > { %15728 = vmatmul.mubr.msk.f32.gmra.mrb[54].mxu0 %vm327_vm0, %v19108_v35  ;;  %15840 = vmatmul.mubr.msk.f32.gmra.mrb[54].mxu1 %vm327_vm0, %v19108_v35  ;;  %v3336_v35 = vld [vmem:[%s18718_s28 + $0x79] sm:$0xff] }
 0x18f   : > { %15730 = vmatprep.mubr.msk.f32.mxu0 %vm327_vm0, %v19111_v36  ;;  %15842 = vmatprep.mubr.msk.f32.mxu1 %vm327_vm0, %v19111_v36  ;;  %v3337_v36 = vld [vmem:[%s18718_s28 + $0x81] sm:$0xff] }
 0x192   : > { %15731 = vmatmul.mubr.msk.f32.gmra.mrb[56].mxu0 %vm327_vm0, %v19122_v37  ;;  %15843 = vmatmul.mubr.msk.f32.gmra.mrb[56].mxu1 %vm327_vm0, %v19122_v37  ;;  %v3338_v37 = vld [vmem:[%s18718_s28 + $0x89] sm:$0xff] }
 0x193   : > { %15733 = vmatprep.mubr.msk.f32.mxu0 %vm327_vm0, %v19125_v38  ;;  %15845 = vmatprep.mubr.msk.f32.mxu1 %vm327_vm0, %v19125_v38  ;;  %v3339_v38 = vld [vmem:[%s18718_s28 + $0x91] sm:$0xff] }
 0x196   : > { %15734 = vmatmul.mubr.msk.f32.gmra.mrb[58].mxu0 %vm327_vm0, %v19136_v39  ;;  %15846 = vmatmul.mubr.msk.f32.gmra.mrb[58].mxu1 %vm327_vm0, %v19136_v39  ;;  %v3340_v39 = vld [vmem:[%s18718_s28 + $0x99] sm:$0xff] }
 0x197   : > { %15736 = vmatprep.mubr.msk.f32.mxu0 %vm327_vm0, %v19139_v40  ;;  %15848 = vmatprep.mubr.msk.f32.mxu1 %vm327_vm0, %v19139_v40  ;;  %v3341_v40 = vld [vmem:[%s18718_s28 + $0xa1] sm:$0xff] }
 0x19a   : > { %15737 = vmatmul.mubr.msk.f32.gmra.mrb[60].mxu0 %vm327_vm0, %v19150_v41  ;;  %15849 = vmatmul.mubr.msk.f32.gmra.mrb[60].mxu1 %vm327_vm0, %v19150_v41  ;;  %v3342_v41 = vld [vmem:[%s18718_s28 + $0xa9] sm:$0xff] }
 0x19b   : > { %15739 = vmatprep.mubr.msk.f32.mxu0 %vm327_vm0, %v19153_v42  ;;  %15851 = vmatprep.mubr.msk.f32.mxu1 %vm327_vm0, %v19153_v42  ;;  %v3343_v42 = vld [vmem:[%s18718_s28 + $0xb1] sm:$0xff] }
 0x19e   : > { %15740 = vmatmul.mubr.msk.f32.gmra.mrb[62].mxu0 %vm327_vm0, %v19164_v43  ;;  %15852 = vmatmul.mubr.msk.f32.gmra.mrb[62].mxu1 %vm327_vm0, %v19164_v43  ;;  %v3344_v43 = vld [vmem:[%s18718_s28 + $0xb9] sm:$0xff] }
 0x19f   : > { %15742 = vmatprep.mubr.msk.f32.mxu0 %vm327_vm0, %v19167_v44  ;;  %15854 = vmatprep.mubr.msk.f32.mxu1 %vm327_vm0, %v19167_v44  ;;  %v3345_v44 = vld [vmem:[%s18718_s28 + $0xc1] sm:$0xff] }
 0x1a2   : > { %15743 = vmatmul.mubr.msk.f32.gmra.mrb[64].mxu0 %vm327_vm0, %v19178_v45  ;;  %15855 = vmatmul.mubr.msk.f32.gmra.mrb[64].mxu1 %vm327_vm0, %v19178_v45  ;;  %v3346_v45 = vld [vmem:[%s18718_s28 + $0xc9] sm:$0xff] }
 0x1a3   : > { %15745 = vmatprep.mubr.msk.f32.mxu0 %vm327_vm0, %v19181_v46  ;;  %15857 = vmatprep.mubr.msk.f32.mxu1 %vm327_vm0, %v19181_v46  ;;  %v3347_v46 = vld [vmem:[%s18718_s28 + $0xd1] sm:$0xff] }
 0x1a6   : > { %15746 = vmatmul.mubr.msk.f32.gmra.mrb[66].mxu0 %vm327_vm0, %v19192_v47  ;;  %15858 = vmatmul.mubr.msk.f32.gmra.mrb[66].mxu1 %vm327_vm0, %v19192_v47  ;;  %v3348_v47 = vld [vmem:[%s18718_s28 + $0xd9] sm:$0xff] }
 0x1a7   : > { %15748 = vmatprep.mubr.msk.f32.mxu0 %vm327_vm0, %v19195_v48  ;;  %15860 = vmatprep.mubr.msk.f32.mxu1 %vm327_vm0, %v19195_v48  ;;  %v3349_v48 = vld [vmem:[%s18718_s28 + $0xe1] sm:$0xff] }
 0x1aa   : > { %15749 = vmatmul.mubr.msk.f32.gmra.mrb[68].mxu0 %vm327_vm0, %v19206_v49  ;;  %15861 = vmatmul.mubr.msk.f32.gmra.mrb[68].mxu1 %vm327_vm0, %v19206_v49  ;;  %v3350_v49 = vld [vmem:[%s18718_s28 + $0xe9] sm:$0xff] }
 0x1ab   : > { %15751 = vmatprep.mubr.msk.f32.mxu0 %vm327_vm0, %v19209_v50  ;;  %15863 = vmatprep.mubr.msk.f32.mxu1 %vm327_vm0, %v19209_v50  ;;  %v3351_v50 = vld [vmem:[%s18718_s28 + $0xf1] sm:$0xff] }
 0x1ae   : > { %15752 = vmatmul.mubr.msk.f32.gmra.mrb[70].mxu0 %vm327_vm0, %v19220_v51  ;;  %15864 = vmatmul.mubr.msk.f32.gmra.mrb[70].mxu1 %vm327_vm0, %v19220_v51  ;;  %v3352_v51 = vld [vmem:[%s18718_s28 + $0xf9] sm:$0xff] }
 0x1af   : > { %15756 = vmatprep.mubr.msk.f32.mxu0 %vm327_vm0, %v3321_v16  ;;  %15868 = vmatprep.mubr.msk.f32.mxu1 %vm327_vm0, %v3321_v16 }
 0x1b2   : > { %15757 = vmatmul.mubr.msk.f32.vlgmr.msra.gmra.mrb[36].mxu0 %vm327_vm0, %v3322_v17  ;;  %15869 = vmatmul.mubr.msk.f32.vlgmr.msra.gmra.mrb[36].mxu1 %vm327_vm0, %v3322_v17 }
 0x1b3   : > { %15979 = vmatpush3.msra.mxu1 %v19419_v19  ;;  %15759 = vmatprep.mubr.msk.f32.mxu0 %vm327_vm0, %v3323_v18 }
 0x1b4   : > { %15871 = vmatprep.mubr.msk.f32.mxu1 %vm327_vm0, %v3323_v18  ;;  %15923 = vmatpush3.msra.mxu0 %v19424_v20  ;;  %v19717_v18 = vld [vmem:[%s22230_s1 + $0x48] sm:$0xff] }
 0x1b5   : > { %16090 = vmatprep.subr.mxu1 %v19576_v21  ;;  %16034 = vmatprep.subr.mxu0 %v19584_v23 }
 0x1b6   : > { %15760 = vmatmul.mubr.msk.f32.gmra.mrb[38].mxu0 %vm327_vm0, %v3324_v22  ;;  %15872 = vmatmul.mubr.msk.f32.gmra.mrb[38].mxu1 %vm327_vm0, %v3324_v22 }
 0x1b7   : > { %15762 = vmatprep.mubr.msk.f32.mxu0 %vm327_vm0, %v3325_v24  ;;  %15874 = vmatprep.mubr.msk.f32.mxu1 %vm327_vm0, %v3325_v24 }
 0x1ba   : > { %15763 = vmatmul.mubr.msk.f32.gmra.mrb[40].mxu0 %vm327_vm0, %v3326_v25  ;;  %15875 = vmatmul.mubr.msk.f32.gmra.mrb[40].mxu1 %vm327_vm0, %v3326_v25 }
 0x1bb   : > { %15765 = vmatprep.mubr.msk.f32.mxu0 %vm327_vm0, %v3327_v26  ;;  %15877 = vmatprep.mubr.msk.f32.mxu1 %vm327_vm0, %v3327_v26 }
 0x1be   : > { %15766 = vmatmul.mubr.msk.f32.gmra.mrb[42].mxu0 %vm327_vm0, %v3328_v27  ;;  %15878 = vmatmul.mubr.msk.f32.gmra.mrb[42].mxu1 %vm327_vm0, %v3328_v27 }
 0x1bf   : > { %15768 = vmatprep.mubr.msk.f32.mxu0 %vm327_vm0, %v3329_v28  ;;  %15880 = vmatprep.mubr.msk.f32.mxu1 %vm327_vm0, %v3329_v28 }
 0x1c2   : > { %15769 = vmatmul.mubr.msk.f32.gmra.mrb[44].mxu0 %vm327_vm0, %v3330_v29  ;;  %15881 = vmatmul.mubr.msk.f32.gmra.mrb[44].mxu1 %vm327_vm0, %v3330_v29 }
 0x1c3   : > { %15771 = vmatprep.mubr.msk.f32.mxu0 %vm327_vm0, %v3331_v30  ;;  %15883 = vmatprep.mubr.msk.f32.mxu1 %vm327_vm0, %v3331_v30 }
 0x1c6   : > { %15772 = vmatmul.mubr.msk.f32.gmra.mrb[46].mxu0 %vm327_vm0, %v3332_v31  ;;  %15884 = vmatmul.mubr.msk.f32.gmra.mrb[46].mxu1 %vm327_vm0, %v3332_v31 }
 0x1c7   : > { %15774 = vmatprep.mubr.msk.f32.mxu0 %vm327_vm0, %v3333_v32  ;;  %15886 = vmatprep.mubr.msk.f32.mxu1 %vm327_vm0, %v3333_v32 }
 0x1ca   : > { %15775 = vmatmul.mubr.msk.f32.gmra.mrb[48].mxu0 %vm327_vm0, %v3334_v33  ;;  %15887 = vmatmul.mubr.msk.f32.gmra.mrb[48].mxu1 %vm327_vm0, %v3334_v33 }
 0x1cb   : > { %15777 = vmatprep.mubr.msk.f32.mxu0 %vm327_vm0, %v3335_v34  ;;  %15889 = vmatprep.mubr.msk.f32.mxu1 %vm327_vm0, %v3335_v34 }
 0x1ce   : > { %15778 = vmatmul.mubr.msk.f32.gmra.mrb[50].mxu0 %vm327_vm0, %v3336_v35  ;;  %15890 = vmatmul.mubr.msk.f32.gmra.mrb[50].mxu1 %vm327_vm0, %v3336_v35 }
 0x1cf   : > { %15780 = vmatprep.mubr.msk.f32.mxu0 %vm327_vm0, %v3337_v36  ;;  %15892 = vmatprep.mubr.msk.f32.mxu1 %vm327_vm0, %v3337_v36 }
 0x1d2   : > { %15781 = vmatmul.mubr.msk.f32.gmra.mrb[52].mxu0 %vm327_vm0, %v3338_v37  ;;  %15893 = vmatmul.mubr.msk.f32.gmra.mrb[52].mxu1 %vm327_vm0, %v3338_v37 }
 0x1d3   : > { %15783 = vmatprep.mubr.msk.f32.mxu0 %vm327_vm0, %v3339_v38  ;;  %15895 = vmatprep.mubr.msk.f32.mxu1 %vm327_vm0, %v3339_v38 }
 0x1d6   : > { %15784 = vmatmul.mubr.msk.f32.gmra.mrb[54].mxu0 %vm327_vm0, %v3340_v39  ;;  %15896 = vmatmul.mubr.msk.f32.gmra.mrb[54].mxu1 %vm327_vm0, %v3340_v39 }
 0x1d7   : > { %15786 = vmatprep.mubr.msk.f32.mxu0 %vm327_vm0, %v3341_v40  ;;  %15898 = vmatprep.mubr.msk.f32.mxu1 %vm327_vm0, %v3341_v40 }
 0x1da   : > { %15787 = vmatmul.mubr.msk.f32.gmra.mrb[56].mxu0 %vm327_vm0, %v3342_v41  ;;  %15899 = vmatmul.mubr.msk.f32.gmra.mrb[56].mxu1 %vm327_vm0, %v3342_v41 }
 0x1db   : > { %15789 = vmatprep.mubr.msk.f32.mxu0 %vm327_vm0, %v3343_v42  ;;  %15901 = vmatprep.mubr.msk.f32.mxu1 %vm327_vm0, %v3343_v42 }
 0x1de   : > { %15790 = vmatmul.mubr.msk.f32.gmra.mrb[58].mxu0 %vm327_vm0, %v3344_v43  ;;  %15902 = vmatmul.mubr.msk.f32.gmra.mrb[58].mxu1 %vm327_vm0, %v3344_v43 }
 0x1df   : > { %15792 = vmatprep.mubr.msk.f32.mxu0 %vm327_vm0, %v3345_v44  ;;  %15904 = vmatprep.mubr.msk.f32.mxu1 %vm327_vm0, %v3345_v44 }
 0x1e2   : > { %15793 = vmatmul.mubr.msk.f32.gmra.mrb[60].mxu0 %vm327_vm0, %v3346_v45  ;;  %15905 = vmatmul.mubr.msk.f32.gmra.mrb[60].mxu1 %vm327_vm0, %v3346_v45 }
 0x1e3   : > { %15795 = vmatprep.mubr.msk.f32.mxu0 %vm327_vm0, %v3347_v46  ;;  %15907 = vmatprep.mubr.msk.f32.mxu1 %vm327_vm0, %v3347_v46 }
 0x1e6   : > { %15796 = vmatmul.mubr.msk.f32.gmra.mrb[62].mxu0 %vm327_vm0, %v3348_v47  ;;  %15908 = vmatmul.mubr.msk.f32.gmra.mrb[62].mxu1 %vm327_vm0, %v3348_v47 }
 0x1e7   : > { %15798 = vmatprep.mubr.msk.f32.mxu0 %vm327_vm0, %v3349_v48  ;;  %15910 = vmatprep.mubr.msk.f32.mxu1 %vm327_vm0, %v3349_v48 }
 0x1ea   : > { %15799 = vmatmul.mubr.msk.f32.gmra.mrb[64].mxu0 %vm327_vm0, %v3350_v49  ;;  %15911 = vmatmul.mubr.msk.f32.gmra.mrb[64].mxu1 %vm327_vm0, %v3350_v49 }
 0x1eb   : > { %15801 = vmatprep.mubr.msk.f32.mxu0 %vm327_vm0, %v3351_v50  ;;  %15913 = vmatprep.mubr.msk.f32.mxu1 %vm327_vm0, %v3351_v50 }
 0x1ee   : > { %15802 = vmatmul.mubr.msk.f32.gmra.mrb[66].mxu0 %vm327_vm0, %v3352_v51  ;;  %15914 = vmatmul.mubr.msk.f32.gmra.mrb[66].mxu1 %vm327_vm0, %v3352_v51 }
 0x1ef   : > { %15804 = vmatprep.mubr.msk.f32.mxu0 %vm327_vm0, %v3353_v57  ;;  %15916 = vmatprep.mubr.msk.f32.mxu1 %vm327_vm0, %v3353_v57 }
 0x1f2   : > { %15805 = vmatmul.mubr.msk.f32.gmra.mrb[68].mxu0 %vm327_vm0, %v3354_v58  ;;  %15917 = vmatmul.mubr.msk.f32.gmra.mrb[68].mxu1 %vm327_vm0, %v3354_v58 }
 0x1f3   : > { %15807 = vmatprep.mubr.msk.f32.mxu0 %vm327_vm0, %v3355_v52  ;;  %15919 = vmatprep.mubr.msk.f32.mxu1 %vm327_vm0, %v3355_v52 }
 0x1f5   : > { %v19688_v7 = vpop.f32.mrb[0].mxu0  ;;  %v15646_v8 = vpop.f32.mrb[0].mxu1 }
 0x1f6   : > { %v2997_v9 = vadd.f32 %v15646_v8, %v19683_v53  ;;  %v19691_v10 = vpop.f32.mrb[1].mxu0  ;;  %v2731_v11 = vpop.f32.mrb[1].mxu1  ;;  %15808 = vmatmul.mubr.msk.f32.gmra.mrb[70].mxu0 %vm327_vm0, %v3356_v6  ;;  %15920 = vmatmul.mubr.msk.f32.gmra.mrb[70].mxu1 %vm327_vm0, %v3356_v6  ;;  %v19784_v6 = vld [vmem:[#allocation2] ss:$0 sm:$0xff] }
 0x1f7   : > { %v2996_v12 = vadd.f32 %v19683_v53, %v2731_v11  ;;  %15924 = vmatprep.mubr.msk.f32.mxu0 %vm327_vm0, %v19231_v54  ;;  %15980 = vmatprep.mubr.msk.f32.mxu1 %vm327_vm0, %v19231_v54  ;;  %v19712_v54 = vld [vmem:[%s22231_s2 + $0x48] sm:$0xff] }
 0x1f8   : > { %v12919_v13 = vmul.f32 -1.442695, %v2997_v9 }
 0x1f9   : > { %v12918_v14 = vmul.f32 -1.442695, %v2996_v12  ;;  %v19700_v15 = vpop.f32.mrb[2].mxu0  ;;  %v15649_v19 = vpop.f32.mrb[2].mxu1 }
 0x1fa   : > { %17937 = vpow2.f32 %v12919_v13  ;;  %v2999_v20 = vadd.f32 %v15649_v19, %v19683_v53  ;;  %v19703_v16 = vpop.f32.mrb[3].mxu0  ;;  %v2741_v17 = vpop.f32.mrb[3].mxu1  ;;  %15925 = vmatmul.mubr.msk.f32.vlgmr.msra.gmra.mrb[36].mxu0 %vm327_vm0, %v19240_v55  ;;  %15981 = vmatmul.mubr.msk.f32.vlgmr.msra.gmra.mrb[36].mxu1 %vm327_vm0, %v19240_v55 }
 0x1fb   : > { %17939 = vpow2.f32 %v12918_v14  ;;  %v2998_v22 = vadd.f32 %v19683_v53, %v2741_v17  ;;  %16091 = vmatpush3.msra.mxu1 %v19576_v21  ;;  %15927 = vmatprep.mubr.msk.f32.mxu0 %vm327_vm0, %v19243_v56 }
 0x1fc   : > { %v12921_v24 = vmul.f32 -1.442695, %v2999_v20  ;;  %15983 = vmatprep.mubr.msk.f32.mxu1 %vm327_vm0, %v19243_v56  ;;  %16035 = vmatpush3.msra.mxu0 %v19584_v23 }
 0x1fd   : > { %v12920_v55 = vmul.f32 -1.442695, %v2998_v22  ;;  %v19726_v25 = vpop.f32.mrb[4].mxu0  ;;  %v15652_v26 = vpop.f32.mrb[4].mxu1  ;;  %16258 = vmatprep.subr.mxu1 %v19712_v54  ;;  %16146 = vmatprep.subr.mxu0 %v19717_v18 }
 0x1fe   : > { %17941 = vpow2.f32 %v12921_v24  ;;  %v3001_v21 = vadd.f32 %v15652_v26, %v19683_v53  ;;  %v19731_v27 = vpop.f32.mrb[5].mxu0  ;;  %v2751_v28 = vpop.f32.mrb[5].mxu1  ;;  %15928 = vmatmul.mubr.msk.f32.gmra.mrb[38].mxu0 %vm327_vm0, %v19263_v59  ;;  %15984 = vmatmul.mubr.msk.f32.gmra.mrb[38].mxu1 %vm327_vm0, %v19263_v59  ;;  %v2954_v24 = vadd.f32 %v19688_v7, %v19784_v6  ;;  %v4611_v26 = vld [vmem:[%s18718_s28 + $0x83] sm:$0xff] }
 0x1ff   : > { %17943 = vpow2.f32 %v12920_v55  ;;  %v3000_v56 = vadd.f32 %v19683_v53, %v2751_v28  ;;  %15930 = vmatprep.mubr.msk.f32.mxu0 %vm327_vm0, %v19268_v60  ;;  %15986 = vmatprep.mubr.msk.f32.mxu1 %vm327_vm0, %v19268_v60 }
 0x200   : > { %v12923_v23 = vmul.f32 -1.442695, %v3001_v21 }
 0x201   : > { %v12922_v29 = vmul.f32 -1.442695, %v3000_v56  ;;  %v19742_v30 = vpop.f32.mrb[6].mxu0  ;;  %v15655_v31 = vpop.f32.mrb[6].mxu1 }
 0x202   : > { %17945 = vpow2.f32 %v12923_v23  ;;  %v3003_v32 = vadd.f32 %v15655_v31, %v19683_v53  ;;  %v19745_v33 = vpop.f32.mrb[7].mxu0  ;;  %v2761_v59 = vpop.f32.mrb[7].mxu1  ;;  %15931 = vmatmul.mubr.msk.f32.gmra.mrb[40].mxu0 %vm327_vm0, %v19282_v61  ;;  %15987 = vmatmul.mubr.msk.f32.gmra.mrb[40].mxu1 %vm327_vm0, %v19282_v61 }
 0x203   : > { %17947 = vpow2.f32 %v12922_v29  ;;  %v3002_v60 = vadd.f32 %v19683_v53, %v2761_v59  ;;  %15933 = vmatprep.mubr.msk.f32.mxu0 %vm327_vm0, %v19285_v62  ;;  %15989 = vmatprep.mubr.msk.f32.mxu1 %vm327_vm0, %v19285_v62 }
 0x204   : > { %v17938_v34 = vpop.eup %17937  ;;  %v12925_v35 = vmul.f32 -1.442695, %v3003_v32 }
 0x205   : > { %v17940_v36 = vpop.eup %17939  ;;  %v3141_v37 = vadd.f32 1.0, %v17938_v34  ;;  %v12924_v38 = vmul.f32 -1.442695, %v3002_v60  ;;  %v19756_v39 = vpop.f32.mrb[8].mxu0 }
 0x206   : > { %v15658_v40 = vpop.f32.mrb[8].mxu1  ;;  %v3140_v41 = vadd.f32 1.0, %v17940_v36  ;;  %17949 = vpow2.f32 %v12925_v35  ;;  %v19759_v42 = vpop.f32.mrb[9].mxu0  ;;  %15934 = vmatmul.mubr.msk.f32.gmra.mrb[42].mxu0 %vm327_vm0, %v19296_v63  ;;  %15990 = vmatmul.mubr.msk.f32.gmra.mrb[42].mxu1 %vm327_vm0, %v19296_v63  ;;  %v4612_v35 = vld [vmem:[%s18718_s28 + $0x8b] sm:$0xff] }
 0x207   : > { %v3005_v61 = vadd.f32 %v15658_v40, %v19683_v53  ;;  %v2771_v43 = vpop.f32.mrb[9].mxu1  ;;  %17951 = vrcp.f32 %v3141_v37  ;;  %15936 = vmatprep.mubr.msk.f32.mxu0 %vm327_vm0, %v19299_v0  ;;  %15992 = vmatprep.mubr.msk.f32.mxu1 %vm327_vm0, %v19299_v0  ;;  %v2956_v37 = vadd.f32 %v19700_v15, %v19784_v6  ;;  %v4613_v40 = vld [vmem:[%s18718_s28 + $0x93] sm:$0xff] }
 0x208   : > { %v3004_v62 = vadd.f32 %v19683_v53, %v2771_v43  ;;  %v17942_v44 = vpop.eup %17941  ;;  %17953 = vrcp.f32 %v3140_v41 }
 0x209   : > { %v12927_v45 = vmul.f32 -1.442695, %v3005_v61  ;;  %v17944_v46 = vpop.eup %17943  ;;  %v3143_v47 = vadd.f32 1.0, %v17942_v44  ;;  %17955 = vpow2.f32 %v12924_v38  ;;  %v19770_v49 = vpop.f32.mrb[10].mxu0  ;;  %v2955_v61 = vadd.f32 %v19784_v6, %v19703_v16 }
 0x20a   : > { %v12926_v48 = vmul.f32 -1.442695, %v3004_v62  ;;  %v15661_v50 = vpop.f32.mrb[10].mxu1  ;;  %v3142_v63 = vadd.f32 1.0, %v17944_v46  ;;  %v19773_v57 = vpop.f32.mrb[11].mxu0  ;;  %15937 = vmatmul.mubr.msk.f32.gmra.mrb[44].mxu0 %vm327_vm0, %v19310_v1  ;;  %15993 = vmatmul.mubr.msk.f32.gmra.mrb[44].mxu1 %vm327_vm0, %v19310_v1 }
 0x20b   : > { %17957 = vpow2.f32 %v12927_v45  ;;  %v3007_v51 = vadd.f32 %v15661_v50, %v19683_v53  ;;  %v2781_v58 = vpop.f32.mrb[11].mxu1  ;;  %15939 = vmatprep.mubr.msk.f32.mxu0 %vm327_vm0, %v19313_v2  ;;  %15995 = vmatprep.mubr.msk.f32.mxu1 %vm327_vm0, %v19313_v2 }
 0x20c   : > { %17959 = vrcp.f32 %v3143_v47  ;;  %v3006_v0 = vadd.f32 %v19683_v53, %v2781_v58  ;;  %v17946_v52 = vpop.eup %17945  ;;  %v4614_v58 = vld [vmem:[%s18718_s28 + $0x9b] sm:$0xff] }
 0x20d   : > { %17961 = vrcp.f32 %v3142_v63  ;;  %v12929_v8 = vmul.f32 -1.442695, %v3007_v51  ;;  %v17948_v9 = vpop.eup %17947  ;;  %v3145_v11 = vadd.f32 1.0, %v17946_v52  ;;  %v19787_v1 = vpop.f32.mrb[12].mxu0  ;;  %v2958_v52 = vadd.f32 %v19726_v25, %v19784_v6 }
 0x20e   : > { %17963 = vpow2.f32 %v12926_v48  ;;  %v12928_v12 = vmul.f32 -1.442695, %v3006_v0  ;;  %v15664_v13 = vpop.f32.mrb[12].mxu1  ;;  %v3144_v14 = vadd.f32 1.0, %v17948_v9  ;;  %v19790_v20 = vpop.f32.mrb[13].mxu0  ;;  %15940 = vmatmul.mubr.msk.f32.gmra.mrb[46].mxu0 %vm327_vm0, %v19324_v3  ;;  %15996 = vmatmul.mubr.msk.f32.gmra.mrb[46].mxu1 %vm327_vm0, %v19324_v3  ;;  %v2953_v3 = vadd.f32 %v19784_v6, %v19691_v10 }
 0x20f   : > { %17965 = vpow2.f32 %v12929_v8  ;;  %v3009_v19 = vadd.f32 %v15664_v13, %v19683_v53  ;;  %v2791_v2 = vpop.f32.mrb[13].mxu1  ;;  %15942 = vmatprep.mubr.msk.f32.mxu0 %vm327_vm0, %v19327_v4  ;;  %15998 = vmatprep.mubr.msk.f32.mxu1 %vm327_vm0, %v19327_v4  ;;  %v2957_v13 = vadd.f32 %v19784_v6, %v19731_v27 }
 0x210   : > { %17967 = vrcp.f32 %v3145_v11  ;;  %v3008_v17 = vadd.f32 %v19683_v53, %v2791_v2  ;;  %v17950_v22 = vpop.eup %17949  ;;  %v4615_v11 = vld [vmem:[%s18718_s28 + $0xa3] sm:$0xff] }
 0x211   : > { %17969 = vrcp.f32 %v3144_v14  ;;  %v12931_v55 = vmul.f32 -1.442695, %v3009_v19  ;;  %v17952_v21 = vpop.eup %17951  ;;  %v3147_v28 = vadd.f32 1.0, %v17950_v22  ;;  %v19811_v56 = vpop.f32.mrb[14].mxu0 }
 0x212   : > { %17971 = vpow2.f32 %v12928_v12  ;;  %v12930_v4 = vmul.f32 -1.442695, %v3008_v17  ;;  %v15667_v7 = vpop.f32.mrb[14].mxu1  ;;  %v17954_v23 = vpop.eup %17953  ;;  %v3249_v29 = vmul.f32 %v17952_v21, %v2954_v24  ;;  %15943 = vmatmul.mubr.msk.f32.gmra.mrb[48].mxu0 %vm327_vm0, %v19338_v5  ;;  %15999 = vmatmul.mubr.msk.f32.gmra.mrb[48].mxu1 %vm327_vm0, %v19338_v5 }
 0x213   : > { %17973 = vpow2.f32 %v12931_v55  ;;  %v3011_v31 = vadd.f32 %v15667_v7, %v19683_v53  ;;  %v19814_v32 = vpop.f32.mrb[15].mxu0  ;;  %v2801_v59 = vpop.f32.mrb[15].mxu1  ;;  %v3248_v60 = vmul.f32 %v17954_v23, %v2953_v3  ;;  %15945 = vmatprep.mubr.msk.f32.mxu0 %vm327_vm0, %v4611_v26  ;;  %16001 = vmatprep.mubr.msk.f32.mxu1 %vm327_vm0, %v4611_v26  ;;  %v2960_v7 = vadd.f32 %v19742_v30, %v19784_v6 }
 0x214   : > { %v17956_v10 = vpop.eup %17955  ;;  %17975 = vrcp.f32 %v3147_v28  ;;  %v3010_v34 = vadd.f32 %v19683_v53, %v2801_v59  ;;  %3286 = vst.msk [vmem:[%s19807_s23 + $0x8] sm:$0xff] %vm3284_vm1, %v3249_v29  ;;  %v19864_v28 = vld [vmem:[%s18718_s28 + $0xab] sm:$0xff] }
 0x215   : > { %v17958_v36 = vpop.eup %17957  ;;  %v3146_v38 = vadd.f32 1.0, %v17956_v10  ;;  %17977 = vpow2.f32 %v12930_v4  ;;  %v12933_v5 = vmul.f32 -1.442695, %v3011_v31  ;;  %3285 = vst.msk [vmem:[%s19807_s23] sm:$0xff] %vm3284_vm1, %v3248_v60  ;;  %v19833_v44 = vpop.f32.mrb[16].mxu0  ;;  %v19871_v31 = vld [vmem:[%s18718_s28 + $0xb3] sm:$0xff] }
 0x216   : > { %v17960_v41 = vpop.eup %17959  ;;  %v3149_v43 = vadd.f32 1.0, %v17958_v36  ;;  %v12932_v62 = vmul.f32 -1.442695, %v3010_v34  ;;  %v15670_v45 = vpop.f32.mrb[16].mxu1  ;;  %15946 = vmatmul.mubr.msk.f32.gmra.mrb[50].mxu0 %vm327_vm0, %v4612_v35  ;;  %16002 = vmatmul.mubr.msk.f32.gmra.mrb[50].mxu1 %vm327_vm0, %v4612_v35 }
 0x217   : > { %v17962_v46 = vpop.eup %17961  ;;  %v3251_v47 = vmul.f32 %v17960_v41, %v2956_v37  ;;  %17979 = vrcp.f32 %v3146_v38  ;;  %v3013_v15 = vadd.f32 %v15670_v45, %v19683_v53  ;;  %v19836_v48 = vpop.f32.mrb[17].mxu0  ;;  %15948 = vmatprep.mubr.msk.f32.mxu0 %vm327_vm0, %v4613_v40  ;;  %16004 = vmatprep.mubr.msk.f32.mxu1 %vm327_vm0, %v4613_v40  ;;  %v2959_v40 = vadd.f32 %v19784_v6, %v19745_v33 }
 0x218   : > { %v2811_v50 = vpop.f32.mrb[17].mxu1  ;;  %v17964_v16 = vpop.eup %17963  ;;  %v3250_v63 = vmul.f32 %v17962_v46, %v2955_v61  ;;  %17981 = vrcp.f32 %v3149_v43  ;;  %v19892_v43 = vld [vmem:[%s18718_s28 + $0xbb] sm:$0xff]  ;;  %v2962_v45 = vadd.f32 %v19756_v39, %v19784_v6  ;;  %v19899_v46 = vld [vmem:[%s18718_s28 + $0xc3] sm:$0xff] }
 0x219   : > { %v3012_v51 = vadd.f32 %v19683_v53, %v2811_v50  ;;  %v17966_v0 = vpop.eup %17965  ;;  %3288 = vst.msk [vmem:[%s19807_s23 + $0x18] sm:$0xff] %vm3284_vm1, %v3251_v47  ;;  %v3148_v8 = vadd.f32 1.0, %v17964_v16  ;;  %17983 = vpow2.f32 %v12933_v5  ;;  %v12935_v9 = vmul.f32 -1.442695, %v3013_v15  ;;  %v19853_v2 = vpop.f32.mrb[18].mxu0 }
 0x21a   : > { %v17968_v12 = vpop.eup %17967  ;;  %3287 = vst.msk [vmem:[%s19807_s23 + $0x10] sm:$0xff] %vm3284_vm1, %v3250_v63  ;;  %v3151_v14 = vadd.f32 1.0, %v17966_v0  ;;  %17985 = vpow2.f32 %v12932_v62  ;;  %v15673_v17 = vpop.f32.mrb[18].mxu1  ;;  %15949 = vmatmul.mubr.msk.f32.gmra.mrb[52].mxu0 %vm327_vm0, %v4614_v58  ;;  %16005 = vmatmul.mubr.msk.f32.gmra.mrb[52].mxu1 %vm327_vm0, %v4614_v58 }
 0x21b   : > { %v12934_v19 = vmul.f32 -1.442695, %v3012_v51  ;;  %v17970_v22 = vpop.eup %17969  ;;  %v3253_v25 = vmul.f32 %v17968_v12, %v2958_v52  ;;  %17987 = vrcp.f32 %v3148_v8  ;;  %v3015_v24 = vadd.f32 %v15673_v17, %v19683_v53  ;;  %v19856_v55 = vpop.f32.mrb[19].mxu0  ;;  %15951 = vmatprep.mubr.msk.f32.mxu0 %vm327_vm0, %v4615_v11  ;;  %16007 = vmatprep.mubr.msk.f32.mxu1 %vm327_vm0, %v4615_v11 }
 0x21c   : > { %v2821_v26 = vpop.f32.mrb[19].mxu1  ;;  %v17972_v27 = vpop.eup %17971  ;;  %v3252_v21 = vmul.f32 %v17970_v22, %v2957_v13  ;;  %17989 = vrcp.f32 %v3151_v14  ;;  %v19920_v13 = vld [vmem:[%s18718_s28 + $0xcb] sm:$0xff]  ;;  %v19927_v22 = vld [vmem:[%s18718_s28 + $0xd3] sm:$0xff] }
 0x21d   : > { %v3014_v3 = vadd.f32 %v19683_v53, %v2821_v26  ;;  %v17974_v4 = vpop.eup %17973  ;;  %3290 = vst.msk [vmem:[%s19807_s23 + $0x28] sm:$0xff] %vm3284_vm1, %v3253_v25  ;;  %v3150_v23 = vadd.f32 1.0, %v17972_v27  ;;  %17991 = vpow2.f32 %v12935_v9  ;;  %v12937_v29 = vmul.f32 -1.442695, %v3015_v24  ;;  %v19875_v60 = vpop.f32.mrb[20].mxu0 }
 0x21e   : > { %v17976_v59 = vpop.eup %17975  ;;  %3289 = vst.msk [vmem:[%s19807_s23 + $0x20] sm:$0xff] %vm3284_vm1, %v3252_v21  ;;  %v3153_v10 = vadd.f32 1.0, %v17974_v4  ;;  %17993 = vpow2.f32 %v12934_v19  ;;  %v15676_v34 = vpop.f32.mrb[20].mxu1  ;;  %15952 = vmatmul.mubr.msk.f32.gmra.mrb[54].mxu0 %vm327_vm0, %v19864_v28  ;;  %16008 = vmatmul.mubr.msk.f32.gmra.mrb[54].mxu1 %vm327_vm0, %v19864_v28  ;;  %v2961_v9 = vadd.f32 %v19784_v6, %v19759_v42  ;;  %v2964_v19 = vadd.f32 %v19770_v49, %v19784_v6 }
 0x21f   : > { %v17978_v35 = vpop.eup %17977  ;;  %v3255_v36 = vmul.f32 %v17976_v59, %v2960_v7  ;;  %17995 = vrcp.f32 %v3150_v23  ;;  %v12936_v37 = vmul.f32 -1.442695, %v3014_v3  ;;  %v3017_v30 = vadd.f32 %v15676_v34, %v19683_v53  ;;  %v19878_v38 = vpop.f32.mrb[21].mxu0  ;;  %15954 = vmatprep.mubr.msk.f32.mxu0 %vm327_vm0, %v19871_v31  ;;  %16010 = vmatprep.mubr.msk.f32.mxu1 %vm327_vm0, %v19871_v31 }
 0x220   : > { %v2831_v5 = vpop.f32.mrb[21].mxu1  ;;  %17997 = vrcp.f32 %v3153_v10  ;;  %v3152_v41 = vadd.f32 1.0, %v17978_v35  ;;  %v2963_v59 = vadd.f32 %v19784_v6, %v19773_v57  ;;  %v19948_v35 = vld [vmem:[%s18718_s28 + $0xdb] sm:$0xff] }
 0x221   : > { %v3016_v61 = vadd.f32 %v19683_v53, %v2831_v5  ;;  %v17980_v62 = vpop.eup %17979  ;;  %3292 = vst.msk [vmem:[%s19807_s23 + $0x38] sm:$0xff] %vm3284_vm1, %v3255_v36  ;;  %17999 = vpow2.f32 %v12937_v29  ;;  %v12939_v33 = vmul.f32 -1.442695, %v3017_v30  ;;  %v19901_v16 = vpop.f32.mrb[22].mxu0  ;;  %v19955_v5 = vld [vmem:[%s18718_s28 + $0xe3] sm:$0xff] }
 0x222   : > { %v17982_v47 = vpop.eup %17981  ;;  %v3254_v15 = vmul.f32 %v17980_v62, %v2959_v40  ;;  %18001 = vrcp.f32 %v3152_v41  ;;  %v15679_v63 = vpop.f32.mrb[22].mxu1  ;;  %15955 = vmatmul.mubr.msk.f32.gmra.mrb[56].mxu0 %vm327_vm0, %v19892_v43  ;;  %16011 = vmatmul.mubr.msk.f32.gmra.mrb[56].mxu1 %vm327_vm0, %v19892_v43 }
 0x223   : > { %v12938_v50 = vmul.f32 -1.442695, %v3016_v61  ;;  %v17984_v51 = vpop.eup %17983  ;;  %v3257_v58 = vmul.f32 %v17982_v47, %v2962_v45  ;;  %18003 = vpow2.f32 %v12936_v37  ;;  %v3019_v0 = vadd.f32 %v15679_v63, %v19683_v53  ;;  %v19904_v39 = vpop.f32.mrb[23].mxu0  ;;  %15957 = vmatprep.mubr.msk.f32.mxu0 %vm327_vm0, %v19899_v46  ;;  %16013 = vmatprep.mubr.msk.f32.mxu1 %vm327_vm0, %v19899_v46 }
 0x224   : > { %v2841_v52 = vpop.f32.mrb[23].mxu1  ;;  %v17986_v8 = vpop.eup %17985  ;;  %3291 = vst.msk [vmem:[%s19807_s23 + $0x30] sm:$0xff] %vm3284_vm1, %v3254_v15  ;;  %v3155_v11 = vadd.f32 1.0, %v17984_v51  ;;  %18005 = vpow2.f32 %v12939_v33  ;;  %v2966_v37 = vadd.f32 %v19787_v1, %v19784_v6  ;;  %v2965_v15 = vadd.f32 %v19784_v6, %v19790_v20 }
 0x225   : > { %v3018_v12 = vadd.f32 %v19683_v53, %v2841_v52  ;;  %v17988_v14 = vpop.eup %17987  ;;  %3294 = vst.msk [vmem:[%s19807_s23 + $0x48] sm:$0xff] %vm3284_vm1, %v3257_v58  ;;  %v3154_v17 = vadd.f32 1.0, %v17986_v8  ;;  %18007 = vpow2.f32 %v12938_v50  ;;  %v12941_v42 = vmul.f32 -1.442695, %v3019_v0  ;;  %v19929_v27 = vpop.f32.mrb[24].mxu0  ;;  %v19976_v0 = vld [vmem:[%s18718_s28 + $0xeb] sm:$0xff] }
 0x226   : > { %v17990_v25 = vpop.eup %17989  ;;  %v3256_v24 = vmul.f32 %v17988_v14, %v2961_v9  ;;  %18009 = vrcp.f32 %v3155_v11  ;;  %v15682_v21 = vpop.f32.mrb[24].mxu1  ;;  %15958 = vmatmul.mubr.msk.f32.gmra.mrb[58].mxu0 %vm327_vm0, %v19920_v13  ;;  %16014 = vmatmul.mubr.msk.f32.gmra.mrb[58].mxu1 %vm327_vm0, %v19920_v13  ;;  %v19981_v11 = vld [vmem:[%s18718_s28 + $0xf3] sm:$0xff]  ;;  %v2968_v14 = vadd.f32 %v19811_v56, %v19784_v6 }
 0x227   : > { %v12940_v26 = vmul.f32 -1.442695, %v3018_v12  ;;  %v17992_v3 = vpop.eup %17991  ;;  %v3259_v4 = vmul.f32 %v17990_v25, %v2964_v19  ;;  %18011 = vrcp.f32 %v3154_v17  ;;  %v3021_v49 = vadd.f32 %v15682_v21, %v19683_v53  ;;  %v19932_v7 = vpop.f32.mrb[25].mxu0  ;;  %15960 = vmatprep.mubr.msk.f32.mxu0 %vm327_vm0, %v19927_v22  ;;  %16016 = vmatprep.mubr.msk.f32.mxu1 %vm327_vm0, %v19927_v22 }
 0x228   : > { %v2851_v23 = vpop.f32.mrb[25].mxu1  ;;  %v17994_v29 = vpop.eup %17993  ;;  %3293 = vst.msk [vmem:[%s19807_s23 + $0x40] sm:$0xff] %vm3284_vm1, %v3256_v24  ;;  %v3157_v10 = vadd.f32 1.0, %v17992_v3  ;;  %18013 = vpow2.f32 %v12941_v42 }
 0x229   : > { %v3020_v34 = vadd.f32 %v19683_v53, %v2851_v23  ;;  %v17996_v36 = vpop.eup %17995  ;;  %3296 = vst.msk [vmem:[%s19807_s23 + $0x58] sm:$0xff] %vm3284_vm1, %v3259_v4  ;;  %v3156_v30 = vadd.f32 1.0, %v17994_v29  ;;  %18015 = vpow2.f32 %v12940_v26  ;;  %v12943_v57 = vmul.f32 -1.442695, %v3021_v49  ;;  %v19957_v62 = vpop.f32.mrb[26].mxu0 }
 0x22a   : > { %v17998_v40 = vpop.eup %17997  ;;  %v3258_v41 = vmul.f32 %v17996_v36, %v2963_v59  ;;  %18017 = vrcp.f32 %v3157_v10  ;;  %v15685_v45 = vpop.f32.mrb[26].mxu1  ;;  %15961 = vmatmul.mubr.msk.f32.gmra.mrb[60].mxu0 %vm327_vm0, %v19948_v35  ;;  %16017 = vmatmul.mubr.msk.f32.gmra.mrb[60].mxu1 %vm327_vm0, %v19948_v35  ;;  %v2967_v49 = vadd.f32 %v19784_v6, %v19814_v32  ;;  %v20004_v59 = vld [vmem:[%s18718_s28 + $0xfb] sm:$0xff] }
 0x22b   : > { %v12942_v61 = vmul.f32 -1.442695, %v3020_v34  ;;  %v18000_v33 = vpop.eup %17999  ;;  %v3261_v47 = vmul.f32 %v17998_v40, %v2966_v37  ;;  %18019 = vrcp.f32 %v3156_v30  ;;  %v3023_v1 = vadd.f32 %v15685_v45, %v19683_v53  ;;  %v19962_v50 = vpop.f32.mrb[27].mxu0  ;;  %15963 = vmatprep.mubr.msk.f32.mxu0 %vm327_vm0, %v19955_v5  ;;  %16019 = vmatprep.mubr.msk.f32.mxu1 %vm327_vm0, %v19955_v5  ;;  %v20007_v37 = vld [vmem:[%s18718_s28 + $0x103] sm:$0xff] }
 0x22c   : > { %v2861_v63 = vpop.f32.mrb[27].mxu1  ;;  %v18002_v51 = vpop.eup %18001  ;;  %3295 = vst.msk [vmem:[%s19807_s23 + $0x50] sm:$0xff] %vm3284_vm1, %v3258_v41  ;;  %v3159_v58 = vadd.f32 1.0, %v18000_v33  ;;  %18021 = vpow2.f32 %v12943_v57  ;;  %v2970_v57 = vadd.f32 %v19833_v44, %v19784_v6 }
 0x22d   : > { %v3022_v20 = vadd.f32 %v19683_v53, %v2861_v63  ;;  %v18004_v52 = vpop.eup %18003  ;;  %3298 = vst.msk [vmem:[%s19807_s23 + $0x68] sm:$0xff] %vm3284_vm1, %v3261_v47  ;;  %v3260_v8 = vmul.f32 %v18002_v51, %v2965_v15  ;;  %18023 = vpow2.f32 %v12942_v61  ;;  %v12945_v9 = vmul.f32 -1.442695, %v3023_v1  ;;  %v19985_v17 = vpop.f32.mrb[28].mxu0 }
 0x22e   : > { %v18006_v12 = vpop.eup %18005  ;;  %18025 = vrcp.f32 %v3159_v58  ;;  %v3158_v19 = vadd.f32 1.0, %v18004_v52  ;;  %v15688_v42 = vpop.f32.mrb[28].mxu1  ;;  %15964 = vmatmul.mubr.msk.f32.gmra.mrb[62].mxu0 %vm327_vm0, %v19976_v0  ;;  %16020 = vmatmul.mubr.msk.f32.gmra.mrb[62].mxu1 %vm327_vm0, %v19976_v0  ;;  %v2969_v63 = vadd.f32 %v19784_v6, %v19836_v48 }
 0x22f   : > { %v18008_v25 = vpop.eup %18007  ;;  %3297 = vst.msk [vmem:[%s19807_s23 + $0x60] sm:$0xff] %vm3284_vm1, %v3260_v8  ;;  %v3161_v24 = vadd.f32 1.0, %v18006_v12  ;;  %18027 = vpow2.f32 %v12945_v9  ;;  %v12944_v26 = vmul.f32 -1.442695, %v3022_v20  ;;  %v3025_v21 = vadd.f32 %v15688_v42, %v19683_v53  ;;  %v19990_v3 = vpop.f32.mrb[29].mxu0  ;;  %15966 = vmatprep.mubr.msk.f32.mxu0 %vm327_vm0, %v19981_v11  ;;  %16022 = vmatprep.mubr.msk.f32.mxu1 %vm327_vm0, %v19981_v11  ;;  %v20032_v20 = vld [vmem:[%s18718_s28 + $0x10b] sm:$0xff] }
 0x230   : > { %v2871_v4 = vpop.f32.mrb[29].mxu1  ;;  %v18010_v56 = vpop.eup %18009  ;;  %18029 = vrcp.f32 %v3158_v19  ;;  %v3160_v23 = vadd.f32 1.0, %v18008_v25  ;;  %v20035_v12 = vld [vmem:[%s18718_s28 + $0x113] sm:$0xff]  ;;  %v2972_v19 = vadd.f32 %v19853_v2, %v19784_v6 }
 0x231   : > { %v3024_v29 = vadd.f32 %v19683_v53, %v2871_v4  ;;  %v18012_v10 = vpop.eup %18011  ;;  %v3263_v34 = vmul.f32 %v18010_v56, %v2968_v14  ;;  %18031 = vrcp.f32 %v3161_v24  ;;  %v12947_v36 = vmul.f32 -1.442695, %v3025_v21  ;;  %v20011_v40 = vpop.f32.mrb[30].mxu0 }
 0x232   : > { %v18014_v32 = vpop.eup %18013  ;;  %v3262_v30 = vmul.f32 %v18012_v10, %v2967_v49  ;;  %18033 = vrcp.f32 %v3160_v23  ;;  %v15691_v41 = vpop.f32.mrb[30].mxu1  ;;  %15967 = vmatmul.mubr.msk.f32.gmra.mrb[64].mxu0 %vm327_vm0, %v20004_v59  ;;  %16023 = vmatmul.mubr.msk.f32.gmra.mrb[64].mxu1 %vm327_vm0, %v20004_v59  ;;  %v20058_v10 = vld [vmem:[%s18718_s28 + $0x11b] sm:$0xff] }
 0x233   : > { %v18016_v61 = vpop.eup %18015  ;;  %3300 = vst.msk [vmem:[%s19807_s23 + $0x78] sm:$0xff] %vm3284_vm1, %v3263_v34  ;;  %v3163_v45 = vadd.f32 1.0, %v18014_v32  ;;  %18035 = vpow2.f32 %v12944_v26  ;;  %v12946_v33 = vmul.f32 -1.442695, %v3024_v29  ;;  %v3027_v47 = vadd.f32 %v15691_v41, %v19683_v53  ;;  %v20016_v15 = vpop.f32.mrb[31].mxu0  ;;  %15969 = vmatprep.mubr.msk.f32.mxu0 %vm327_vm0, %v20007_v37  ;;  %16025 = vmatprep.mubr.msk.f32.mxu1 %vm327_vm0, %v20007_v37 }
 0x234   : > { %v2881_v1 = vpop.f32.mrb[31].mxu1  ;;  %v18018_v44 = vpop.eup %18017  ;;  %3299 = vst.msk [vmem:[%s19807_s23 + $0x70] sm:$0xff] %vm3284_vm1, %v3262_v30  ;;  %v3162_v51 = vadd.f32 1.0, %v18016_v61  ;;  %18037 = vpow2.f32 %v12947_v36  ;;  %v2971_v32 = vadd.f32 %v19784_v6, %v19856_v55  ;;  %v2974_v61 = vadd.f32 %v19875_v60, %v19784_v6 }
 0x235   : > { %v3026_v58 = vadd.f32 %v19683_v53, %v2881_v1  ;;  %v18020_v52 = vpop.eup %18019  ;;  %v3265_v8 = vmul.f32 %v18018_v44, %v2970_v57  ;;  %18039 = vrcp.f32 %v3163_v45  ;;  %v12949_v9 = vmul.f32 -1.442695, %v3027_v47  ;;  %v20039_v42 = vpop.f32.mrb[32].mxu0  ;;  %v20063_v57 = vld [vmem:[%s18718_s28 + $0x123] sm:$0xff] }
 0x236   : > { %v18022_v48 = vpop.eup %18021  ;;  %v3264_v14 = vmul.f32 %v18020_v52, %v2969_v63  ;;  %18041 = vrcp.f32 %v3162_v51  ;;  %v15694_v25 = vpop.f32.mrb[32].mxu1  ;;  %15970 = vmatmul.mubr.msk.f32.gmra.mrb[66].mxu0 %vm327_vm0, %v20032_v20  ;;  %16026 = vmatmul.mubr.msk.f32.gmra.mrb[66].mxu1 %vm327_vm0, %v20032_v20  ;;  %v2973_v55 = vadd.f32 %v19784_v6, %v19878_v38  ;;  %v20086_v38 = vld [vmem:[%s18718_s28 + $0x12b] sm:$0xff] }
 0x237   : > { %v18024_v24 = vpop.eup %18023  ;;  %3302 = vst.msk [vmem:[%s19807_s23 + $0x88] sm:$0xff] %vm3284_vm1, %v3265_v8  ;;  %v3165_v26 = vadd.f32 1.0, %v18022_v48  ;;  %18043 = vpow2.f32 %v12946_v33  ;;  %v12948_v21 = vmul.f32 -1.442695, %v3026_v58  ;;  %v3029_v4 = vadd.f32 %v15694_v25, %v19683_v53  ;;  %v20044_v56 = vpop.f32.mrb[33].mxu0  ;;  %15972 = vmatprep.mubr.msk.f32.mxu0 %vm327_vm0, %v20035_v12  ;;  %16028 = vmatprep.mubr.msk.f32.mxu1 %vm327_vm0, %v20035_v12  ;;  %v5307_v25 = vld [vmem:[%s18718_s28 + $0x14] sm:$0xff] }
 0x238   : > { %v2891_v49 = vpop.f32.mrb[33].mxu1  ;;  %v18026_v2 = vpop.eup %18025  ;;  %3301 = vst.msk [vmem:[%s19807_s23 + $0x80] sm:$0xff] %vm3284_vm1, %v3264_v14  ;;  %v3164_v23 = vadd.f32 1.0, %v18024_v24  ;;  %18045 = vpow2.f32 %v12949_v9 }
 0x239   : > { %v3028_v29 = vadd.f32 %v19683_v53, %v2891_v49  ;;  %v18028_v34 = vpop.eup %18027  ;;  %v3267_v36 = vmul.f32 %v18026_v2, %v2972_v19  ;;  %18047 = vrcp.f32 %v3165_v26  ;;  %v12951_v30 = vmul.f32 -1.442695, %v3029_v4  ;;  %v20067_v47 = vpop.f32.mrb[34].mxu0 }
 0x23a   : > { %v18030_v41 = vpop.eup %18029  ;;  %18049 = vrcp.f32 %v3164_v23  ;;  %v3167_v45 = vadd.f32 1.0, %v18028_v34  ;;  %v15697_v1 = vpop.f32.mrb[34].mxu1  ;;  %15973 = vmatmul.mubr.msk.f32.gmra.mrb[68].mxu0 %vm327_vm0, %v20058_v10  ;;  %16029 = vmatmul.mubr.msk.f32.gmra.mrb[68].mxu1 %vm327_vm0, %v20058_v10  ;;  %v2975_v49 = vadd.f32 %v19784_v6, %v19904_v39 }
 0x23b   : > { %v12950_v33 = vmul.f32 -1.442695, %v3028_v29  ;;  %v18032_v44 = vpop.eup %18031  ;;  %3304 = vst.msk [vmem:[%s19807_s23 + $0x98] sm:$0xff] %vm3284_vm1, %v3267_v36  ;;  %v3266_v63 = vmul.f32 %v18030_v41, %v2971_v32  ;;  %18051 = vpow2.f32 %v12948_v21  ;;  %v3031_v51 = vadd.f32 %v15697_v1, %v19683_v53  ;;  %v20074_v58 = vpop.f32.mrb[35].mxu0  ;;  %15975 = vmatprep.mubr.msk.f32.mxu0 %vm327_vm0, %v20063_v57  ;;  %16031 = vmatprep.mubr.msk.f32.mxu1 %vm327_vm0, %v20063_v57  ;;  %v5308_v29 = vld [vmem:[%s18718_s28 + $0x1c] sm:$0xff]  ;;  %v20107_v36 = vld [vmem:[%s18718_s28 + $0x24] sm:$0xff] }
 0x23c   : > { %v2901_v60 = vpop.f32.mrb[35].mxu1  ;;  %v18034_v52 = vpop.eup %18033  ;;  %v3269_v8 = vmul.f32 %v18032_v44, %v2974_v61  ;;  %18053 = vrcp.f32 %v3167_v45  ;;  %v2977_v45 = vadd.f32 %v19784_v6, %v19932_v7  ;;  %v20122_v1 = vld [vmem:[%s22231_s2 + $0x40] sm:$0xff]  ;;  %v20133_v7 = vld [vmem:[%s18718_s28 + $0x2c] sm:$0xff] }
 0x23d   : > { %v3030_v9 = vadd.f32 %v19683_v53, %v2901_v60  ;;  %v18036_v48 = vpop.eup %18035  ;;  %3303 = vst.msk [vmem:[%s19807_s23 + $0x90] sm:$0xff] %vm3284_vm1, %v3266_v63  ;;  %v3268_v14 = vmul.f32 %v18034_v52, %v2973_v55  ;;  %18055 = vpow2.f32 %v12951_v30  ;;  %v12953_v19 = vmul.f32 -1.442695, %v3031_v51  ;;  %v20140_v52 = vld [vmem:[%s18718_s28 + $0x34] sm:$0xff] }
 0x23e   : > { %v18038_v24 = vpop.eup %18037  ;;  %3306 = vst.msk [vmem:[%s19807_s23 + $0xa8] sm:$0xff] %vm3284_vm1, %v3269_v8  ;;  %v2976_v53 = vadd.f32 %v19901_v16, %v19784_v6  ;;  %v3166_v26 = vadd.f32 1.0, %v18036_v48  ;;  %18057 = vpow2.f32 %v12950_v33  ;;  %15976 = vmatmul.mubr.msk.f32.gmra.mrb[70].mxu0 %vm327_vm0, %v20086_v38  ;;  %16032 = vmatmul.mubr.msk.f32.gmra.mrb[70].mxu1 %vm327_vm0, %v20086_v38  ;;  %v2978_v30 = vadd.f32 %v19929_v27, %v19784_v6  ;;  %v20127_v27 = vld [vmem:[%s22230_s1 + $0x40] sm:$0xff] }
 0x23f   : > { %v12952_v21 = vmul.f32 -1.442695, %v3030_v9  ;;  %v18040_v4 = vpop.eup %18039  ;;  %3305 = vst.msk [vmem:[%s19807_s23 + $0xa0] sm:$0xff] %vm3284_vm1, %v3268_v14  ;;  %v3169_v2 = vadd.f32 1.0, %v18038_v24  ;;  %18059 = vpow2.f32 %v12953_v19  ;;  %16036 = vmatprep.mubr.msk.f32.mxu0 %vm327_vm0, %v5307_v25  ;;  %16092 = vmatprep.mubr.msk.f32.mxu1 %vm327_vm0, %v5307_v25  ;;  %v2980_v60 = vadd.f32 %v19957_v62, %v19784_v6  ;;  %v20158_v14 = vld [vmem:[%s18718_s28 + $0x3c] sm:$0xff] }
 0x240   : > { %v18042_v16 = vpop.eup %18041  ;;  %v3271_v23 = vmul.f32 %v18040_v4, %v2976_v53  ;;  %18061 = vrcp.f32 %v3166_v26  ;;  %v2979_v25 = vadd.f32 %v19784_v6, %v19962_v50  ;;  %v20165_v53 = vld [vmem:[%s18718_s28 + $0x44] sm:$0xff] }
 0x241   : > { %v18044_v34 = vpop.eup %18043  ;;  %v3270_v39 = vmul.f32 %v18042_v16, %v2975_v49  ;;  %18063 = vrcp.f32 %v3169_v2 }
 0x242   : > { %v18046_v32 = vpop.eup %18045  ;;  %3308 = vst.msk [vmem:[%s19807_s23 + $0xb8] sm:$0xff] %vm3284_vm1, %v3271_v23  ;;  %v3168_v41 = vadd.f32 1.0, %v18044_v34  ;;  %18065 = vpow2.f32 %v12952_v21  ;;  %16037 = vmatmul.mubr.msk.f32.vlgmr.msra.gmra.mrb[36].mxu0 %vm327_vm0, %v5308_v29  ;;  %16093 = vmatmul.mubr.msk.f32.vlgmr.msra.gmra.mrb[36].mxu1 %vm327_vm0, %v5308_v29  ;;  %v2982_v21 = vadd.f32 %v19985_v17, %v19784_v6  ;;  %v20178_v17 = vld [vmem:[%s18718_s28 + $0x4c] sm:$0xff]  ;;  %v2981_v23 = vadd.f32 %v19784_v6, %v19990_v3  ;;  %v20185_v34 = vld [vmem:[%s18718_s28 + $0x54] sm:$0xff] }
 0x243   : > { %v18048_v61 = vpop.eup %18047  ;;  %3307 = vst.msk [vmem:[%s19807_s23 + $0xb0] sm:$0xff] %vm3284_vm1, %v3270_v39  ;;  %v3171_v33 = vadd.f32 1.0, %v18046_v32  ;;  %16259 = vmatpush3.msra.mxu1 %v19712_v54  ;;  %16039 = vmatprep.mubr.msk.f32.mxu0 %vm327_vm0, %v20107_v36  ;;  %v2984_v32 = vadd.f32 %v20011_v40, %v19784_v6  ;;  %v2983_v40 = vadd.f32 %v19784_v6, %v20016_v15 }
 0x244   : > { %v18050_v44 = vpop.eup %18049  ;;  %v3273_v63 = vmul.f32 %v18048_v61, %v2978_v30  ;;  %18067 = vrcp.f32 %v3168_v41  ;;  %16095 = vmatprep.mubr.msk.f32.mxu1 %vm327_vm0, %v20107_v36  ;;  %16147 = vmatpush3.msra.mxu0 %v19717_v18  ;;  %v20200_v61 = vld [vmem:[%s18718_s28 + $0x5c] sm:$0xff]  ;;  %v2985_v15 = vadd.f32 %v19784_v6, %v20044_v56 }
 0x245   : > { %v18052_v55 = vpop.eup %18051  ;;  %v3272_v51 = vmul.f32 %v18050_v44, %v2977_v45  ;;  %18069 = vrcp.f32 %v3171_v33  ;;  %16314 = vmatprep.subr.mxu1 %v20122_v1  ;;  %16202 = vmatprep.subr.mxu0 %v20127_v27  ;;  %v20207_v45 = vld [vmem:[%s18718_s28 + $0x64] sm:$0xff] }
 0x246   : > { %v18054_v54 = vpop.eup %18053  ;;  %3310 = vst.msk [vmem:[%s19807_s23 + $0xc8] sm:$0xff] %vm3284_vm1, %v3273_v63  ;;  %v3170_v8 = vadd.f32 1.0, %v18052_v55  ;;  %16040 = vmatmul.mubr.msk.f32.gmra.mrb[38].mxu0 %vm327_vm0, %v20133_v7  ;;  %16096 = vmatmul.mubr.msk.f32.gmra.mrb[38].mxu1 %vm327_vm0, %v20133_v7  ;;  %v2986_v63 = vadd.f32 %v20039_v42, %v19784_v6 }
 0x247   : > { %v18056_v62 = vpop.eup %18055  ;;  %3309 = vst.msk [vmem:[%s19807_s23 + $0xc0] sm:$0xff] %vm3284_vm1, %v3272_v51  ;;  %v3275_v9 = vmul.f32 %v18054_v54, %v2980_v60  ;;  %16042 = vmatprep.mubr.msk.f32.mxu0 %vm327_vm0, %v20140_v52  ;;  %16098 = vmatprep.mubr.msk.f32.mxu1 %vm327_vm0, %v20140_v52  ;;  %v20224_v51 = vld [vmem:[%s18718_s28 + $0x6c] sm:$0xff]  ;;  %v2988_v54 = vadd.f32 %v20067_v47, %v19784_v6 }
 0x248   : > { %v18058_v18 = vpop.eup %18057  ;;  %18071 = vrcp.f32 %v3170_v8  ;;  %v3173_v48 = vadd.f32 1.0, %v18056_v62  ;;  %v20231_v8 = vld [vmem:[%s18718_s28 + $0x74] sm:$0xff]  ;;  %v2987_v47 = vadd.f32 %v19784_v6, %v20074_v58  ;;  %v20266_v6 = vld [vmem:[%s18718_s28 + $0x8c] sm:$0xff] }
 0x249   : > { %v18060_v19 = vpop.eup %18059  ;;  %3312 = vst.msk [vmem:[%s19807_s23 + $0xd8] sm:$0xff] %vm3284_vm1, %v3275_v9  ;;  %v3172_v24 = vadd.f32 1.0, %v18058_v18  ;;  %v20248_v18 = vld [vmem:[%s18718_s28 + $0x7c] sm:$0xff]  ;;  %v20269_v58 = vld [vmem:[%s18718_s28 + $0x94] sm:$0xff] }
 0x24a   : > { %v18062_v26 = vpop.eup %18061  ;;  %18073 = vrcp.f32 %v3173_v48  ;;  %v3175_v4 = vadd.f32 1.0, %v18060_v19  ;;  %16043 = vmatmul.mubr.msk.f32.gmra.mrb[40].mxu0 %vm327_vm0, %v20158_v14  ;;  %16099 = vmatmul.mubr.msk.f32.gmra.mrb[40].mxu1 %vm327_vm0, %v20158_v14  ;;  %v20253_v19 = vld [vmem:[%s18718_s28 + $0x84] sm:$0xff] }
 0x24b   : > { %v18064_v49 = vpop.eup %18063  ;;  %v3274_v2 = vmul.f32 %v18062_v26, %v2979_v25  ;;  %18075 = vrcp.f32 %v3172_v24  ;;  %16045 = vmatprep.mubr.msk.f32.mxu0 %vm327_vm0, %v20165_v53  ;;  %16101 = vmatprep.mubr.msk.f32.mxu1 %vm327_vm0, %v20165_v53  ;;  %v5324_v24 = vld [vmem:[%s18718_s28 + $0x9c] sm:$0xff]  ;;  %v5325_v26 = vld [vmem:[%s18718_s28 + $0xa4] sm:$0xff] }
 0x24c   : > { %v18066_v50 = vpop.eup %18065  ;;  %v3277_v16 = vmul.f32 %v18064_v49, %v2982_v21  ;;  %18077 = vrcp.f32 %v3175_v4  ;;  %v5326_v21 = vld [vmem:[%s18718_s28 + $0xac] sm:$0xff]  ;;  %v5327_v4 = vld [vmem:[%s18718_s28 + $0xb4] sm:$0xff]  ;;  %v5328_v49 = vld [vmem:[%s18718_s28 + $0xbc] sm:$0xff] }
 0x24d   : > { %3311 = vst.msk [vmem:[%s19807_s23 + $0xd0] sm:$0xff] %vm3284_vm1, %v3274_v2  ;;  %v3174_v29 = vadd.f32 1.0, %v18066_v50  ;;  %v5329_v2 = vld [vmem:[%s18718_s28 + $0xc4] sm:$0xff]  ;;  %v5330_v50 = vld [vmem:[%s18718_s28 + $0xcc] sm:$0xff] }
 0x24e   : > { %v18068_v39 = vpop.eup %18067  ;;  %3314 = vst.msk [vmem:[%s19807_s23 + $0xe8] sm:$0xff] %vm3284_vm1, %v3277_v16  ;;  %16046 = vmatmul.mubr.msk.f32.gmra.mrb[42].mxu0 %vm327_vm0, %v20178_v17  ;;  %16102 = vmatmul.mubr.msk.f32.gmra.mrb[42].mxu1 %vm327_vm0, %v20178_v17  ;;  %v5331_v16 = vld [vmem:[%s18718_s28 + $0xd4] sm:$0xff] }
 0x24f   : > { %v18070_v30 = vpop.eup %18069  ;;  %v3276_v41 = vmul.f32 %v18068_v39, %v2981_v23  ;;  %18079 = vrcp.f32 %v3174_v29  ;;  %16048 = vmatprep.mubr.msk.f32.mxu0 %vm327_vm0, %v20185_v34  ;;  %16104 = vmatprep.mubr.msk.f32.mxu1 %vm327_vm0, %v20185_v34  ;;  %v5332_v23 = vld [vmem:[%s18718_s28 + $0xdc] sm:$0xff]  ;;  %v5333_v29 = vld [vmem:[%s18718_s28 + $0xe4] sm:$0xff]  ;;  %v5334_v39 = vld [vmem:[%s18718_s28 + $0xec] sm:$0xff] }
 0x250   : > { %v3279_v3 = vmul.f32 %v18070_v30, %v2984_v32  ;;  %v5335_v32 = vld [vmem:[%s18718_s28 + $0xf4] sm:$0xff]  ;;  %v5336_v30 = vld [vmem:[%s18718_s28 + $0xfc] sm:$0xff] }
 0x251   : > { %3313 = vst.msk [vmem:[%s19807_s23 + $0xe0] sm:$0xff] %vm3284_vm1, %v3276_v41  ;;  %v5337_v41 = vld [vmem:[%s18718_s28 + $0x104] sm:$0xff] }
 0x252   : > { %v18072_v33 = vpop.eup %18071  ;;  %3316 = vst.msk [vmem:[%s19807_s23 + $0xf8] sm:$0xff] %vm3284_vm1, %v3279_v3  ;;  %16049 = vmatmul.mubr.msk.f32.gmra.mrb[44].mxu0 %vm327_vm0, %v20200_v61  ;;  %16105 = vmatmul.mubr.msk.f32.gmra.mrb[44].mxu1 %vm327_vm0, %v20200_v61  ;;  %v5338_v3 = vld [vmem:[%s18718_s28 + $0x10c] sm:$0xff] }
 0x253   : > { %v3278_v44 = vmul.f32 %v18072_v33, %v2983_v40  ;;  %16051 = vmatprep.mubr.msk.f32.mxu0 %vm327_vm0, %v20207_v45  ;;  %16107 = vmatprep.mubr.msk.f32.mxu1 %vm327_vm0, %v20207_v45  ;;  %v5339_v40 = vld [vmem:[%s18718_s28 + $0x114] sm:$0xff]  ;;  %v5340_v33 = vld [vmem:[%s18718_s28 + $0x11c] sm:$0xff] }
 0x254   : > { %v18074_v55 = vpop.eup %18073 }
 0x255   : > { %v18076_v42 = vpop.eup %18075  ;;  %3315 = vst.msk [vmem:[%s19807_s23 + $0xf0] sm:$0xff] %vm3284_vm1, %v3278_v44  ;;  %v3281_v60 = vmul.f32 %v18074_v55, %v2986_v63  ;;  %v5341_v44 = vld [vmem:[%s18718_s28 + $0x124] sm:$0xff]  ;;  %v5342_v63 = vld [vmem:[%s18718_s28 + $0x12c] sm:$0xff] }
 0x256   : > { %v18078_v56 = vpop.eup %18077  ;;  %v3280_v62 = vmul.f32 %v18076_v42, %v2985_v15  ;;  %16052 = vmatmul.mubr.msk.f32.gmra.mrb[46].mxu0 %vm327_vm0, %v20224_v51  ;;  %16108 = vmatmul.mubr.msk.f32.gmra.mrb[46].mxu1 %vm327_vm0, %v20224_v51  ;;  %v6432_v55 = vld [vmem:[%s18718_s28 + $0x13] sm:$0xff]  ;;  %v6433_v15 = vld [vmem:[%s18718_s28 + $0x1b] sm:$0xff]  ;;  %v6434_v42 = vld [vmem:[%s18718_s28 + $0x23] sm:$0xff] }
 0x257   : > { %3318 = vst.msk [vmem:[%s19807_s23 + $0x108] sm:$0xff] %vm3284_vm1, %v3281_v60  ;;  %v3283_v9 = vmul.f32 %v18078_v56, %v2988_v54  ;;  %16054 = vmatprep.mubr.msk.f32.mxu0 %vm327_vm0, %v20231_v8  ;;  %16110 = vmatprep.mubr.msk.f32.mxu1 %vm327_vm0, %v20231_v8  ;;  %v20346_v60 = vld [vmem:[%s22231_s2 + $0x50] sm:$0xff] }
 0x258   : > { %3317 = vst.msk [vmem:[%s19807_s23 + $0x100] sm:$0xff] %vm3284_vm1, %v3280_v62  ;;  %v20351_v54 = vld [vmem:[%s22230_s1 + $0x50] sm:$0xff] }
 0x259   : > { %v18080_v48 = vpop.eup %18079  ;;  %3320 = vst.msk [vmem:[%s19807_s23 + $0x118] sm:$0xff] %vm3284_vm1, %v3283_v9  ;;  %v6435_v56 = vld [vmem:[%s18718_s28 + $0x2b] sm:$0xff]  ;;  %v6436_v62 = vld [vmem:[%s18718_s28 + $0x33] sm:$0xff]  ;;  %v6438_v9 = vld [vmem:[%s18718_s28 + $0x43] sm:$0xff] }
 0x25a   : > { %v3282_v25 = vmul.f32 %v18080_v48, %v2987_v47  ;;  %16055 = vmatmul.mubr.msk.f32.gmra.mrb[48].mxu0 %vm327_vm0, %v20248_v18  ;;  %16111 = vmatmul.mubr.msk.f32.gmra.mrb[48].mxu1 %vm327_vm0, %v20248_v18  ;;  %v6440_v47 = vld [vmem:[%s18718_s28 + $0x53] sm:$0xff]  ;;  %v6441_v48 = vld [vmem:[%s18718_s28 + $0x5b] sm:$0xff] }
 0x25b   : > { %16057 = vmatprep.mubr.msk.f32.mxu0 %vm327_vm0, %v20253_v19  ;;  %16113 = vmatprep.mubr.msk.f32.mxu1 %vm327_vm0, %v20253_v19 }
 0x25c   : > { %3319 = vst.msk [vmem:[%s19807_s23 + $0x110] sm:$0xff] %vm3284_vm1, %v3282_v25  ;;  %v6442_v25 = vld [vmem:[%s18718_s28 + $0x63] sm:$0xff] }
 0x25e   : > { %16058 = vmatmul.mubr.msk.f32.gmra.mrb[50].mxu0 %vm327_vm0, %v20266_v6  ;;  %16114 = vmatmul.mubr.msk.f32.gmra.mrb[50].mxu1 %vm327_vm0, %v20266_v6 }
 0x25f   : > { %16060 = vmatprep.mubr.msk.f32.mxu0 %vm327_vm0, %v20269_v58  ;;  %16116 = vmatprep.mubr.msk.f32.mxu1 %vm327_vm0, %v20269_v58 }
 0x262   : > { %16061 = vmatmul.mubr.msk.f32.gmra.mrb[52].mxu0 %vm327_vm0, %v5324_v24  ;;  %16117 = vmatmul.mubr.msk.f32.gmra.mrb[52].mxu1 %vm327_vm0, %v5324_v24  ;;  %v6443_v24 = vld [vmem:[%s18718_s28 + $0x6b] sm:$0xff] }
 0x263   : > { %16063 = vmatprep.mubr.msk.f32.mxu0 %vm327_vm0, %v5325_v26  ;;  %16119 = vmatprep.mubr.msk.f32.mxu1 %vm327_vm0, %v5325_v26  ;;  %v6444_v26 = vld [vmem:[%s18718_s28 + $0x73] sm:$0xff] }
 0x266   : > { %16064 = vmatmul.mubr.msk.f32.gmra.mrb[54].mxu0 %vm327_vm0, %v5326_v21  ;;  %16120 = vmatmul.mubr.msk.f32.gmra.mrb[54].mxu1 %vm327_vm0, %v5326_v21  ;;  %v6445_v21 = vld [vmem:[%s18718_s28 + $0x7b] sm:$0xff] }
 0x267   : > { %16066 = vmatprep.mubr.msk.f32.mxu0 %vm327_vm0, %v5327_v4  ;;  %16122 = vmatprep.mubr.msk.f32.mxu1 %vm327_vm0, %v5327_v4  ;;  %v18513_v4 = vld [vmem:[%s18718_s28 + $0x83] sm:$0xff] }
 0x26a   : > { %16067 = vmatmul.mubr.msk.f32.gmra.mrb[56].mxu0 %vm327_vm0, %v5328_v49  ;;  %16123 = vmatmul.mubr.msk.f32.gmra.mrb[56].mxu1 %vm327_vm0, %v5328_v49  ;;  %v18514_v49 = vld [vmem:[%s18718_s28 + $0x8b] sm:$0xff] }
 0x26b   : > { %16069 = vmatprep.mubr.msk.f32.mxu0 %vm327_vm0, %v5329_v2  ;;  %16125 = vmatprep.mubr.msk.f32.mxu1 %vm327_vm0, %v5329_v2  ;;  %v18515_v2 = vld [vmem:[%s18718_s28 + $0x93] sm:$0xff] }
 0x26e   : > { %16070 = vmatmul.mubr.msk.f32.gmra.mrb[58].mxu0 %vm327_vm0, %v5330_v50  ;;  %16126 = vmatmul.mubr.msk.f32.gmra.mrb[58].mxu1 %vm327_vm0, %v5330_v50  ;;  %v18516_v50 = vld [vmem:[%s18718_s28 + $0x9b] sm:$0xff] }
 0x26f   : > { %16072 = vmatprep.mubr.msk.f32.mxu0 %vm327_vm0, %v5331_v16  ;;  %16128 = vmatprep.mubr.msk.f32.mxu1 %vm327_vm0, %v5331_v16  ;;  %v18517_v16 = vld [vmem:[%s18718_s28 + $0xa3] sm:$0xff] }
 0x272   : > { %16073 = vmatmul.mubr.msk.f32.gmra.mrb[60].mxu0 %vm327_vm0, %v5332_v23  ;;  %16129 = vmatmul.mubr.msk.f32.gmra.mrb[60].mxu1 %vm327_vm0, %v5332_v23  ;;  %v6407_v23 = vld [vmem:[%s18718_s28 + $0x8a] sm:$0xff] }
 0x273   : > { %16075 = vmatprep.mubr.msk.f32.mxu0 %vm327_vm0, %v5333_v29  ;;  %16131 = vmatprep.mubr.msk.f32.mxu1 %vm327_vm0, %v5333_v29  ;;  %v6408_v29 = vld [vmem:[%s18718_s28 + $0x92] sm:$0xff] }
 0x276   : > { %16076 = vmatmul.mubr.msk.f32.gmra.mrb[62].mxu0 %vm327_vm0, %v5334_v39  ;;  %16132 = vmatmul.mubr.msk.f32.gmra.mrb[62].mxu1 %vm327_vm0, %v5334_v39  ;;  %v6409_v39 = vld [vmem:[%s18718_s28 + $0x9a] sm:$0xff] }
 0x277   : > { %16078 = vmatprep.mubr.msk.f32.mxu0 %vm327_vm0, %v5335_v32  ;;  %16134 = vmatprep.mubr.msk.f32.mxu1 %vm327_vm0, %v5335_v32  ;;  %v6410_v32 = vld [vmem:[%s18718_s28 + $0xa2] sm:$0xff] }
 0x27a   : > { %16079 = vmatmul.mubr.msk.f32.gmra.mrb[64].mxu0 %vm327_vm0, %v5336_v30  ;;  %16135 = vmatmul.mubr.msk.f32.gmra.mrb[64].mxu1 %vm327_vm0, %v5336_v30  ;;  %v6411_v30 = vld [vmem:[%s18718_s28 + $0xaa] sm:$0xff] }
 0x27b   : > { %16081 = vmatprep.mubr.msk.f32.mxu0 %vm327_vm0, %v5337_v41  ;;  %16137 = vmatprep.mubr.msk.f32.mxu1 %vm327_vm0, %v5337_v41  ;;  %v6412_v41 = vld [vmem:[%s18718_s28 + $0xb2] sm:$0xff] }
 0x27e   : > { %16082 = vmatmul.mubr.msk.f32.gmra.mrb[66].mxu0 %vm327_vm0, %v5338_v3  ;;  %16138 = vmatmul.mubr.msk.f32.gmra.mrb[66].mxu1 %vm327_vm0, %v5338_v3  ;;  %v6413_v3 = vld [vmem:[%s18718_s28 + $0xba] sm:$0xff] }
 0x27f   : > { %16084 = vmatprep.mubr.msk.f32.mxu0 %vm327_vm0, %v5339_v40  ;;  %16140 = vmatprep.mubr.msk.f32.mxu1 %vm327_vm0, %v5339_v40  ;;  %v6414_v40 = vld [vmem:[%s18718_s28 + $0xc2] sm:$0xff] }
 0x282   : > { %16085 = vmatmul.mubr.msk.f32.gmra.mrb[68].mxu0 %vm327_vm0, %v5340_v33  ;;  %16141 = vmatmul.mubr.msk.f32.gmra.mrb[68].mxu1 %vm327_vm0, %v5340_v33  ;;  %v6415_v33 = vld [vmem:[%s18718_s28 + $0xca] sm:$0xff] }
 0x283   : > { %16087 = vmatprep.mubr.msk.f32.mxu0 %vm327_vm0, %v5341_v44  ;;  %16143 = vmatprep.mubr.msk.f32.mxu1 %vm327_vm0, %v5341_v44  ;;  %v6416_v44 = vld [vmem:[%s18718_s28 + $0xd2] sm:$0xff] }
 0x286   : > { %16088 = vmatmul.mubr.msk.f32.gmra.mrb[70].mxu0 %vm327_vm0, %v5342_v63  ;;  %16144 = vmatmul.mubr.msk.f32.gmra.mrb[70].mxu1 %vm327_vm0, %v5342_v63  ;;  %v6417_v63 = vld [vmem:[%s18718_s28 + $0xda] sm:$0xff] }
 0x287   : > { %16148 = vmatprep.mubr.msk.f32.mxu0 %vm327_vm0, %v6432_v55  ;;  %16260 = vmatprep.mubr.msk.f32.mxu1 %vm327_vm0, %v6432_v55  ;;  %v6418_v55 = vld [vmem:[%s18718_s28 + $0xe2] sm:$0xff] }
 0x28a   : > { %16149 = vmatmul.mubr.msk.f32.vlgmr.msra.gmra.mrb[72].mxu0 %vm327_vm0, %v6433_v15  ;;  %16261 = vmatmul.mubr.msk.f32.vlgmr.msra.gmra.mrb[72].mxu1 %vm327_vm0, %v6433_v15  ;;  %v6419_v15 = vld [vmem:[%s18718_s28 + $0xea] sm:$0xff] }
 0x28b   : > { %16315 = vmatpush3.msra.mxu1 %v20122_v1  ;;  %16151 = vmatprep.mubr.msk.f32.mxu0 %vm327_vm0, %v6434_v42  ;;  %v6437_v1 = vld [vmem:[%s18718_s28 + $0x3b] sm:$0xff] }
 0x28c   : > { %16263 = vmatprep.mubr.msk.f32.mxu1 %vm327_vm0, %v6434_v42  ;;  %16203 = vmatpush3.msra.mxu0 %v20127_v27  ;;  %v6439_v27 = vld [vmem:[%s18718_s28 + $0x4b] sm:$0xff] }
 0x28d   : > { %16426 = vmatprep.subr.mxu1 %v20346_v60  ;;  %16370 = vmatprep.subr.mxu0 %v20351_v54  ;;  %v6420_v42 = vld [vmem:[%s18718_s28 + $0xf2] sm:$0xff] }
 0x28e   : > { %16152 = vmatmul.mubr.msk.f32.gmra.mrb[74].mxu0 %vm327_vm0, %v6435_v56  ;;  %16264 = vmatmul.mubr.msk.f32.gmra.mrb[74].mxu1 %vm327_vm0, %v6435_v56  ;;  %v6423_v56 = vld [vmem:[%s18718_s28 + $0x10a] sm:$0xff] }
 0x28f   : > { %16154 = vmatprep.mubr.msk.f32.mxu0 %vm327_vm0, %v6436_v62  ;;  %16266 = vmatprep.mubr.msk.f32.mxu1 %vm327_vm0, %v6436_v62  ;;  %v6424_v62 = vld [vmem:[%s18718_s28 + $0x112] sm:$0xff] }
 0x292   : > { %16155 = vmatmul.mubr.msk.f32.gmra.mrb[76].mxu0 %vm327_vm0, %v6437_v1  ;;  %16267 = vmatmul.mubr.msk.f32.gmra.mrb[76].mxu1 %vm327_vm0, %v6437_v1  ;;  %v6425_v1 = vld [vmem:[%s18718_s28 + $0x11a] sm:$0xff] }
 0x293   : > { %16157 = vmatprep.mubr.msk.f32.mxu0 %vm327_vm0, %v6438_v9  ;;  %16269 = vmatprep.mubr.msk.f32.mxu1 %vm327_vm0, %v6438_v9  ;;  %v6426_v9 = vld [vmem:[%s18718_s28 + $0x122] sm:$0xff] }
 0x296   : > { %16158 = vmatmul.mubr.msk.f32.gmra.mrb[78].mxu0 %vm327_vm0, %v6439_v27  ;;  %16270 = vmatmul.mubr.msk.f32.gmra.mrb[78].mxu1 %vm327_vm0, %v6439_v27  ;;  %v20592_v27 = vld [vmem:[#allocation4] ss:$0 sm:$0xff] }
 0x297   : > { %16160 = vmatprep.mubr.msk.f32.mxu0 %vm327_vm0, %v6440_v47  ;;  %16272 = vmatprep.mubr.msk.f32.mxu1 %vm327_vm0, %v6440_v47  ;;  %v6427_v47 = vld [vmem:[%s18718_s28 + $0x12a] sm:$0xff] }
 0x29a   : > { %16161 = vmatmul.mubr.msk.f32.gmra.mrb[80].mxu0 %vm327_vm0, %v6441_v48  ;;  %16273 = vmatmul.mubr.msk.f32.gmra.mrb[80].mxu1 %vm327_vm0, %v6441_v48 }
 0x29b   : > { %16163 = vmatprep.mubr.msk.f32.mxu0 %vm327_vm0, %v6442_v25  ;;  %16275 = vmatprep.mubr.msk.f32.mxu1 %vm327_vm0, %v6442_v25 }
 0x29e   : > { %16164 = vmatmul.mubr.msk.f32.gmra.mrb[82].mxu0 %vm327_vm0, %v6443_v24  ;;  %16276 = vmatmul.mubr.msk.f32.gmra.mrb[82].mxu1 %vm327_vm0, %v6443_v24 }
 0x29f   : > { %16166 = vmatprep.mubr.msk.f32.mxu0 %vm327_vm0, %v6444_v26  ;;  %16278 = vmatprep.mubr.msk.f32.mxu1 %vm327_vm0, %v6444_v26 }
 0x2a2   : > { %16167 = vmatmul.mubr.msk.f32.gmra.mrb[84].mxu0 %vm327_vm0, %v6445_v21  ;;  %16279 = vmatmul.mubr.msk.f32.gmra.mrb[84].mxu1 %vm327_vm0, %v6445_v21 }
 0x2a3   : > { %16169 = vmatprep.mubr.msk.f32.mxu0 %vm327_vm0, %v18513_v4  ;;  %16281 = vmatprep.mubr.msk.f32.mxu1 %vm327_vm0, %v18513_v4 }
 0x2a6   : > { %16170 = vmatmul.mubr.msk.f32.gmra.mrb[86].mxu0 %vm327_vm0, %v18514_v49  ;;  %16282 = vmatmul.mubr.msk.f32.gmra.mrb[86].mxu1 %vm327_vm0, %v18514_v49 }
 0x2a7   : > { %16172 = vmatprep.mubr.msk.f32.mxu0 %vm327_vm0, %v18515_v2  ;;  %16284 = vmatprep.mubr.msk.f32.mxu1 %vm327_vm0, %v18515_v2 }
 0x2aa   : > { %16173 = vmatmul.mubr.msk.f32.gmra.mrb[88].mxu0 %vm327_vm0, %v18516_v50  ;;  %16285 = vmatmul.mubr.msk.f32.gmra.mrb[88].mxu1 %vm327_vm0, %v18516_v50 }
 0x2ab   : > { %16175 = vmatprep.mubr.msk.f32.mxu0 %vm327_vm0, %v18517_v16  ;;  %16287 = vmatprep.mubr.msk.f32.mxu1 %vm327_vm0, %v18517_v16 }
 0x2ae   : > { %16176 = vmatmul.mubr.msk.f32.gmra.mrb[90].mxu0 %vm327_vm0, %v19864_v28  ;;  %16288 = vmatmul.mubr.msk.f32.gmra.mrb[90].mxu1 %vm327_vm0, %v19864_v28  ;;  %v6392_v28 = vld [vmem:[%s18718_s28 + $0x12] sm:$0xff] }
 0x2af   : > { %16178 = vmatprep.mubr.msk.f32.mxu0 %vm327_vm0, %v19871_v31  ;;  %16290 = vmatprep.mubr.msk.f32.mxu1 %vm327_vm0, %v19871_v31  ;;  %v6393_v31 = vld [vmem:[%s18718_s28 + $0x1a] sm:$0xff] }
 0x2b2   : > { %16179 = vmatmul.mubr.msk.f32.gmra.mrb[92].mxu0 %vm327_vm0, %v19892_v43  ;;  %16291 = vmatmul.mubr.msk.f32.gmra.mrb[92].mxu1 %vm327_vm0, %v19892_v43  ;;  %v6394_v43 = vld [vmem:[%s18718_s28 + $0x22] sm:$0xff] }
 0x2b3   : > { %16181 = vmatprep.mubr.msk.f32.mxu0 %vm327_vm0, %v19899_v46  ;;  %16293 = vmatprep.mubr.msk.f32.mxu1 %vm327_vm0, %v19899_v46  ;;  %v20485_v46 = vld [vmem:[%s22231_s2 + $0x58] sm:$0xff] }
 0x2b6   : > { %16182 = vmatmul.mubr.msk.f32.gmra.mrb[94].mxu0 %vm327_vm0, %v19920_v13  ;;  %16294 = vmatmul.mubr.msk.f32.gmra.mrb[94].mxu1 %vm327_vm0, %v19920_v13  ;;  %v6395_v13 = vld [vmem:[%s18718_s28 + $0x2a] sm:$0xff] }
 0x2b7   : > { %16184 = vmatprep.mubr.msk.f32.mxu0 %vm327_vm0, %v19927_v22  ;;  %16296 = vmatprep.mubr.msk.f32.mxu1 %vm327_vm0, %v19927_v22  ;;  %v20493_v22 = vld [vmem:[%s22230_s1 + $0x58] sm:$0xff] }
 0x2ba   : > { %16185 = vmatmul.mubr.msk.f32.gmra.mrb[96].mxu0 %vm327_vm0, %v19948_v35  ;;  %16297 = vmatmul.mubr.msk.f32.gmra.mrb[96].mxu1 %vm327_vm0, %v19948_v35  ;;  %v6396_v35 = vld [vmem:[%s18718_s28 + $0x32] sm:$0xff] }
 0x2bb   : > { %16187 = vmatprep.mubr.msk.f32.mxu0 %vm327_vm0, %v19955_v5  ;;  %16299 = vmatprep.mubr.msk.f32.mxu1 %vm327_vm0, %v19955_v5  ;;  %v6397_v5 = vld [vmem:[%s18718_s28 + $0x3a] sm:$0xff] }
 0x2be   : > { %16188 = vmatmul.mubr.msk.f32.gmra.mrb[98].mxu0 %vm327_vm0, %v19976_v0  ;;  %16300 = vmatmul.mubr.msk.f32.gmra.mrb[98].mxu1 %vm327_vm0, %v19976_v0  ;;  %v6398_v0 = vld [vmem:[%s18718_s28 + $0x42] sm:$0xff] }
 0x2bf   : > { %16190 = vmatprep.mubr.msk.f32.mxu0 %vm327_vm0, %v19981_v11  ;;  %16302 = vmatprep.mubr.msk.f32.mxu1 %vm327_vm0, %v19981_v11  ;;  %v6399_v11 = vld [vmem:[%s18718_s28 + $0x4a] sm:$0xff] }
 0x2c2   : > { %16191 = vmatmul.mubr.msk.f32.gmra.mrb[100].mxu0 %vm327_vm0, %v20004_v59  ;;  %16303 = vmatmul.mubr.msk.f32.gmra.mrb[100].mxu1 %vm327_vm0, %v20004_v59  ;;  %v6400_v59 = vld [vmem:[%s18718_s28 + $0x52] sm:$0xff] }
 0x2c3   : > { %16193 = vmatprep.mubr.msk.f32.mxu0 %vm327_vm0, %v20007_v37  ;;  %16305 = vmatprep.mubr.msk.f32.mxu1 %vm327_vm0, %v20007_v37  ;;  %v6401_v37 = vld [vmem:[%s18718_s28 + $0x5a] sm:$0xff] }
 0x2c6   : > { %16194 = vmatmul.mubr.msk.f32.gmra.mrb[102].mxu0 %vm327_vm0, %v20032_v20  ;;  %16306 = vmatmul.mubr.msk.f32.gmra.mrb[102].mxu1 %vm327_vm0, %v20032_v20  ;;  %v6402_v20 = vld [vmem:[%s18718_s28 + $0x62] sm:$0xff] }
 0x2c7   : > { %16196 = vmatprep.mubr.msk.f32.mxu0 %vm327_vm0, %v20035_v12  ;;  %16308 = vmatprep.mubr.msk.f32.mxu1 %vm327_vm0, %v20035_v12  ;;  %v6403_v12 = vld [vmem:[%s18718_s28 + $0x6a] sm:$0xff] }
 0x2ca   : > { %16197 = vmatmul.mubr.msk.f32.gmra.mrb[104].mxu0 %vm327_vm0, %v20058_v10  ;;  %16309 = vmatmul.mubr.msk.f32.gmra.mrb[104].mxu1 %vm327_vm0, %v20058_v10  ;;  %v6404_v10 = vld [vmem:[%s18718_s28 + $0x72] sm:$0xff] }
 0x2cb   : > { %16199 = vmatprep.mubr.msk.f32.mxu0 %vm327_vm0, %v20063_v57  ;;  %16311 = vmatprep.mubr.msk.f32.mxu1 %vm327_vm0, %v20063_v57  ;;  %v6405_v57 = vld [vmem:[%s18718_s28 + $0x7a] sm:$0xff] }
 0x2ce   : > { %16200 = vmatmul.mubr.msk.f32.gmra.mrb[106].mxu0 %vm327_vm0, %v20086_v38  ;;  %16312 = vmatmul.mubr.msk.f32.gmra.mrb[106].mxu1 %vm327_vm0, %v20086_v38  ;;  %v6406_v38 = vld [vmem:[%s18718_s28 + $0x82] sm:$0xff] }
 0x2cf   : > { %16204 = vmatprep.mubr.msk.f32.mxu0 %vm327_vm0, %v6392_v28  ;;  %16316 = vmatprep.mubr.msk.f32.mxu1 %vm327_vm0, %v6392_v28 }
 0x2d2   : > { %16205 = vmatmul.mubr.msk.f32.vlgmr.msra.gmra.mrb[72].mxu0 %vm327_vm0, %v6393_v31  ;;  %16317 = vmatmul.mubr.msk.f32.vlgmr.msra.gmra.mrb[72].mxu1 %vm327_vm0, %v6393_v31 }
 0x2d3   : > { %16427 = vmatpush3.msra.mxu1 %v20346_v60  ;;  %16207 = vmatprep.mubr.msk.f32.mxu0 %vm327_vm0, %v6394_v43  ;;  %v6421_v60 = vld [vmem:[%s18718_s28 + $0xfa] sm:$0xff] }
 0x2d4   : > { %16319 = vmatprep.mubr.msk.f32.mxu1 %vm327_vm0, %v6394_v43  ;;  %16371 = vmatpush3.msra.mxu0 %v20351_v54  ;;  %v6422_v54 = vld [vmem:[%s18718_s28 + $0x102] sm:$0xff] }
 0x2d5   : > { %16538 = vmatprep.subr.mxu1 %v20485_v46  ;;  %16482 = vmatprep.subr.mxu0 %v20493_v22 }
 0x2d6   : > { %16208 = vmatmul.mubr.msk.f32.gmra.mrb[74].mxu0 %vm327_vm0, %v6395_v13  ;;  %16320 = vmatmul.mubr.msk.f32.gmra.mrb[74].mxu1 %vm327_vm0, %v6395_v13  ;;  %v20626_v13 = vld [vmem:[%s22230_s1 + $0x68] sm:$0xff] }
 0x2d7   : > { %16210 = vmatprep.mubr.msk.f32.mxu0 %vm327_vm0, %v6396_v35  ;;  %16322 = vmatprep.mubr.msk.f32.mxu1 %vm327_vm0, %v6396_v35 }
 0x2da   : > { %16211 = vmatmul.mubr.msk.f32.gmra.mrb[76].mxu0 %vm327_vm0, %v6397_v5  ;;  %16323 = vmatmul.mubr.msk.f32.gmra.mrb[76].mxu1 %vm327_vm0, %v6397_v5 }
 0x2db   : > { %16213 = vmatprep.mubr.msk.f32.mxu0 %vm327_vm0, %v6398_v0  ;;  %16325 = vmatprep.mubr.msk.f32.mxu1 %vm327_vm0, %v6398_v0 }
 0x2de   : > { %16214 = vmatmul.mubr.msk.f32.gmra.mrb[78].mxu0 %vm327_vm0, %v6399_v11  ;;  %16326 = vmatmul.mubr.msk.f32.gmra.mrb[78].mxu1 %vm327_vm0, %v6399_v11 }
 0x2df   : > { %16216 = vmatprep.mubr.msk.f32.mxu0 %vm327_vm0, %v6400_v59  ;;  %16328 = vmatprep.mubr.msk.f32.mxu1 %vm327_vm0, %v6400_v59 }
 0x2e2   : > { %16217 = vmatmul.mubr.msk.f32.gmra.mrb[80].mxu0 %vm327_vm0, %v6401_v37  ;;  %16329 = vmatmul.mubr.msk.f32.gmra.mrb[80].mxu1 %vm327_vm0, %v6401_v37 }
 0x2e3   : > { %16219 = vmatprep.mubr.msk.f32.mxu0 %vm327_vm0, %v6402_v20  ;;  %16331 = vmatprep.mubr.msk.f32.mxu1 %vm327_vm0, %v6402_v20 }
 0x2e6   : > { %16220 = vmatmul.mubr.msk.f32.gmra.mrb[82].mxu0 %vm327_vm0, %v6403_v12  ;;  %16332 = vmatmul.mubr.msk.f32.gmra.mrb[82].mxu1 %vm327_vm0, %v6403_v12 }
 0x2e7   : > { %16222 = vmatprep.mubr.msk.f32.mxu0 %vm327_vm0, %v6404_v10  ;;  %16334 = vmatprep.mubr.msk.f32.mxu1 %vm327_vm0, %v6404_v10 }
 0x2ea   : > { %16223 = vmatmul.mubr.msk.f32.gmra.mrb[84].mxu0 %vm327_vm0, %v6405_v57  ;;  %16335 = vmatmul.mubr.msk.f32.gmra.mrb[84].mxu1 %vm327_vm0, %v6405_v57 }
 0x2eb   : > { %16225 = vmatprep.mubr.msk.f32.mxu0 %vm327_vm0, %v6406_v38  ;;  %16337 = vmatprep.mubr.msk.f32.mxu1 %vm327_vm0, %v6406_v38 }
 0x2ee   : > { %16226 = vmatmul.mubr.msk.f32.gmra.mrb[86].mxu0 %vm327_vm0, %v6407_v23  ;;  %16338 = vmatmul.mubr.msk.f32.gmra.mrb[86].mxu1 %vm327_vm0, %v6407_v23 }
 0x2ef   : > { %16228 = vmatprep.mubr.msk.f32.mxu0 %vm327_vm0, %v6408_v29  ;;  %16340 = vmatprep.mubr.msk.f32.mxu1 %vm327_vm0, %v6408_v29 }
 0x2f2   : > { %16229 = vmatmul.mubr.msk.f32.gmra.mrb[88].mxu0 %vm327_vm0, %v6409_v39  ;;  %16341 = vmatmul.mubr.msk.f32.gmra.mrb[88].mxu1 %vm327_vm0, %v6409_v39 }
 0x2f3   : > { %16231 = vmatprep.mubr.msk.f32.mxu0 %vm327_vm0, %v6410_v32  ;;  %16343 = vmatprep.mubr.msk.f32.mxu1 %vm327_vm0, %v6410_v32 }
 0x2f6   : > { %16232 = vmatmul.mubr.msk.f32.gmra.mrb[90].mxu0 %vm327_vm0, %v6411_v30  ;;  %16344 = vmatmul.mubr.msk.f32.gmra.mrb[90].mxu1 %vm327_vm0, %v6411_v30 }
 0x2f7   : > { %16234 = vmatprep.mubr.msk.f32.mxu0 %vm327_vm0, %v6412_v41  ;;  %16346 = vmatprep.mubr.msk.f32.mxu1 %vm327_vm0, %v6412_v41 }
 0x2fa   : > { %16235 = vmatmul.mubr.msk.f32.gmra.mrb[92].mxu0 %vm327_vm0, %v6413_v3  ;;  %16347 = vmatmul.mubr.msk.f32.gmra.mrb[92].mxu1 %vm327_vm0, %v6413_v3 }
 0x2fb   : > { %16237 = vmatprep.mubr.msk.f32.mxu0 %vm327_vm0, %v6414_v40  ;;  %16349 = vmatprep.mubr.msk.f32.mxu1 %vm327_vm0, %v6414_v40 }
 0x2fe   : > { %16238 = vmatmul.mubr.msk.f32.gmra.mrb[94].mxu0 %vm327_vm0, %v6415_v33  ;;  %16350 = vmatmul.mubr.msk.f32.gmra.mrb[94].mxu1 %vm327_vm0, %v6415_v33 }
 0x2ff   : > { %16240 = vmatprep.mubr.msk.f32.mxu0 %vm327_vm0, %v6416_v44  ;;  %16352 = vmatprep.mubr.msk.f32.mxu1 %vm327_vm0, %v6416_v44 }
 0x302   : > { %16241 = vmatmul.mubr.msk.f32.gmra.mrb[96].mxu0 %vm327_vm0, %v6417_v63  ;;  %16353 = vmatmul.mubr.msk.f32.gmra.mrb[96].mxu1 %vm327_vm0, %v6417_v63 }
 0x303   : > { %16243 = vmatprep.mubr.msk.f32.mxu0 %vm327_vm0, %v6418_v55  ;;  %16355 = vmatprep.mubr.msk.f32.mxu1 %vm327_vm0, %v6418_v55 }
 0x306   : > { %16244 = vmatmul.mubr.msk.f32.gmra.mrb[98].mxu0 %vm327_vm0, %v6419_v15  ;;  %16356 = vmatmul.mubr.msk.f32.gmra.mrb[98].mxu1 %vm327_vm0, %v6419_v15 }
 0x307   : > { %16246 = vmatprep.mubr.msk.f32.mxu0 %vm327_vm0, %v6420_v42  ;;  %16358 = vmatprep.mubr.msk.f32.mxu1 %vm327_vm0, %v6420_v42 }
 0x30a   : > { %16247 = vmatmul.mubr.msk.f32.gmra.mrb[100].mxu0 %vm327_vm0, %v6421_v60  ;;  %16359 = vmatmul.mubr.msk.f32.gmra.mrb[100].mxu1 %vm327_vm0, %v6421_v60 }
 0x30b   : > { %16249 = vmatprep.mubr.msk.f32.mxu0 %vm327_vm0, %v6422_v54  ;;  %16361 = vmatprep.mubr.msk.f32.mxu1 %vm327_vm0, %v6422_v54 }
 0x30e   : > { %16250 = vmatmul.mubr.msk.f32.gmra.mrb[102].mxu0 %vm327_vm0, %v6423_v56  ;;  %16362 = vmatmul.mubr.msk.f32.gmra.mrb[102].mxu1 %vm327_vm0, %v6423_v56 }
 0x30f   : > { %16252 = vmatprep.mubr.msk.f32.mxu0 %vm327_vm0, %v6424_v62  ;;  %16364 = vmatprep.mubr.msk.f32.mxu1 %vm327_vm0, %v6424_v62 }
 0x312   : > { %16253 = vmatmul.mubr.msk.f32.gmra.mrb[104].mxu0 %vm327_vm0, %v6425_v1  ;;  %16365 = vmatmul.mubr.msk.f32.gmra.mrb[104].mxu1 %vm327_vm0, %v6425_v1 }
 0x313   : > { %16255 = vmatprep.mubr.msk.f32.mxu0 %vm327_vm0, %v6426_v9  ;;  %16367 = vmatprep.mubr.msk.f32.mxu1 %vm327_vm0, %v6426_v9 }
 0x315   : > { %v20597_v48 = vpop.f32.mrb[36].mxu0  ;;  %v16094_v25 = vpop.f32.mrb[36].mxu1 }
 0x316   : > { %v6068_v24 = vadd.f32 %v16094_v25, %v20592_v27  ;;  %v20600_v26 = vpop.f32.mrb[37].mxu0  ;;  %v5802_v21 = vpop.f32.mrb[37].mxu1  ;;  %16256 = vmatmul.mubr.msk.f32.gmra.mrb[106].mxu0 %vm327_vm0, %v6427_v47  ;;  %16368 = vmatmul.mubr.msk.f32.gmra.mrb[106].mxu1 %vm327_vm0, %v6427_v47  ;;  %v20693_v25 = vld [vmem:[#allocation2] ss:$0 sm:$0xff] }
 0x317   : > { %v6067_v4 = vadd.f32 %v20592_v27, %v5802_v21  ;;  %16372 = vmatprep.mubr.msk.f32.mxu0 %vm327_vm0, %v20107_v36  ;;  %16428 = vmatprep.mubr.msk.f32.mxu1 %vm327_vm0, %v20107_v36  ;;  %v20621_v36 = vld [vmem:[%s22231_s2 + $0x68] sm:$0xff] }
 0x318   : > { %v13253_v49 = vmul.f32 -1.442695, %v6068_v24 }
 0x319   : > { %v13252_v2 = vmul.f32 -1.442695, %v6067_v4  ;;  %v20609_v50 = vpop.f32.mrb[38].mxu0  ;;  %v16097_v16 = vpop.f32.mrb[38].mxu1 }
 0x31a   : > { %18081 = vpow2.f32 %v13253_v49  ;;  %v6070_v28 = vadd.f32 %v16097_v16, %v20592_v27  ;;  %v20612_v31 = vpop.f32.mrb[39].mxu0  ;;  %v5812_v43 = vpop.f32.mrb[39].mxu1  ;;  %16373 = vmatmul.mubr.msk.f32.vlgmr.msra.gmra.mrb[72].mxu0 %vm327_vm0, %v20133_v7  ;;  %16429 = vmatmul.mubr.msk.f32.vlgmr.msra.gmra.mrb[72].mxu1 %vm327_vm0, %v20133_v7 }
 0x31b   : > { %18083 = vpow2.f32 %v13252_v2  ;;  %v6069_v35 = vadd.f32 %v20592_v27, %v5812_v43  ;;  %16539 = vmatpush3.msra.mxu1 %v20485_v46  ;;  %16375 = vmatprep.mubr.msk.f32.mxu0 %vm327_vm0, %v20140_v52 }
 0x31c   : > { %v13255_v5 = vmul.f32 -1.442695, %v6070_v28  ;;  %16431 = vmatprep.mubr.msk.f32.mxu1 %vm327_vm0, %v20140_v52  ;;  %16483 = vmatpush3.msra.mxu0 %v20493_v22 }
 0x31d   : > { %v13254_v7 = vmul.f32 -1.442695, %v6069_v35  ;;  %v20635_v0 = vpop.f32.mrb[40].mxu0  ;;  %v16100_v11 = vpop.f32.mrb[40].mxu1  ;;  %16706 = vmatprep.subr.mxu1 %v20621_v36  ;;  %16594 = vmatprep.subr.mxu0 %v20626_v13 }
 0x31e   : > { %18085 = vpow2.f32 %v13255_v5  ;;  %v6072_v46 = vadd.f32 %v16100_v11, %v20592_v27  ;;  %v20640_v59 = vpop.f32.mrb[41].mxu0  ;;  %v5822_v37 = vpop.f32.mrb[41].mxu1  ;;  %16376 = vmatmul.mubr.msk.f32.gmra.mrb[74].mxu0 %vm327_vm0, %v20158_v14  ;;  %16432 = vmatmul.mubr.msk.f32.gmra.mrb[74].mxu1 %vm327_vm0, %v20158_v14 }
 0x31f   : > { %18087 = vpow2.f32 %v13254_v7  ;;  %v6071_v52 = vadd.f32 %v20592_v27, %v5822_v37  ;;  %16378 = vmatprep.mubr.msk.f32.mxu0 %vm327_vm0, %v20165_v53  ;;  %16434 = vmatprep.mubr.msk.f32.mxu1 %vm327_vm0, %v20165_v53  ;;  %v6025_v7 = vadd.f32 %v20597_v48, %v20693_v25  ;;  %v6024_v37 = vadd.f32 %v20693_v25, %v20600_v26 }
 0x320   : > { %v13257_v22 = vmul.f32 -1.442695, %v6072_v46 }
 0x321   : > { %v13256_v20 = vmul.f32 -1.442695, %v6071_v52  ;;  %v20651_v12 = vpop.f32.mrb[42].mxu0  ;;  %v16103_v10 = vpop.f32.mrb[42].mxu1 }
 0x322   : > { %18089 = vpow2.f32 %v13257_v22  ;;  %v6074_v57 = vadd.f32 %v16103_v10, %v20592_v27  ;;  %v20654_v38 = vpop.f32.mrb[43].mxu0  ;;  %v5832_v14 = vpop.f32.mrb[43].mxu1  ;;  %16379 = vmatmul.mubr.msk.f32.gmra.mrb[76].mxu0 %vm327_vm0, %v20178_v17  ;;  %16435 = vmatmul.mubr.msk.f32.gmra.mrb[76].mxu1 %vm327_vm0, %v20178_v17 }
 0x323   : > { %18091 = vpow2.f32 %v13256_v20  ;;  %v6073_v53 = vadd.f32 %v20592_v27, %v5832_v14  ;;  %16381 = vmatprep.mubr.msk.f32.mxu0 %vm327_vm0, %v20185_v34  ;;  %16437 = vmatprep.mubr.msk.f32.mxu1 %vm327_vm0, %v20185_v34 }
 0x324   : > { %v18082_v23 = vpop.eup %18081  ;;  %v13259_v29 = vmul.f32 -1.442695, %v6074_v57 }
 0x325   : > { %v18084_v39 = vpop.eup %18083  ;;  %v6212_v32 = vadd.f32 1.0, %v18082_v23  ;;  %v13258_v30 = vmul.f32 -1.442695, %v6073_v53  ;;  %v20665_v41 = vpop.f32.mrb[44].mxu0 }
 0x326   : > { %v16106_v3 = vpop.f32.mrb[44].mxu1  ;;  %v6211_v40 = vadd.f32 1.0, %v18084_v39  ;;  %18093 = vpow2.f32 %v13259_v29  ;;  %v20668_v33 = vpop.f32.mrb[45].mxu0  ;;  %16382 = vmatmul.mubr.msk.f32.gmra.mrb[78].mxu0 %vm327_vm0, %v20200_v61  ;;  %16438 = vmatmul.mubr.msk.f32.gmra.mrb[78].mxu1 %vm327_vm0, %v20200_v61  ;;  %v7683_v29 = vld [vmem:[%s18718_s28 + $0x9c] sm:$0xff] }
 0x327   : > { %v6076_v17 = vadd.f32 %v16106_v3, %v20592_v27  ;;  %v5842_v44 = vpop.f32.mrb[45].mxu1  ;;  %18095 = vrcp.f32 %v6212_v32  ;;  %16384 = vmatprep.mubr.msk.f32.mxu0 %vm327_vm0, %v20207_v45  ;;  %16440 = vmatprep.mubr.msk.f32.mxu1 %vm327_vm0, %v20207_v45  ;;  %v6027_v32 = vadd.f32 %v20609_v50, %v20693_v25  ;;  %v7684_v3 = vld [vmem:[%s18718_s28 + $0xa4] sm:$0xff] }
 0x328   : > { %v6075_v34 = vadd.f32 %v20592_v27, %v5842_v44  ;;  %v18086_v63 = vpop.eup %18085  ;;  %18097 = vrcp.f32 %v6211_v40 }
 0x329   : > { %v13261_v55 = vmul.f32 -1.442695, %v6076_v17  ;;  %v18088_v15 = vpop.eup %18087  ;;  %v6214_v42 = vadd.f32 1.0, %v18086_v63  ;;  %18099 = vpow2.f32 %v13258_v30  ;;  %v20679_v54 = vpop.f32.mrb[46].mxu0  ;;  %v6026_v17 = vadd.f32 %v20693_v25, %v20612_v31 }
 0x32a   : > { %v13260_v60 = vmul.f32 -1.442695, %v6075_v34  ;;  %v16109_v56 = vpop.f32.mrb[46].mxu1  ;;  %v6213_v61 = vadd.f32 1.0, %v18088_v15  ;;  %v20682_v1 = vpop.f32.mrb[47].mxu0  ;;  %16385 = vmatmul.mubr.msk.f32.gmra.mrb[80].mxu0 %vm327_vm0, %v20224_v51  ;;  %16441 = vmatmul.mubr.msk.f32.gmra.mrb[80].mxu1 %vm327_vm0, %v20224_v51 }
 0x32b   : > { %18101 = vpow2.f32 %v13261_v55  ;;  %v6078_v62 = vadd.f32 %v16109_v56, %v20592_v27  ;;  %v5852_v9 = vpop.f32.mrb[47].mxu1  ;;  %16387 = vmatprep.mubr.msk.f32.mxu0 %vm327_vm0, %v20231_v8  ;;  %16443 = vmatprep.mubr.msk.f32.mxu1 %vm327_vm0, %v20231_v8 }
 0x32c   : > { %18103 = vrcp.f32 %v6214_v42  ;;  %v6077_v45 = vadd.f32 %v20592_v27, %v5852_v9  ;;  %v18090_v47 = vpop.eup %18089 }
 0x32d   : > { %18105 = vrcp.f32 %v6213_v61  ;;  %v13263_v24 = vmul.f32 -1.442695, %v6078_v62  ;;  %v18092_v21 = vpop.eup %18091  ;;  %v6216_v4 = vadd.f32 1.0, %v18090_v47  ;;  %v20695_v2 = vpop.f32.mrb[48].mxu0  ;;  %v7685_v62 = vld [vmem:[%s18718_s28 + $0xac] sm:$0xff] }
 0x32e   : > { %18107 = vpow2.f32 %v13260_v60  ;;  %v13262_v49 = vmul.f32 -1.442695, %v6077_v45  ;;  %v16112_v51 = vpop.f32.mrb[48].mxu1  ;;  %v6215_v16 = vadd.f32 1.0, %v18092_v21  ;;  %v20698_v43 = vpop.f32.mrb[49].mxu0  ;;  %16388 = vmatmul.mubr.msk.f32.gmra.mrb[82].mxu0 %vm327_vm0, %v20248_v18  ;;  %16444 = vmatmul.mubr.msk.f32.gmra.mrb[82].mxu1 %vm327_vm0, %v20248_v18  ;;  %v6029_v45 = vadd.f32 %v20635_v0, %v20693_v25  ;;  %v7686_v21 = vld [vmem:[%s18718_s28 + $0xb4] sm:$0xff] }
 0x32f   : > { %18109 = vpow2.f32 %v13263_v24  ;;  %v6080_v28 = vadd.f32 %v16112_v51, %v20592_v27  ;;  %v5862_v35 = vpop.f32.mrb[49].mxu1  ;;  %16390 = vmatprep.mubr.msk.f32.mxu0 %vm327_vm0, %v20253_v19  ;;  %16446 = vmatprep.mubr.msk.f32.mxu1 %vm327_vm0, %v20253_v19 }
 0x330   : > { %18111 = vrcp.f32 %v6216_v4  ;;  %v6079_v8 = vadd.f32 %v20592_v27, %v5862_v35  ;;  %v18094_v5 = vpop.eup %18093 }
 0x331   : > { %18113 = vrcp.f32 %v6215_v16  ;;  %v13265_v11 = vmul.f32 -1.442695, %v6080_v28  ;;  %v18096_v46 = vpop.eup %18095  ;;  %v6218_v18 = vadd.f32 1.0, %v18094_v5  ;;  %v20713_v22 = vpop.f32.mrb[50].mxu0 }
 0x332   : > { %18115 = vpow2.f32 %v13262_v49  ;;  %v13264_v52 = vmul.f32 -1.442695, %v6079_v8  ;;  %v16115_v20 = vpop.f32.mrb[50].mxu1  ;;  %v18098_v10 = vpop.eup %18097  ;;  %v6320_v19 = vmul.f32 %v18096_v46, %v6025_v7  ;;  %16391 = vmatmul.mubr.msk.f32.gmra.mrb[84].mxu0 %vm327_vm0, %v20266_v6  ;;  %16447 = vmatmul.mubr.msk.f32.gmra.mrb[84].mxu1 %vm327_vm0, %v20266_v6  ;;  %v6028_v49 = vadd.f32 %v20693_v25, %v20640_v59 }
 0x333   : > { %18117 = vpow2.f32 %v13265_v11  ;;  %v6082_v57 = vadd.f32 %v16115_v20, %v20592_v27  ;;  %v20716_v48 = vpop.f32.mrb[51].mxu0  ;;  %v5872_v14 = vpop.f32.mrb[51].mxu1  ;;  %v6319_v53 = vmul.f32 %v18098_v10, %v6024_v37  ;;  %16393 = vmatprep.mubr.msk.f32.mxu0 %vm327_vm0, %v20269_v58  ;;  %16449 = vmatprep.mubr.msk.f32.mxu1 %vm327_vm0, %v20269_v58  ;;  %v6031_v20 = vadd.f32 %v20651_v12, %v20693_v25 }
 0x334   : > { %v18100_v26 = vpop.eup %18099  ;;  %18119 = vrcp.f32 %v6218_v18  ;;  %v6081_v23 = vadd.f32 %v20592_v27, %v5872_v14  ;;  %13289 = vst.msk [vmem:[%s19807_s23 + $0x128] sm:$0xff] %vm3284_vm1, %v6320_v19  ;;  %v7687_v18 = vld [vmem:[%s18718_s28 + $0xbc] sm:$0xff] }
 0x335   : > { %v18102_v39 = vpop.eup %18101  ;;  %v6217_v6 = vadd.f32 1.0, %v18100_v26  ;;  %18121 = vpow2.f32 %v13264_v52  ;;  %v13267_v30 = vmul.f32 -1.442695, %v6082_v57  ;;  %13288 = vst.msk [vmem:[%s19807_s23 + $0x120] sm:$0xff] %vm3284_vm1, %v6319_v53  ;;  %v20737_v58 = vpop.f32.mrb[52].mxu0  ;;  %v20773_v57 = vld [vmem:[%s18718_s28 + $0xc4] sm:$0xff] }
 0x336   : > { %v18104_v40 = vpop.eup %18103  ;;  %v6220_v44 = vadd.f32 1.0, %v18102_v39  ;;  %v13266_v34 = vmul.f32 -1.442695, %v6081_v23  ;;  %v16118_v63 = vpop.f32.mrb[52].mxu1  ;;  %16394 = vmatmul.mubr.msk.f32.gmra.mrb[86].mxu0 %vm327_vm0, %v7683_v29  ;;  %16450 = vmatmul.mubr.msk.f32.gmra.mrb[86].mxu1 %vm327_vm0, %v7683_v29 }
 0x337   : > { %v18106_v55 = vpop.eup %18105  ;;  %v6322_v15 = vmul.f32 %v18104_v40, %v6027_v32  ;;  %18123 = vrcp.f32 %v6217_v6  ;;  %v6084_v50 = vadd.f32 %v16118_v63, %v20592_v27  ;;  %v20740_v42 = vpop.f32.mrb[53].mxu0  ;;  %16396 = vmatprep.mubr.msk.f32.mxu0 %vm327_vm0, %v7684_v3  ;;  %16452 = vmatprep.mubr.msk.f32.mxu1 %vm327_vm0, %v7684_v3  ;;  %v6030_v3 = vadd.f32 %v20693_v25, %v20654_v38 }
 0x338   : > { %v5882_v60 = vpop.f32.mrb[53].mxu1  ;;  %v18108_v31 = vpop.eup %18107  ;;  %v6321_v56 = vmul.f32 %v18106_v55, %v6026_v17  ;;  %18125 = vrcp.f32 %v6220_v44  ;;  %v20792_v44 = vld [vmem:[%s18718_s28 + $0xcc] sm:$0xff]  ;;  %v6033_v63 = vadd.f32 %v20665_v41, %v20693_v25  ;;  %v20799_v55 = vld [vmem:[%s18718_s28 + $0xd4] sm:$0xff] }
 0x339   : > { %v6083_v61 = vadd.f32 %v20592_v27, %v5882_v60  ;;  %v18110_v9 = vpop.eup %18109  ;;  %13291 = vst.msk [vmem:[%s19807_s23 + $0x138] sm:$0xff] %vm3284_vm1, %v6322_v15  ;;  %v6219_v47 = vadd.f32 1.0, %v18108_v31  ;;  %18127 = vpow2.f32 %v13267_v30  ;;  %v13269_v24 = vmul.f32 -1.442695, %v6084_v50  ;;  %v20757_v28 = vpop.f32.mrb[54].mxu0 }
 0x33a   : > { %v18112_v4 = vpop.eup %18111  ;;  %13290 = vst.msk [vmem:[%s19807_s23 + $0x130] sm:$0xff] %vm3284_vm1, %v6321_v56  ;;  %v6222_v51 = vadd.f32 1.0, %v18110_v9  ;;  %18129 = vpow2.f32 %v13266_v34  ;;  %v16121_v35 = vpop.f32.mrb[54].mxu1  ;;  %16397 = vmatmul.mubr.msk.f32.gmra.mrb[88].mxu0 %vm327_vm0, %v7685_v62  ;;  %16453 = vmatmul.mubr.msk.f32.gmra.mrb[88].mxu1 %vm327_vm0, %v7685_v62 }
 0x33b   : > { %v13268_v16 = vmul.f32 -1.442695, %v6083_v61  ;;  %v18114_v8 = vpop.eup %18113  ;;  %v6324_v0 = vmul.f32 %v18112_v4, %v6029_v45  ;;  %18131 = vrcp.f32 %v6219_v47  ;;  %v6086_v5 = vadd.f32 %v16121_v35, %v20592_v27  ;;  %v20760_v7 = vpop.f32.mrb[55].mxu0  ;;  %16399 = vmatprep.mubr.msk.f32.mxu0 %vm327_vm0, %v7686_v21  ;;  %16455 = vmatprep.mubr.msk.f32.mxu1 %vm327_vm0, %v7686_v21 }
 0x33c   : > { %v5892_v11 = vpop.f32.mrb[55].mxu1  ;;  %v18116_v59 = vpop.eup %18115  ;;  %v6323_v46 = vmul.f32 %v18114_v8, %v6028_v49  ;;  %18133 = vrcp.f32 %v6222_v51  ;;  %v20820_v49 = vld [vmem:[%s18718_s28 + $0xdc] sm:$0xff]  ;;  %v20827_v8 = vld [vmem:[%s18718_s28 + $0xe4] sm:$0xff] }
 0x33d   : > { %v6085_v37 = vadd.f32 %v20592_v27, %v5892_v11  ;;  %v18118_v52 = vpop.eup %18117  ;;  %13293 = vst.msk [vmem:[%s19807_s23 + $0x148] sm:$0xff] %vm3284_vm1, %v6324_v0  ;;  %v6221_v10 = vadd.f32 1.0, %v18116_v59  ;;  %18135 = vpow2.f32 %v13269_v24  ;;  %v13271_v19 = vmul.f32 -1.442695, %v6086_v5  ;;  %v20777_v53 = vpop.f32.mrb[56].mxu0 }
 0x33e   : > { %v18120_v14 = vpop.eup %18119  ;;  %13292 = vst.msk [vmem:[%s19807_s23 + $0x140] sm:$0xff] %vm3284_vm1, %v6323_v46  ;;  %v6224_v26 = vadd.f32 1.0, %v18118_v52  ;;  %18137 = vpow2.f32 %v13268_v16  ;;  %v16124_v23 = vpop.f32.mrb[56].mxu1  ;;  %16400 = vmatmul.mubr.msk.f32.gmra.mrb[90].mxu0 %vm327_vm0, %v7687_v18  ;;  %16456 = vmatmul.mubr.msk.f32.gmra.mrb[90].mxu1 %vm327_vm0, %v7687_v18  ;;  %v6032_v24 = vadd.f32 %v20693_v25, %v20668_v33  ;;  %v6035_v16 = vadd.f32 %v20679_v54, %v20693_v25 }
 0x33f   : > { %v18122_v29 = vpop.eup %18121  ;;  %v6326_v39 = vmul.f32 %v18120_v14, %v6031_v20  ;;  %18139 = vrcp.f32 %v6221_v10  ;;  %v13270_v32 = vmul.f32 -1.442695, %v6085_v37  ;;  %v6088_v12 = vadd.f32 %v16124_v23, %v20592_v27  ;;  %v20780_v6 = vpop.f32.mrb[57].mxu0  ;;  %16402 = vmatprep.mubr.msk.f32.mxu0 %vm327_vm0, %v20773_v57  ;;  %16458 = vmatprep.mubr.msk.f32.mxu1 %vm327_vm0, %v20773_v57  ;;  %v20848_v23 = vld [vmem:[%s18718_s28 + $0xec] sm:$0xff] }
 0x340   : > { %v5902_v30 = vpop.f32.mrb[57].mxu1  ;;  %18141 = vrcp.f32 %v6224_v26  ;;  %v6223_v40 = vadd.f32 1.0, %v18122_v29 }
 0x341   : > { %v6087_v17 = vadd.f32 %v20592_v27, %v5902_v30  ;;  %v18124_v34 = vpop.eup %18123  ;;  %13295 = vst.msk [vmem:[%s19807_s23 + $0x158] sm:$0xff] %vm3284_vm1, %v6326_v39  ;;  %18143 = vpow2.f32 %v13271_v19  ;;  %v13273_v38 = vmul.f32 -1.442695, %v6088_v12  ;;  %v20801_v31 = vpop.f32.mrb[58].mxu0  ;;  %v6034_v19 = vadd.f32 %v20693_v25, %v20682_v1  ;;  %v20855_v12 = vld [vmem:[%s18718_s28 + $0xf4] sm:$0xff] }
 0x342   : > { %v18126_v15 = vpop.eup %18125  ;;  %v6325_v50 = vmul.f32 %v18124_v34, %v6030_v3  ;;  %18145 = vrcp.f32 %v6223_v40  ;;  %v16127_v56 = vpop.f32.mrb[58].mxu1  ;;  %16403 = vmatmul.mubr.msk.f32.gmra.mrb[92].mxu0 %vm327_vm0, %v20792_v44  ;;  %16459 = vmatmul.mubr.msk.f32.gmra.mrb[92].mxu1 %vm327_vm0, %v20792_v44  ;;  %v6037_v39 = vadd.f32 %v20695_v2, %v20693_v25 }
 0x343   : > { %v13272_v60 = vmul.f32 -1.442695, %v6087_v17  ;;  %v18128_v61 = vpop.eup %18127  ;;  %v6328_v62 = vmul.f32 %v18126_v15, %v6033_v63  ;;  %18147 = vpow2.f32 %v13270_v32  ;;  %v6090_v9 = vadd.f32 %v16127_v56, %v20592_v27  ;;  %v20804_v41 = vpop.f32.mrb[59].mxu0  ;;  %16405 = vmatprep.mubr.msk.f32.mxu0 %vm327_vm0, %v20799_v55  ;;  %16461 = vmatprep.mubr.msk.f32.mxu1 %vm327_vm0, %v20799_v55 }
 0x344   : > { %v5912_v45 = vpop.f32.mrb[59].mxu1  ;;  %v18130_v47 = vpop.eup %18129  ;;  %13294 = vst.msk [vmem:[%s19807_s23 + $0x150] sm:$0xff] %vm3284_vm1, %v6325_v50  ;;  %v6226_v21 = vadd.f32 1.0, %v18128_v61  ;;  %18149 = vpow2.f32 %v13273_v38  ;;  %v6036_v15 = vadd.f32 %v20693_v25, %v20698_v43 }
 0x345   : > { %v6089_v4 = vadd.f32 %v20592_v27, %v5912_v45  ;;  %v18132_v51 = vpop.eup %18131  ;;  %13297 = vst.msk [vmem:[%s19807_s23 + $0x168] sm:$0xff] %vm3284_vm1, %v6328_v62  ;;  %v6225_v35 = vadd.f32 1.0, %v18130_v47  ;;  %18151 = vpow2.f32 %v13272_v60  ;;  %v13275_v33 = vmul.f32 -1.442695, %v6090_v9  ;;  %v20829_v59 = vpop.f32.mrb[60].mxu0  ;;  %v20876_v62 = vld [vmem:[%s18718_s28 + $0xfc] sm:$0xff] }
 0x346   : > { %v18134_v0 = vpop.eup %18133  ;;  %v6327_v5 = vmul.f32 %v18132_v51, %v6032_v24  ;;  %18153 = vrcp.f32 %v6226_v21  ;;  %v16130_v46 = vpop.f32.mrb[60].mxu1  ;;  %16406 = vmatmul.mubr.msk.f32.gmra.mrb[94].mxu0 %vm327_vm0, %v20820_v49  ;;  %16462 = vmatmul.mubr.msk.f32.gmra.mrb[94].mxu1 %vm327_vm0, %v20820_v49  ;;  %v20881_v24 = vld [vmem:[%s18718_s28 + $0x104] sm:$0xff] }
 0x347   : > { %v13274_v11 = vmul.f32 -1.442695, %v6089_v4  ;;  %v18136_v37 = vpop.eup %18135  ;;  %v6330_v18 = vmul.f32 %v18134_v0, %v6035_v16  ;;  %18155 = vrcp.f32 %v6225_v35  ;;  %v6092_v54 = vadd.f32 %v16130_v46, %v20592_v27  ;;  %v20832_v52 = vpop.f32.mrb[61].mxu0  ;;  %16408 = vmatprep.mubr.msk.f32.mxu0 %vm327_vm0, %v20827_v8  ;;  %16464 = vmatprep.mubr.msk.f32.mxu1 %vm327_vm0, %v20827_v8 }
 0x348   : > { %v5922_v20 = vpop.f32.mrb[61].mxu1  ;;  %v18138_v10 = vpop.eup %18137  ;;  %13296 = vst.msk [vmem:[%s19807_s23 + $0x160] sm:$0xff] %vm3284_vm1, %v6327_v5  ;;  %v6228_v14 = vadd.f32 1.0, %v18136_v37  ;;  %18157 = vpow2.f32 %v13275_v33  ;;  %v6039_v4 = vadd.f32 %v20713_v22, %v20693_v25 }
 0x349   : > { %v6091_v26 = vadd.f32 %v20592_v27, %v5922_v20  ;;  %v18140_v29 = vpop.eup %18139  ;;  %13299 = vst.msk [vmem:[%s19807_s23 + $0x178] sm:$0xff] %vm3284_vm1, %v6330_v18  ;;  %v6227_v32 = vadd.f32 1.0, %v18138_v10  ;;  %18159 = vpow2.f32 %v13274_v11  ;;  %v13277_v1 = vmul.f32 -1.442695, %v6092_v54  ;;  %v20857_v17 = vpop.f32.mrb[62].mxu0  ;;  %v20904_v10 = vld [vmem:[%s18718_s28 + $0x10c] sm:$0xff] }
 0x34a   : > { %v18142_v30 = vpop.eup %18141  ;;  %v6329_v3 = vmul.f32 %v18140_v29, %v6034_v19  ;;  %18161 = vrcp.f32 %v6228_v14  ;;  %v16133_v34 = vpop.f32.mrb[62].mxu1  ;;  %16409 = vmatmul.mubr.msk.f32.gmra.mrb[96].mxu0 %vm327_vm0, %v20848_v23  ;;  %16465 = vmatmul.mubr.msk.f32.gmra.mrb[96].mxu1 %vm327_vm0, %v20848_v23  ;;  %v6038_v18 = vadd.f32 %v20693_v25, %v20716_v48  ;;  %v20907_v29 = vld [vmem:[%s18718_s28 + $0x114] sm:$0xff] }
 0x34b   : > { %v13276_v40 = vmul.f32 -1.442695, %v6091_v26  ;;  %v18144_v63 = vpop.eup %18143  ;;  %v6332_v38 = vmul.f32 %v18142_v30, %v6037_v39  ;;  %18163 = vrcp.f32 %v6227_v32  ;;  %v6094_v2 = vadd.f32 %v16133_v34, %v20592_v27  ;;  %v20862_v50 = vpop.f32.mrb[63].mxu0  ;;  %16411 = vmatprep.mubr.msk.f32.mxu0 %vm327_vm0, %v20855_v12  ;;  %16467 = vmatprep.mubr.msk.f32.mxu1 %vm327_vm0, %v20855_v12 }
 0x34c   : > { %v5932_v60 = vpop.f32.mrb[63].mxu1  ;;  %v18146_v56 = vpop.eup %18145  ;;  %13298 = vst.msk [vmem:[%s19807_s23 + $0x170] sm:$0xff] %vm3284_vm1, %v6329_v3  ;;  %v6230_v61 = vadd.f32 1.0, %v18144_v63  ;;  %18165 = vpow2.f32 %v13277_v1  ;;  %v6041_v32 = vadd.f32 %v20737_v58, %v20693_v25 }
 0x34d   : > { %v6093_v43 = vadd.f32 %v20592_v27, %v5932_v60  ;;  %v18148_v9 = vpop.eup %18147  ;;  %13301 = vst.msk [vmem:[%s19807_s23 + $0x188] sm:$0xff] %vm3284_vm1, %v6332_v38  ;;  %v6331_v45 = vmul.f32 %v18146_v56, %v6036_v15  ;;  %18167 = vpow2.f32 %v13276_v40  ;;  %v13279_v47 = vmul.f32 -1.442695, %v6094_v2  ;;  %v20885_v16 = vpop.f32.mrb[64].mxu0 }
 0x34e   : > { %v18150_v21 = vpop.eup %18149  ;;  %18169 = vrcp.f32 %v6230_v61  ;;  %v6229_v51 = vadd.f32 1.0, %v18148_v9  ;;  %v16136_v35 = vpop.f32.mrb[64].mxu1  ;;  %16412 = vmatmul.mubr.msk.f32.gmra.mrb[98].mxu0 %vm327_vm0, %v20876_v62  ;;  %16468 = vmatmul.mubr.msk.f32.gmra.mrb[98].mxu1 %vm327_vm0, %v20876_v62  ;;  %v6040_v2 = vadd.f32 %v20693_v25, %v20740_v42  ;;  %v20932_v61 = vld [vmem:[%s18718_s28 + $0x11c] sm:$0xff] }
 0x34f   : > { %v18152_v33 = vpop.eup %18151  ;;  %13300 = vst.msk [vmem:[%s19807_s23 + $0x180] sm:$0xff] %vm3284_vm1, %v6331_v45  ;;  %v6232_v0 = vadd.f32 1.0, %v18150_v21  ;;  %18171 = vpow2.f32 %v13279_v47  ;;  %v13278_v5 = vmul.f32 -1.442695, %v6093_v43  ;;  %v6096_v11 = vadd.f32 %v16136_v35, %v20592_v27  ;;  %v20890_v46 = vpop.f32.mrb[65].mxu0  ;;  %16414 = vmatprep.mubr.msk.f32.mxu0 %vm327_vm0, %v20881_v24  ;;  %16470 = vmatprep.mubr.msk.f32.mxu1 %vm327_vm0, %v20881_v24  ;;  %v20935_v47 = vld [vmem:[%s18718_s28 + $0x124] sm:$0xff] }
 0x350   : > { %v5942_v37 = vpop.f32.mrb[65].mxu1  ;;  %v18154_v22 = vpop.eup %18153  ;;  %18173 = vrcp.f32 %v6229_v51  ;;  %v6231_v54 = vadd.f32 1.0, %v18152_v33 }
 0x351   : > { %v6095_v20 = vadd.f32 %v20592_v27, %v5942_v37  ;;  %v18156_v19 = vpop.eup %18155  ;;  %v6334_v14 = vmul.f32 %v18154_v22, %v6039_v4  ;;  %18175 = vrcp.f32 %v6232_v0  ;;  %v13281_v26 = vmul.f32 -1.442695, %v6096_v11  ;;  %v20911_v1 = vpop.f32.mrb[66].mxu0 }
 0x352   : > { %v18158_v48 = vpop.eup %18157  ;;  %v6333_v39 = vmul.f32 %v18156_v19, %v6038_v18  ;;  %18177 = vrcp.f32 %v6231_v54  ;;  %v16139_v30 = vpop.f32.mrb[66].mxu1  ;;  %16415 = vmatmul.mubr.msk.f32.gmra.mrb[100].mxu0 %vm327_vm0, %v20904_v10  ;;  %16471 = vmatmul.mubr.msk.f32.gmra.mrb[100].mxu1 %vm327_vm0, %v20904_v10  ;;  %v6043_v4 = vadd.f32 %v20757_v28, %v20693_v25 }
 0x353   : > { %v18160_v3 = vpop.eup %18159  ;;  %13303 = vst.msk [vmem:[%s19807_s23 + $0x198] sm:$0xff] %vm3284_vm1, %v6334_v14  ;;  %v6234_v40 = vadd.f32 1.0, %v18158_v48  ;;  %18179 = vpow2.f32 %v13278_v5  ;;  %v13280_v34 = vmul.f32 -1.442695, %v6095_v20  ;;  %v6098_v63 = vadd.f32 %v16139_v30, %v20592_v27  ;;  %v20916_v38 = vpop.f32.mrb[67].mxu0  ;;  %16417 = vmatprep.mubr.msk.f32.mxu0 %vm327_vm0, %v20907_v29  ;;  %16473 = vmatprep.mubr.msk.f32.mxu1 %vm327_vm0, %v20907_v29  ;;  %v20958_v20 = vld [vmem:[%s18718_s28 + $0x12c] sm:$0xff] }
 0x354   : > { %v5952_v15 = vpop.f32.mrb[67].mxu1  ;;  %v18162_v58 = vpop.eup %18161  ;;  %13302 = vst.msk [vmem:[%s19807_s23 + $0x190] sm:$0xff] %vm3284_vm1, %v6333_v39  ;;  %v6233_v60 = vadd.f32 1.0, %v18160_v3  ;;  %18181 = vpow2.f32 %v13281_v26  ;;  %v6042_v26 = vadd.f32 %v20693_v25, %v20760_v7  ;;  %v7702_v39 = vld [vmem:[%s18718_s28 + $0x134] sm:$0xff]  ;;  %v6045_v30 = vadd.f32 %v20777_v53, %v20693_v25 }
 0x355   : > { %v6097_v56 = vadd.f32 %v20592_v27, %v5952_v15  ;;  %v18164_v43 = vpop.eup %18163  ;;  %v6336_v9 = vmul.f32 %v18162_v58, %v6041_v32  ;;  %18183 = vrcp.f32 %v6234_v40  ;;  %v13283_v45 = vmul.f32 -1.442695, %v6098_v63  ;;  %v20939_v51 = vpop.f32.mrb[68].mxu0 }
 0x356   : > { %v18166_v42 = vpop.eup %18165  ;;  %v6335_v21 = vmul.f32 %v18164_v43, %v6040_v2  ;;  %18185 = vrcp.f32 %v6233_v60  ;;  %v16142_v35 = vpop.f32.mrb[68].mxu1  ;;  %16418 = vmatmul.mubr.msk.f32.gmra.mrb[102].mxu0 %vm327_vm0, %v20932_v61  ;;  %16474 = vmatmul.mubr.msk.f32.gmra.mrb[102].mxu1 %vm327_vm0, %v20932_v61  ;;  %v6044_v7 = vadd.f32 %v20693_v25, %v20780_v6  ;;  %v7703_v6 = vld [vmem:[%s18718_s28 + $0x13c] sm:$0xff] }
 0x357   : > { %v18168_v33 = vpop.eup %18167  ;;  %13305 = vst.msk [vmem:[%s19807_s23 + $0x1a8] sm:$0xff] %vm3284_vm1, %v6336_v9  ;;  %v6236_v0 = vadd.f32 1.0, %v18166_v42  ;;  %18187 = vpow2.f32 %v13280_v34  ;;  %v13282_v5 = vmul.f32 -1.442695, %v6097_v56  ;;  %v6100_v11 = vadd.f32 %v16142_v35, %v20592_v27  ;;  %v20944_v37 = vpop.f32.mrb[69].mxu0  ;;  %16420 = vmatprep.mubr.msk.f32.mxu0 %vm327_vm0, %v20935_v47  ;;  %16476 = vmatprep.mubr.msk.f32.mxu1 %vm327_vm0, %v20935_v47 }
 0x358   : > { %v5962_v22 = vpop.f32.mrb[69].mxu1  ;;  %v18170_v28 = vpop.eup %18169  ;;  %13304 = vst.msk [vmem:[%s19807_s23 + $0x1a0] sm:$0xff] %vm3284_vm1, %v6335_v21  ;;  %v6235_v18 = vadd.f32 1.0, %v18168_v33  ;;  %18189 = vpow2.f32 %v13283_v45 }
 0x359   : > { %v6099_v54 = vadd.f32 %v20592_v27, %v5962_v22  ;;  %v18172_v19 = vpop.eup %18171  ;;  %v6338_v14 = vmul.f32 %v18170_v28, %v6043_v4  ;;  %18191 = vrcp.f32 %v6236_v0  ;;  %v13285_v48 = vmul.f32 -1.442695, %v6100_v11  ;;  %v20965_v34 = vpop.f32.mrb[70].mxu0  ;;  %v20985_v4 = vld [vmem:[%s18718_s28 + $0x25] sm:$0xff] }
 0x35a   : > { %v18174_v32 = vpop.eup %18173  ;;  %18193 = vrcp.f32 %v6235_v18  ;;  %v6238_v3 = vadd.f32 1.0, %v18172_v19  ;;  %v16145_v63 = vpop.f32.mrb[70].mxu1  ;;  %16421 = vmatmul.mubr.msk.f32.gmra.mrb[104].mxu0 %vm327_vm0, %v20958_v20  ;;  %16477 = vmatmul.mubr.msk.f32.gmra.mrb[104].mxu1 %vm327_vm0, %v20958_v20  ;;  %v6046_v11 = vadd.f32 %v20693_v25, %v20804_v41  ;;  %v21002_v18 = vld [vmem:[%s18718_s28 + $0x2d] sm:$0xff]  ;;  %v21005_v19 = vld [vmem:[%s18718_s28 + $0x35] sm:$0xff] }
 0x35b   : > { %v13284_v40 = vmul.f32 -1.442695, %v6099_v54  ;;  %v18176_v15 = vpop.eup %18175  ;;  %13307 = vst.msk [vmem:[%s19807_s23 + $0x1b8] sm:$0xff] %vm3284_vm1, %v6338_v14  ;;  %v6337_v58 = vmul.f32 %v18174_v32, %v6042_v26  ;;  %18195 = vpow2.f32 %v13282_v5  ;;  %v6102_v2 = vadd.f32 %v16145_v63, %v20592_v27  ;;  %v20972_v60 = vpop.f32.mrb[71].mxu0  ;;  %16423 = vmatprep.mubr.msk.f32.mxu0 %vm327_vm0, %v7702_v39  ;;  %16479 = vmatprep.mubr.msk.f32.mxu1 %vm327_vm0, %v7702_v39  ;;  %v21033_v63 = vld [vmem:[%s18718_s28 + $0x3d] sm:$0xff] }
 0x35c   : > { %v5972_v53 = vpop.f32.mrb[71].mxu1  ;;  %v18178_v56 = vpop.eup %18177  ;;  %v6340_v43 = vmul.f32 %v18176_v15, %v6045_v30  ;;  %18197 = vrcp.f32 %v6238_v3  ;;  %v6049_v26 = vadd.f32 %v20829_v59, %v20693_v25  ;;  %v6048_v32 = vadd.f32 %v20693_v25, %v20832_v52  ;;  %v21022_v59 = vld [vmem:[%s22231_s2 + $0x60] sm:$0xff] }
 0x35d   : > { %v6101_v9 = vadd.f32 %v20592_v27, %v5972_v53  ;;  %v18180_v45 = vpop.eup %18179  ;;  %13306 = vst.msk [vmem:[%s19807_s23 + $0x1b0] sm:$0xff] %vm3284_vm1, %v6337_v58  ;;  %v6339_v42 = vmul.f32 %v18178_v56, %v6044_v7  ;;  %18199 = vpow2.f32 %v13285_v48  ;;  %v13287_v21 = vmul.f32 -1.442695, %v6102_v2  ;;  %v21027_v3 = vld [vmem:[%s22230_s1 + $0x60] sm:$0xff] }
 0x35e   : > { %v18182_v35 = vpop.eup %18181  ;;  %13309 = vst.msk [vmem:[%s19807_s23 + $0x1c8] sm:$0xff] %vm3284_vm1, %v6340_v43  ;;  %v6047_v27 = vadd.f32 %v20801_v31, %v20693_v25  ;;  %v6237_v33 = vadd.f32 1.0, %v18180_v45  ;;  %18201 = vpow2.f32 %v13284_v40  ;;  %16424 = vmatmul.mubr.msk.f32.gmra.mrb[106].mxu0 %vm327_vm0, %v7703_v6  ;;  %16480 = vmatmul.mubr.msk.f32.gmra.mrb[106].mxu1 %vm327_vm0, %v7703_v6  ;;  %v6051_v7 = vadd.f32 %v20857_v17, %v20693_v25  ;;  %v21040_v2 = vld [vmem:[%s18718_s28 + $0x45] sm:$0xff] }
 0x35f   : > { %v13286_v0 = vmul.f32 -1.442695, %v6101_v9  ;;  %v18184_v5 = vpop.eup %18183  ;;  %13308 = vst.msk [vmem:[%s19807_s23 + $0x1c0] sm:$0xff] %vm3284_vm1, %v6339_v42  ;;  %v6240_v22 = vadd.f32 1.0, %v18182_v35  ;;  %18203 = vpow2.f32 %v13287_v21  ;;  %16484 = vmatprep.mubr.msk.f32.mxu0 %vm327_vm0, %v20985_v4  ;;  %16540 = vmatprep.mubr.msk.f32.mxu1 %vm327_vm0, %v20985_v4  ;;  %v21058_v9 = vld [vmem:[%s18718_s28 + $0x4d] sm:$0xff]  ;;  %v6050_v45 = vadd.f32 %v20693_v25, %v20862_v50  ;;  %v21065_v21 = vld [vmem:[%s18718_s28 + $0x55] sm:$0xff] }
 0x360   : > { %v18186_v28 = vpop.eup %18185  ;;  %v6342_v31 = vmul.f32 %v18184_v5, %v6047_v27  ;;  %18205 = vrcp.f32 %v6237_v33  ;;  %v6053_v27 = vadd.f32 %v20885_v16, %v20693_v25  ;;  %v21078_v16 = vld [vmem:[%s18718_s28 + $0x5d] sm:$0xff] }
 0x361   : > { %v18188_v41 = vpop.eup %18187  ;;  %v6341_v54 = vmul.f32 %v18186_v28, %v6046_v11  ;;  %18207 = vrcp.f32 %v6240_v22  ;;  %v6052_v22 = vadd.f32 %v20693_v25, %v20890_v46 }
 0x362   : > { %v18190_v14 = vpop.eup %18189  ;;  %13311 = vst.msk [vmem:[%s19807_s23 + $0x1d8] sm:$0xff] %vm3284_vm1, %v6342_v31  ;;  %v6239_v48 = vadd.f32 1.0, %v18188_v41  ;;  %18209 = vpow2.f32 %v13286_v0  ;;  %16485 = vmatmul.mubr.msk.f32.vlgmr.msra.gmra.mrb[72].mxu0 %vm327_vm0, %v21002_v18  ;;  %16541 = vmatmul.mubr.msk.f32.vlgmr.msra.gmra.mrb[72].mxu1 %vm327_vm0, %v21002_v18  ;;  %v21085_v31 = vld [vmem:[%s18718_s28 + $0x65] sm:$0xff] }
 0x363   : > { %v18192_v39 = vpop.eup %18191  ;;  %13310 = vst.msk [vmem:[%s19807_s23 + $0x1d0] sm:$0xff] %vm3284_vm1, %v6341_v54  ;;  %v6242_v30 = vadd.f32 1.0, %v18190_v14  ;;  %16707 = vmatpush3.msra.mxu1 %v20621_v36  ;;  %16487 = vmatprep.mubr.msk.f32.mxu0 %vm327_vm0, %v21005_v19  ;;  %v6055_v54 = vadd.f32 %v20911_v1, %v20693_v25  ;;  %v6054_v1 = vadd.f32 %v20693_v25, %v20916_v38 }
 0x364   : > { %v18194_v52 = vpop.eup %18193  ;;  %v6344_v40 = vmul.f32 %v18192_v39, %v6049_v26  ;;  %18211 = vrcp.f32 %v6239_v48  ;;  %16543 = vmatprep.mubr.msk.f32.mxu1 %vm327_vm0, %v21005_v19  ;;  %16595 = vmatpush3.msra.mxu0 %v20626_v13  ;;  %v21100_v48 = vld [vmem:[%s18718_s28 + $0x6d] sm:$0xff]  ;;  %v21107_v39 = vld [vmem:[%s18718_s28 + $0x75] sm:$0xff]  ;;  %v6056_v38 = vadd.f32 %v20693_v25, %v20944_v37 }
 0x365   : > { %v18196_v15 = vpop.eup %18195  ;;  %v6343_v58 = vmul.f32 %v18194_v52, %v6048_v32  ;;  %18213 = vrcp.f32 %v6242_v30  ;;  %16762 = vmatprep.subr.mxu1 %v21022_v59  ;;  %16650 = vmatprep.subr.mxu0 %v21027_v3  ;;  %v6057_v52 = vadd.f32 %v20939_v51, %v20693_v25 }
 0x366   : > { %v18198_v36 = vpop.eup %18197  ;;  %13313 = vst.msk [vmem:[%s19807_s23 + $0x1e8] sm:$0xff] %vm3284_vm1, %v6344_v40  ;;  %v6241_v53 = vadd.f32 1.0, %v18196_v15  ;;  %16488 = vmatmul.mubr.msk.f32.gmra.mrb[74].mxu0 %vm327_vm0, %v21033_v63  ;;  %16544 = vmatmul.mubr.msk.f32.gmra.mrb[74].mxu1 %vm327_vm0, %v21033_v63  ;;  %v21124_v15 = vld [vmem:[%s18718_s28 + $0x7d] sm:$0xff] }
 0x367   : > { %v18200_v17 = vpop.eup %18199  ;;  %13312 = vst.msk [vmem:[%s19807_s23 + $0x1e0] sm:$0xff] %vm3284_vm1, %v6343_v58  ;;  %v6346_v56 = vmul.f32 %v18198_v36, %v6051_v7  ;;  %16490 = vmatprep.mubr.msk.f32.mxu0 %vm327_vm0, %v21040_v2  ;;  %16546 = vmatprep.mubr.msk.f32.mxu1 %vm327_vm0, %v21040_v2  ;;  %v6059_v7 = vadd.f32 %v20965_v34, %v20693_v25  ;;  %v21131_v36 = vld [vmem:[%s18718_s28 + $0x85] sm:$0xff] }
 0x368   : > { %v18202_v13 = vpop.eup %18201  ;;  %18215 = vrcp.f32 %v6241_v53  ;;  %v6244_v43 = vadd.f32 1.0, %v18200_v17  ;;  %v6058_v34 = vadd.f32 %v20693_v25, %v20972_v60  ;;  %v8393_v25 = vld [vmem:[%s18718_s28 + $0x9d] sm:$0xff]  ;;  %v8394_v60 = vld [vmem:[%s18718_s28 + $0xa5] sm:$0xff] }
 0x369   : > { %v18204_v6 = vpop.eup %18203  ;;  %13315 = vst.msk [vmem:[%s19807_s23 + $0x1f8] sm:$0xff] %vm3284_vm1, %v6346_v56  ;;  %v6243_v42 = vadd.f32 1.0, %v18202_v13  ;;  %v21148_v56 = vld [vmem:[%s18718_s28 + $0x8d] sm:$0xff] }
 0x36a   : > { %v18206_v35 = vpop.eup %18205  ;;  %18217 = vrcp.f32 %v6244_v43  ;;  %v6246_v33 = vadd.f32 1.0, %v18204_v6  ;;  %16491 = vmatmul.mubr.msk.f32.gmra.mrb[76].mxu0 %vm327_vm0, %v21058_v9  ;;  %16547 = vmatmul.mubr.msk.f32.gmra.mrb[76].mxu1 %vm327_vm0, %v21058_v9  ;;  %v8392_v43 = vld [vmem:[%s18718_s28 + $0x95] sm:$0xff] }
 0x36b   : > { %v18208_v0 = vpop.eup %18207  ;;  %v6345_v5 = vmul.f32 %v18206_v35, %v6050_v45  ;;  %18219 = vrcp.f32 %v6243_v42  ;;  %16493 = vmatprep.mubr.msk.f32.mxu0 %vm327_vm0, %v21065_v21  ;;  %16549 = vmatprep.mubr.msk.f32.mxu1 %vm327_vm0, %v21065_v21  ;;  %v8395_v45 = vld [vmem:[%s18718_s28 + $0xad] sm:$0xff]  ;;  %v8396_v42 = vld [vmem:[%s18718_s28 + $0xb5] sm:$0xff]  ;;  %v8397_v35 = vld [vmem:[%s18718_s28 + $0xbd] sm:$0xff] }
 0x36c   : > { %v18210_v50 = vpop.eup %18209  ;;  %v6348_v11 = vmul.f32 %v18208_v0, %v6053_v27  ;;  %18221 = vrcp.f32 %v6246_v33  ;;  %v8398_v27 = vld [vmem:[%s18718_s28 + $0xc5] sm:$0xff]  ;;  %v8399_v33 = vld [vmem:[%s18718_s28 + $0xcd] sm:$0xff]  ;;  %v8400_v0 = vld [vmem:[%s18718_s28 + $0xd5] sm:$0xff] }
 0x36d   : > { %13314 = vst.msk [vmem:[%s19807_s23 + $0x1f0] sm:$0xff] %vm3284_vm1, %v6345_v5  ;;  %v6245_v28 = vadd.f32 1.0, %v18210_v50  ;;  %v8401_v5 = vld [vmem:[%s18718_s28 + $0xdd] sm:$0xff]  ;;  %v8402_v50 = vld [vmem:[%s18718_s28 + $0xe5] sm:$0xff] }
 0x36e   : > { %v18212_v41 = vpop.eup %18211  ;;  %13317 = vst.msk [vmem:[%s19807_s23 + $0x208] sm:$0xff] %vm3284_vm1, %v6348_v11  ;;  %16494 = vmatmul.mubr.msk.f32.gmra.mrb[78].mxu0 %vm327_vm0, %v21078_v16  ;;  %16550 = vmatmul.mubr.msk.f32.gmra.mrb[78].mxu1 %vm327_vm0, %v21078_v16  ;;  %v8403_v11 = vld [vmem:[%s18718_s28 + $0xed] sm:$0xff] }
 0x36f   : > { %v18214_v14 = vpop.eup %18213  ;;  %v6347_v26 = vmul.f32 %v18212_v41, %v6052_v22  ;;  %18223 = vrcp.f32 %v6245_v28  ;;  %16496 = vmatprep.mubr.msk.f32.mxu0 %vm327_vm0, %v21085_v31  ;;  %16552 = vmatprep.mubr.msk.f32.mxu1 %vm327_vm0, %v21085_v31  ;;  %v8404_v22 = vld [vmem:[%s18718_s28 + $0xf5] sm:$0xff]  ;;  %v8405_v28 = vld [vmem:[%s18718_s28 + $0xfd] sm:$0xff]  ;;  %v8406_v41 = vld [vmem:[%s18718_s28 + $0x105] sm:$0xff] }
 0x370   : > { %v6350_v46 = vmul.f32 %v18214_v14, %v6055_v54  ;;  %v8407_v54 = vld [vmem:[%s18718_s28 + $0x10d] sm:$0xff]  ;;  %v8408_v14 = vld [vmem:[%s18718_s28 + $0x115] sm:$0xff] }
 0x371   : > { %13316 = vst.msk [vmem:[%s19807_s23 + $0x200] sm:$0xff] %vm3284_vm1, %v6347_v26  ;;  %v8409_v26 = vld [vmem:[%s18718_s28 + $0x11d] sm:$0xff] }
 0x372   : > { %v18216_v32 = vpop.eup %18215  ;;  %13319 = vst.msk [vmem:[%s19807_s23 + $0x218] sm:$0xff] %vm3284_vm1, %v6350_v46  ;;  %16497 = vmatmul.mubr.msk.f32.gmra.mrb[80].mxu0 %vm327_vm0, %v21100_v48  ;;  %16553 = vmatmul.mubr.msk.f32.gmra.mrb[80].mxu1 %vm327_vm0, %v21100_v48  ;;  %v8410_v46 = vld [vmem:[%s18718_s28 + $0x125] sm:$0xff] }
 0x373   : > { %v6349_v30 = vmul.f32 %v18216_v32, %v6054_v1  ;;  %16499 = vmatprep.mubr.msk.f32.mxu0 %vm327_vm0, %v21107_v39  ;;  %16555 = vmatprep.mubr.msk.f32.mxu1 %vm327_vm0, %v21107_v39  ;;  %v8411_v1 = vld [vmem:[%s18718_s28 + $0x12d] sm:$0xff]  ;;  %v8412_v32 = vld [vmem:[%s18718_s28 + $0x135] sm:$0xff] }
 0x374   : > { %v18218_v40 = vpop.eup %18217 }
 0x375   : > { %v18220_v51 = vpop.eup %18219  ;;  %13318 = vst.msk [vmem:[%s19807_s23 + $0x210] sm:$0xff] %vm3284_vm1, %v6349_v30  ;;  %v6352_v58 = vmul.f32 %v18218_v40, %v6057_v52  ;;  %v8413_v30 = vld [vmem:[%s18718_s28 + $0x13d] sm:$0xff]  ;;  %v9503_v52 = vld [vmem:[%s18718_s28 + $0x14] sm:$0xff] }
 0x376   : > { %v18222_v37 = vpop.eup %18221  ;;  %v6351_v53 = vmul.f32 %v18220_v51, %v6056_v38  ;;  %16500 = vmatmul.mubr.msk.f32.gmra.mrb[82].mxu0 %vm327_vm0, %v21124_v15  ;;  %16556 = vmatmul.mubr.msk.f32.gmra.mrb[82].mxu1 %vm327_vm0, %v21124_v15  ;;  %v9504_v40 = vld [vmem:[%s18718_s28 + $0x1c] sm:$0xff]  ;;  %v9505_v38 = vld [vmem:[%s18718_s28 + $0x24] sm:$0xff]  ;;  %v21234_v51 = vld [vmem:[%s22231_s2 + $0x70] sm:$0xff] }
 0x377   : > { %13321 = vst.msk [vmem:[%s19807_s23 + $0x228] sm:$0xff] %vm3284_vm1, %v6352_v58  ;;  %v6354_v17 = vmul.f32 %v18222_v37, %v6059_v7  ;;  %16502 = vmatprep.mubr.msk.f32.mxu0 %vm327_vm0, %v21131_v36  ;;  %16558 = vmatprep.mubr.msk.f32.mxu1 %vm327_vm0, %v21131_v36  ;;  %v21239_v58 = vld [vmem:[%s22230_s1 + $0x70] sm:$0xff] }
 0x378   : > { %13320 = vst.msk [vmem:[%s19807_s23 + $0x220] sm:$0xff] %vm3284_vm1, %v6351_v53  ;;  %v9506_v7 = vld [vmem:[%s18718_s28 + $0x2c] sm:$0xff]  ;;  %v9507_v37 = vld [vmem:[%s18718_s28 + $0x34] sm:$0xff]  ;;  %v9509_v53 = vld [vmem:[%s18718_s28 + $0x44] sm:$0xff] }
 0x379   : > { %v18224_v13 = vpop.eup %18223  ;;  %13323 = vst.msk [vmem:[%s19807_s23 + $0x238] sm:$0xff] %vm3284_vm1, %v6354_v17  ;;  %v9511_v17 = vld [vmem:[%s18718_s28 + $0x54] sm:$0xff] }
 0x37a   : > { %v6353_v6 = vmul.f32 %v18224_v13, %v6058_v34  ;;  %16503 = vmatmul.mubr.msk.f32.gmra.mrb[84].mxu0 %vm327_vm0, %v21148_v56  ;;  %16559 = vmatmul.mubr.msk.f32.gmra.mrb[84].mxu1 %vm327_vm0, %v21148_v56  ;;  %v9512_v34 = vld [vmem:[%s18718_s28 + $0x5c] sm:$0xff]  ;;  %v9513_v13 = vld [vmem:[%s18718_s28 + $0x64] sm:$0xff] }
 0x37b   : > { %16505 = vmatprep.mubr.msk.f32.mxu0 %vm327_vm0, %v8392_v43  ;;  %16561 = vmatprep.mubr.msk.f32.mxu1 %vm327_vm0, %v8392_v43  ;;  %v9514_v43 = vld [vmem:[%s18718_s28 + $0x6c] sm:$0xff] }
 0x37c   : > { %13322 = vst.msk [vmem:[%s19807_s23 + $0x230] sm:$0xff] %vm3284_vm1, %v6353_v6  ;;  %v9515_v6 = vld [vmem:[%s18718_s28 + $0x74] sm:$0xff] }
 0x37e   : > { %16506 = vmatmul.mubr.msk.f32.gmra.mrb[86].mxu0 %vm327_vm0, %v8393_v25  ;;  %16562 = vmatmul.mubr.msk.f32.gmra.mrb[86].mxu1 %vm327_vm0, %v8393_v25  ;;  %v9516_v25 = vld [vmem:[%s18718_s28 + $0x7c] sm:$0xff] }
 0x37f   : > { %16508 = vmatprep.mubr.msk.f32.mxu0 %vm327_vm0, %v8394_v60  ;;  %16564 = vmatprep.mubr.msk.f32.mxu1 %vm327_vm0, %v8394_v60  ;;  %v9517_v60 = vld [vmem:[%s18718_s28 + $0x84] sm:$0xff] }
 0x382   : > { %16509 = vmatmul.mubr.msk.f32.gmra.mrb[88].mxu0 %vm327_vm0, %v8395_v45  ;;  %16565 = vmatmul.mubr.msk.f32.gmra.mrb[88].mxu1 %vm327_vm0, %v8395_v45  ;;  %v9518_v45 = vld [vmem:[%s18718_s28 + $0x8c] sm:$0xff] }
 0x383   : > { %16511 = vmatprep.mubr.msk.f32.mxu0 %vm327_vm0, %v8396_v42  ;;  %16567 = vmatprep.mubr.msk.f32.mxu1 %vm327_vm0, %v8396_v42  ;;  %v9519_v42 = vld [vmem:[%s18718_s28 + $0x94] sm:$0xff] }
 0x386   : > { %16512 = vmatmul.mubr.msk.f32.gmra.mrb[90].mxu0 %vm327_vm0, %v8397_v35  ;;  %16568 = vmatmul.mubr.msk.f32.gmra.mrb[90].mxu1 %vm327_vm0, %v8397_v35  ;;  %v18518_v35 = vld [vmem:[%s18718_s28 + $0x9c] sm:$0xff] }
 0x387   : > { %16514 = vmatprep.mubr.msk.f32.mxu0 %vm327_vm0, %v8398_v27  ;;  %16570 = vmatprep.mubr.msk.f32.mxu1 %vm327_vm0, %v8398_v27  ;;  %v18519_v27 = vld [vmem:[%s18718_s28 + $0xa4] sm:$0xff] }
 0x38a   : > { %16515 = vmatmul.mubr.msk.f32.gmra.mrb[92].mxu0 %vm327_vm0, %v8399_v33  ;;  %16571 = vmatmul.mubr.msk.f32.gmra.mrb[92].mxu1 %vm327_vm0, %v8399_v33  ;;  %v18520_v33 = vld [vmem:[%s18718_s28 + $0xac] sm:$0xff] }
 0x38b   : > { %16517 = vmatprep.mubr.msk.f32.mxu0 %vm327_vm0, %v8400_v0  ;;  %16573 = vmatprep.mubr.msk.f32.mxu1 %vm327_vm0, %v8400_v0  ;;  %v18521_v0 = vld [vmem:[%s18718_s28 + $0xb4] sm:$0xff] }
 0x38e   : > { %16518 = vmatmul.mubr.msk.f32.gmra.mrb[94].mxu0 %vm327_vm0, %v8401_v5  ;;  %16574 = vmatmul.mubr.msk.f32.gmra.mrb[94].mxu1 %vm327_vm0, %v8401_v5  ;;  %v18522_v5 = vld [vmem:[%s18718_s28 + $0xbc] sm:$0xff] }
 0x38f   : > { %16520 = vmatprep.mubr.msk.f32.mxu0 %vm327_vm0, %v8402_v50  ;;  %16576 = vmatprep.mubr.msk.f32.mxu1 %vm327_vm0, %v8402_v50  ;;  %v9475_v50 = vld [vmem:[%s18718_s28 + $0x73] sm:$0xff] }
 0x392   : > { %16521 = vmatmul.mubr.msk.f32.gmra.mrb[96].mxu0 %vm327_vm0, %v8403_v11  ;;  %16577 = vmatmul.mubr.msk.f32.gmra.mrb[96].mxu1 %vm327_vm0, %v8403_v11  ;;  %v9476_v11 = vld [vmem:[%s18718_s28 + $0x7b] sm:$0xff] }
 0x393   : > { %16523 = vmatprep.mubr.msk.f32.mxu0 %vm327_vm0, %v8404_v22  ;;  %16579 = vmatprep.mubr.msk.f32.mxu1 %vm327_vm0, %v8404_v22  ;;  %v9477_v22 = vld [vmem:[%s18718_s28 + $0x83] sm:$0xff] }
 0x396   : > { %16524 = vmatmul.mubr.msk.f32.gmra.mrb[98].mxu0 %vm327_vm0, %v8405_v28  ;;  %16580 = vmatmul.mubr.msk.f32.gmra.mrb[98].mxu1 %vm327_vm0, %v8405_v28  ;;  %v9478_v28 = vld [vmem:[%s18718_s28 + $0x8b] sm:$0xff] }
 0x397   : > { %16526 = vmatprep.mubr.msk.f32.mxu0 %vm327_vm0, %v8406_v41  ;;  %16582 = vmatprep.mubr.msk.f32.mxu1 %vm327_vm0, %v8406_v41  ;;  %v9479_v41 = vld [vmem:[%s18718_s28 + $0x93] sm:$0xff] }
 0x39a   : > { %16527 = vmatmul.mubr.msk.f32.gmra.mrb[100].mxu0 %vm327_vm0, %v8407_v54  ;;  %16583 = vmatmul.mubr.msk.f32.gmra.mrb[100].mxu1 %vm327_vm0, %v8407_v54  ;;  %v9480_v54 = vld [vmem:[%s18718_s28 + $0x9b] sm:$0xff] }
 0x39b   : > { %16529 = vmatprep.mubr.msk.f32.mxu0 %vm327_vm0, %v8408_v14  ;;  %16585 = vmatprep.mubr.msk.f32.mxu1 %vm327_vm0, %v8408_v14  ;;  %v9481_v14 = vld [vmem:[%s18718_s28 + $0xa3] sm:$0xff] }
 0x39e   : > { %16530 = vmatmul.mubr.msk.f32.gmra.mrb[102].mxu0 %vm327_vm0, %v8409_v26  ;;  %16586 = vmatmul.mubr.msk.f32.gmra.mrb[102].mxu1 %vm327_vm0, %v8409_v26  ;;  %v9482_v26 = vld [vmem:[%s18718_s28 + $0xab] sm:$0xff] }
 0x39f   : > { %16532 = vmatprep.mubr.msk.f32.mxu0 %vm327_vm0, %v8410_v46  ;;  %16588 = vmatprep.mubr.msk.f32.mxu1 %vm327_vm0, %v8410_v46  ;;  %v9483_v46 = vld [vmem:[%s18718_s28 + $0xb3] sm:$0xff] }
 0x3a2   : > { %16533 = vmatmul.mubr.msk.f32.gmra.mrb[104].mxu0 %vm327_vm0, %v8411_v1  ;;  %16589 = vmatmul.mubr.msk.f32.gmra.mrb[104].mxu1 %vm327_vm0, %v8411_v1  ;;  %v9484_v1 = vld [vmem:[%s18718_s28 + $0xbb] sm:$0xff] }
 0x3a3   : > { %16535 = vmatprep.mubr.msk.f32.mxu0 %vm327_vm0, %v8412_v32  ;;  %16591 = vmatprep.mubr.msk.f32.mxu1 %vm327_vm0, %v8412_v32  ;;  %v9485_v32 = vld [vmem:[%s18718_s28 + $0xc3] sm:$0xff] }
 0x3a6   : > { %16536 = vmatmul.mubr.msk.f32.gmra.mrb[106].mxu0 %vm327_vm0, %v8413_v30  ;;  %16592 = vmatmul.mubr.msk.f32.gmra.mrb[106].mxu1 %vm327_vm0, %v8413_v30  ;;  %v9486_v30 = vld [vmem:[%s18718_s28 + $0xcb] sm:$0xff] }
 0x3a7   : > { %16596 = vmatprep.mubr.msk.f32.mxu0 %vm327_vm0, %v9503_v52  ;;  %16708 = vmatprep.mubr.msk.f32.mxu1 %vm327_vm0, %v9503_v52  ;;  %v9487_v52 = vld [vmem:[%s18718_s28 + $0xd3] sm:$0xff] }
 0x3aa   : > { %16597 = vmatmul.mubr.msk.f32.vlgmr.msra.gmra.mrb[108].mxu0 %vm327_vm0, %v9504_v40  ;;  %16709 = vmatmul.mubr.msk.f32.vlgmr.msra.gmra.mrb[108].mxu1 %vm327_vm0, %v9504_v40  ;;  %v9488_v40 = vld [vmem:[%s18718_s28 + $0xdb] sm:$0xff] }
 0x3ab   : > { %16763 = vmatpush3.msra.mxu1 %v21022_v59  ;;  %16599 = vmatprep.mubr.msk.f32.mxu0 %vm327_vm0, %v9505_v38  ;;  %v9508_v59 = vld [vmem:[%s18718_s28 + $0x3c] sm:$0xff] }
 0x3ac   : > { %16711 = vmatprep.mubr.msk.f32.mxu1 %vm327_vm0, %v9505_v38  ;;  %16651 = vmatpush3.msra.mxu0 %v21027_v3  ;;  %v9510_v3 = vld [vmem:[%s18718_s28 + $0x4c] sm:$0xff]  ;;  %v9489_v38 = vld [vmem:[%s18718_s28 + $0xe3] sm:$0xff] }
 0x3ad   : > { %16874 = vmatprep.subr.mxu1 %v21234_v51  ;;  %16818 = vmatprep.subr.mxu0 %v21239_v58 }
 0x3ae   : > { %16600 = vmatmul.mubr.msk.f32.gmra.mrb[110].mxu0 %vm327_vm0, %v9506_v7  ;;  %16712 = vmatmul.mubr.msk.f32.gmra.mrb[110].mxu1 %vm327_vm0, %v9506_v7  ;;  %v9492_v7 = vld [vmem:[%s18718_s28 + $0xfb] sm:$0xff] }
 0x3af   : > { %16602 = vmatprep.mubr.msk.f32.mxu0 %vm327_vm0, %v9507_v37  ;;  %16714 = vmatprep.mubr.msk.f32.mxu1 %vm327_vm0, %v9507_v37  ;;  %v9493_v37 = vld [vmem:[%s18718_s28 + $0x103] sm:$0xff] }
 0x3b2   : > { %16603 = vmatmul.mubr.msk.f32.gmra.mrb[112].mxu0 %vm327_vm0, %v9508_v59  ;;  %16715 = vmatmul.mubr.msk.f32.gmra.mrb[112].mxu1 %vm327_vm0, %v9508_v59  ;;  %v9494_v59 = vld [vmem:[%s18718_s28 + $0x10b] sm:$0xff] }
 0x3b3   : > { %16605 = vmatprep.mubr.msk.f32.mxu0 %vm327_vm0, %v9509_v53  ;;  %16717 = vmatprep.mubr.msk.f32.mxu1 %vm327_vm0, %v9509_v53  ;;  %v9495_v53 = vld [vmem:[%s18718_s28 + $0x113] sm:$0xff] }
 0x3b6   : > { %16606 = vmatmul.mubr.msk.f32.gmra.mrb[114].mxu0 %vm327_vm0, %v9510_v3  ;;  %16718 = vmatmul.mubr.msk.f32.gmra.mrb[114].mxu1 %vm327_vm0, %v9510_v3  ;;  %v9496_v3 = vld [vmem:[%s18718_s28 + $0x11b] sm:$0xff] }
 0x3b7   : > { %16608 = vmatprep.mubr.msk.f32.mxu0 %vm327_vm0, %v9511_v17  ;;  %16720 = vmatprep.mubr.msk.f32.mxu1 %vm327_vm0, %v9511_v17  ;;  %v9497_v17 = vld [vmem:[%s18718_s28 + $0x123] sm:$0xff] }
 0x3ba   : > { %16609 = vmatmul.mubr.msk.f32.gmra.mrb[116].mxu0 %vm327_vm0, %v9512_v34  ;;  %16721 = vmatmul.mubr.msk.f32.gmra.mrb[116].mxu1 %vm327_vm0, %v9512_v34  ;;  %v21477_v34 = vld [vmem:[#allocation4] ss:$0 sm:$0xff] }
 0x3bb   : > { %16611 = vmatprep.mubr.msk.f32.mxu0 %vm327_vm0, %v9513_v13  ;;  %16723 = vmatprep.mubr.msk.f32.mxu1 %vm327_vm0, %v9513_v13  ;;  %v9498_v13 = vld [vmem:[%s18718_s28 + $0x12b] sm:$0xff] }
 0x3be   : > { %16612 = vmatmul.mubr.msk.f32.gmra.mrb[118].mxu0 %vm327_vm0, %v9514_v43  ;;  %16724 = vmatmul.mubr.msk.f32.gmra.mrb[118].mxu1 %vm327_vm0, %v9514_v43 }
 0x3bf   : > { %16614 = vmatprep.mubr.msk.f32.mxu0 %vm327_vm0, %v9515_v6  ;;  %16726 = vmatprep.mubr.msk.f32.mxu1 %vm327_vm0, %v9515_v6 }
 0x3c2   : > { %16615 = vmatmul.mubr.msk.f32.gmra.mrb[120].mxu0 %vm327_vm0, %v9516_v25  ;;  %16727 = vmatmul.mubr.msk.f32.gmra.mrb[120].mxu1 %vm327_vm0, %v9516_v25 }
 0x3c3   : > { %16617 = vmatprep.mubr.msk.f32.mxu0 %vm327_vm0, %v9517_v60  ;;  %16729 = vmatprep.mubr.msk.f32.mxu1 %vm327_vm0, %v9517_v60 }
 0x3c6   : > { %16618 = vmatmul.mubr.msk.f32.gmra.mrb[122].mxu0 %vm327_vm0, %v9518_v45  ;;  %16730 = vmatmul.mubr.msk.f32.gmra.mrb[122].mxu1 %vm327_vm0, %v9518_v45 }
 0x3c7   : > { %16620 = vmatprep.mubr.msk.f32.mxu0 %vm327_vm0, %v9519_v42  ;;  %16732 = vmatprep.mubr.msk.f32.mxu1 %vm327_vm0, %v9519_v42 }
 0x3ca   : > { %16621 = vmatmul.mubr.msk.f32.gmra.mrb[124].mxu0 %vm327_vm0, %v18518_v35  ;;  %16733 = vmatmul.mubr.msk.f32.gmra.mrb[124].mxu1 %vm327_vm0, %v18518_v35 }
 0x3cb   : > { %16623 = vmatprep.mubr.msk.f32.mxu0 %vm327_vm0, %v18519_v27  ;;  %16735 = vmatprep.mubr.msk.f32.mxu1 %vm327_vm0, %v18519_v27 }
 0x3ce   : > { %16624 = vmatmul.mubr.msk.f32.gmra.mrb[126].mxu0 %vm327_vm0, %v18520_v33  ;;  %16736 = vmatmul.mubr.msk.f32.gmra.mrb[126].mxu1 %vm327_vm0, %v18520_v33 }
 0x3cf   : > { %16626 = vmatprep.mubr.msk.f32.mxu0 %vm327_vm0, %v18521_v0  ;;  %16738 = vmatprep.mubr.msk.f32.mxu1 %vm327_vm0, %v18521_v0 }
 0x3d2   : > { %16627 = vmatmul.mubr.msk.f32.gmra.mrb[128].mxu0 %vm327_vm0, %v18522_v5  ;;  %16739 = vmatmul.mubr.msk.f32.gmra.mrb[128].mxu1 %vm327_vm0, %v18522_v5 }
 0x3d3   : > { %16629 = vmatprep.mubr.msk.f32.mxu0 %vm327_vm0, %v20773_v57  ;;  %16741 = vmatprep.mubr.msk.f32.mxu1 %vm327_vm0, %v20773_v57  ;;  %v9463_v57 = vld [vmem:[%s18718_s28 + $0x13] sm:$0xff] }
 0x3d6   : > { %16630 = vmatmul.mubr.msk.f32.gmra.mrb[130].mxu0 %vm327_vm0, %v20792_v44  ;;  %16742 = vmatmul.mubr.msk.f32.gmra.mrb[130].mxu1 %vm327_vm0, %v20792_v44  ;;  %v9464_v44 = vld [vmem:[%s18718_s28 + $0x1b] sm:$0xff] }
 0x3d7   : > { %16632 = vmatprep.mubr.msk.f32.mxu0 %vm327_vm0, %v20799_v55  ;;  %16744 = vmatprep.mubr.msk.f32.mxu1 %vm327_vm0, %v20799_v55  ;;  %v9465_v55 = vld [vmem:[%s18718_s28 + $0x23] sm:$0xff] }
 0x3da   : > { %16633 = vmatmul.mubr.msk.f32.gmra.mrb[132].mxu0 %vm327_vm0, %v20820_v49  ;;  %16745 = vmatmul.mubr.msk.f32.gmra.mrb[132].mxu1 %vm327_vm0, %v20820_v49  ;;  %v21370_v49 = vld [vmem:[%s22231_s2 + $0x78] sm:$0xff] }
 0x3db   : > { %16635 = vmatprep.mubr.msk.f32.mxu0 %vm327_vm0, %v20827_v8  ;;  %16747 = vmatprep.mubr.msk.f32.mxu1 %vm327_vm0, %v20827_v8  ;;  %v9466_v8 = vld [vmem:[%s18718_s28 + $0x2b] sm:$0xff] }
 0x3de   : > { %16636 = vmatmul.mubr.msk.f32.gmra.mrb[134].mxu0 %vm327_vm0, %v20848_v23  ;;  %16748 = vmatmul.mubr.msk.f32.gmra.mrb[134].mxu1 %vm327_vm0, %v20848_v23  ;;  %v21378_v23 = vld [vmem:[%s22230_s1 + $0x78] sm:$0xff] }
 0x3df   : > { %16638 = vmatprep.mubr.msk.f32.mxu0 %vm327_vm0, %v20855_v12  ;;  %16750 = vmatprep.mubr.msk.f32.mxu1 %vm327_vm0, %v20855_v12  ;;  %v9467_v12 = vld [vmem:[%s18718_s28 + $0x33] sm:$0xff] }
 0x3e2   : > { %16639 = vmatmul.mubr.msk.f32.gmra.mrb[136].mxu0 %vm327_vm0, %v20876_v62  ;;  %16751 = vmatmul.mubr.msk.f32.gmra.mrb[136].mxu1 %vm327_vm0, %v20876_v62  ;;  %v9468_v62 = vld [vmem:[%s18718_s28 + $0x3b] sm:$0xff] }
 0x3e3   : > { %16641 = vmatprep.mubr.msk.f32.mxu0 %vm327_vm0, %v20881_v24  ;;  %16753 = vmatprep.mubr.msk.f32.mxu1 %vm327_vm0, %v20881_v24  ;;  %v9469_v24 = vld [vmem:[%s18718_s28 + $0x43] sm:$0xff] }
 0x3e6   : > { %16642 = vmatmul.mubr.msk.f32.gmra.mrb[138].mxu0 %vm327_vm0, %v20904_v10  ;;  %16754 = vmatmul.mubr.msk.f32.gmra.mrb[138].mxu1 %vm327_vm0, %v20904_v10  ;;  %v9470_v10 = vld [vmem:[%s18718_s28 + $0x4b] sm:$0xff] }
 0x3e7   : > { %16644 = vmatprep.mubr.msk.f32.mxu0 %vm327_vm0, %v20907_v29  ;;  %16756 = vmatprep.mubr.msk.f32.mxu1 %vm327_vm0, %v20907_v29  ;;  %v9471_v29 = vld [vmem:[%s18718_s28 + $0x53] sm:$0xff] }
 0x3ea   : > { %16645 = vmatmul.mubr.msk.f32.gmra.mrb[140].mxu0 %vm327_vm0, %v20932_v61  ;;  %16757 = vmatmul.mubr.msk.f32.gmra.mrb[140].mxu1 %vm327_vm0, %v20932_v61  ;;  %v9472_v61 = vld [vmem:[%s18718_s28 + $0x5b] sm:$0xff] }
 0x3eb   : > { %16647 = vmatprep.mubr.msk.f32.mxu0 %vm327_vm0, %v20935_v47  ;;  %16759 = vmatprep.mubr.msk.f32.mxu1 %vm327_vm0, %v20935_v47  ;;  %v9473_v47 = vld [vmem:[%s18718_s28 + $0x63] sm:$0xff] }
 0x3ee   : > { %16648 = vmatmul.mubr.msk.f32.gmra.mrb[142].mxu0 %vm327_vm0, %v20958_v20  ;;  %16760 = vmatmul.mubr.msk.f32.gmra.mrb[142].mxu1 %vm327_vm0, %v20958_v20  ;;  %v9474_v20 = vld [vmem:[%s18718_s28 + $0x6b] sm:$0xff] }
 0x3ef   : > { %16652 = vmatprep.mubr.msk.f32.mxu0 %vm327_vm0, %v9463_v57  ;;  %16764 = vmatprep.mubr.msk.f32.mxu1 %vm327_vm0, %v9463_v57 }
 0x3f2   : > { %16653 = vmatmul.mubr.msk.f32.vlgmr.msra.gmra.mrb[108].mxu0 %vm327_vm0, %v9464_v44  ;;  %16765 = vmatmul.mubr.msk.f32.vlgmr.msra.gmra.mrb[108].mxu1 %vm327_vm0, %v9464_v44 }
 0x3f3   : > { %16875 = vmatpush3.msra.mxu1 %v21234_v51  ;;  %16655 = vmatprep.mubr.msk.f32.mxu0 %vm327_vm0, %v9465_v55  ;;  %v9490_v51 = vld [vmem:[%s18718_s28 + $0xeb] sm:$0xff] }
 0x3f4   : > { %16767 = vmatprep.mubr.msk.f32.mxu1 %vm327_vm0, %v9465_v55  ;;  %16819 = vmatpush3.msra.mxu0 %v21239_v58  ;;  %v9491_v58 = vld [vmem:[%s18718_s28 + $0xf3] sm:$0xff] }
 0x3f5   : > { %16986 = vmatprep.subr.mxu1 %v21370_v49  ;;  %16930 = vmatprep.subr.mxu0 %v21378_v23 }
 0x3f6   : > { %16656 = vmatmul.mubr.msk.f32.gmra.mrb[110].mxu0 %vm327_vm0, %v9466_v8  ;;  %16768 = vmatmul.mubr.msk.f32.gmra.mrb[110].mxu1 %vm327_vm0, %v9466_v8 }
 0x3f7   : > { %16658 = vmatprep.mubr.msk.f32.mxu0 %vm327_vm0, %v9467_v12  ;;  %16770 = vmatprep.mubr.msk.f32.mxu1 %vm327_vm0, %v9467_v12 }
 0x3fa   : > { %16659 = vmatmul.mubr.msk.f32.gmra.mrb[112].mxu0 %vm327_vm0, %v9468_v62  ;;  %16771 = vmatmul.mubr.msk.f32.gmra.mrb[112].mxu1 %vm327_vm0, %v9468_v62 }
 0x3fb   : > { %16661 = vmatprep.mubr.msk.f32.mxu0 %vm327_vm0, %v9469_v24  ;;  %16773 = vmatprep.mubr.msk.f32.mxu1 %vm327_vm0, %v9469_v24 }
 0x3fe   : > { %16662 = vmatmul.mubr.msk.f32.gmra.mrb[114].mxu0 %vm327_vm0, %v9470_v10  ;;  %16774 = vmatmul.mubr.msk.f32.gmra.mrb[114].mxu1 %vm327_vm0, %v9470_v10 }
 0x3ff   : > { %16664 = vmatprep.mubr.msk.f32.mxu0 %vm327_vm0, %v9471_v29  ;;  %16776 = vmatprep.mubr.msk.f32.mxu1 %vm327_vm0, %v9471_v29 }
 0x402   : > { %16665 = vmatmul.mubr.msk.f32.gmra.mrb[116].mxu0 %vm327_vm0, %v9472_v61  ;;  %16777 = vmatmul.mubr.msk.f32.gmra.mrb[116].mxu1 %vm327_vm0, %v9472_v61 }
 0x403   : > { %16667 = vmatprep.mubr.msk.f32.mxu0 %vm327_vm0, %v9473_v47  ;;  %16779 = vmatprep.mubr.msk.f32.mxu1 %vm327_vm0, %v9473_v47 }
 0x406   : > { %16668 = vmatmul.mubr.msk.f32.gmra.mrb[118].mxu0 %vm327_vm0, %v9474_v20  ;;  %16780 = vmatmul.mubr.msk.f32.gmra.mrb[118].mxu1 %vm327_vm0, %v9474_v20 }
 0x407   : > { %16670 = vmatprep.mubr.msk.f32.mxu0 %vm327_vm0, %v9475_v50  ;;  %16782 = vmatprep.mubr.msk.f32.mxu1 %vm327_vm0, %v9475_v50 }
 0x40a   : > { %16671 = vmatmul.mubr.msk.f32.gmra.mrb[120].mxu0 %vm327_vm0, %v9476_v11  ;;  %16783 = vmatmul.mubr.msk.f32.gmra.mrb[120].mxu1 %vm327_vm0, %v9476_v11 }
 0x40b   : > { %16673 = vmatprep.mubr.msk.f32.mxu0 %vm327_vm0, %v9477_v22  ;;  %16785 = vmatprep.mubr.msk.f32.mxu1 %vm327_vm0, %v9477_v22 }
 0x40e   : > { %16674 = vmatmul.mubr.msk.f32.gmra.mrb[122].mxu0 %vm327_vm0, %v9478_v28  ;;  %16786 = vmatmul.mubr.msk.f32.gmra.mrb[122].mxu1 %vm327_vm0, %v9478_v28 }
 0x40f   : > { %16676 = vmatprep.mubr.msk.f32.mxu0 %vm327_vm0, %v9479_v41  ;;  %16788 = vmatprep.mubr.msk.f32.mxu1 %vm327_vm0, %v9479_v41 }
 0x412   : > { %16677 = vmatmul.mubr.msk.f32.gmra.mrb[124].mxu0 %vm327_vm0, %v9480_v54  ;;  %16789 = vmatmul.mubr.msk.f32.gmra.mrb[124].mxu1 %vm327_vm0, %v9480_v54 }
 0x413   : > { %16679 = vmatprep.mubr.msk.f32.mxu0 %vm327_vm0, %v9481_v14  ;;  %16791 = vmatprep.mubr.msk.f32.mxu1 %vm327_vm0, %v9481_v14 }
 0x416   : > { %16680 = vmatmul.mubr.msk.f32.gmra.mrb[126].mxu0 %vm327_vm0, %v9482_v26  ;;  %16792 = vmatmul.mubr.msk.f32.gmra.mrb[126].mxu1 %vm327_vm0, %v9482_v26 }
 0x417   : > { %16682 = vmatprep.mubr.msk.f32.mxu0 %vm327_vm0, %v9483_v46  ;;  %16794 = vmatprep.mubr.msk.f32.mxu1 %vm327_vm0, %v9483_v46 }
 0x41a   : > { %16683 = vmatmul.mubr.msk.f32.gmra.mrb[128].mxu0 %vm327_vm0, %v9484_v1  ;;  %16795 = vmatmul.mubr.msk.f32.gmra.mrb[128].mxu1 %vm327_vm0, %v9484_v1 }
 0x41b   : > { %16685 = vmatprep.mubr.msk.f32.mxu0 %vm327_vm0, %v9485_v32  ;;  %16797 = vmatprep.mubr.msk.f32.mxu1 %vm327_vm0, %v9485_v32 }
 0x41e   : > { %16686 = vmatmul.mubr.msk.f32.gmra.mrb[130].mxu0 %vm327_vm0, %v9486_v30  ;;  %16798 = vmatmul.mubr.msk.f32.gmra.mrb[130].mxu1 %vm327_vm0, %v9486_v30 }
 0x41f   : > { %16688 = vmatprep.mubr.msk.f32.mxu0 %vm327_vm0, %v9487_v52  ;;  %16800 = vmatprep.mubr.msk.f32.mxu1 %vm327_vm0, %v9487_v52 }
 0x422   : > { %16689 = vmatmul.mubr.msk.f32.gmra.mrb[132].mxu0 %vm327_vm0, %v9488_v40  ;;  %16801 = vmatmul.mubr.msk.f32.gmra.mrb[132].mxu1 %vm327_vm0, %v9488_v40 }
 0x423   : > { %16691 = vmatprep.mubr.msk.f32.mxu0 %vm327_vm0, %v9489_v38  ;;  %16803 = vmatprep.mubr.msk.f32.mxu1 %vm327_vm0, %v9489_v38 }
 0x426   : > { %16692 = vmatmul.mubr.msk.f32.gmra.mrb[134].mxu0 %vm327_vm0, %v9490_v51  ;;  %16804 = vmatmul.mubr.msk.f32.gmra.mrb[134].mxu1 %vm327_vm0, %v9490_v51 }
 0x427   : > { %16694 = vmatprep.mubr.msk.f32.mxu0 %vm327_vm0, %v9491_v58  ;;  %16806 = vmatprep.mubr.msk.f32.mxu1 %vm327_vm0, %v9491_v58 }
 0x42a   : > { %16695 = vmatmul.mubr.msk.f32.gmra.mrb[136].mxu0 %vm327_vm0, %v9492_v7  ;;  %16807 = vmatmul.mubr.msk.f32.gmra.mrb[136].mxu1 %vm327_vm0, %v9492_v7 }
 0x42b   : > { %16697 = vmatprep.mubr.msk.f32.mxu0 %vm327_vm0, %v9493_v37  ;;  %16809 = vmatprep.mubr.msk.f32.mxu1 %vm327_vm0, %v9493_v37 }
 0x42e   : > { %16698 = vmatmul.mubr.msk.f32.gmra.mrb[138].mxu0 %vm327_vm0, %v9494_v59  ;;  %16810 = vmatmul.mubr.msk.f32.gmra.mrb[138].mxu1 %vm327_vm0, %v9494_v59 }
 0x42f   : > { %16700 = vmatprep.mubr.msk.f32.mxu0 %vm327_vm0, %v9495_v53  ;;  %16812 = vmatprep.mubr.msk.f32.mxu1 %vm327_vm0, %v9495_v53 }
 0x432   : > { %16701 = vmatmul.mubr.msk.f32.gmra.mrb[140].mxu0 %vm327_vm0, %v9496_v3  ;;  %16813 = vmatmul.mubr.msk.f32.gmra.mrb[140].mxu1 %vm327_vm0, %v9496_v3  ;;  %v21566_v3 = vld [vmem:[#allocation2] ss:$0 sm:$0xff] }
 0x433   : > { %16703 = vmatprep.mubr.msk.f32.mxu0 %vm327_vm0, %v9497_v17  ;;  %16815 = vmatprep.mubr.msk.f32.mxu1 %vm327_vm0, %v9497_v17 }
 0x435   : > { %v21482_v43 = vpop.f32.mrb[72].mxu0  ;;  %v16542_v6 = vpop.f32.mrb[72].mxu1 }
 0x436   : > { %v9139_v25 = vadd.f32 %v16542_v6, %v21477_v34  ;;  %v21485_v60 = vpop.f32.mrb[73].mxu0  ;;  %v8873_v45 = vpop.f32.mrb[73].mxu1  ;;  %16704 = vmatmul.mubr.msk.f32.gmra.mrb[142].mxu0 %vm327_vm0, %v9498_v13  ;;  %16816 = vmatmul.mubr.msk.f32.gmra.mrb[142].mxu1 %vm327_vm0, %v9498_v13 }
 0x437   : > { %v9138_v42 = vadd.f32 %v21477_v34, %v8873_v45  ;;  %16820 = vmatprep.mubr.msk.f32.mxu0 %vm327_vm0, %v20985_v4  ;;  %16876 = vmatprep.mubr.msk.f32.mxu1 %vm327_vm0, %v20985_v4 }
 0x438   : > { %v13623_v35 = vmul.f32 -1.442695, %v9139_v25 }
 0x439   : > { %v13622_v27 = vmul.f32 -1.442695, %v9138_v42  ;;  %v21494_v33 = vpop.f32.mrb[74].mxu0  ;;  %v16545_v0 = vpop.f32.mrb[74].mxu1 }
 0x43a   : > { %18225 = vpow2.f32 %v13623_v35  ;;  %v9141_v5 = vadd.f32 %v16545_v0, %v21477_v34  ;;  %v21497_v57 = vpop.f32.mrb[75].mxu0  ;;  %v8883_v44 = vpop.f32.mrb[75].mxu1  ;;  %16821 = vmatmul.mubr.msk.f32.vlgmr.msra.gmra.mrb[108].mxu0 %vm327_vm0, %v21002_v18  ;;  %16877 = vmatmul.mubr.msk.f32.vlgmr.msra.gmra.mrb[108].mxu1 %vm327_vm0, %v21002_v18 }
 0x43b   : > { %18227 = vpow2.f32 %v13622_v27  ;;  %v9140_v4 = vadd.f32 %v21477_v34, %v8883_v44  ;;  %16987 = vmatpush3.msra.mxu1 %v21370_v49  ;;  %16823 = vmatprep.mubr.msk.f32.mxu0 %vm327_vm0, %v21005_v19  ;;  %v9096_v44 = vadd.f32 %v21482_v43, %v21566_v3 }
 0x43c   : > { %v13625_v55 = vmul.f32 -1.442695, %v9141_v5  ;;  %16879 = vmatprep.mubr.msk.f32.mxu1 %vm327_vm0, %v21005_v19  ;;  %16931 = vmatpush3.msra.mxu0 %v21378_v23 }
 0x43d   : > { %v13624_v8 = vmul.f32 -1.442695, %v9140_v4  ;;  %v21510_v12 = vpop.f32.mrb[76].mxu0  ;;  %v16548_v62 = vpop.f32.mrb[76].mxu1 }
 0x43e   : > { %18229 = vpow2.f32 %v13625_v55  ;;  %v9143_v18 = vadd.f32 %v16548_v62, %v21477_v34  ;;  %v21513_v24 = vpop.f32.mrb[77].mxu0  ;;  %v8893_v10 = vpop.f32.mrb[77].mxu1  ;;  %16824 = vmatmul.mubr.msk.f32.gmra.mrb[110].mxu0 %vm327_vm0, %v21033_v63  ;;  %16880 = vmatmul.mubr.msk.f32.gmra.mrb[110].mxu1 %vm327_vm0, %v21033_v63  ;;  %v10753_v55 = vld [vmem:[%s18718_s28 + $0x95] sm:$0xff] }
 0x43f   : > { %18231 = vpow2.f32 %v13624_v8  ;;  %v9142_v19 = vadd.f32 %v21477_v34, %v8893_v10  ;;  %16826 = vmatprep.mubr.msk.f32.mxu0 %vm327_vm0, %v21040_v2  ;;  %16882 = vmatprep.mubr.msk.f32.mxu1 %vm327_vm0, %v21040_v2 }
 0x440   : > { %v13627_v49 = vmul.f32 -1.442695, %v9143_v18 }
 0x441   : > { %v13626_v23 = vmul.f32 -1.442695, %v9142_v19  ;;  %v21524_v29 = vpop.f32.mrb[78].mxu0  ;;  %v16551_v61 = vpop.f32.mrb[78].mxu1 }
 0x442   : > { %18233 = vpow2.f32 %v13627_v49  ;;  %v9145_v47 = vadd.f32 %v16551_v61, %v21477_v34  ;;  %v21527_v20 = vpop.f32.mrb[79].mxu0  ;;  %v8903_v63 = vpop.f32.mrb[79].mxu1  ;;  %16827 = vmatmul.mubr.msk.f32.gmra.mrb[112].mxu0 %vm327_vm0, %v21058_v9  ;;  %16883 = vmatmul.mubr.msk.f32.gmra.mrb[112].mxu1 %vm327_vm0, %v21058_v9 }
 0x443   : > { %18235 = vpow2.f32 %v13626_v23  ;;  %v9144_v2 = vadd.f32 %v21477_v34, %v8903_v63  ;;  %16829 = vmatprep.mubr.msk.f32.mxu0 %vm327_vm0, %v21065_v21  ;;  %16885 = vmatprep.mubr.msk.f32.mxu1 %vm327_vm0, %v21065_v21 }
 0x444   : > { %v18226_v50 = vpop.eup %18225  ;;  %v13629_v11 = vmul.f32 -1.442695, %v9145_v47 }
 0x445   : > { %v18228_v22 = vpop.eup %18227  ;;  %v9283_v28 = vadd.f32 1.0, %v18226_v50  ;;  %v13628_v41 = vmul.f32 -1.442695, %v9144_v2  ;;  %v21538_v54 = vpop.f32.mrb[80].mxu0  ;;  %v10754_v2 = vld [vmem:[%s18718_s28 + $0x9d] sm:$0xff] }
 0x446   : > { %v16554_v14 = vpop.f32.mrb[80].mxu1  ;;  %v9282_v26 = vadd.f32 1.0, %v18228_v22  ;;  %18237 = vpow2.f32 %v13629_v11  ;;  %v21541_v46 = vpop.f32.mrb[81].mxu0  ;;  %16830 = vmatmul.mubr.msk.f32.gmra.mrb[114].mxu0 %vm327_vm0, %v21078_v16  ;;  %16886 = vmatmul.mubr.msk.f32.gmra.mrb[114].mxu1 %vm327_vm0, %v21078_v16  ;;  %v9098_v11 = vadd.f32 %v21494_v33, %v21566_v3 }
 0x447   : > { %v9147_v9 = vadd.f32 %v16554_v14, %v21477_v34  ;;  %v8913_v1 = vpop.f32.mrb[81].mxu1  ;;  %18239 = vrcp.f32 %v9283_v28  ;;  %16832 = vmatprep.mubr.msk.f32.mxu0 %vm327_vm0, %v21085_v31  ;;  %16888 = vmatprep.mubr.msk.f32.mxu1 %vm327_vm0, %v21085_v31  ;;  %v10755_v28 = vld [vmem:[%s18718_s28 + $0xa5] sm:$0xff]  ;;  %v9097_v14 = vadd.f32 %v21566_v3, %v21497_v57 }
 0x448   : > { %v9146_v21 = vadd.f32 %v21477_v34, %v8913_v1  ;;  %v18230_v32 = vpop.eup %18229  ;;  %18241 = vrcp.f32 %v9282_v26 }
 0x449   : > { %v13631_v30 = vmul.f32 -1.442695, %v9147_v9  ;;  %v18232_v52 = vpop.eup %18231  ;;  %v9285_v40 = vadd.f32 1.0, %v18230_v32  ;;  %18243 = vpow2.f32 %v13628_v41  ;;  %v21552_v51 = vpop.f32.mrb[82].mxu0 }
 0x44a   : > { %v13630_v38 = vmul.f32 -1.442695, %v9146_v21  ;;  %v16557_v58 = vpop.f32.mrb[82].mxu1  ;;  %v9284_v16 = vadd.f32 1.0, %v18232_v52  ;;  %v21555_v37 = vpop.f32.mrb[83].mxu0  ;;  %16833 = vmatmul.mubr.msk.f32.gmra.mrb[116].mxu0 %vm327_vm0, %v21100_v48  ;;  %16889 = vmatmul.mubr.msk.f32.gmra.mrb[116].mxu1 %vm327_vm0, %v21100_v48 }
 0x44b   : > { %18245 = vpow2.f32 %v13631_v30  ;;  %v9149_v7 = vadd.f32 %v16557_v58, %v21477_v34  ;;  %v8923_v59 = vpop.f32.mrb[83].mxu1  ;;  %16835 = vmatprep.mubr.msk.f32.mxu0 %vm327_vm0, %v21107_v39  ;;  %16891 = vmatprep.mubr.msk.f32.mxu1 %vm327_vm0, %v21107_v39 }
 0x44c   : > { %18247 = vrcp.f32 %v9285_v40  ;;  %v9148_v31 = vadd.f32 %v21477_v34, %v8923_v59  ;;  %v18234_v53 = vpop.eup %18233  ;;  %v9100_v59 = vadd.f32 %v21510_v12, %v21566_v3 }
 0x44d   : > { %18249 = vrcp.f32 %v9284_v16  ;;  %v13633_v17 = vmul.f32 -1.442695, %v9149_v7  ;;  %v18236_v13 = vpop.eup %18235  ;;  %v9287_v6 = vadd.f32 1.0, %v18234_v53  ;;  %v21568_v45 = vpop.f32.mrb[84].mxu0  ;;  %v10756_v16 = vld [vmem:[%s18718_s28 + $0xad] sm:$0xff] }
 0x44e   : > { %18251 = vpow2.f32 %v13630_v38  ;;  %v13632_v25 = vmul.f32 -1.442695, %v9148_v31  ;;  %v16560_v48 = vpop.f32.mrb[84].mxu1  ;;  %v9286_v42 = vadd.f32 1.0, %v18236_v13  ;;  %v21571_v27 = vpop.f32.mrb[85].mxu0  ;;  %16836 = vmatmul.mubr.msk.f32.gmra.mrb[118].mxu0 %vm327_vm0, %v21124_v15  ;;  %16892 = vmatmul.mubr.msk.f32.gmra.mrb[118].mxu1 %vm327_vm0, %v21124_v15  ;;  %v9095_v15 = vadd.f32 %v21566_v3, %v21485_v60 }
 0x44f   : > { %18253 = vpow2.f32 %v13633_v17  ;;  %v9151_v35 = vadd.f32 %v16560_v48, %v21477_v34  ;;  %v8933_v39 = vpop.f32.mrb[85].mxu1  ;;  %16838 = vmatprep.mubr.msk.f32.mxu0 %vm327_vm0, %v21131_v36  ;;  %16894 = vmatprep.mubr.msk.f32.mxu1 %vm327_vm0, %v21131_v36  ;;  %v10757_v17 = vld [vmem:[%s18718_s28 + $0xb5] sm:$0xff] }
 0x450   : > { %18255 = vrcp.f32 %v9287_v6  ;;  %v9150_v0 = vadd.f32 %v21477_v34, %v8933_v39  ;;  %v18238_v5 = vpop.eup %18237  ;;  %v9099_v6 = vadd.f32 %v21566_v3, %v21513_v24 }
 0x451   : > { %18257 = vrcp.f32 %v9286_v42  ;;  %v13635_v4 = vmul.f32 -1.442695, %v9151_v35  ;;  %v18240_v8 = vpop.eup %18239  ;;  %v9289_v62 = vadd.f32 1.0, %v18238_v5  ;;  %v21587_v10 = vpop.f32.mrb[86].mxu0 }
 0x452   : > { %18259 = vpow2.f32 %v13632_v25  ;;  %v13634_v18 = vmul.f32 -1.442695, %v9150_v0  ;;  %v16563_v19 = vpop.f32.mrb[86].mxu1  ;;  %v18242_v49 = vpop.eup %18241  ;;  %v9391_v36 = vmul.f32 %v18240_v8, %v9096_v44  ;;  %16839 = vmatmul.mubr.msk.f32.gmra.mrb[120].mxu0 %vm327_vm0, %v21148_v56  ;;  %16895 = vmatmul.mubr.msk.f32.gmra.mrb[120].mxu1 %vm327_vm0, %v21148_v56  ;;  %v10758_v8 = vld [vmem:[%s18718_s28 + $0xbd] sm:$0xff] }
 0x453   : > { %18261 = vpow2.f32 %v13635_v4  ;;  %v9153_v43 = vadd.f32 %v16563_v19, %v21477_v34  ;;  %v21590_v23 = vpop.f32.mrb[87].mxu0  ;;  %v8943_v61 = vpop.f32.mrb[87].mxu1  ;;  %v9390_v47 = vmul.f32 %v18242_v49, %v9095_v15  ;;  %16841 = vmatprep.mubr.msk.f32.mxu0 %vm327_vm0, %v10753_v55  ;;  %16897 = vmatprep.mubr.msk.f32.mxu1 %vm327_vm0, %v10753_v55  ;;  %v10759_v49 = vld [vmem:[%s18718_s28 + $0xc5] sm:$0xff] }
 0x454   : > { %v18244_v60 = vpop.eup %18243  ;;  %18263 = vrcp.f32 %v9289_v62  ;;  %v9152_v63 = vadd.f32 %v21477_v34, %v8943_v61  ;;  %13659 = vst.msk [vmem:[%s19807_s23 + $0x248] sm:$0xff] %vm3284_vm1, %v9391_v36  ;;  %v9102_v62 = vadd.f32 %v21524_v29, %v21566_v3 }
 0x455   : > { %v18246_v50 = vpop.eup %18245  ;;  %v9288_v22 = vadd.f32 1.0, %v18244_v60  ;;  %18265 = vpow2.f32 %v13634_v18  ;;  %v13637_v56 = vmul.f32 -1.442695, %v9153_v43  ;;  %13658 = vst.msk [vmem:[%s19807_s23 + $0x240] sm:$0xff] %vm3284_vm1, %v9390_v47  ;;  %v21609_v1 = vpop.f32.mrb[88].mxu0 }
 0x456   : > { %v18248_v41 = vpop.eup %18247  ;;  %v9291_v26 = vadd.f32 1.0, %v18246_v50  ;;  %v13636_v9 = vmul.f32 -1.442695, %v9152_v63  ;;  %v16566_v21 = vpop.f32.mrb[88].mxu1  ;;  %16842 = vmatmul.mubr.msk.f32.gmra.mrb[122].mxu0 %vm327_vm0, %v10754_v2  ;;  %16898 = vmatmul.mubr.msk.f32.gmra.mrb[122].mxu1 %vm327_vm0, %v10754_v2 }
 0x457   : > { %v18250_v32 = vpop.eup %18249  ;;  %v9393_v30 = vmul.f32 %v18248_v41, %v9098_v11  ;;  %18267 = vrcp.f32 %v9288_v22  ;;  %v9155_v33 = vadd.f32 %v16566_v21, %v21477_v34  ;;  %v21612_v52 = vpop.f32.mrb[89].mxu0  ;;  %16844 = vmatprep.mubr.msk.f32.mxu0 %vm327_vm0, %v10755_v28  ;;  %16900 = vmatprep.mubr.msk.f32.mxu1 %vm327_vm0, %v10755_v28  ;;  %v9101_v22 = vadd.f32 %v21566_v3, %v21527_v20  ;;  %v10760_v41 = vld [vmem:[%s18718_s28 + $0xcd] sm:$0xff]  ;;  %v10761_v21 = vld [vmem:[%s18718_s28 + $0xd5] sm:$0xff] }
 0x458   : > { %v8953_v40 = vpop.f32.mrb[89].mxu1  ;;  %v18252_v57 = vpop.eup %18251  ;;  %v9392_v38 = vmul.f32 %v18250_v32, %v9097_v14  ;;  %18269 = vrcp.f32 %v9291_v26  ;;  %v9104_v26 = vadd.f32 %v21538_v54, %v21566_v3 }
 0x459   : > { %v9154_v58 = vadd.f32 %v21477_v34, %v8953_v40  ;;  %v18254_v7 = vpop.eup %18253  ;;  %13661 = vst.msk [vmem:[%s19807_s23 + $0x258] sm:$0xff] %vm3284_vm1, %v9393_v30  ;;  %v9290_v31 = vadd.f32 1.0, %v18252_v57  ;;  %18271 = vpow2.f32 %v13637_v56  ;;  %v13639_v53 = vmul.f32 -1.442695, %v9155_v33  ;;  %v21629_v42 = vpop.f32.mrb[90].mxu0 }
 0x45a   : > { %v18256_v13 = vpop.eup %18255  ;;  %13660 = vst.msk [vmem:[%s19807_s23 + $0x250] sm:$0xff] %vm3284_vm1, %v9392_v38  ;;  %v9293_v25 = vadd.f32 1.0, %v18254_v7  ;;  %18273 = vpow2.f32 %v13636_v9  ;;  %v16569_v35 = vpop.f32.mrb[90].mxu1  ;;  %16845 = vmatmul.mubr.msk.f32.gmra.mrb[124].mxu0 %vm327_vm0, %v10756_v16  ;;  %16901 = vmatmul.mubr.msk.f32.gmra.mrb[124].mxu1 %vm327_vm0, %v10756_v16 }
 0x45b   : > { %v13638_v48 = vmul.f32 -1.442695, %v9154_v58  ;;  %v18258_v39 = vpop.eup %18257  ;;  %v9395_v12 = vmul.f32 %v18256_v13, %v9100_v59  ;;  %18275 = vrcp.f32 %v9290_v31  ;;  %v9157_v0 = vadd.f32 %v16569_v35, %v21477_v34  ;;  %v21632_v5 = vpop.f32.mrb[91].mxu0  ;;  %16847 = vmatprep.mubr.msk.f32.mxu0 %vm327_vm0, %v10757_v17  ;;  %16903 = vmatprep.mubr.msk.f32.mxu1 %vm327_vm0, %v10757_v17  ;;  %v10762_v17 = vld [vmem:[%s18718_s28 + $0xdd] sm:$0xff]  ;;  %v10763_v35 = vld [vmem:[%s18718_s28 + $0xe5] sm:$0xff] }
 0x45c   : > { %v8963_v44 = vpop.f32.mrb[91].mxu1  ;;  %v18260_v24 = vpop.eup %18259  ;;  %v9394_v4 = vmul.f32 %v18258_v39, %v9099_v6  ;;  %18277 = vrcp.f32 %v9293_v25  ;;  %v9103_v59 = vadd.f32 %v21566_v3, %v21541_v46  ;;  %v9106_v6 = vadd.f32 %v21552_v51, %v21566_v3 }
 0x45d   : > { %v9156_v55 = vadd.f32 %v21477_v34, %v8963_v44  ;;  %v18262_v15 = vpop.eup %18261  ;;  %13663 = vst.msk [vmem:[%s19807_s23 + $0x268] sm:$0xff] %vm3284_vm1, %v9395_v12  ;;  %v9292_v18 = vadd.f32 1.0, %v18260_v24  ;;  %18279 = vpow2.f32 %v13639_v53  ;;  %v13641_v19 = vmul.f32 -1.442695, %v9157_v0  ;;  %v21647_v61 = vpop.f32.mrb[92].mxu0 }
 0x45e   : > { %v18264_v36 = vpop.eup %18263  ;;  %13662 = vst.msk [vmem:[%s19807_s23 + $0x260] sm:$0xff] %vm3284_vm1, %v9394_v4  ;;  %v9295_v43 = vadd.f32 1.0, %v18262_v15  ;;  %18281 = vpow2.f32 %v13638_v48  ;;  %v16572_v60 = vpop.f32.mrb[92].mxu1  ;;  %16848 = vmatmul.mubr.msk.f32.gmra.mrb[126].mxu0 %vm327_vm0, %v10758_v8  ;;  %16904 = vmatmul.mubr.msk.f32.gmra.mrb[126].mxu1 %vm327_vm0, %v10758_v8 }
 0x45f   : > { %v18266_v47 = vpop.eup %18265  ;;  %v9397_v63 = vmul.f32 %v18264_v36, %v9102_v62  ;;  %18283 = vrcp.f32 %v9292_v18  ;;  %v13640_v2 = vmul.f32 -1.442695, %v9156_v55  ;;  %v9159_v29 = vadd.f32 %v16572_v60, %v21477_v34  ;;  %v21650_v50 = vpop.f32.mrb[93].mxu0  ;;  %16850 = vmatprep.mubr.msk.f32.mxu0 %vm327_vm0, %v10759_v49  ;;  %16906 = vmatprep.mubr.msk.f32.mxu1 %vm327_vm0, %v10759_v49  ;;  %v10764_v49 = vld [vmem:[%s18718_s28 + $0xed] sm:$0xff] }
 0x460   : > { %v8973_v11 = vpop.f32.mrb[93].mxu1  ;;  %18285 = vrcp.f32 %v9295_v43  ;;  %v9294_v56 = vadd.f32 1.0, %v18266_v47  ;;  %v9105_v62 = vadd.f32 %v21566_v3, %v21555_v37  ;;  %v9108_v43 = vadd.f32 %v21568_v45, %v21566_v3 }
 0x461   : > { %v9158_v28 = vadd.f32 %v21477_v34, %v8973_v11  ;;  %v18268_v14 = vpop.eup %18267  ;;  %13665 = vst.msk [vmem:[%s19807_s23 + $0x278] sm:$0xff] %vm3284_vm1, %v9397_v63  ;;  %18287 = vpow2.f32 %v13641_v19  ;;  %v13643_v9 = vmul.f32 -1.442695, %v9159_v29  ;;  %v21665_v33 = vpop.f32.mrb[94].mxu0  ;;  %v10765_v63 = vld [vmem:[%s18718_s28 + $0xf5] sm:$0xff] }
 0x462   : > { %v18270_v20 = vpop.eup %18269  ;;  %v9396_v32 = vmul.f32 %v18268_v14, %v9101_v22  ;;  %18289 = vrcp.f32 %v9294_v56  ;;  %v16575_v40 = vpop.f32.mrb[94].mxu1  ;;  %16851 = vmatmul.mubr.msk.f32.gmra.mrb[128].mxu0 %vm327_vm0, %v10760_v41  ;;  %16907 = vmatmul.mubr.msk.f32.gmra.mrb[128].mxu1 %vm327_vm0, %v10760_v41  ;;  %v9107_v41 = vadd.f32 %v21566_v3, %v21571_v27  ;;  %v10766_v27 = vld [vmem:[%s18718_s28 + $0xfd] sm:$0xff] }
 0x463   : > { %v13642_v30 = vmul.f32 -1.442695, %v9158_v28  ;;  %v18272_v57 = vpop.eup %18271  ;;  %v9399_v38 = vmul.f32 %v18270_v20, %v9104_v26  ;;  %18291 = vpow2.f32 %v13640_v2  ;;  %v9161_v58 = vadd.f32 %v16575_v40, %v21477_v34  ;;  %v21668_v16 = vpop.f32.mrb[95].mxu0  ;;  %16853 = vmatprep.mubr.msk.f32.mxu0 %vm327_vm0, %v10761_v21  ;;  %16909 = vmatprep.mubr.msk.f32.mxu1 %vm327_vm0, %v10761_v21 }
 0x464   : > { %v8983_v54 = vpop.f32.mrb[95].mxu1  ;;  %v18274_v7 = vpop.eup %18273  ;;  %13664 = vst.msk [vmem:[%s19807_s23 + $0x270] sm:$0xff] %vm3284_vm1, %v9396_v32  ;;  %v9297_v31 = vadd.f32 1.0, %v18272_v57  ;;  %18293 = vpow2.f32 %v13643_v9  ;;  %v10767_v57 = vld [vmem:[%s18718_s28 + $0x105] sm:$0xff] }
 0x465   : > { %v9160_v53 = vadd.f32 %v21477_v34, %v8983_v54  ;;  %v18276_v13 = vpop.eup %18275  ;;  %13667 = vst.msk [vmem:[%s19807_s23 + $0x288] sm:$0xff] %vm3284_vm1, %v9399_v38  ;;  %v9296_v25 = vadd.f32 1.0, %v18274_v7  ;;  %18295 = vpow2.f32 %v13642_v30  ;;  %v13645_v48 = vmul.f32 -1.442695, %v9161_v58  ;;  %v21685_v0 = vpop.f32.mrb[96].mxu0 }
 0x466   : > { %v18278_v46 = vpop.eup %18277  ;;  %v9398_v39 = vmul.f32 %v18276_v13, %v9103_v59  ;;  %18297 = vrcp.f32 %v9297_v31  ;;  %v16578_v44 = vpop.f32.mrb[96].mxu1  ;;  %16854 = vmatmul.mubr.msk.f32.gmra.mrb[130].mxu0 %vm327_vm0, %v10762_v17  ;;  %16910 = vmatmul.mubr.msk.f32.gmra.mrb[130].mxu1 %vm327_vm0, %v10762_v17  ;;  %v9110_v58 = vadd.f32 %v21587_v10, %v21566_v3 }
 0x467   : > { %v13644_v12 = vmul.f32 -1.442695, %v9160_v53  ;;  %v18280_v24 = vpop.eup %18279  ;;  %v9401_v4 = vmul.f32 %v18278_v46, %v9106_v6  ;;  %18299 = vrcp.f32 %v9296_v25  ;;  %v9163_v55 = vadd.f32 %v16578_v44, %v21477_v34  ;;  %v21688_v51 = vpop.f32.mrb[97].mxu0  ;;  %16856 = vmatprep.mubr.msk.f32.mxu0 %vm327_vm0, %v10763_v35  ;;  %16912 = vmatprep.mubr.msk.f32.mxu1 %vm327_vm0, %v10763_v35 }
 0x468   : > { %v8993_v8 = vpop.f32.mrb[97].mxu1  ;;  %v18282_v15 = vpop.eup %18281  ;;  %13666 = vst.msk [vmem:[%s19807_s23 + $0x280] sm:$0xff] %vm3284_vm1, %v9398_v39  ;;  %v9299_v18 = vadd.f32 1.0, %v18280_v24  ;;  %18301 = vpow2.f32 %v13645_v48  ;;  %v9109_v48 = vadd.f32 %v21566_v3, %v21590_v23  ;;  %v10768_v39 = vld [vmem:[%s18718_s28 + $0x10d] sm:$0xff]  ;;  %v9112_v23 = vadd.f32 %v21609_v1, %v21566_v3 }
 0x469   : > { %v9162_v19 = vadd.f32 %v21477_v34, %v8993_v8  ;;  %v18284_v36 = vpop.eup %18283  ;;  %13669 = vst.msk [vmem:[%s19807_s23 + $0x298] sm:$0xff] %vm3284_vm1, %v9401_v4  ;;  %v9298_v60 = vadd.f32 1.0, %v18282_v15  ;;  %18303 = vpow2.f32 %v13644_v12  ;;  %v13647_v47 = vmul.f32 -1.442695, %v9163_v55  ;;  %v21705_v11 = vpop.f32.mrb[98].mxu0  ;;  %v10769_v4 = vld [vmem:[%s18718_s28 + $0x115] sm:$0xff] }
 0x46a   : > { %v18286_v37 = vpop.eup %18285  ;;  %v9400_v2 = vmul.f32 %v18284_v36, %v9105_v62  ;;  %18305 = vrcp.f32 %v9299_v18  ;;  %v16581_v22 = vpop.f32.mrb[98].mxu1  ;;  %16857 = vmatmul.mubr.msk.f32.gmra.mrb[132].mxu0 %vm327_vm0, %v10764_v49  ;;  %16913 = vmatmul.mubr.msk.f32.gmra.mrb[132].mxu1 %vm327_vm0, %v10764_v49 }
 0x46b   : > { %v13646_v29 = vmul.f32 -1.442695, %v9162_v19  ;;  %v18288_v56 = vpop.eup %18287  ;;  %v9403_v28 = vmul.f32 %v18286_v37, %v9108_v43  ;;  %18307 = vrcp.f32 %v9298_v60  ;;  %v9165_v45 = vadd.f32 %v16581_v22, %v21477_v34  ;;  %v21710_v14 = vpop.f32.mrb[99].mxu0  ;;  %16859 = vmatprep.mubr.msk.f32.mxu0 %vm327_vm0, %v10765_v63  ;;  %16915 = vmatprep.mubr.msk.f32.mxu1 %vm327_vm0, %v10765_v63 }
 0x46c   : > { %v9003_v26 = vpop.f32.mrb[99].mxu1  ;;  %v18290_v9 = vpop.eup %18289  ;;  %13668 = vst.msk [vmem:[%s19807_s23 + $0x290] sm:$0xff] %vm3284_vm1, %v9400_v2  ;;  %v9301_v21 = vadd.f32 1.0, %v18288_v56  ;;  %18309 = vpow2.f32 %v13647_v47  ;;  %v9111_v47 = vadd.f32 %v21566_v3, %v21612_v52  ;;  %v10770_v2 = vld [vmem:[%s18718_s28 + $0x11d] sm:$0xff]  ;;  %v9114_v52 = vadd.f32 %v21629_v42, %v21566_v3 }
 0x46d   : > { %v9164_v20 = vadd.f32 %v21477_v34, %v9003_v26  ;;  %v18292_v32 = vpop.eup %18291  ;;  %13671 = vst.msk [vmem:[%s19807_s23 + $0x2a8] sm:$0xff] %vm3284_vm1, %v9403_v28  ;;  %v9402_v30 = vmul.f32 %v18290_v9, %v9107_v41  ;;  %18311 = vpow2.f32 %v13646_v29  ;;  %v13649_v40 = vmul.f32 -1.442695, %v9165_v45  ;;  %v21725_v7 = vpop.f32.mrb[100].mxu0  ;;  %v10771_v28 = vld [vmem:[%s18718_s28 + $0x125] sm:$0xff] }
 0x46e   : > { %v18294_v38 = vpop.eup %18293  ;;  %18313 = vrcp.f32 %v9301_v21  ;;  %v9300_v54 = vadd.f32 1.0, %v18292_v32  ;;  %v16584_v59 = vpop.f32.mrb[100].mxu1  ;;  %16860 = vmatmul.mubr.msk.f32.gmra.mrb[134].mxu0 %vm327_vm0, %v10766_v27  ;;  %16916 = vmatmul.mubr.msk.f32.gmra.mrb[134].mxu1 %vm327_vm0, %v10766_v27 }
 0x46f   : > { %v18296_v31 = vpop.eup %18295  ;;  %13670 = vst.msk [vmem:[%s19807_s23 + $0x2a0] sm:$0xff] %vm3284_vm1, %v9402_v30  ;;  %v9303_v53 = vadd.f32 1.0, %v18294_v38  ;;  %18315 = vpow2.f32 %v13649_v40  ;;  %v13648_v17 = vmul.f32 -1.442695, %v9164_v20  ;;  %v9167_v13 = vadd.f32 %v16584_v59, %v21477_v34  ;;  %v21730_v6 = vpop.f32.mrb[101].mxu0  ;;  %16862 = vmatprep.mubr.msk.f32.mxu0 %vm327_vm0, %v10767_v57  ;;  %16918 = vmatprep.mubr.msk.f32.mxu1 %vm327_vm0, %v10767_v57 }
 0x470   : > { %v9013_v25 = vpop.f32.mrb[101].mxu1  ;;  %v18298_v10 = vpop.eup %18297  ;;  %18317 = vrcp.f32 %v9300_v54  ;;  %v9302_v35 = vadd.f32 1.0, %v18296_v31  ;;  %v9113_v31 = vadd.f32 %v21566_v3, %v21632_v5  ;;  %v9115_v5 = vadd.f32 %v21566_v3, %v21650_v50  ;;  %v10774_v50 = vld [vmem:[%s18718_s28 + $0x13d] sm:$0xff] }
 0x471   : > { %v9166_v46 = vadd.f32 %v21477_v34, %v9013_v25  ;;  %v18300_v12 = vpop.eup %18299  ;;  %v9405_v44 = vmul.f32 %v18298_v10, %v9110_v58  ;;  %18319 = vrcp.f32 %v9303_v53  ;;  %v13651_v24 = vmul.f32 -1.442695, %v9167_v13  ;;  %v21743_v15 = vpop.f32.mrb[102].mxu0  ;;  %v10772_v58 = vld [vmem:[%s18718_s28 + $0x12d] sm:$0xff] }
 0x472   : > { %v18302_v55 = vpop.eup %18301  ;;  %v9404_v8 = vmul.f32 %v18300_v12, %v9109_v48  ;;  %18321 = vrcp.f32 %v9302_v35  ;;  %v16587_v62 = vpop.f32.mrb[102].mxu1  ;;  %16863 = vmatmul.mubr.msk.f32.gmra.mrb[136].mxu0 %vm327_vm0, %v10768_v39  ;;  %16919 = vmatmul.mubr.msk.f32.gmra.mrb[136].mxu1 %vm327_vm0, %v10768_v39  ;;  %v9116_v25 = vadd.f32 %v21647_v61, %v21566_v3 }
 0x473   : > { %v18304_v18 = vpop.eup %18303  ;;  %13673 = vst.msk [vmem:[%s19807_s23 + $0x2b8] sm:$0xff] %vm3284_vm1, %v9405_v44  ;;  %v9305_v19 = vadd.f32 1.0, %v18302_v55  ;;  %18323 = vpow2.f32 %v13648_v17  ;;  %v13650_v49 = vmul.f32 -1.442695, %v9166_v46  ;;  %v9169_v36 = vadd.f32 %v16587_v62, %v21477_v34  ;;  %v21748_v43 = vpop.f32.mrb[103].mxu0  ;;  %16865 = vmatprep.mubr.msk.f32.mxu0 %vm327_vm0, %v10769_v4  ;;  %16921 = vmatprep.mubr.msk.f32.mxu1 %vm327_vm0, %v10769_v4  ;;  %v10773_v17 = vld [vmem:[%s18718_s28 + $0x135] sm:$0xff] }
 0x474   : > { %v9023_v60 = vpop.f32.mrb[103].mxu1  ;;  %v18306_v1 = vpop.eup %18305  ;;  %13672 = vst.msk [vmem:[%s19807_s23 + $0x2b0] sm:$0xff] %vm3284_vm1, %v9404_v8  ;;  %v9304_v63 = vadd.f32 1.0, %v18304_v18  ;;  %18325 = vpow2.f32 %v13651_v24 }
 0x475   : > { %v9168_v37 = vadd.f32 %v21477_v34, %v9023_v60  ;;  %v18308_v29 = vpop.eup %18307  ;;  %v9407_v22 = vmul.f32 %v18306_v1, %v9112_v23  ;;  %18327 = vrcp.f32 %v9305_v19  ;;  %v13653_v56 = vmul.f32 -1.442695, %v9169_v36  ;;  %v21763_v26 = vpop.f32.mrb[104].mxu0  ;;  %v11449_v19 = vld [vmem:[%s18718_s28 + $0x26] sm:$0xff] }
 0x476   : > { %v18310_v41 = vpop.eup %18309  ;;  %v9406_v45 = vmul.f32 %v18308_v29, %v9111_v47  ;;  %18329 = vrcp.f32 %v9304_v63  ;;  %v16590_v9 = vpop.f32.mrb[104].mxu1  ;;  %16866 = vmatmul.mubr.msk.f32.gmra.mrb[138].mxu0 %vm327_vm0, %v10770_v2  ;;  %16922 = vmatmul.mubr.msk.f32.gmra.mrb[138].mxu1 %vm327_vm0, %v10770_v2  ;;  %v9118_v36 = vadd.f32 %v21665_v33, %v21566_v3  ;;  %v9117_v47 = vadd.f32 %v21566_v3, %v21668_v16  ;;  %v11450_v2 = vld [vmem:[%s18718_s28 + $0x2e] sm:$0xff]  ;;  %v11451_v16 = vld [vmem:[%s18718_s28 + $0x36] sm:$0xff] }
 0x477   : > { %v18312_v21 = vpop.eup %18311  ;;  %13675 = vst.msk [vmem:[%s19807_s23 + $0x2c8] sm:$0xff] %vm3284_vm1, %v9407_v22  ;;  %v9307_v20 = vadd.f32 1.0, %v18310_v41  ;;  %18331 = vpow2.f32 %v13650_v49  ;;  %v13652_v27 = vmul.f32 -1.442695, %v9168_v37  ;;  %v9171_v32 = vadd.f32 %v16590_v9, %v21477_v34  ;;  %v21768_v30 = vpop.f32.mrb[105].mxu0  ;;  %16868 = vmatprep.mubr.msk.f32.mxu0 %vm327_vm0, %v10771_v28  ;;  %16924 = vmatprep.mubr.msk.f32.mxu1 %vm327_vm0, %v10771_v28 }
 0x478   : > { %v9033_v40 = vpop.f32.mrb[105].mxu1  ;;  %v18314_v42 = vpop.eup %18313  ;;  %13674 = vst.msk [vmem:[%s19807_s23 + $0x2c0] sm:$0xff] %vm3284_vm1, %v9406_v45  ;;  %v9306_v57 = vadd.f32 1.0, %v18312_v21  ;;  %18333 = vpow2.f32 %v13653_v56  ;;  %v9120_v28 = vadd.f32 %v21685_v0, %v21566_v3  ;;  %v11452_v0 = vld [vmem:[%s18718_s28 + $0x3e] sm:$0xff] }
 0x479   : > { %v9170_v38 = vadd.f32 %v21477_v34, %v9033_v40  ;;  %v18316_v54 = vpop.eup %18315  ;;  %v9409_v59 = vmul.f32 %v18314_v42, %v9114_v52  ;;  %18335 = vrcp.f32 %v9307_v20  ;;  %v13655_v53 = vmul.f32 -1.442695, %v9171_v32  ;;  %v21783_v35 = vpop.f32.mrb[106].mxu0  ;;  %v11453_v40 = vld [vmem:[%s18718_s28 + $0x46] sm:$0xff] }
 0x47a   : > { %v18318_v13 = vpop.eup %18317  ;;  %18337 = vrcp.f32 %v9306_v57  ;;  %v9309_v10 = vadd.f32 1.0, %v18316_v54  ;;  %v16593_v46 = vpop.f32.mrb[106].mxu1  ;;  %16869 = vmatmul.mubr.msk.f32.gmra.mrb[140].mxu0 %vm327_vm0, %v10772_v58  ;;  %16925 = vmatmul.mubr.msk.f32.gmra.mrb[140].mxu1 %vm327_vm0, %v10772_v58  ;;  %v9119_v52 = vadd.f32 %v21566_v3, %v21688_v51  ;;  %v9122_v51 = vadd.f32 %v21705_v11, %v21566_v3 }
 0x47b   : > { %v13654_v48 = vmul.f32 -1.442695, %v9170_v38  ;;  %v18320_v39 = vpop.eup %18319  ;;  %13677 = vst.msk [vmem:[%s19807_s23 + $0x2d8] sm:$0xff] %vm3284_vm1, %v9409_v59  ;;  %v9408_v12 = vmul.f32 %v18318_v13, %v9113_v31  ;;  %18339 = vpow2.f32 %v13652_v27  ;;  %v9173_v44 = vadd.f32 %v16593_v46, %v21477_v34  ;;  %v21790_v24 = vpop.f32.mrb[107].mxu0  ;;  %16871 = vmatprep.mubr.msk.f32.mxu0 %vm327_vm0, %v10773_v17  ;;  %16927 = vmatprep.mubr.msk.f32.mxu1 %vm327_vm0, %v10773_v17  ;;  %v11454_v59 = vld [vmem:[%s18718_s28 + $0x4e] sm:$0xff]  ;;  %v11455_v13 = vld [vmem:[%s18718_s28 + $0x56] sm:$0xff] }
 0x47c   : > { %v9043_v61 = vpop.f32.mrb[107].mxu1  ;;  %v18322_v4 = vpop.eup %18321  ;;  %v9411_v55 = vmul.f32 %v18320_v39, %v9116_v25  ;;  %18341 = vrcp.f32 %v9309_v10  ;;  %v9124_v10 = vadd.f32 %v21725_v7, %v21566_v3  ;;  %v9123_v7 = vadd.f32 %v21566_v3, %v21730_v6  ;;  %v11458_v6 = vld [vmem:[%s18718_s28 + $0x6e] sm:$0xff] }
 0x47d   : > { %v9172_v8 = vadd.f32 %v21477_v34, %v9043_v61  ;;  %v18324_v23 = vpop.eup %18323  ;;  %13676 = vst.msk [vmem:[%s19807_s23 + $0x2d0] sm:$0xff] %vm3284_vm1, %v9408_v12  ;;  %v9410_v62 = vmul.f32 %v18322_v4, %v9115_v5  ;;  %18343 = vpow2.f32 %v13655_v53  ;;  %v13657_v18 = vmul.f32 -1.442695, %v9173_v44  ;;  %v11456_v5 = vld [vmem:[%s18718_s28 + $0x5e] sm:$0xff]  ;;  %v11457_v61 = vld [vmem:[%s18718_s28 + $0x66] sm:$0xff] }
 0x47e   : > { %v18326_v49 = vpop.eup %18325  ;;  %13679 = vst.msk [vmem:[%s19807_s23 + $0x2e8] sm:$0xff] %vm3284_vm1, %v9411_v55  ;;  %v9308_v34 = vadd.f32 1.0, %v18324_v23  ;;  %18345 = vpow2.f32 %v13654_v48  ;;  %16872 = vmatmul.mubr.msk.f32.gmra.mrb[142].mxu0 %vm327_vm0, %v10774_v50  ;;  %16928 = vmatmul.mubr.msk.f32.gmra.mrb[142].mxu1 %vm327_vm0, %v10774_v50  ;;  %v9121_v53 = vadd.f32 %v21566_v3, %v21710_v14  ;;  %v9126_v55 = vadd.f32 %v21743_v15, %v21566_v3 }
 0x47f   : > { %v13656_v60 = vmul.f32 -1.442695, %v9172_v8  ;;  %v18328_v1 = vpop.eup %18327  ;;  %13678 = vst.msk [vmem:[%s19807_s23 + $0x2e0] sm:$0xff] %vm3284_vm1, %v9410_v62  ;;  %v9311_v63 = vadd.f32 1.0, %v18326_v49  ;;  %18347 = vpow2.f32 %v13657_v18  ;;  %16932 = vmatprep.mubr.msk.f32.mxu0 %vm327_vm0, %v11449_v19  ;;  %16988 = vmatprep.mubr.msk.f32.mxu1 %vm327_vm0, %v11449_v19  ;;  %v9125_v15 = vadd.f32 %v21566_v3, %v21748_v43  ;;  %v11459_v62 = vld [vmem:[%s18718_s28 + $0x76] sm:$0xff]  ;;  %v11460_v43 = vld [vmem:[%s18718_s28 + $0x7e] sm:$0xff] }
 0x480   : > { %v18330_v37 = vpop.eup %18329  ;;  %v9413_v33 = vmul.f32 %v18328_v1, %v9118_v36  ;;  %18349 = vrcp.f32 %v9308_v34  ;;  %v9128_v49 = vadd.f32 %v21763_v26, %v21566_v3  ;;  %v9127_v34 = vadd.f32 %v21566_v3, %v21768_v30 }
 0x481   : > { %v18332_v29 = vpop.eup %18331  ;;  %v9412_v22 = vmul.f32 %v18330_v37, %v9117_v47  ;;  %18351 = vrcp.f32 %v9311_v63  ;;  %v9130_v1 = vadd.f32 %v21783_v35, %v21566_v3  ;;  %v11461_v47 = vld [vmem:[%s18718_s28 + $0x86] sm:$0xff]  ;;  %v11462_v35 = vld [vmem:[%s18718_s28 + $0x8e] sm:$0xff] }
 0x482   : > { %v18334_v56 = vpop.eup %18333  ;;  %13681 = vst.msk [vmem:[%s19807_s23 + $0x2f8] sm:$0xff] %vm3284_vm1, %v9413_v33  ;;  %v9310_v41 = vadd.f32 1.0, %v18332_v29  ;;  %18353 = vpow2.f32 %v13656_v60  ;;  %16933 = vmatmul.mubr.msk.f32.vlgmr.msra.gmra.mrb[108].mxu0 %vm327_vm0, %v11450_v2  ;;  %16989 = vmatmul.mubr.msk.f32.vlgmr.msra.gmra.mrb[108].mxu1 %vm327_vm0, %v11450_v2  ;;  %v9129_v33 = vadd.f32 %v21566_v3, %v21790_v24  ;;  %v11463_v29 = vld [vmem:[%s18718_s28 + $0x96] sm:$0xff]  ;;  %v11464_v3 = vld [vmem:[%s18718_s28 + $0x9e] sm:$0xff]  ;;  %v11465_v24 = vld [vmem:[%s18718_s28 + $0xa6] sm:$0xff] }
 0x483   : > { %v18336_v45 = vpop.eup %18335  ;;  %13680 = vst.msk [vmem:[%s19807_s23 + $0x2f0] sm:$0xff] %vm3284_vm1, %v9412_v22  ;;  %v9313_v9 = vadd.f32 1.0, %v18334_v56  ;;  %16935 = vmatprep.mubr.msk.f32.mxu0 %vm327_vm0, %v11451_v16  ;;  %16991 = vmatprep.mubr.msk.f32.mxu1 %vm327_vm0, %v11451_v16  ;;  %v11466_v16 = vld [vmem:[%s18718_s28 + $0xae] sm:$0xff]  ;;  %v11467_v56 = vld [vmem:[%s18718_s28 + $0xb6] sm:$0xff] }
 0x484   : > { %v18338_v21 = vpop.eup %18337  ;;  %v9415_v20 = vmul.f32 %v18336_v45, %v9120_v28  ;;  %18355 = vrcp.f32 %v9310_v41  ;;  %v11468_v28 = vld [vmem:[%s18718_s28 + $0xbe] sm:$0xff]  ;;  %v11469_v41 = vld [vmem:[%s18718_s28 + $0xc6] sm:$0xff]  ;;  %v11470_v45 = vld [vmem:[%s18718_s28 + $0xce] sm:$0xff] }
 0x485   : > { %v18340_v27 = vpop.eup %18339  ;;  %v9414_v32 = vmul.f32 %v18338_v21, %v9119_v52  ;;  %18357 = vrcp.f32 %v9313_v9  ;;  %v11471_v52 = vld [vmem:[%s18718_s28 + $0xd6] sm:$0xff]  ;;  %v11472_v9 = vld [vmem:[%s18718_s28 + $0xde] sm:$0xff]  ;;  %v11473_v21 = vld [vmem:[%s18718_s28 + $0xe6] sm:$0xff] }
 0x486   : > { %v18342_v42 = vpop.eup %18341  ;;  %13683 = vst.msk [vmem:[%s19807_s23 + $0x308] sm:$0xff] %vm3284_vm1, %v9415_v20  ;;  %v9312_v57 = vadd.f32 1.0, %v18340_v27  ;;  %16936 = vmatmul.mubr.msk.f32.gmra.mrb[110].mxu0 %vm327_vm0, %v11452_v0  ;;  %16992 = vmatmul.mubr.msk.f32.gmra.mrb[110].mxu1 %vm327_vm0, %v11452_v0  ;;  %v11474_v20 = vld [vmem:[%s18718_s28 + $0xee] sm:$0xff]  ;;  %v11475_v0 = vld [vmem:[%s18718_s28 + $0xf6] sm:$0xff]  ;;  %v11476_v27 = vld [vmem:[%s18718_s28 + $0xfe] sm:$0xff] }
 0x487   : > { %v18344_v38 = vpop.eup %18343  ;;  %13682 = vst.msk [vmem:[%s19807_s23 + $0x300] sm:$0xff] %vm3284_vm1, %v9414_v32  ;;  %v9417_v58 = vmul.f32 %v18342_v42, %v9122_v51  ;;  %16938 = vmatprep.mubr.msk.f32.mxu0 %vm327_vm0, %v11453_v40  ;;  %16994 = vmatprep.mubr.msk.f32.mxu1 %vm327_vm0, %v11453_v40  ;;  %v11477_v32 = vld [vmem:[%s18718_s28 + $0x106] sm:$0xff]  ;;  %v11478_v51 = vld [vmem:[%s18718_s28 + $0x10e] sm:$0xff]  ;;  %v11479_v40 = vld [vmem:[%s18718_s28 + $0x116] sm:$0xff] }
 0x488   : > { %v18346_v54 = vpop.eup %18345  ;;  %18359 = vrcp.f32 %v9312_v57  ;;  %v9315_v11 = vadd.f32 1.0, %v18344_v38  ;;  %v11480_v42 = vld [vmem:[%s18718_s28 + $0x11e] sm:$0xff]  ;;  %v11481_v57 = vld [vmem:[%s18718_s28 + $0x126] sm:$0xff]  ;;  %v11482_v38 = vld [vmem:[%s18718_s28 + $0x12e] sm:$0xff] }
 0x489   : > { %v18348_v31 = vpop.eup %18347  ;;  %13685 = vst.msk [vmem:[%s19807_s23 + $0x318] sm:$0xff] %vm3284_vm1, %v9417_v58  ;;  %v9314_v17 = vadd.f32 1.0, %v18346_v54  ;;  %v11483_v58 = vld [vmem:[%s18718_s28 + $0x136] sm:$0xff]  ;;  %v11484_v54 = vld [vmem:[%s18718_s28 + $0x13e] sm:$0xff] }
 0x48a   : > { %v18350_v25 = vpop.eup %18349  ;;  %18361 = vrcp.f32 %v9315_v11  ;;  %v9317_v48 = vadd.f32 1.0, %v18348_v31  ;;  %16939 = vmatmul.mubr.msk.f32.gmra.mrb[112].mxu0 %vm327_vm0, %v11454_v59  ;;  %16995 = vmatmul.mubr.msk.f32.gmra.mrb[112].mxu1 %vm327_vm0, %v11454_v59  ;;  %v21970_v11 = vld [vmem:[#allocation4] ss:$0 sm:$0xff] }
 0x48b   : > { %v18352_v46 = vpop.eup %18351  ;;  %v9416_v39 = vmul.f32 %v18350_v25, %v9121_v53  ;;  %18363 = vrcp.f32 %v9314_v17  ;;  %16941 = vmatprep.mubr.msk.f32.mxu0 %vm327_vm0, %v11455_v13  ;;  %16997 = vmatprep.mubr.msk.f32.mxu1 %vm327_vm0, %v11455_v13 }
 0x48c   : > { %v18354_v14 = vpop.eup %18353  ;;  %v9419_v12 = vmul.f32 %v18352_v46, %v9124_v10  ;;  %18365 = vrcp.f32 %v9317_v48 }
 0x48d   : > { %13684 = vst.msk [vmem:[%s19807_s23 + $0x310] sm:$0xff] %vm3284_vm1, %v9416_v39  ;;  %v9316_v44 = vadd.f32 1.0, %v18354_v14 }
 0x48e   : > { %v18356_v4 = vpop.eup %18355  ;;  %13687 = vst.msk [vmem:[%s19807_s23 + $0x328] sm:$0xff] %vm3284_vm1, %v9419_v12  ;;  %16942 = vmatmul.mubr.msk.f32.gmra.mrb[114].mxu0 %vm327_vm0, %v11456_v5  ;;  %16998 = vmatmul.mubr.msk.f32.gmra.mrb[114].mxu1 %vm327_vm0, %v11456_v5 }
 0x48f   : > { %v18358_v8 = vpop.eup %18357  ;;  %v9418_v50 = vmul.f32 %v18356_v4, %v9123_v7  ;;  %18367 = vrcp.f32 %v9316_v44  ;;  %16944 = vmatprep.mubr.msk.f32.mxu0 %vm327_vm0, %v11457_v61  ;;  %17000 = vmatprep.mubr.msk.f32.mxu1 %vm327_vm0, %v11457_v61 }
 0x490   : > { %v9421_v23 = vmul.f32 %v18358_v8, %v9126_v55 }
 0x491   : > { %13686 = vst.msk [vmem:[%s19807_s23 + $0x320] sm:$0xff] %vm3284_vm1, %v9418_v50 }
 0x492   : > { %v18360_v18 = vpop.eup %18359  ;;  %13689 = vst.msk [vmem:[%s19807_s23 + $0x338] sm:$0xff] %vm3284_vm1, %v9421_v23  ;;  %16945 = vmatmul.mubr.msk.f32.gmra.mrb[116].mxu0 %vm327_vm0, %v11458_v6  ;;  %17001 = vmatmul.mubr.msk.f32.gmra.mrb[116].mxu1 %vm327_vm0, %v11458_v6 }
 0x493   : > { %v9420_v19 = vmul.f32 %v18360_v18, %v9125_v15  ;;  %16947 = vmatprep.mubr.msk.f32.mxu0 %vm327_vm0, %v11459_v62  ;;  %17003 = vmatprep.mubr.msk.f32.mxu1 %vm327_vm0, %v11459_v62 }
 0x494   : > { %v18362_v36 = vpop.eup %18361 }
 0x495   : > { %v18364_v60 = vpop.eup %18363  ;;  %13688 = vst.msk [vmem:[%s19807_s23 + $0x330] sm:$0xff] %vm3284_vm1, %v9420_v19  ;;  %v9423_v26 = vmul.f32 %v18362_v36, %v9128_v49 }
 0x496   : > { %v18366_v63 = vpop.eup %18365  ;;  %v9422_v37 = vmul.f32 %v18364_v60, %v9127_v34  ;;  %16948 = vmatmul.mubr.msk.f32.gmra.mrb[118].mxu0 %vm327_vm0, %v11460_v43  ;;  %17004 = vmatmul.mubr.msk.f32.gmra.mrb[118].mxu1 %vm327_vm0, %v11460_v43 }
 0x497   : > { %13691 = vst.msk [vmem:[%s19807_s23 + $0x348] sm:$0xff] %vm3284_vm1, %v9423_v26  ;;  %v9425_v30 = vmul.f32 %v18366_v63, %v9130_v1  ;;  %16950 = vmatprep.mubr.msk.f32.mxu0 %vm327_vm0, %v11461_v47  ;;  %17006 = vmatprep.mubr.msk.f32.mxu1 %vm327_vm0, %v11461_v47 }
 0x498   : > { %13690 = vst.msk [vmem:[%s19807_s23 + $0x340] sm:$0xff] %vm3284_vm1, %v9422_v37 }
 0x499   : > { %v18368_v2 = vpop.eup %18367  ;;  %13693 = vst.msk [vmem:[%s19807_s23 + $0x358] sm:$0xff] %vm3284_vm1, %v9425_v30 }
 0x49a   : > { %v9424_v22 = vmul.f32 %v18368_v2, %v9129_v33  ;;  %16951 = vmatmul.mubr.msk.f32.gmra.mrb[120].mxu0 %vm327_vm0, %v11462_v35  ;;  %17007 = vmatmul.mubr.msk.f32.gmra.mrb[120].mxu1 %vm327_vm0, %v11462_v35 }
 0x49b   : > { %16953 = vmatprep.mubr.msk.f32.mxu0 %vm327_vm0, %v11463_v29  ;;  %17009 = vmatprep.mubr.msk.f32.mxu1 %vm327_vm0, %v11463_v29 }
 0x49c   : > { %13692 = vst.msk [vmem:[%s19807_s23 + $0x350] sm:$0xff] %vm3284_vm1, %v9424_v22 }
 0x49e   : > { %16954 = vmatmul.mubr.msk.f32.gmra.mrb[122].mxu0 %vm327_vm0, %v11464_v3  ;;  %17010 = vmatmul.mubr.msk.f32.gmra.mrb[122].mxu1 %vm327_vm0, %v11464_v3 }
 0x49f   : > { %16956 = vmatprep.mubr.msk.f32.mxu0 %vm327_vm0, %v11465_v24  ;;  %17012 = vmatprep.mubr.msk.f32.mxu1 %vm327_vm0, %v11465_v24 }
 0x4a2   : > { %16957 = vmatmul.mubr.msk.f32.gmra.mrb[124].mxu0 %vm327_vm0, %v11466_v16  ;;  %17013 = vmatmul.mubr.msk.f32.gmra.mrb[124].mxu1 %vm327_vm0, %v11466_v16 }
 0x4a3   : > { %16959 = vmatprep.mubr.msk.f32.mxu0 %vm327_vm0, %v11467_v56  ;;  %17015 = vmatprep.mubr.msk.f32.mxu1 %vm327_vm0, %v11467_v56 }
 0x4a6   : > { %16960 = vmatmul.mubr.msk.f32.gmra.mrb[126].mxu0 %vm327_vm0, %v11468_v28  ;;  %17016 = vmatmul.mubr.msk.f32.gmra.mrb[126].mxu1 %vm327_vm0, %v11468_v28 }
 0x4a7   : > { %16962 = vmatprep.mubr.msk.f32.mxu0 %vm327_vm0, %v11469_v41  ;;  %17018 = vmatprep.mubr.msk.f32.mxu1 %vm327_vm0, %v11469_v41 }
 0x4aa   : > { %16963 = vmatmul.mubr.msk.f32.gmra.mrb[128].mxu0 %vm327_vm0, %v11470_v45  ;;  %17019 = vmatmul.mubr.msk.f32.gmra.mrb[128].mxu1 %vm327_vm0, %v11470_v45 }
 0x4ab   : > { %16965 = vmatprep.mubr.msk.f32.mxu0 %vm327_vm0, %v11471_v52  ;;  %17021 = vmatprep.mubr.msk.f32.mxu1 %vm327_vm0, %v11471_v52 }
 0x4ae   : > { %16966 = vmatmul.mubr.msk.f32.gmra.mrb[130].mxu0 %vm327_vm0, %v11472_v9  ;;  %17022 = vmatmul.mubr.msk.f32.gmra.mrb[130].mxu1 %vm327_vm0, %v11472_v9 }
 0x4af   : > { %16968 = vmatprep.mubr.msk.f32.mxu0 %vm327_vm0, %v11473_v21  ;;  %17024 = vmatprep.mubr.msk.f32.mxu1 %vm327_vm0, %v11473_v21 }
 0x4b2   : > { %16969 = vmatmul.mubr.msk.f32.gmra.mrb[132].mxu0 %vm327_vm0, %v11474_v20  ;;  %17025 = vmatmul.mubr.msk.f32.gmra.mrb[132].mxu1 %vm327_vm0, %v11474_v20 }
 0x4b3   : > { %16971 = vmatprep.mubr.msk.f32.mxu0 %vm327_vm0, %v11475_v0  ;;  %17027 = vmatprep.mubr.msk.f32.mxu1 %vm327_vm0, %v11475_v0 }
 0x4b6   : > { %16972 = vmatmul.mubr.msk.f32.gmra.mrb[134].mxu0 %vm327_vm0, %v11476_v27  ;;  %17028 = vmatmul.mubr.msk.f32.gmra.mrb[134].mxu1 %vm327_vm0, %v11476_v27 }
 0x4b7   : > { %16974 = vmatprep.mubr.msk.f32.mxu0 %vm327_vm0, %v11477_v32  ;;  %17030 = vmatprep.mubr.msk.f32.mxu1 %vm327_vm0, %v11477_v32  ;;  %v22008_v32 = vld [vmem:[#allocation2] ss:$0 sm:$0xff] }
 0x4ba   : > { %16975 = vmatmul.mubr.msk.f32.gmra.mrb[136].mxu0 %vm327_vm0, %v11478_v51  ;;  %17031 = vmatmul.mubr.msk.f32.gmra.mrb[136].mxu1 %vm327_vm0, %v11478_v51 }
 0x4bb   : > { %16977 = vmatprep.mubr.msk.f32.mxu0 %vm327_vm0, %v11479_v40  ;;  %17033 = vmatprep.mubr.msk.f32.mxu1 %vm327_vm0, %v11479_v40 }
 0x4be   : > { %16978 = vmatmul.mubr.msk.f32.gmra.mrb[138].mxu0 %vm327_vm0, %v11480_v42  ;;  %17034 = vmatmul.mubr.msk.f32.gmra.mrb[138].mxu1 %vm327_vm0, %v11480_v42 }
 0x4bf   : > { %16980 = vmatprep.mubr.msk.f32.mxu0 %vm327_vm0, %v11481_v57  ;;  %17036 = vmatprep.mubr.msk.f32.mxu1 %vm327_vm0, %v11481_v57 }
 0x4c2   : > { %16981 = vmatmul.mubr.msk.f32.gmra.mrb[140].mxu0 %vm327_vm0, %v11482_v38  ;;  %17037 = vmatmul.mubr.msk.f32.gmra.mrb[140].mxu1 %vm327_vm0, %v11482_v38 }
 0x4c3   : > { %16983 = vmatprep.mubr.msk.f32.mxu0 %vm327_vm0, %v11483_v58  ;;  %17039 = vmatprep.mubr.msk.f32.mxu1 %vm327_vm0, %v11483_v58 }
 0x4c6   : > { %16984 = vmatmul.mubr.msk.f32.gmra.mrb[142].mxu0 %vm327_vm0, %v11484_v54  ;;  %17040 = vmatmul.mubr.msk.f32.gmra.mrb[142].mxu1 %vm327_vm0, %v11484_v54 }
 0x555   : > { %v21972_v59 = vpop.f32.mrb[108].mxu0  ;;  %v16990_v31 = vpop.f32.mrb[108].mxu1 }
 0x556   : > { %v12210_v53 = vadd.f32 %v16990_v31, %v21970_v11  ;;  %v21975_v17 = vpop.f32.mrb[109].mxu0  ;;  %v11944_v13 = vpop.f32.mrb[109].mxu1 }
 0x557   : > { %v12209_v25 = vadd.f32 %v21970_v11, %v11944_v13 }
 0x558   : > { %v13993_v10 = vmul.f32 -1.442695, %v12210_v53 }
 0x559   : > { %v13992_v48 = vmul.f32 -1.442695, %v12209_v25  ;;  %v21978_v46 = vpop.f32.mrb[110].mxu0  ;;  %v16993_v39 = vpop.f32.mrb[110].mxu1 }
 0x55a   : > { %18369 = vpow2.f32 %v13993_v10  ;;  %v12212_v14 = vadd.f32 %v16993_v39, %v21970_v11  ;;  %v21981_v12 = vpop.f32.mrb[111].mxu0  ;;  %v11954_v5 = vpop.f32.mrb[111].mxu1 }
 0x55b   : > { %18371 = vpow2.f32 %v13992_v48  ;;  %v12211_v7 = vadd.f32 %v21970_v11, %v11954_v5  ;;  %v12167_v48 = vadd.f32 %v21972_v59, %v22008_v32  ;;  %v12166_v5 = vadd.f32 %v22008_v32, %v21975_v17 }
 0x55c   : > { %v13995_v44 = vmul.f32 -1.442695, %v12212_v14 }
 0x55d   : > { %v13994_v61 = vmul.f32 -1.442695, %v12211_v7  ;;  %v21984_v4 = vpop.f32.mrb[112].mxu0  ;;  %v16996_v55 = vpop.f32.mrb[112].mxu1 }
 0x55e   : > { %18373 = vpow2.f32 %v13995_v44  ;;  %v12214_v8 = vadd.f32 %v16996_v55, %v21970_v11  ;;  %v21987_v50 = vpop.f32.mrb[113].mxu0  ;;  %v11964_v23 = vpop.f32.mrb[113].mxu1 }
 0x55f   : > { %18375 = vpow2.f32 %v13994_v61  ;;  %v12213_v6 = vadd.f32 %v21970_v11, %v11964_v23 }
 0x560   : > { %v13997_v15 = vmul.f32 -1.442695, %v12214_v8 }
 0x561   : > { %v13996_v62 = vmul.f32 -1.442695, %v12213_v6  ;;  %v21990_v18 = vpop.f32.mrb[114].mxu0  ;;  %v16999_v19 = vpop.f32.mrb[114].mxu1 }
 0x562   : > { %18377 = vpow2.f32 %v13997_v15  ;;  %v12216_v49 = vadd.f32 %v16999_v19, %v21970_v11  ;;  %v21993_v36 = vpop.f32.mrb[115].mxu0  ;;  %v11974_v34 = vpop.f32.mrb[115].mxu1 }
 0x563   : > { %18379 = vpow2.f32 %v13996_v62  ;;  %v12215_v43 = vadd.f32 %v21970_v11, %v11974_v34  ;;  %v12169_v34 = vadd.f32 %v21978_v46, %v22008_v32 }
 0x564   : > { %v18370_v60 = vpop.eup %18369  ;;  %v13999_v26 = vmul.f32 -1.442695, %v12216_v49 }
 0x565   : > { %v18372_v1 = vpop.eup %18371  ;;  %v12354_v47 = vadd.f32 1.0, %v18370_v60  ;;  %v13998_v63 = vmul.f32 -1.442695, %v12215_v43  ;;  %v21996_v37 = vpop.f32.mrb[116].mxu0 }
 0x566   : > { %v17002_v30 = vpop.f32.mrb[116].mxu1  ;;  %v12353_v33 = vadd.f32 1.0, %v18372_v1  ;;  %18381 = vpow2.f32 %v13999_v26  ;;  %v21999_v2 = vpop.f32.mrb[117].mxu0  ;;  %v12168_v1 = vadd.f32 %v22008_v32, %v21981_v12 }
 0x567   : > { %v12218_v35 = vadd.f32 %v17002_v30, %v21970_v11  ;;  %v11984_v29 = vpop.f32.mrb[117].mxu1  ;;  %18383 = vrcp.f32 %v12354_v47 }
 0x568   : > { %v12217_v22 = vadd.f32 %v21970_v11, %v11984_v29  ;;  %v18374_v3 = vpop.eup %18373  ;;  %18385 = vrcp.f32 %v12353_v33 }
 0x569   : > { %v14001_v24 = vmul.f32 -1.442695, %v12218_v35  ;;  %v18376_v16 = vpop.eup %18375  ;;  %v12356_v56 = vadd.f32 1.0, %v18374_v3  ;;  %18387 = vpow2.f32 %v13998_v63  ;;  %v22002_v41 = vpop.f32.mrb[118].mxu0 }
 0x56a   : > { %v14000_v28 = vmul.f32 -1.442695, %v12217_v22  ;;  %v17005_v45 = vpop.f32.mrb[118].mxu1  ;;  %v12355_v52 = vadd.f32 1.0, %v18376_v16  ;;  %v22005_v21 = vpop.f32.mrb[119].mxu0 }
 0x56b   : > { %18389 = vpow2.f32 %v14001_v24  ;;  %v12220_v9 = vadd.f32 %v17005_v45, %v21970_v11  ;;  %v11994_v20 = vpop.f32.mrb[119].mxu1 }
 0x56c   : > { %18391 = vrcp.f32 %v12356_v56  ;;  %v12219_v0 = vadd.f32 %v21970_v11, %v11994_v20  ;;  %v18378_v27 = vpop.eup %18377  ;;  %v12170_v20 = vadd.f32 %v22008_v32, %v21987_v50 }
 0x56d   : > { %18393 = vrcp.f32 %v12355_v52  ;;  %v14003_v51 = vmul.f32 -1.442695, %v12220_v9  ;;  %v18380_v40 = vpop.eup %18379  ;;  %v12358_v42 = vadd.f32 1.0, %v18378_v27  ;;  %v22010_v38 = vpop.f32.mrb[120].mxu0 }
 0x56e   : > { %18395 = vpow2.f32 %v14000_v28  ;;  %v14002_v57 = vmul.f32 -1.442695, %v12219_v0  ;;  %v17008_v58 = vpop.f32.mrb[120].mxu1  ;;  %v12357_v54 = vadd.f32 1.0, %v18380_v40  ;;  %v22013_v53 = vpop.f32.mrb[121].mxu0  ;;  %v12171_v28 = vadd.f32 %v21984_v4, %v22008_v32 }
 0x56f   : > { %18397 = vpow2.f32 %v14003_v51  ;;  %v12222_v31 = vadd.f32 %v17008_v58, %v21970_v11  ;;  %v12004_v13 = vpop.f32.mrb[121].mxu1 }
 0x570   : > { %18399 = vrcp.f32 %v12358_v42  ;;  %v12221_v25 = vadd.f32 %v21970_v11, %v12004_v13  ;;  %v18382_v10 = vpop.eup %18381 }
 0x571   : > { %18401 = vrcp.f32 %v12357_v54  ;;  %v14005_v39 = vmul.f32 -1.442695, %v12222_v31  ;;  %v18384_v14 = vpop.eup %18383  ;;  %v12360_v7 = vadd.f32 1.0, %v18382_v10  ;;  %v22020_v61 = vpop.f32.mrb[122].mxu0  ;;  %v12173_v10 = vadd.f32 %v21990_v18, %v22008_v32 }
 0x572   : > { %18403 = vpow2.f32 %v14002_v57  ;;  %v14004_v44 = vmul.f32 -1.442695, %v12221_v25  ;;  %v17011_v55 = vpop.f32.mrb[122].mxu1  ;;  %v18386_v8 = vpop.eup %18385  ;;  %v12462_v23 = vmul.f32 %v18384_v14, %v12167_v48 }
 0x573   : > { %18405 = vpow2.f32 %v14005_v39  ;;  %v12224_v6 = vadd.f32 %v17011_v55, %v21970_v11  ;;  %v22023_v59 = vpop.f32.mrb[123].mxu0  ;;  %v12014_v15 = vpop.f32.mrb[123].mxu1  ;;  %v12461_v19 = vmul.f32 %v18386_v8, %v12166_v5 }
 0x574   : > { %v18388_v62 = vpop.eup %18387  ;;  %18407 = vrcp.f32 %v12360_v7  ;;  %v12223_v17 = vadd.f32 %v21970_v11, %v12014_v15  ;;  %14029 = vst.msk [vmem:[%s19807_s23 + $0x368] sm:$0xff] %vm3284_vm1, %v12462_v23 }
 0x575   : > { %v18390_v49 = vpop.eup %18389  ;;  %v12359_v43 = vadd.f32 1.0, %v18388_v62  ;;  %18409 = vpow2.f32 %v14004_v44  ;;  %v14007_v60 = vmul.f32 -1.442695, %v12224_v6  ;;  %14028 = vst.msk [vmem:[%s19807_s23 + $0x360] sm:$0xff] %vm3284_vm1, %v12461_v19  ;;  %v22034_v30 = vpop.f32.mrb[124].mxu0  ;;  %v12172_v62 = vadd.f32 %v22008_v32, %v21993_v36 }
 0x576   : > { %v18392_v26 = vpop.eup %18391  ;;  %v12362_v47 = vadd.f32 1.0, %v18390_v49  ;;  %v14006_v63 = vmul.f32 -1.442695, %v12223_v17  ;;  %v17014_v33 = vpop.f32.mrb[124].mxu1 }
 0x577   : > { %v18394_v35 = vpop.eup %18393  ;;  %v12464_v29 = vmul.f32 %v18392_v26, %v12169_v34  ;;  %18411 = vrcp.f32 %v12359_v43  ;;  %v12226_v46 = vadd.f32 %v17014_v33, %v21970_v11  ;;  %v22037_v22 = vpop.f32.mrb[125].mxu0  ;;  %v12175_v34 = vadd.f32 %v21996_v37, %v22008_v32 }
 0x578   : > { %v12024_v3 = vpop.f32.mrb[125].mxu1  ;;  %v18396_v24 = vpop.eup %18395  ;;  %v12463_v16 = vmul.f32 %v18394_v35, %v12168_v1  ;;  %18413 = vrcp.f32 %v12362_v47 }
 0x579   : > { %v12225_v12 = vadd.f32 %v21970_v11, %v12024_v3  ;;  %v18398_v56 = vpop.eup %18397  ;;  %14031 = vst.msk [vmem:[%s19807_s23 + $0x378] sm:$0xff] %vm3284_vm1, %v12464_v29  ;;  %v12361_v45 = vadd.f32 1.0, %v18396_v24  ;;  %18415 = vpow2.f32 %v14007_v60  ;;  %v14009_v52 = vmul.f32 -1.442695, %v12226_v46  ;;  %v22048_v51 = vpop.f32.mrb[126].mxu0 }
 0x57a   : > { %v18400_v9 = vpop.eup %18399  ;;  %14030 = vst.msk [vmem:[%s19807_s23 + $0x370] sm:$0xff] %vm3284_vm1, %v12463_v16  ;;  %v12364_v0 = vadd.f32 1.0, %v18398_v56  ;;  %18417 = vpow2.f32 %v14006_v63  ;;  %v17017_v40 = vpop.f32.mrb[126].mxu1  ;;  %v12174_v3 = vadd.f32 %v22008_v32, %v21999_v2  ;;  %v12177_v56 = vadd.f32 %v22002_v41, %v22008_v32 }
 0x57b   : > { %v14008_v27 = vmul.f32 -1.442695, %v12225_v12  ;;  %v18402_v42 = vpop.eup %18401  ;;  %v12466_v57 = vmul.f32 %v18400_v9, %v12171_v28  ;;  %18419 = vrcp.f32 %v12361_v45  ;;  %v12228_v4 = vadd.f32 %v17017_v40, %v21970_v11  ;;  %v22051_v58 = vpop.f32.mrb[127].mxu0 }
 0x57c   : > { %v12034_v54 = vpop.f32.mrb[127].mxu1  ;;  %v18404_v31 = vpop.eup %18403  ;;  %v12465_v13 = vmul.f32 %v18402_v42, %v12170_v20  ;;  %18421 = vrcp.f32 %v12364_v0 }
 0x57d   : > { %v12227_v50 = vadd.f32 %v21970_v11, %v12034_v54  ;;  %v18406_v25 = vpop.eup %18405  ;;  %14033 = vst.msk [vmem:[%s19807_s23 + $0x388] sm:$0xff] %vm3284_vm1, %v12466_v57  ;;  %v12363_v48 = vadd.f32 1.0, %v18404_v31  ;;  %18423 = vpow2.f32 %v14009_v52  ;;  %v14011_v39 = vmul.f32 -1.442695, %v12228_v4  ;;  %v22060_v7 = vpop.f32.mrb[128].mxu0 }
 0x57e   : > { %v18408_v14 = vpop.eup %18407  ;;  %14032 = vst.msk [vmem:[%s19807_s23 + $0x380] sm:$0xff] %vm3284_vm1, %v12465_v13  ;;  %v12366_v5 = vadd.f32 1.0, %v18406_v25  ;;  %18425 = vpow2.f32 %v14008_v27  ;;  %v17020_v44 = vpop.f32.mrb[128].mxu1  ;;  %v12176_v54 = vadd.f32 %v22008_v32, %v22005_v21  ;;  %v12179_v25 = vadd.f32 %v22010_v38, %v22008_v32 }
 0x57f   : > { %v18410_v55 = vpop.eup %18409  ;;  %v12468_v8 = vmul.f32 %v18408_v14, %v12173_v10  ;;  %18427 = vrcp.f32 %v12363_v48  ;;  %v14010_v23 = vmul.f32 -1.442695, %v12227_v50  ;;  %v12230_v6 = vadd.f32 %v17020_v44, %v21970_v11  ;;  %v22063_v15 = vpop.f32.mrb[129].mxu0 }
 0x580   : > { %v12044_v18 = vpop.f32.mrb[129].mxu1  ;;  %18429 = vrcp.f32 %v12366_v5  ;;  %v12365_v19 = vadd.f32 1.0, %v18410_v55 }
 0x581   : > { %v12229_v17 = vadd.f32 %v21970_v11, %v12044_v18  ;;  %v18412_v49 = vpop.eup %18411  ;;  %14035 = vst.msk [vmem:[%s19807_s23 + $0x398] sm:$0xff] %vm3284_vm1, %v12468_v8  ;;  %18431 = vpow2.f32 %v14011_v39  ;;  %v14013_v43 = vmul.f32 -1.442695, %v12230_v6  ;;  %v22072_v47 = vpop.f32.mrb[130].mxu0 }
 0x582   : > { %v18414_v60 = vpop.eup %18413  ;;  %v12467_v26 = vmul.f32 %v18412_v49, %v12172_v62  ;;  %18433 = vrcp.f32 %v12365_v19  ;;  %v17023_v36 = vpop.f32.mrb[130].mxu1 }
 0x583   : > { %v14012_v1 = vmul.f32 -1.442695, %v12229_v17  ;;  %v18416_v63 = vpop.eup %18415  ;;  %v12470_v33 = vmul.f32 %v18414_v60, %v12175_v34  ;;  %18435 = vpow2.f32 %v14010_v23  ;;  %v12232_v35 = vadd.f32 %v17023_v36, %v21970_v11  ;;  %v22075_v29 = vpop.f32.mrb[131].mxu0 }
 0x584   : > { %v12054_v46 = vpop.f32.mrb[131].mxu1  ;;  %v18418_v37 = vpop.eup %18417  ;;  %14034 = vst.msk [vmem:[%s19807_s23 + $0x390] sm:$0xff] %vm3284_vm1, %v12467_v26  ;;  %v12368_v24 = vadd.f32 1.0, %v18416_v63  ;;  %18437 = vpow2.f32 %v14013_v43  ;;  %v12178_v23 = vadd.f32 %v22008_v32, %v22013_v53  ;;  %v12181_v60 = vadd.f32 %v22020_v61, %v22008_v32 }
 0x585   : > { %v12231_v16 = vadd.f32 %v21970_v11, %v12054_v46  ;;  %v18420_v12 = vpop.eup %18419  ;;  %14037 = vst.msk [vmem:[%s19807_s23 + $0x3a8] sm:$0xff] %vm3284_vm1, %v12470_v33  ;;  %v12367_v28 = vadd.f32 1.0, %v18418_v37  ;;  %18439 = vpow2.f32 %v14012_v1  ;;  %v14015_v45 = vmul.f32 -1.442695, %v12232_v35  ;;  %v22086_v2 = vpop.f32.mrb[132].mxu0 }
 0x586   : > { %v18422_v52 = vpop.eup %18421  ;;  %v12469_v9 = vmul.f32 %v18420_v12, %v12174_v3  ;;  %18441 = vrcp.f32 %v12368_v24  ;;  %v17026_v0 = vpop.f32.mrb[132].mxu1  ;;  %v12180_v61 = vadd.f32 %v22008_v32, %v22023_v59 }
 0x587   : > { %v14014_v20 = vmul.f32 -1.442695, %v12231_v16  ;;  %v18424_v27 = vpop.eup %18423  ;;  %v12472_v40 = vmul.f32 %v18422_v52, %v12177_v56  ;;  %18443 = vrcp.f32 %v12367_v28  ;;  %v12234_v42 = vadd.f32 %v17026_v0, %v21970_v11  ;;  %v22089_v57 = vpop.f32.mrb[133].mxu0 }
 0x588   : > { %v12064_v41 = vpop.f32.mrb[133].mxu1  ;;  %v18426_v4 = vpop.eup %18425  ;;  %14036 = vst.msk [vmem:[%s19807_s23 + $0x3a0] sm:$0xff] %vm3284_vm1, %v12469_v9  ;;  %v12370_v31 = vadd.f32 1.0, %v18424_v27  ;;  %18445 = vpow2.f32 %v14015_v45 }
 0x589   : > { %v12233_v13 = vadd.f32 %v21970_v11, %v12064_v41  ;;  %v18428_v50 = vpop.eup %18427  ;;  %14039 = vst.msk [vmem:[%s19807_s23 + $0x3b8] sm:$0xff] %vm3284_vm1, %v12472_v40  ;;  %v12369_v10 = vadd.f32 1.0, %v18426_v4  ;;  %18447 = vpow2.f32 %v14014_v20  ;;  %v14017_v48 = vmul.f32 -1.442695, %v12234_v42  ;;  %v22100_v21 = vpop.f32.mrb[134].mxu0 }
 0x58a   : > { %v18430_v39 = vpop.eup %18429  ;;  %v12471_v14 = vmul.f32 %v18428_v50, %v12176_v54  ;;  %18449 = vrcp.f32 %v12370_v31  ;;  %v17029_v44 = vpop.f32.mrb[134].mxu1  ;;  %v12183_v20 = vadd.f32 %v22034_v30, %v22008_v32  ;;  %v12182_v30 = vadd.f32 %v22008_v32, %v22037_v22 }
 0x58b   : > { %v14016_v5 = vmul.f32 -1.442695, %v12233_v13  ;;  %v18432_v55 = vpop.eup %18431  ;;  %v12474_v8 = vmul.f32 %v18430_v39, %v12179_v25  ;;  %18451 = vrcp.f32 %v12369_v10  ;;  %v12236_v38 = vadd.f32 %v17029_v44, %v21970_v11  ;;  %v22105_v6 = vpop.f32.mrb[135].mxu0 }
 0x58c   : > { %v12074_v18 = vpop.f32.mrb[135].mxu1  ;;  %v18434_v62 = vpop.eup %18433  ;;  %14038 = vst.msk [vmem:[%s19807_s23 + $0x3b0] sm:$0xff] %vm3284_vm1, %v12471_v14  ;;  %v12372_v19 = vadd.f32 1.0, %v18432_v55  ;;  %18453 = vpow2.f32 %v14017_v48 }
 0x58d   : > { %v12235_v17 = vadd.f32 %v21970_v11, %v12074_v18  ;;  %v18436_v49 = vpop.eup %18435  ;;  %14041 = vst.msk [vmem:[%s19807_s23 + $0x3c8] sm:$0xff] %vm3284_vm1, %v12474_v8  ;;  %v12473_v34 = vmul.f32 %v18434_v62, %v12178_v23  ;;  %18455 = vpow2.f32 %v14016_v5  ;;  %v14019_v53 = vmul.f32 -1.442695, %v12236_v38  ;;  %v22114_v1 = vpop.f32.mrb[136].mxu0 }
 0x58e   : > { %v18438_v43 = vpop.eup %18437  ;;  %18457 = vrcp.f32 %v12372_v19  ;;  %v12371_v26 = vadd.f32 1.0, %v18436_v49  ;;  %v17032_v36 = vpop.f32.mrb[136].mxu1  ;;  %v12185_v5 = vadd.f32 %v22048_v51, %v22008_v32 }
 0x58f   : > { %v18440_v63 = vpop.eup %18439  ;;  %14040 = vst.msk [vmem:[%s19807_s23 + $0x3c0] sm:$0xff] %vm3284_vm1, %v12473_v34  ;;  %v12374_v33 = vadd.f32 1.0, %v18438_v43  ;;  %18459 = vpow2.f32 %v14019_v53  ;;  %v14018_v35 = vmul.f32 -1.442695, %v12235_v17  ;;  %v12238_v46 = vadd.f32 %v17032_v36, %v21970_v11  ;;  %v22119_v37 = vpop.f32.mrb[137].mxu0 }
 0x590   : > { %v12084_v3 = vpop.f32.mrb[137].mxu1  ;;  %v18442_v24 = vpop.eup %18441  ;;  %18461 = vrcp.f32 %v12371_v26  ;;  %v12373_v16 = vadd.f32 1.0, %v18440_v63  ;;  %v12184_v53 = vadd.f32 %v22008_v32, %v22051_v58  ;;  %v12187_v26 = vadd.f32 %v22060_v7, %v22008_v32 }
 0x591   : > { %v12237_v12 = vadd.f32 %v21970_v11, %v12084_v3  ;;  %v18444_v56 = vpop.eup %18443  ;;  %v12476_v28 = vmul.f32 %v18442_v24, %v12181_v60  ;;  %18463 = vrcp.f32 %v12374_v33  ;;  %v14021_v45 = vmul.f32 -1.442695, %v12238_v46  ;;  %v22126_v0 = vpop.f32.mrb[138].mxu0 }
 0x592   : > { %v18446_v52 = vpop.eup %18445  ;;  %v12475_v9 = vmul.f32 %v18444_v56, %v12180_v61  ;;  %18465 = vrcp.f32 %v12373_v16  ;;  %v17035_v27 = vpop.f32.mrb[138].mxu1  ;;  %v12186_v58 = vadd.f32 %v22008_v32, %v22063_v15  ;;  %v12189_v15 = vadd.f32 %v22072_v47, %v22008_v32 }
 0x593   : > { %v18448_v40 = vpop.eup %18447  ;;  %14043 = vst.msk [vmem:[%s19807_s23 + $0x3d8] sm:$0xff] %vm3284_vm1, %v12476_v28  ;;  %v12376_v59 = vadd.f32 1.0, %v18446_v52  ;;  %18467 = vpow2.f32 %v14018_v35  ;;  %v14020_v42 = vmul.f32 -1.442695, %v12237_v12  ;;  %v12240_v41 = vadd.f32 %v17035_v27, %v21970_v11  ;;  %v22131_v4 = vpop.f32.mrb[139].mxu0 }
 0x594   : > { %v12094_v54 = vpop.f32.mrb[139].mxu1  ;;  %v18450_v31 = vpop.eup %18449  ;;  %14042 = vst.msk [vmem:[%s19807_s23 + $0x3d0] sm:$0xff] %vm3284_vm1, %v12475_v9  ;;  %v12375_v13 = vadd.f32 1.0, %v18448_v40  ;;  %18469 = vpow2.f32 %v14021_v45 }
 0x595   : > { %v12239_v50 = vadd.f32 %v21970_v11, %v12094_v54  ;;  %v18452_v25 = vpop.eup %18451  ;;  %v12478_v10 = vmul.f32 %v18450_v31, %v12183_v20  ;;  %18471 = vrcp.f32 %v12376_v59  ;;  %v14023_v48 = vmul.f32 -1.442695, %v12240_v41  ;;  %v22140_v44 = vpop.f32.mrb[140].mxu0 }
 0x596   : > { %v18454_v39 = vpop.eup %18453  ;;  %v12477_v14 = vmul.f32 %v18452_v25, %v12182_v30  ;;  %18473 = vrcp.f32 %v12375_v13  ;;  %v17038_v55 = vpop.f32.mrb[140].mxu1  ;;  %v12191_v30 = vadd.f32 %v22086_v2, %v22008_v32 }
 0x597   : > { %v18456_v8 = vpop.eup %18455  ;;  %14045 = vst.msk [vmem:[%s19807_s23 + $0x3e8] sm:$0xff] %vm3284_vm1, %v12478_v10  ;;  %v12378_v22 = vadd.f32 1.0, %v18454_v39  ;;  %18475 = vpow2.f32 %v14020_v42  ;;  %v14022_v23 = vmul.f32 -1.442695, %v12239_v50  ;;  %v12242_v38 = vadd.f32 %v17038_v55, %v21970_v11  ;;  %v22145_v18 = vpop.f32.mrb[141].mxu0 }
 0x598   : > { %v12104_v62 = vpop.f32.mrb[141].mxu1  ;;  %v18458_v19 = vpop.eup %18457  ;;  %14044 = vst.msk [vmem:[%s19807_s23 + $0x3e0] sm:$0xff] %vm3284_vm1, %v12477_v14  ;;  %v12377_v17 = vadd.f32 1.0, %v18456_v8  ;;  %18477 = vpow2.f32 %v14023_v48 }
 0x599   : > { %v12241_v51 = vadd.f32 %v21970_v11, %v12104_v62  ;;  %v18460_v49 = vpop.eup %18459  ;;  %v12480_v34 = vmul.f32 %v18458_v19, %v12185_v5  ;;  %18479 = vrcp.f32 %v12378_v22  ;;  %v14025_v43 = vmul.f32 -1.442695, %v12242_v38  ;;  %v22154_v33 = vpop.f32.mrb[142].mxu0 }
 0x59a   : > { %v18462_v60 = vpop.eup %18461  ;;  %18481 = vrcp.f32 %v12377_v17  ;;  %v12380_v36 = vadd.f32 1.0, %v18460_v49  ;;  %v17041_v35 = vpop.f32.mrb[142].mxu1  ;;  %v12193_v5 = vadd.f32 %v22100_v21, %v22008_v32  ;;  %v12192_v62 = vadd.f32 %v22008_v32, %v22105_v6 }
 0x59b   : > { %v14024_v63 = vmul.f32 -1.442695, %v12241_v51  ;;  %v18464_v46 = vpop.eup %18463  ;;  %14047 = vst.msk [vmem:[%s19807_s23 + $0x3f8] sm:$0xff] %vm3284_vm1, %v12480_v34  ;;  %v12479_v3 = vmul.f32 %v18462_v60, %v12184_v53  ;;  %18483 = vpow2.f32 %v14022_v23  ;;  %v12244_v24 = vadd.f32 %v17041_v35, %v21970_v11  ;;  %v22161_v61 = vpop.f32.mrb[143].mxu0 }
 0x59c   : > { %v12114_v7 = vpop.f32.mrb[143].mxu1  ;;  %v18466_v16 = vpop.eup %18465  ;;  %v12482_v12 = vmul.f32 %v18464_v46, %v12187_v26  ;;  %18485 = vrcp.f32 %v12380_v36  ;;  %v12195_v17 = vadd.f32 %v22114_v1, %v22008_v32  ;;  %v12194_v6 = vadd.f32 %v22008_v32, %v22119_v37 }
 0x59d   : > { %v12243_v56 = vadd.f32 %v21970_v11, %v12114_v7  ;;  %v18468_v28 = vpop.eup %18467  ;;  %14046 = vst.msk [vmem:[%s19807_s23 + $0x3f0] sm:$0xff] %vm3284_vm1, %v12479_v3  ;;  %v12481_v45 = vmul.f32 %v18466_v16, %v12186_v58  ;;  %18487 = vpow2.f32 %v14025_v43  ;;  %v14027_v52 = vmul.f32 -1.442695, %v12244_v24 }
 0x59e   : > { %v18470_v9 = vpop.eup %18469  ;;  %14049 = vst.msk [vmem:[%s19807_s23 + $0x408] sm:$0xff] %vm3284_vm1, %v12482_v12  ;;  %v12379_v20 = vadd.f32 1.0, %v18468_v28  ;;  %18489 = vpow2.f32 %v14024_v63  ;;  %v12188_v11 = vadd.f32 %v22008_v32, %v22075_v29  ;;  %v12190_v29 = vadd.f32 %v22008_v32, %v22089_v57 }
 0x59f   : > { %v14026_v27 = vmul.f32 -1.442695, %v12243_v56  ;;  %v18472_v40 = vpop.eup %18471  ;;  %14048 = vst.msk [vmem:[%s19807_s23 + $0x400] sm:$0xff] %vm3284_vm1, %v12481_v45  ;;  %v12382_v59 = vadd.f32 1.0, %v18470_v9  ;;  %18491 = vpow2.f32 %v14027_v52  ;;  %v12197_v1 = vadd.f32 %v22126_v0, %v22008_v32 }
 0x5a0   : > { %v18474_v42 = vpop.eup %18473  ;;  %v12484_v41 = vmul.f32 %v18472_v40, %v12189_v15  ;;  %18493 = vrcp.f32 %v12379_v20  ;;  %v12196_v46 = vadd.f32 %v22008_v32, %v22131_v4  ;;  %v12199_v58 = vadd.f32 %v22140_v44, %v22008_v32 }
 0x5a1   : > { %v18476_v54 = vpop.eup %18475  ;;  %v12483_v31 = vmul.f32 %v18474_v42, %v12188_v11  ;;  %18495 = vrcp.f32 %v12382_v59  ;;  %v12198_v24 = vadd.f32 %v22008_v32, %v22145_v18  ;;  %v12201_v4 = vadd.f32 %v22154_v33, %v22008_v32 }
 0x5a2   : > { %v18478_v47 = vpop.eup %18477  ;;  %14051 = vst.msk [vmem:[%s19807_s23 + $0x418] sm:$0xff] %vm3284_vm1, %v12484_v41  ;;  %v12381_v13 = vadd.f32 1.0, %v18476_v54  ;;  %18497 = vpow2.f32 %v14026_v27  ;;  %v12200_v44 = vadd.f32 %v22008_v32, %v22161_v61 }
 0x5a3   : > { %v18480_v50 = vpop.eup %18479  ;;  %14050 = vst.msk [vmem:[%s19807_s23 + $0x410] sm:$0xff] %vm3284_vm1, %v12483_v31  ;;  %v12384_v25 = vadd.f32 1.0, %v18478_v47 }
 0x5a4   : > { %v18482_v10 = vpop.eup %18481  ;;  %v12486_v48 = vmul.f32 %v18480_v50, %v12191_v30  ;;  %18499 = vrcp.f32 %v12381_v13 }
 0x5a5   : > { %v18484_v39 = vpop.eup %18483  ;;  %v12485_v14 = vmul.f32 %v18482_v10, %v12190_v29  ;;  %18501 = vrcp.f32 %v12384_v25 }
 0x5a6   : > { %v18486_v2 = vpop.eup %18485  ;;  %14053 = vst.msk [vmem:[%s19807_s23 + $0x428] sm:$0xff] %vm3284_vm1, %v12486_v48  ;;  %v12383_v55 = vadd.f32 1.0, %v18484_v39 }
 0x5a7   : > { %v18488_v8 = vpop.eup %18487  ;;  %14052 = vst.msk [vmem:[%s19807_s23 + $0x420] sm:$0xff] %vm3284_vm1, %v12485_v14  ;;  %v12488_v22 = vmul.f32 %v18486_v2, %v12193_v5 }
 0x5a8   : > { %v18490_v57 = vpop.eup %18489  ;;  %18503 = vrcp.f32 %v12383_v55  ;;  %v12386_v23 = vadd.f32 1.0, %v18488_v8 }
 0x5a9   : > { %v18492_v38 = vpop.eup %18491  ;;  %14055 = vst.msk [vmem:[%s19807_s23 + $0x438] sm:$0xff] %vm3284_vm1, %v12488_v22  ;;  %v12385_v21 = vadd.f32 1.0, %v18490_v57 }
 0x5aa   : > { %v18494_v19 = vpop.eup %18493  ;;  %18505 = vrcp.f32 %v12386_v23  ;;  %v12388_v51 = vadd.f32 1.0, %v18492_v38 }
 0x5ab   : > { %v18496_v49 = vpop.eup %18495  ;;  %v12487_v34 = vmul.f32 %v18494_v19, %v12192_v62  ;;  %18507 = vrcp.f32 %v12385_v21 }
 0x5ac   : > { %v18498_v53 = vpop.eup %18497  ;;  %v12490_v43 = vmul.f32 %v18496_v49, %v12195_v17  ;;  %18509 = vrcp.f32 %v12388_v51 }
 0x5ad   : > { %14054 = vst.msk [vmem:[%s19807_s23 + $0x430] sm:$0xff] %vm3284_vm1, %v12487_v34  ;;  %v12387_v60 = vadd.f32 1.0, %v18498_v53 }
 0x5ae   : > { %v18500_v26 = vpop.eup %18499  ;;  %14057 = vst.msk [vmem:[%s19807_s23 + $0x448] sm:$0xff] %vm3284_vm1, %v12490_v43 }
 0x5af   : > { %v18502_v36 = vpop.eup %18501  ;;  %v12489_v63 = vmul.f32 %v18500_v26, %v12194_v6  ;;  %18511 = vrcp.f32 %v12387_v60 }
 0x5b0   : > { %v12492_v35 = vmul.f32 %v18502_v36, %v12197_v1 }
 0x5b1   : > { %14056 = vst.msk [vmem:[%s19807_s23 + $0x440] sm:$0xff] %vm3284_vm1, %v12489_v63 }
 0x5b2   : > { %v18504_v37 = vpop.eup %18503  ;;  %14059 = vst.msk [vmem:[%s19807_s23 + $0x458] sm:$0xff] %vm3284_vm1, %v12492_v35 }
 0x5b3   : > { %v12491_v3 = vmul.f32 %v18504_v37, %v12196_v46 }
 0x5b4   : > { %v18506_v0 = vpop.eup %18505 }
 0x5b5   : > { %v18508_v7 = vpop.eup %18507  ;;  %14058 = vst.msk [vmem:[%s19807_s23 + $0x450] sm:$0xff] %vm3284_vm1, %v12491_v3  ;;  %v12494_v16 = vmul.f32 %v18506_v0, %v12199_v58 }
 0x5b6   : > { %v18510_v12 = vpop.eup %18509  ;;  %v12493_v56 = vmul.f32 %v18508_v7, %v12198_v24 }
 0x5b7   : > { %14061 = vst.msk [vmem:[%s19807_s23 + $0x468] sm:$0xff] %vm3284_vm1, %v12494_v16  ;;  %v12496_v28 = vmul.f32 %v18510_v12, %v12201_v4 }
 0x5b8   : > { %14060 = vst.msk [vmem:[%s19807_s23 + $0x460] sm:$0xff] %vm3284_vm1, %v12493_v56 }
 0x5b9   : > { %v18512_v45 = vpop.eup %18511  ;;  %14063 = vst.msk [vmem:[%s19807_s23 + $0x478] sm:$0xff] %vm3284_vm1, %v12496_v28 }
 0x5ba   : > { %v12495_v18 = vmul.f32 %v18512_v45, %v12200_v44 }
 0x5bc   : > { %14062 = vst.msk [vmem:[%s19807_s23 + $0x470] sm:$0xff] %vm3284_vm1, %v12495_v18 }
 0x5bd PF: > { %s17_s18 = sadd.s32 1, %s18593_s18  }
 0x5be   : > { %p14_p5 = scmp.ge.s32.totalorder %s17_s18, 4  }
 0x5c0   :  { %16 = sbr.rel (!%p14_p5) target bundleno = 2 (0x2), region = 112 }
 0x5c7   :  { %12555 = vsyncpa [#allocation3], 1 }
 0x5c8   :  { %12557 = vsyncpa [#allocation3 + $0x1], 1 }
 0x5c9   :  { %12558 = vsyncpa [#allocation5], 1 }

</bundles_post_ra>
